<compile_context>
chip_gen: v7x
topology: tpu7x:2x2x1
jax: 0.10.0
libtpu: 0.0.40
codegen_flags: <defaults>
</compile_context>

<pallas_src>
import numpy as np
import jax
import jax.numpy as jnp
from jax.experimental import pallas as pl
from jax.experimental.pallas import tpu as pltpu

BN_EPS = 1e-5


# ------------------------------ small helpers ------------------------------ #

def _round_up(v, m):
    return ((v + m - 1) // m) * m


def _full_spec(shape):
    nd = len(shape)
    return pl.BlockSpec(shape, lambda i, _nd=nd: (0,) * _nd)


def _hidden_sizes(in_size, out_size, layer_no):
    """Exactly the schedule computed in CovDecoder.__init__."""
    sx = (out_size[0] / in_size[0]) ** (1.0 / (layer_no + 1))
    sy = (out_size[1] / in_size[1]) ** (1.0 / (layer_no + 1))
    return [(int(np.ceil(sx ** n * in_size[0])), int(np.ceil(sy ** n * in_size[1])))
            for n in range(1, layer_no + 1)] + [tuple(out_size)]


def _gather_matrices(in_hw, out_hw):
    """(9, Hi*Wi, Ho*Wo) one-hot matrices: nearest upsample + 3x3 zero halo + tap shift.

    X (C, Hi*Wi) @ G[t]  ==  tap t of the padded, upsampled input, (C, Ho*Wo).
    For the last conv stage (in_hw == out_hw) this degenerates to identity+halo.
    """
    hi, wi = in_hw
    ho, wo = out_hw
    ih = np.minimum(np.floor(np.arange(ho) * (hi / ho)).astype(np.int64), hi - 1)
    iw = np.minimum(np.floor(np.arange(wo) * (wi / wo)).astype(np.int64), wi - 1)
    g = np.zeros((9, hi * wi, ho * wo), np.float32)
    for t in range(9):
        dy, dx = t // 3 - 1, t % 3 - 1
        for a in range(ho):
            ya = a + dy
            if ya < 0 or ya >= ho:
                continue                      # zero halo row -> all-zero columns
            row_base = int(ih[ya]) * wi
            for b in range(wo):
                xb = b + dx
                if 0 <= xb < wo:
                    g[t, row_base + int(iw[xb]), a * wo + b] = 1.0
    return g


def _pack_conv_weight(w, cin_p, cout_p):
    """(cout, cin, 3, 3) torch layout -> (9, cout_p, cin_p) bf16, tap-major."""
    w = np.asarray(w, np.float32)
    cout, cin = w.shape[:2]
    packed = np.zeros((9, cout_p, cin_p), np.float32)
    for t in range(9):
        packed[t, :cout, :cin] = w[:, :, t // 3, t % 3]
    return jnp.asarray(packed, jnp.bfloat16)


# ------------------------------- Pallas kernel ------------------------------ #

def _make_decoder_kernel(n_stages):
    def kernel(*refs):
        x_ref = refs[0]
        g_refs = refs[1:1 + n_stages]                       # (9, HWin, HWout) bf16
        w_refs = refs[1 + n_stages:1 + 2 * n_stages]        # (9, Cout_p, Cin_p) bf16
        (bias_ref, gamma_ref, beta_ref,
         wend_ref, bend_ref, o_ref) = refs[1 + 2 * n_stages:]

        n_batch = x_ref.shape[0]
        # per-sample activations: channels on sublanes, flattened spatial on lanes
        acts = [x_ref[n] for n in range(n_batch)]           # (C_p, Hin*Win) bf16

        for s in range(n_stages):
            g_ref = g_refs[s]
            w_ref = w_refs[s]
            hw_out = g_ref.shape[2]
            cout_p = w_ref.shape[1]
            bias = bias_ref[s]                               # (Cout_p, 1) f32

            # conv3x3 (with upsample + halo folded into G) + bias + ReLU
            ys = []
            for n in range(n_batch):
                xn = acts[n]
                acc = jnp.zeros((cout_p, hw_out), jnp.float32)
                for t in range(9):
                    tap = jnp.dot(xn, g_ref[t],
                                  preferred_element_type=jnp.float32)
                    acc = acc + jnp.dot(w_ref[t], tap.astype(jnp.bfloat16),
                                        preferred_element_type=jnp.float32)
                ys.append(jnp.maximum(acc + bias, 0.0))

            # BatchNorm2d, training mode: single-pass batch stats over (N, H, W),
            # biased variance, eps=1e-5, affine.
            inv_cnt = 1.0 / float(n_batch * hw_out)
            ssum = ys[0].sum(axis=1, keepdims=True)
            sqsum = (ys[0] * ys[0]).sum(axis=1, keepdims=True)
            for n in range(1, n_batch):
                ssum = ssum + ys[n].sum(axis=1, keepdims=True)
                sqsum = sqsum + (ys[n] * ys[n]).sum(axis=1, keepdims=True)
            mean = ssum * inv_cnt
            var = jnp.maximum(sqsum * inv_cnt - mean * mean, 0.0)
            scale = gamma_ref[s] * jax.lax.rsqrt(var + BN_EPS)
            shift = beta_ref[s] - mean * scale
            acts = [(y * scale + shift).astype(jnp.bfloat16) for y in ys]

        # conv_end: 1x1 conv + bias, no activation.  Lane-dense (Ho*Wo) store.
        wend = wend_ref[...]
        bend = bend_ref[...]
        for n in range(n_batch):
            o_ref[n] = (jnp.dot(wend, acts[n], preferred_element_type=jnp.float32)
                        + bend)

    return kernel


# ----------------------------- builder / wrapper ---------------------------- #

def build_cov_decoder(params, *, nch_in, nch_h, nch_out, layer_no, in_size, out_size):
    n_stages = layer_no + 2
    hidden = _hidden_sizes(in_size, out_size, layer_no)
    stage_in = [tuple(in_size)] + hidden            # per-stage input spatial
    stage_out = hidden + [hidden[-1]]               # per-stage output spatial

    cin_p = _round_up(nch_in, 8)
    ch_p = _round_up(nch_h, 8)
    cend_p = _round_up(nch_out, 8)

    g_list = [jnp.asarray(_gather_matrices(stage_in[s], stage_out[s]), jnp.bfloat16)
              for s in range(n_stages)]
    w_list = [_pack_conv_weight(params["conv0_w"], cin_p, ch_p)]
    for s in range(1, n_stages):
        w_list.append(_pack_conv_weight(params["conv_w"][s - 1], ch_p, ch_p))

    bias_all = np.zeros((n_stages, ch_p, 1), np.float32)
    gamma_all = np.zeros((n_stages, ch_p, 1), np.float32)
    beta_all = np.zeros((n_stages, ch_p, 1), np.float32)
    bias_all[0, :nch_h, 0] = np.asarray(params["conv0_b"])
    for s in range(1, n_stages):
        bias_all[s, :nch_h, 0] = np.asarray(params["conv_b"][s - 1])
    for s in range(n_stages):
        gamma_all[s, :nch_h, 0] = np.asarray(params["bn_g"][s])
        beta_all[s, :nch_h, 0] = np.asarray(params["bn_b"][s])

    wend = np.zeros((cend_p, ch_p), np.float32)
    wend[:nch_out, :nch_h] = np.asarray(params["convend_w"])
    bend = np.zeros((cend_p, 1), np.float32)
    bend[:nch_out, 0] = np.asarray(params["convend_b"])

    ops = (tuple(g_list) + tuple(w_list) +
           (jnp.asarray(bias_all), jnp.asarray(gamma_all), jnp.asarray(beta_all),
            jnp.asarray(wend, jnp.bfloat16), jnp.asarray(bend)))

    ho, wo = stage_out[-1]
    hi, wi = in_size
    kernel = _make_decoder_kernel(n_stages)

    def forward(x_nchw):
        n = x_nchw.shape[0]
        # zero-pad input channels to a sublane multiple, flatten spatial to lanes
        x = jnp.pad(x_nchw, ((0, 0), (0, cin_p - nch_in), (0, 0), (0, 0)))
        x = x.reshape(n, cin_p, hi * wi).astype(jnp.bfloat16)

        inputs = (x,) + ops
        out = pl.pallas_call(
            kernel,
            out_shape=jax.ShapeDtypeStruct((n, cend_p, ho * wo), jnp.float32),
            grid=(1,),
            in_specs=[_full_spec(a.shape) for a in inputs],
            out_specs=_full_spec((n, cend_p, ho * wo)),
            compiler_params=pltpu.CompilerParams(
                dimension_semantics=("arbitrary",),
                vmem_limit_bytes=32 * 1024 * 1024),
        )(*inputs)
        # back to NCHW, drop channel padding
        return out.reshape(n, cend_p, ho, wo)[:, :nch_out]

    return jax.jit(forward)


# --------------------------- params / reference ----------------------------- #

def make_params(key, nch_in, nch_h, nch_out, layer_no):
    keys = iter(jax.random.split(key, 8 * (layer_no + 4)))

    def rnd(shape, scale=0.1):
        return scale * jax.random.normal(next(keys), shape, jnp.float32)

    return {
        "conv0_w": rnd((nch_h, nch_in, 3, 3)),
        "conv0_b": rnd((nch_h,)),
        "conv_w": [rnd((nch_h, nch_h, 3, 3)) for _ in range(layer_no + 1)],
        "conv_b": [rnd((nch_h,)) for _ in range(layer_no + 1)],
        "bn_g": [1.0 + rnd((nch_h,), 0.05) for _ in range(layer_no + 2)],
        "bn_b": [rnd((nch_h,), 0.05) for _ in range(layer_no + 2)],
        "convend_w": rnd((nch_out, nch_h)),
        "convend_b": rnd((nch_out,)),
    }


def reference_forward(x, params, hidden, layer_no):
    """Plain-JAX f32 reference of the PyTorch module (for a sanity check)."""
    def upsample(t, hw):
        _, _, h, w = t.shape
        ho, wo = hw
        ih = jnp.clip(jnp.floor(jnp.arange(ho) * (h / ho)).astype(jnp.int32), 0, h - 1)
        iw = jnp.clip(jnp.floor(jnp.arange(wo) * (w / wo)).astype(jnp.int32), 0, w - 1)
        return t[:, :, ih][:, :, :, iw]

    def conv3(t, w, b):
        y = jax.lax.conv_general_dilated(t, w, (1, 1), ((1, 1), (1, 1)),
                                         dimension_numbers=("NCHW", "OIHW", "NCHW"))
        return y + b[None, :, None, None]

    def bn(t, g, bt):
        mean = t.mean(axis=(0, 2, 3), keepdims=True)
        var = ((t - mean) ** 2).mean(axis=(0, 2, 3), keepdims=True)
        return ((t - mean) * jax.lax.rsqrt(var + BN_EPS) * g[None, :, None, None]
                + bt[None, :, None, None])

    x = upsample(x, hidden[0])
    x = bn(jax.nn.relu(conv3(x, params["conv0_w"], params["conv0_b"])),
           params["bn_g"][0], params["bn_b"][0])
    for layer in range(layer_no):
        x = upsample(x, hidden[layer + 1])
        x = bn(jax.nn.relu(conv3(x, params["conv_w"][layer], params["conv_b"][layer])),
               params["bn_g"][layer + 1], params["bn_b"][layer + 1])
    x = bn(jax.nn.relu(conv3(x, params["conv_w"][layer_no], params["conv_b"][layer_no])),
           params["bn_g"][layer_no + 1], params["bn_b"][layer_no + 1])
    return (jnp.einsum("oc,nchw->nohw", params["convend_w"], x)
            + params["convend_b"][None, :, None, None])


# ----------------------------------- main ----------------------------------- #

if __name__ == "__main__":
    nch_in, nch_h, nch_out = 4, 8, 3
    in_size, out_size = (8, 8), (16, 16)
    layer_no = 2
    batch = 2

    key = jax.random.PRNGKey(0)
    k_param, k_x = jax.random.split(key)
    params = make_params(k_param, nch_in, nch_h, nch_out, layer_no)
    x = jax.random.normal(k_x, (batch, nch_in, in_size[0], in_size[1]), jnp.float32)

    fwd = build_cov_decoder(params, nch_in=nch_in, nch_h=nch_h, nch_out=nch_out,
                            layer_no=layer_no, in_size=in_size, out_size=out_size)
    out = fwd(x)
    jax.block_until_ready(out)

    assert out.shape == (batch, nch_out, out_size[0], out_size[1]), out.shape
    assert bool(jnp.all(jnp.isfinite(out)))

    # numerical sanity check against an f32 plain-JAX reference (bf16 MXU tolerance)
    hidden = _hidden_sizes(in_size, out_size, layer_no)
    ref = reference_forward(x, params, hidden, layer_no)
    err = float(jnp.max(jnp.abs(out - ref)))
    assert err < 0.25, f"max abs error vs reference too large: {err}"

    print("KERNEL_OK")
</pallas_src>

<mosaic_0001>
module attributes {stable_mosaic.version = 11 : i64} {
  func.func @kernel(%arg0: i32, %arg1: memref<2x8x64xbf16, #tpu.memory_space<vmem>>, %arg2: memref<9x64x121xbf16, #tpu.memory_space<vmem>>, %arg3: memref<9x121x169xbf16, #tpu.memory_space<vmem>>, %arg4: memref<9x169x256xbf16, #tpu.memory_space<vmem>>, %arg5: memref<9x256x256xbf16, #tpu.memory_space<vmem>>, %arg6: memref<9x8x8xbf16, #tpu.memory_space<vmem>>, %arg7: memref<9x8x8xbf16, #tpu.memory_space<vmem>>, %arg8: memref<9x8x8xbf16, #tpu.memory_space<vmem>>, %arg9: memref<9x8x8xbf16, #tpu.memory_space<vmem>>, %arg10: memref<4x8x1xf32, #tpu.memory_space<vmem>>, %arg11: memref<4x8x1xf32, #tpu.memory_space<vmem>>, %arg12: memref<4x8x1xf32, #tpu.memory_space<vmem>>, %arg13: memref<8x8xbf16, #tpu.memory_space<vmem>>, %arg14: memref<8x1xf32, #tpu.memory_space<vmem>>, %arg15: memref<2x8x256xf32, #tpu.memory_space<vmem>>) attributes {dimension_semantics = [#tpu.dimension_semantics<arbitrary>], iteration_bounds = array<i64: 1>, scalar_prefetch = 0 : i64, scratch_operands = 0 : i64, tpu.core_type = #tpu.core_type<tc>, window_params = [{pipeline_mode = #tpu.pipeline_mode<synchronous>, transform_indices = @transform_0, window_bounds = array<i64: 2, 8, 64>}, {pipeline_mode = #tpu.pipeline_mode<synchronous>, transform_indices = @transform_1, window_bounds = array<i64: 9, 64, 121>}, {pipeline_mode = #tpu.pipeline_mode<synchronous>, transform_indices = @transform_2, window_bounds = array<i64: 9, 121, 169>}, {pipeline_mode = #tpu.pipeline_mode<synchronous>, transform_indices = @transform_3, window_bounds = array<i64: 9, 169, 256>}, {pipeline_mode = #tpu.pipeline_mode<synchronous>, transform_indices = @transform_4, window_bounds = array<i64: 9, 256, 256>}, {pipeline_mode = #tpu.pipeline_mode<synchronous>, transform_indices = @transform_5, window_bounds = array<i64: 9, 8, 8>}, {pipeline_mode = #tpu.pipeline_mode<synchronous>, transform_indices = @transform_6, window_bounds = array<i64: 9, 8, 8>}, {pipeline_mode = #tpu.pipeline_mode<synchronous>, transform_indices = @transform_7, window_bounds = array<i64: 9, 8, 8>}, {pipeline_mode = #tpu.pipeline_mode<synchronous>, transform_indices = @transform_8, window_bounds = array<i64: 9, 8, 8>}, {pipeline_mode = #tpu.pipeline_mode<synchronous>, transform_indices = @transform_9, window_bounds = array<i64: 4, 8, 1>}, {pipeline_mode = #tpu.pipeline_mode<synchronous>, transform_indices = @transform_10, window_bounds = array<i64: 4, 8, 1>}, {pipeline_mode = #tpu.pipeline_mode<synchronous>, transform_indices = @transform_11, window_bounds = array<i64: 4, 8, 1>}, {pipeline_mode = #tpu.pipeline_mode<synchronous>, transform_indices = @transform_12, window_bounds = array<i64: 8, 8>}, {pipeline_mode = #tpu.pipeline_mode<synchronous>, transform_indices = @transform_13, window_bounds = array<i64: 8, 1>}, {pipeline_mode = #tpu.pipeline_mode<synchronous>, transform_indices = @transform_14, window_bounds = array<i64: 2, 8, 256>}]} {
    %c0 = arith.constant 0 : index
    %c0_0 = arith.constant 0 : index
    %c0_1 = arith.constant 0 : index
    %0 = vector.load %arg1[%c0, %c0_0, %c0_1] : memref<2x8x64xbf16, #tpu.memory_space<vmem>>, vector<1x8x64xbf16>
    %1 = vector.shape_cast %0 : vector<1x8x64xbf16> to vector<8x64xbf16>
    %c1 = arith.constant 1 : index
    %c0_2 = arith.constant 0 : index
    %c0_3 = arith.constant 0 : index
    %2 = vector.load %arg1[%c1, %c0_2, %c0_3] : memref<2x8x64xbf16, #tpu.memory_space<vmem>>, vector<1x8x64xbf16>
    %3 = vector.shape_cast %2 : vector<1x8x64xbf16> to vector<8x64xbf16>
    %c0_4 = arith.constant 0 : index
    %c0_5 = arith.constant 0 : index
    %c0_6 = arith.constant 0 : index
    %4 = vector.load %arg10[%c0_4, %c0_5, %c0_6] : memref<4x8x1xf32, #tpu.memory_space<vmem>>, vector<1x8x1xf32>
    %5 = vector.shape_cast %4 : vector<1x8x1xf32> to vector<8x1xf32>
    %cst = arith.constant 0.000000e+00 : f32
    %6 = vector.broadcast %cst : f32 to vector<8x121xf32>
    %c0_7 = arith.constant 0 : index
    %c0_8 = arith.constant 0 : index
    %c0_9 = arith.constant 0 : index
    %7 = vector.load %arg2[%c0_7, %c0_8, %c0_9] : memref<9x64x121xbf16, #tpu.memory_space<vmem>>, vector<1x64x121xbf16>
    %8 = vector.shape_cast %7 : vector<1x64x121xbf16> to vector<64x121xbf16>
    %cst_10 = arith.constant dense<0.000000e+00> : vector<8x121xf32>
    %9 = tpu.matmul %1, %8, %cst_10 {dimension_numbers = #tpu.dot_dimension_numbers<[1], [0], [0], [1], [0, 0, 1, 1], [], []>} : vector<8x64xbf16>, vector<64x121xbf16>, vector<8x121xf32> -> vector<8x121xf32>
    %c0_11 = arith.constant 0 : index
    %c0_12 = arith.constant 0 : index
    %c0_13 = arith.constant 0 : index
    %10 = vector.load %arg6[%c0_11, %c0_12, %c0_13] : memref<9x8x8xbf16, #tpu.memory_space<vmem>>, vector<1x8x8xbf16>
    %11 = vector.shape_cast %10 : vector<1x8x8xbf16> to vector<8x8xbf16>
    %12 = arith.truncf %9 : vector<8x121xf32> to vector<8x121xbf16>
    %cst_14 = arith.constant dense<0.000000e+00> : vector<8x121xf32>
    %13 = tpu.matmul %11, %12, %cst_14 {dimension_numbers = #tpu.dot_dimension_numbers<[1], [0], [0], [1], [0, 0, 1, 1], [], []>} : vector<8x8xbf16>, vector<8x121xbf16>, vector<8x121xf32> -> vector<8x121xf32>
    %14 = arith.addf %6, %13 : vector<8x121xf32>
    %c1_15 = arith.constant 1 : index
    %c0_16 = arith.constant 0 : index
    %c0_17 = arith.constant 0 : index
    %15 = vector.load %arg2[%c1_15, %c0_16, %c0_17] : memref<9x64x121xbf16, #tpu.memory_space<vmem>>, vector<1x64x121xbf16>
    %16 = vector.shape_cast %15 : vector<1x64x121xbf16> to vector<64x121xbf16>
    %cst_18 = arith.constant dense<0.000000e+00> : vector<8x121xf32>
    %17 = tpu.matmul %1, %16, %cst_18 {dimension_numbers = #tpu.dot_dimension_numbers<[1], [0], [0], [1], [0, 0, 1, 1], [], []>} : vector<8x64xbf16>, vector<64x121xbf16>, vector<8x121xf32> -> vector<8x121xf32>
    %c1_19 = arith.constant 1 : index
    %c0_20 = arith.constant 0 : index
    %c0_21 = arith.constant 0 : index
    %18 = vector.load %arg6[%c1_19, %c0_20, %c0_21] : memref<9x8x8xbf16, #tpu.memory_space<vmem>>, vector<1x8x8xbf16>
    %19 = vector.shape_cast %18 : vector<1x8x8xbf16> to vector<8x8xbf16>
    %20 = arith.truncf %17 : vector<8x121xf32> to vector<8x121xbf16>
    %cst_22 = arith.constant dense<0.000000e+00> : vector<8x121xf32>
    %21 = tpu.matmul %19, %20, %cst_22 {dimension_numbers = #tpu.dot_dimension_numbers<[1], [0], [0], [1], [0, 0, 1, 1], [], []>} : vector<8x8xbf16>, vector<8x121xbf16>, vector<8x121xf32> -> vector<8x121xf32>
    %22 = arith.addf %14, %21 : vector<8x121xf32>
    %c2 = arith.constant 2 : index
    %c0_23 = arith.constant 0 : index
    %c0_24 = arith.constant 0 : index
    %23 = vector.load %arg2[%c2, %c0_23, %c0_24] : memref<9x64x121xbf16, #tpu.memory_space<vmem>>, vector<1x64x121xbf16>
    %24 = vector.shape_cast %23 : vector<1x64x121xbf16> to vector<64x121xbf16>
    %cst_25 = arith.constant dense<0.000000e+00> : vector<8x121xf32>
    %25 = tpu.matmul %1, %24, %cst_25 {dimension_numbers = #tpu.dot_dimension_numbers<[1], [0], [0], [1], [0, 0, 1, 1], [], []>} : vector<8x64xbf16>, vector<64x121xbf16>, vector<8x121xf32> -> vector<8x121xf32>
    %c2_26 = arith.constant 2 : index
    %c0_27 = arith.constant 0 : index
    %c0_28 = arith.constant 0 : index
    %26 = vector.load %arg6[%c2_26, %c0_27, %c0_28] : memref<9x8x8xbf16, #tpu.memory_space<vmem>>, vector<1x8x8xbf16>
    %27 = vector.shape_cast %26 : vector<1x8x8xbf16> to vector<8x8xbf16>
    %28 = arith.truncf %25 : vector<8x121xf32> to vector<8x121xbf16>
    %cst_29 = arith.constant dense<0.000000e+00> : vector<8x121xf32>
    %29 = tpu.matmul %27, %28, %cst_29 {dimension_numbers = #tpu.dot_dimension_numbers<[1], [0], [0], [1], [0, 0, 1, 1], [], []>} : vector<8x8xbf16>, vector<8x121xbf16>, vector<8x121xf32> -> vector<8x121xf32>
    %30 = arith.addf %22, %29 : vector<8x121xf32>
    %c3 = arith.constant 3 : index
    %c0_30 = arith.constant 0 : index
    %c0_31 = arith.constant 0 : index
    %31 = vector.load %arg2[%c3, %c0_30, %c0_31] : memref<9x64x121xbf16, #tpu.memory_space<vmem>>, vector<1x64x121xbf16>
    %32 = vector.shape_cast %31 : vector<1x64x121xbf16> to vector<64x121xbf16>
    %cst_32 = arith.constant dense<0.000000e+00> : vector<8x121xf32>
    %33 = tpu.matmul %1, %32, %cst_32 {dimension_numbers = #tpu.dot_dimension_numbers<[1], [0], [0], [1], [0, 0, 1, 1], [], []>} : vector<8x64xbf16>, vector<64x121xbf16>, vector<8x121xf32> -> vector<8x121xf32>
    %c3_33 = arith.constant 3 : index
    %c0_34 = arith.constant 0 : index
    %c0_35 = arith.constant 0 : index
    %34 = vector.load %arg6[%c3_33, %c0_34, %c0_35] : memref<9x8x8xbf16, #tpu.memory_space<vmem>>, vector<1x8x8xbf16>
    %35 = vector.shape_cast %34 : vector<1x8x8xbf16> to vector<8x8xbf16>
    %36 = arith.truncf %33 : vector<8x121xf32> to vector<8x121xbf16>
    %cst_36 = arith.constant dense<0.000000e+00> : vector<8x121xf32>
    %37 = tpu.matmul %35, %36, %cst_36 {dimension_numbers = #tpu.dot_dimension_numbers<[1], [0], [0], [1], [0, 0, 1, 1], [], []>} : vector<8x8xbf16>, vector<8x121xbf16>, vector<8x121xf32> -> vector<8x121xf32>
    %38 = arith.addf %30, %37 : vector<8x121xf32>
    %c4 = arith.constant 4 : index
    %c0_37 = arith.constant 0 : index
    %c0_38 = arith.constant 0 : index
    %39 = vector.load %arg2[%c4, %c0_37, %c0_38] : memref<9x64x121xbf16, #tpu.memory_space<vmem>>, vector<1x64x121xbf16>
    %40 = vector.shape_cast %39 : vector<1x64x121xbf16> to vector<64x121xbf16>
    %cst_39 = arith.constant dense<0.000000e+00> : vector<8x121xf32>
    %41 = tpu.matmul %1, %40, %cst_39 {dimension_numbers = #tpu.dot_dimension_numbers<[1], [0], [0], [1], [0, 0, 1, 1], [], []>} : vector<8x64xbf16>, vector<64x121xbf16>, vector<8x121xf32> -> vector<8x121xf32>
    %c4_40 = arith.constant 4 : index
    %c0_41 = arith.constant 0 : index
    %c0_42 = arith.constant 0 : index
    %42 = vector.load %arg6[%c4_40, %c0_41, %c0_42] : memref<9x8x8xbf16, #tpu.memory_space<vmem>>, vector<1x8x8xbf16>
    %43 = vector.shape_cast %42 : vector<1x8x8xbf16> to vector<8x8xbf16>
    %44 = arith.truncf %41 : vector<8x121xf32> to vector<8x121xbf16>
    %cst_43 = arith.constant dense<0.000000e+00> : vector<8x121xf32>
    %45 = tpu.matmul %43, %44, %cst_43 {dimension_numbers = #tpu.dot_dimension_numbers<[1], [0], [0], [1], [0, 0, 1, 1], [], []>} : vector<8x8xbf16>, vector<8x121xbf16>, vector<8x121xf32> -> vector<8x121xf32>
    %46 = arith.addf %38, %45 : vector<8x121xf32>
    %c5 = arith.constant 5 : index
    %c0_44 = arith.constant 0 : index
    %c0_45 = arith.constant 0 : index
    %47 = vector.load %arg2[%c5, %c0_44, %c0_45] : memref<9x64x121xbf16, #tpu.memory_space<vmem>>, vector<1x64x121xbf16>
    %48 = vector.shape_cast %47 : vector<1x64x121xbf16> to vector<64x121xbf16>
    %cst_46 = arith.constant dense<0.000000e+00> : vector<8x121xf32>
    %49 = tpu.matmul %1, %48, %cst_46 {dimension_numbers = #tpu.dot_dimension_numbers<[1], [0], [0], [1], [0, 0, 1, 1], [], []>} : vector<8x64xbf16>, vector<64x121xbf16>, vector<8x121xf32> -> vector<8x121xf32>
    %c5_47 = arith.constant 5 : index
    %c0_48 = arith.constant 0 : index
    %c0_49 = arith.constant 0 : index
    %50 = vector.load %arg6[%c5_47, %c0_48, %c0_49] : memref<9x8x8xbf16, #tpu.memory_space<vmem>>, vector<1x8x8xbf16>
    %51 = vector.shape_cast %50 : vector<1x8x8xbf16> to vector<8x8xbf16>
    %52 = arith.truncf %49 : vector<8x121xf32> to vector<8x121xbf16>
    %cst_50 = arith.constant dense<0.000000e+00> : vector<8x121xf32>
    %53 = tpu.matmul %51, %52, %cst_50 {dimension_numbers = #tpu.dot_dimension_numbers<[1], [0], [0], [1], [0, 0, 1, 1], [], []>} : vector<8x8xbf16>, vector<8x121xbf16>, vector<8x121xf32> -> vector<8x121xf32>
    %54 = arith.addf %46, %53 : vector<8x121xf32>
    %c6 = arith.constant 6 : index
    %c0_51 = arith.constant 0 : index
    %c0_52 = arith.constant 0 : index
    %55 = vector.load %arg2[%c6, %c0_51, %c0_52] : memref<9x64x121xbf16, #tpu.memory_space<vmem>>, vector<1x64x121xbf16>
    %56 = vector.shape_cast %55 : vector<1x64x121xbf16> to vector<64x121xbf16>
    %cst_53 = arith.constant dense<0.000000e+00> : vector<8x121xf32>
    %57 = tpu.matmul %1, %56, %cst_53 {dimension_numbers = #tpu.dot_dimension_numbers<[1], [0], [0], [1], [0, 0, 1, 1], [], []>} : vector<8x64xbf16>, vector<64x121xbf16>, vector<8x121xf32> -> vector<8x121xf32>
    %c6_54 = arith.constant 6 : index
    %c0_55 = arith.constant 0 : index
    %c0_56 = arith.constant 0 : index
    %58 = vector.load %arg6[%c6_54, %c0_55, %c0_56] : memref<9x8x8xbf16, #tpu.memory_space<vmem>>, vector<1x8x8xbf16>
    %59 = vector.shape_cast %58 : vector<1x8x8xbf16> to vector<8x8xbf16>
    %60 = arith.truncf %57 : vector<8x121xf32> to vector<8x121xbf16>
    %cst_57 = arith.constant dense<0.000000e+00> : vector<8x121xf32>
    %61 = tpu.matmul %59, %60, %cst_57 {dimension_numbers = #tpu.dot_dimension_numbers<[1], [0], [0], [1], [0, 0, 1, 1], [], []>} : vector<8x8xbf16>, vector<8x121xbf16>, vector<8x121xf32> -> vector<8x121xf32>
    %62 = arith.addf %54, %61 : vector<8x121xf32>
    %c7 = arith.constant 7 : index
    %c0_58 = arith.constant 0 : index
    %c0_59 = arith.constant 0 : index
    %63 = vector.load %arg2[%c7, %c0_58, %c0_59] : memref<9x64x121xbf16, #tpu.memory_space<vmem>>, vector<1x64x121xbf16>
    %64 = vector.shape_cast %63 : vector<1x64x121xbf16> to vector<64x121xbf16>
    %cst_60 = arith.constant dense<0.000000e+00> : vector<8x121xf32>
    %65 = tpu.matmul %1, %64, %cst_60 {dimension_numbers = #tpu.dot_dimension_numbers<[1], [0], [0], [1], [0, 0, 1, 1], [], []>} : vector<8x64xbf16>, vector<64x121xbf16>, vector<8x121xf32> -> vector<8x121xf32>
    %c7_61 = arith.constant 7 : index
    %c0_62 = arith.constant 0 : index
    %c0_63 = arith.constant 0 : index
    %66 = vector.load %arg6[%c7_61, %c0_62, %c0_63] : memref<9x8x8xbf16, #tpu.memory_space<vmem>>, vector<1x8x8xbf16>
    %67 = vector.shape_cast %66 : vector<1x8x8xbf16> to vector<8x8xbf16>
    %68 = arith.truncf %65 : vector<8x121xf32> to vector<8x121xbf16>
    %cst_64 = arith.constant dense<0.000000e+00> : vector<8x121xf32>
    %69 = tpu.matmul %67, %68, %cst_64 {dimension_numbers = #tpu.dot_dimension_numbers<[1], [0], [0], [1], [0, 0, 1, 1], [], []>} : vector<8x8xbf16>, vector<8x121xbf16>, vector<8x121xf32> -> vector<8x121xf32>
    %70 = arith.addf %62, %69 : vector<8x121xf32>
    %c8 = arith.constant 8 : index
    %c0_65 = arith.constant 0 : index
    %c0_66 = arith.constant 0 : index
    %71 = vector.load %arg2[%c8, %c0_65, %c0_66] : memref<9x64x121xbf16, #tpu.memory_space<vmem>>, vector<1x64x121xbf16>
    %72 = vector.shape_cast %71 : vector<1x64x121xbf16> to vector<64x121xbf16>
    %cst_67 = arith.constant dense<0.000000e+00> : vector<8x121xf32>
    %73 = tpu.matmul %1, %72, %cst_67 {dimension_numbers = #tpu.dot_dimension_numbers<[1], [0], [0], [1], [0, 0, 1, 1], [], []>} : vector<8x64xbf16>, vector<64x121xbf16>, vector<8x121xf32> -> vector<8x121xf32>
    %c8_68 = arith.constant 8 : index
    %c0_69 = arith.constant 0 : index
    %c0_70 = arith.constant 0 : index
    %74 = vector.load %arg6[%c8_68, %c0_69, %c0_70] : memref<9x8x8xbf16, #tpu.memory_space<vmem>>, vector<1x8x8xbf16>
    %75 = vector.shape_cast %74 : vector<1x8x8xbf16> to vector<8x8xbf16>
    %76 = arith.truncf %73 : vector<8x121xf32> to vector<8x121xbf16>
    %cst_71 = arith.constant dense<0.000000e+00> : vector<8x121xf32>
    %77 = tpu.matmul %75, %76, %cst_71 {dimension_numbers = #tpu.dot_dimension_numbers<[1], [0], [0], [1], [0, 0, 1, 1], [], []>} : vector<8x8xbf16>, vector<8x121xbf16>, vector<8x121xf32> -> vector<8x121xf32>
    %78 = arith.addf %70, %77 : vector<8x121xf32>
    %79 = vector.broadcast %5 : vector<8x1xf32> to vector<8x121xf32>
    %80 = arith.addf %78, %79 : vector<8x121xf32>
    %cst_72 = arith.constant 0.000000e+00 : f32
    %81 = vector.broadcast %cst_72 : f32 to vector<8x121xf32>
    %82 = arith.maximumf %80, %81 : vector<8x121xf32>
    %cst_73 = arith.constant 0.000000e+00 : f32
    %83 = vector.broadcast %cst_73 : f32 to vector<8x121xf32>
    %c0_74 = arith.constant 0 : index
    %c0_75 = arith.constant 0 : index
    %c0_76 = arith.constant 0 : index
    %84 = vector.load %arg2[%c0_74, %c0_75, %c0_76] : memref<9x64x121xbf16, #tpu.memory_space<vmem>>, vector<1x64x121xbf16>
    %85 = vector.shape_cast %84 : vector<1x64x121xbf16> to vector<64x121xbf16>
    %cst_77 = arith.constant dense<0.000000e+00> : vector<8x121xf32>
    %86 = tpu.matmul %3, %85, %cst_77 {dimension_numbers = #tpu.dot_dimension_numbers<[1], [0], [0], [1], [0, 0, 1, 1], [], []>} : vector<8x64xbf16>, vector<64x121xbf16>, vector<8x121xf32> -> vector<8x121xf32>
    %c0_78 = arith.constant 0 : index
    %c0_79 = arith.constant 0 : index
    %c0_80 = arith.constant 0 : index
    %87 = vector.load %arg6[%c0_78, %c0_79, %c0_80] : memref<9x8x8xbf16, #tpu.memory_space<vmem>>, vector<1x8x8xbf16>
    %88 = vector.shape_cast %87 : vector<1x8x8xbf16> to vector<8x8xbf16>
    %89 = arith.truncf %86 : vector<8x121xf32> to vector<8x121xbf16>
    %cst_81 = arith.constant dense<0.000000e+00> : vector<8x121xf32>
    %90 = tpu.matmul %88, %89, %cst_81 {dimension_numbers = #tpu.dot_dimension_numbers<[1], [0], [0], [1], [0, 0, 1, 1], [], []>} : vector<8x8xbf16>, vector<8x121xbf16>, vector<8x121xf32> -> vector<8x121xf32>
    %91 = arith.addf %83, %90 : vector<8x121xf32>
    %c1_82 = arith.constant 1 : index
    %c0_83 = arith.constant 0 : index
    %c0_84 = arith.constant 0 : index
    %92 = vector.load %arg2[%c1_82, %c0_83, %c0_84] : memref<9x64x121xbf16, #tpu.memory_space<vmem>>, vector<1x64x121xbf16>
    %93 = vector.shape_cast %92 : vector<1x64x121xbf16> to vector<64x121xbf16>
    %cst_85 = arith.constant dense<0.000000e+00> : vector<8x121xf32>
    %94 = tpu.matmul %3, %93, %cst_85 {dimension_numbers = #tpu.dot_dimension_numbers<[1], [0], [0], [1], [0, 0, 1, 1], [], []>} : vector<8x64xbf16>, vector<64x121xbf16>, vector<8x121xf32> -> vector<8x121xf32>
    %c1_86 = arith.constant 1 : index
    %c0_87 = arith.constant 0 : index
    %c0_88 = arith.constant 0 : index
    %95 = vector.load %arg6[%c1_86, %c0_87, %c0_88] : memref<9x8x8xbf16, #tpu.memory_space<vmem>>, vector<1x8x8xbf16>
    %96 = vector.shape_cast %95 : vector<1x8x8xbf16> to vector<8x8xbf16>
    %97 = arith.truncf %94 : vector<8x121xf32> to vector<8x121xbf16>
    %cst_89 = arith.constant dense<0.000000e+00> : vector<8x121xf32>
    %98 = tpu.matmul %96, %97, %cst_89 {dimension_numbers = #tpu.dot_dimension_numbers<[1], [0], [0], [1], [0, 0, 1, 1], [], []>} : vector<8x8xbf16>, vector<8x121xbf16>, vector<8x121xf32> -> vector<8x121xf32>
    %99 = arith.addf %91, %98 : vector<8x121xf32>
    %c2_90 = arith.constant 2 : index
    %c0_91 = arith.constant 0 : index
    %c0_92 = arith.constant 0 : index
    %100 = vector.load %arg2[%c2_90, %c0_91, %c0_92] : memref<9x64x121xbf16, #tpu.memory_space<vmem>>, vector<1x64x121xbf16>
    %101 = vector.shape_cast %100 : vector<1x64x121xbf16> to vector<64x121xbf16>
    %cst_93 = arith.constant dense<0.000000e+00> : vector<8x121xf32>
    %102 = tpu.matmul %3, %101, %cst_93 {dimension_numbers = #tpu.dot_dimension_numbers<[1], [0], [0], [1], [0, 0, 1, 1], [], []>} : vector<8x64xbf16>, vector<64x121xbf16>, vector<8x121xf32> -> vector<8x121xf32>
    %c2_94 = arith.constant 2 : index
    %c0_95 = arith.constant 0 : index
    %c0_96 = arith.constant 0 : index
    %103 = vector.load %arg6[%c2_94, %c0_95, %c0_96] : memref<9x8x8xbf16, #tpu.memory_space<vmem>>, vector<1x8x8xbf16>
    %104 = vector.shape_cast %103 : vector<1x8x8xbf16> to vector<8x8xbf16>
    %105 = arith.truncf %102 : vector<8x121xf32> to vector<8x121xbf16>
    %cst_97 = arith.constant dense<0.000000e+00> : vector<8x121xf32>
    %106 = tpu.matmul %104, %105, %cst_97 {dimension_numbers = #tpu.dot_dimension_numbers<[1], [0], [0], [1], [0, 0, 1, 1], [], []>} : vector<8x8xbf16>, vector<8x121xbf16>, vector<8x121xf32> -> vector<8x121xf32>
    %107 = arith.addf %99, %106 : vector<8x121xf32>
    %c3_98 = arith.constant 3 : index
    %c0_99 = arith.constant 0 : index
    %c0_100 = arith.constant 0 : index
    %108 = vector.load %arg2[%c3_98, %c0_99, %c0_100] : memref<9x64x121xbf16, #tpu.memory_space<vmem>>, vector<1x64x121xbf16>
    %109 = vector.shape_cast %108 : vector<1x64x121xbf16> to vector<64x121xbf16>
    %cst_101 = arith.constant dense<0.000000e+00> : vector<8x121xf32>
    %110 = tpu.matmul %3, %109, %cst_101 {dimension_numbers = #tpu.dot_dimension_numbers<[1], [0], [0], [1], [0, 0, 1, 1], [], []>} : vector<8x64xbf16>, vector<64x121xbf16>, vector<8x121xf32> -> vector<8x121xf32>
    %c3_102 = arith.constant 3 : index
    %c0_103 = arith.constant 0 : index
    %c0_104 = arith.constant 0 : index
    %111 = vector.load %arg6[%c3_102, %c0_103, %c0_104] : memref<9x8x8xbf16, #tpu.memory_space<vmem>>, vector<1x8x8xbf16>
    %112 = vector.shape_cast %111 : vector<1x8x8xbf16> to vector<8x8xbf16>
    %113 = arith.truncf %110 : vector<8x121xf32> to vector<8x121xbf16>
    %cst_105 = arith.constant dense<0.000000e+00> : vector<8x121xf32>
    %114 = tpu.matmul %112, %113, %cst_105 {dimension_numbers = #tpu.dot_dimension_numbers<[1], [0], [0], [1], [0, 0, 1, 1], [], []>} : vector<8x8xbf16>, vector<8x121xbf16>, vector<8x121xf32> -> vector<8x121xf32>
    %115 = arith.addf %107, %114 : vector<8x121xf32>
    %c4_106 = arith.constant 4 : index
    %c0_107 = arith.constant 0 : index
    %c0_108 = arith.constant 0 : index
    %116 = vector.load %arg2[%c4_106, %c0_107, %c0_108] : memref<9x64x121xbf16, #tpu.memory_space<vmem>>, vector<1x64x121xbf16>
    %117 = vector.shape_cast %116 : vector<1x64x121xbf16> to vector<64x121xbf16>
    %cst_109 = arith.constant dense<0.000000e+00> : vector<8x121xf32>
    %118 = tpu.matmul %3, %117, %cst_109 {dimension_numbers = #tpu.dot_dimension_numbers<[1], [0], [0], [1], [0, 0, 1, 1], [], []>} : vector<8x64xbf16>, vector<64x121xbf16>, vector<8x121xf32> -> vector<8x121xf32>
    %c4_110 = arith.constant 4 : index
    %c0_111 = arith.constant 0 : index
    %c0_112 = arith.constant 0 : index
    %119 = vector.load %arg6[%c4_110, %c0_111, %c0_112] : memref<9x8x8xbf16, #tpu.memory_space<vmem>>, vector<1x8x8xbf16>
    %120 = vector.shape_cast %119 : vector<1x8x8xbf16> to vector<8x8xbf16>
    %121 = arith.truncf %118 : vector<8x121xf32> to vector<8x121xbf16>
    %cst_113 = arith.constant dense<0.000000e+00> : vector<8x121xf32>
    %122 = tpu.matmul %120, %121, %cst_113 {dimension_numbers = #tpu.dot_dimension_numbers<[1], [0], [0], [1], [0, 0, 1, 1], [], []>} : vector<8x8xbf16>, vector<8x121xbf16>, vector<8x121xf32> -> vector<8x121xf32>
    %123 = arith.addf %115, %122 : vector<8x121xf32>
    %c5_114 = arith.constant 5 : index
    %c0_115 = arith.constant 0 : index
    %c0_116 = arith.constant 0 : index
    %124 = vector.load %arg2[%c5_114, %c0_115, %c0_116] : memref<9x64x121xbf16, #tpu.memory_space<vmem>>, vector<1x64x121xbf16>
    %125 = vector.shape_cast %124 : vector<1x64x121xbf16> to vector<64x121xbf16>
    %cst_117 = arith.constant dense<0.000000e+00> : vector<8x121xf32>
    %126 = tpu.matmul %3, %125, %cst_117 {dimension_numbers = #tpu.dot_dimension_numbers<[1], [0], [0], [1], [0, 0, 1, 1], [], []>} : vector<8x64xbf16>, vector<64x121xbf16>, vector<8x121xf32> -> vector<8x121xf32>
    %c5_118 = arith.constant 5 : index
    %c0_119 = arith.constant 0 : index
    %c0_120 = arith.constant 0 : index
    %127 = vector.load %arg6[%c5_118, %c0_119, %c0_120] : memref<9x8x8xbf16, #tpu.memory_space<vmem>>, vector<1x8x8xbf16>
    %128 = vector.shape_cast %127 : vector<1x8x8xbf16> to vector<8x8xbf16>
    %129 = arith.truncf %126 : vector<8x121xf32> to vector<8x121xbf16>
    %cst_121 = arith.constant dense<0.000000e+00> : vector<8x121xf32>
    %130 = tpu.matmul %128, %129, %cst_121 {dimension_numbers = #tpu.dot_dimension_numbers<[1], [0], [0], [1], [0, 0, 1, 1], [], []>} : vector<8x8xbf16>, vector<8x121xbf16>, vector<8x121xf32> -> vector<8x121xf32>
    %131 = arith.addf %123, %130 : vector<8x121xf32>
    %c6_122 = arith.constant 6 : index
    %c0_123 = arith.constant 0 : index
    %c0_124 = arith.constant 0 : index
    %132 = vector.load %arg2[%c6_122, %c0_123, %c0_124] : memref<9x64x121xbf16, #tpu.memory_space<vmem>>, vector<1x64x121xbf16>
    %133 = vector.shape_cast %132 : vector<1x64x121xbf16> to vector<64x121xbf16>
    %cst_125 = arith.constant dense<0.000000e+00> : vector<8x121xf32>
    %134 = tpu.matmul %3, %133, %cst_125 {dimension_numbers = #tpu.dot_dimension_numbers<[1], [0], [0], [1], [0, 0, 1, 1], [], []>} : vector<8x64xbf16>, vector<64x121xbf16>, vector<8x121xf32> -> vector<8x121xf32>
    %c6_126 = arith.constant 6 : index
    %c0_127 = arith.constant 0 : index
    %c0_128 = arith.constant 0 : index
    %135 = vector.load %arg6[%c6_126, %c0_127, %c0_128] : memref<9x8x8xbf16, #tpu.memory_space<vmem>>, vector<1x8x8xbf16>
    %136 = vector.shape_cast %135 : vector<1x8x8xbf16> to vector<8x8xbf16>
    %137 = arith.truncf %134 : vector<8x121xf32> to vector<8x121xbf16>
    %cst_129 = arith.constant dense<0.000000e+00> : vector<8x121xf32>
    %138 = tpu.matmul %136, %137, %cst_129 {dimension_numbers = #tpu.dot_dimension_numbers<[1], [0], [0], [1], [0, 0, 1, 1], [], []>} : vector<8x8xbf16>, vector<8x121xbf16>, vector<8x121xf32> -> vector<8x121xf32>
    %139 = arith.addf %131, %138 : vector<8x121xf32>
    %c7_130 = arith.constant 7 : index
    %c0_131 = arith.constant 0 : index
    %c0_132 = arith.constant 0 : index
    %140 = vector.load %arg2[%c7_130, %c0_131, %c0_132] : memref<9x64x121xbf16, #tpu.memory_space<vmem>>, vector<1x64x121xbf16>
    %141 = vector.shape_cast %140 : vector<1x64x121xbf16> to vector<64x121xbf16>
    %cst_133 = arith.constant dense<0.000000e+00> : vector<8x121xf32>
    %142 = tpu.matmul %3, %141, %cst_133 {dimension_numbers = #tpu.dot_dimension_numbers<[1], [0], [0], [1], [0, 0, 1, 1], [], []>} : vector<8x64xbf16>, vector<64x121xbf16>, vector<8x121xf32> -> vector<8x121xf32>
    %c7_134 = arith.constant 7 : index
    %c0_135 = arith.constant 0 : index
    %c0_136 = arith.constant 0 : index
    %143 = vector.load %arg6[%c7_134, %c0_135, %c0_136] : memref<9x8x8xbf16, #tpu.memory_space<vmem>>, vector<1x8x8xbf16>
    %144 = vector.shape_cast %143 : vector<1x8x8xbf16> to vector<8x8xbf16>
    %145 = arith.truncf %142 : vector<8x121xf32> to vector<8x121xbf16>
    %cst_137 = arith.constant dense<0.000000e+00> : vector<8x121xf32>
    %146 = tpu.matmul %144, %145, %cst_137 {dimension_numbers = #tpu.dot_dimension_numbers<[1], [0], [0], [1], [0, 0, 1, 1], [], []>} : vector<8x8xbf16>, vector<8x121xbf16>, vector<8x121xf32> -> vector<8x121xf32>
    %147 = arith.addf %139, %146 : vector<8x121xf32>
    %c8_138 = arith.constant 8 : index
    %c0_139 = arith.constant 0 : index
    %c0_140 = arith.constant 0 : index
    %148 = vector.load %arg2[%c8_138, %c0_139, %c0_140] : memref<9x64x121xbf16, #tpu.memory_space<vmem>>, vector<1x64x121xbf16>
    %149 = vector.shape_cast %148 : vector<1x64x121xbf16> to vector<64x121xbf16>
    %cst_141 = arith.constant dense<0.000000e+00> : vector<8x121xf32>
    %150 = tpu.matmul %3, %149, %cst_141 {dimension_numbers = #tpu.dot_dimension_numbers<[1], [0], [0], [1], [0, 0, 1, 1], [], []>} : vector<8x64xbf16>, vector<64x121xbf16>, vector<8x121xf32> -> vector<8x121xf32>
    %c8_142 = arith.constant 8 : index
    %c0_143 = arith.constant 0 : index
    %c0_144 = arith.constant 0 : index
    %151 = vector.load %arg6[%c8_142, %c0_143, %c0_144] : memref<9x8x8xbf16, #tpu.memory_space<vmem>>, vector<1x8x8xbf16>
    %152 = vector.shape_cast %151 : vector<1x8x8xbf16> to vector<8x8xbf16>
    %153 = arith.truncf %150 : vector<8x121xf32> to vector<8x121xbf16>
    %cst_145 = arith.constant dense<0.000000e+00> : vector<8x121xf32>
    %154 = tpu.matmul %152, %153, %cst_145 {dimension_numbers = #tpu.dot_dimension_numbers<[1], [0], [0], [1], [0, 0, 1, 1], [], []>} : vector<8x8xbf16>, vector<8x121xbf16>, vector<8x121xf32> -> vector<8x121xf32>
    %155 = arith.addf %147, %154 : vector<8x121xf32>
    %156 = vector.broadcast %5 : vector<8x1xf32> to vector<8x121xf32>
    %157 = arith.addf %155, %156 : vector<8x121xf32>
    %cst_146 = arith.constant 0.000000e+00 : f32
    %158 = vector.broadcast %cst_146 : f32 to vector<8x121xf32>
    %159 = arith.maximumf %157, %158 : vector<8x121xf32>
    %cst_147 = arith.constant dense<0.000000e+00> : vector<8xf32>
    %160 = vector.multi_reduction <add>, %82, %cst_147 [1] : vector<8x121xf32> to vector<8xf32>
    %161 = vector.shape_cast %160 : vector<8xf32> to vector<8x1xf32>
    %162 = arith.mulf %82, %82 : vector<8x121xf32>
    %cst_148 = arith.constant dense<0.000000e+00> : vector<8xf32>
    %163 = vector.multi_reduction <add>, %162, %cst_148 [1] : vector<8x121xf32> to vector<8xf32>
    %164 = vector.shape_cast %163 : vector<8xf32> to vector<8x1xf32>
    %cst_149 = arith.constant dense<0.000000e+00> : vector<8xf32>
    %165 = vector.multi_reduction <add>, %159, %cst_149 [1] : vector<8x121xf32> to vector<8xf32>
    %166 = vector.shape_cast %165 : vector<8xf32> to vector<8x1xf32>
    %167 = arith.addf %161, %166 : vector<8x1xf32>
    %168 = arith.mulf %159, %159 : vector<8x121xf32>
    %cst_150 = arith.constant dense<0.000000e+00> : vector<8xf32>
    %169 = vector.multi_reduction <add>, %168, %cst_150 [1] : vector<8x121xf32> to vector<8xf32>
    %170 = vector.shape_cast %169 : vector<8xf32> to vector<8x1xf32>
    %171 = arith.addf %164, %170 : vector<8x1xf32>
    %cst_151 = arith.constant 0.00413223123 : f32
    %172 = vector.broadcast %cst_151 : f32 to vector<8x1xf32>
    %173 = arith.mulf %167, %172 : vector<8x1xf32>
    %cst_152 = arith.constant 0.00413223123 : f32
    %174 = vector.broadcast %cst_152 : f32 to vector<8x1xf32>
    %175 = arith.mulf %171, %174 : vector<8x1xf32>
    %176 = arith.mulf %173, %173 : vector<8x1xf32>
    %177 = arith.subf %175, %176 : vector<8x1xf32>
    %cst_153 = arith.constant 0.000000e+00 : f32
    %178 = vector.broadcast %cst_153 : f32 to vector<8x1xf32>
    %179 = arith.maximumf %177, %178 : vector<8x1xf32>
    %c0_154 = arith.constant 0 : index
    %c0_155 = arith.constant 0 : index
    %c0_156 = arith.constant 0 : index
    %180 = vector.load %arg11[%c0_154, %c0_155, %c0_156] : memref<4x8x1xf32, #tpu.memory_space<vmem>>, vector<1x8x1xf32>
    %181 = vector.shape_cast %180 : vector<1x8x1xf32> to vector<8x1xf32>
    %cst_157 = arith.constant 9.99999974E-6 : f32
    %182 = vector.broadcast %cst_157 : f32 to vector<8x1xf32>
    %183 = arith.addf %179, %182 : vector<8x1xf32>
    %184 = math.rsqrt %183 : vector<8x1xf32>
    %185 = arith.mulf %181, %184 : vector<8x1xf32>
    %c0_158 = arith.constant 0 : index
    %c0_159 = arith.constant 0 : index
    %c0_160 = arith.constant 0 : index
    %186 = vector.load %arg12[%c0_158, %c0_159, %c0_160] : memref<4x8x1xf32, #tpu.memory_space<vmem>>, vector<1x8x1xf32>
    %187 = vector.shape_cast %186 : vector<1x8x1xf32> to vector<8x1xf32>
    %188 = arith.mulf %173, %185 : vector<8x1xf32>
    %189 = arith.subf %187, %188 : vector<8x1xf32>
    %190 = vector.broadcast %185 : vector<8x1xf32> to vector<8x121xf32>
    %191 = arith.mulf %82, %190 : vector<8x121xf32>
    %192 = vector.broadcast %189 : vector<8x1xf32> to vector<8x121xf32>
    %193 = arith.addf %191, %192 : vector<8x121xf32>
    %194 = arith.truncf %193 : vector<8x121xf32> to vector<8x121xbf16>
    %195 = vector.broadcast %185 : vector<8x1xf32> to vector<8x121xf32>
    %196 = arith.mulf %159, %195 : vector<8x121xf32>
    %197 = vector.broadcast %189 : vector<8x1xf32> to vector<8x121xf32>
    %198 = arith.addf %196, %197 : vector<8x121xf32>
    %199 = arith.truncf %198 : vector<8x121xf32> to vector<8x121xbf16>
    %c1_161 = arith.constant 1 : index
    %c0_162 = arith.constant 0 : index
    %c0_163 = arith.constant 0 : index
    %200 = vector.load %arg10[%c1_161, %c0_162, %c0_163] : memref<4x8x1xf32, #tpu.memory_space<vmem>>, vector<1x8x1xf32>
    %201 = vector.shape_cast %200 : vector<1x8x1xf32> to vector<8x1xf32>
    %cst_164 = arith.constant 0.000000e+00 : f32
    %202 = vector.broadcast %cst_164 : f32 to vector<8x169xf32>
    %c0_165 = arith.constant 0 : index
    %c0_166 = arith.constant 0 : index
    %c0_167 = arith.constant 0 : index
    %203 = vector.load %arg3[%c0_165, %c0_166, %c0_167] : memref<9x121x169xbf16, #tpu.memory_space<vmem>>, vector<1x121x169xbf16>
    %204 = vector.shape_cast %203 : vector<1x121x169xbf16> to vector<121x169xbf16>
    %cst_168 = arith.constant dense<0.000000e+00> : vector<8x169xf32>
    %205 = tpu.matmul %194, %204, %cst_168 {dimension_numbers = #tpu.dot_dimension_numbers<[1], [0], [0], [1], [0, 0, 1, 1], [], []>} : vector<8x121xbf16>, vector<121x169xbf16>, vector<8x169xf32> -> vector<8x169xf32>
    %c0_169 = arith.constant 0 : index
    %c0_170 = arith.constant 0 : index
    %c0_171 = arith.constant 0 : index
    %206 = vector.load %arg7[%c0_169, %c0_170, %c0_171] : memref<9x8x8xbf16, #tpu.memory_space<vmem>>, vector<1x8x8xbf16>
    %207 = vector.shape_cast %206 : vector<1x8x8xbf16> to vector<8x8xbf16>
    %208 = arith.truncf %205 : vector<8x169xf32> to vector<8x169xbf16>
    %cst_172 = arith.constant dense<0.000000e+00> : vector<8x169xf32>
    %209 = tpu.matmul %207, %208, %cst_172 {dimension_numbers = #tpu.dot_dimension_numbers<[1], [0], [0], [1], [0, 0, 1, 1], [], []>} : vector<8x8xbf16>, vector<8x169xbf16>, vector<8x169xf32> -> vector<8x169xf32>
    %210 = arith.addf %202, %209 : vector<8x169xf32>
    %c1_173 = arith.constant 1 : index
    %c0_174 = arith.constant 0 : index
    %c0_175 = arith.constant 0 : index
    %211 = vector.load %arg3[%c1_173, %c0_174, %c0_175] : memref<9x121x169xbf16, #tpu.memory_space<vmem>>, vector<1x121x169xbf16>
    %212 = vector.shape_cast %211 : vector<1x121x169xbf16> to vector<121x169xbf16>
    %cst_176 = arith.constant dense<0.000000e+00> : vector<8x169xf32>
    %213 = tpu.matmul %194, %212, %cst_176 {dimension_numbers = #tpu.dot_dimension_numbers<[1], [0], [0], [1], [0, 0, 1, 1], [], []>} : vector<8x121xbf16>, vector<121x169xbf16>, vector<8x169xf32> -> vector<8x169xf32>
    %c1_177 = arith.constant 1 : index
    %c0_178 = arith.constant 0 : index
    %c0_179 = arith.constant 0 : index
    %214 = vector.load %arg7[%c1_177, %c0_178, %c0_179] : memref<9x8x8xbf16, #tpu.memory_space<vmem>>, vector<1x8x8xbf16>
    %215 = vector.shape_cast %214 : vector<1x8x8xbf16> to vector<8x8xbf16>
    %216 = arith.truncf %213 : vector<8x169xf32> to vector<8x169xbf16>
    %cst_180 = arith.constant dense<0.000000e+00> : vector<8x169xf32>
    %217 = tpu.matmul %215, %216, %cst_180 {dimension_numbers = #tpu.dot_dimension_numbers<[1], [0], [0], [1], [0, 0, 1, 1], [], []>} : vector<8x8xbf16>, vector<8x169xbf16>, vector<8x169xf32> -> vector<8x169xf32>
    %218 = arith.addf %210, %217 : vector<8x169xf32>
    %c2_181 = arith.constant 2 : index
    %c0_182 = arith.constant 0 : index
    %c0_183 = arith.constant 0 : index
    %219 = vector.load %arg3[%c2_181, %c0_182, %c0_183] : memref<9x121x169xbf16, #tpu.memory_space<vmem>>, vector<1x121x169xbf16>
    %220 = vector.shape_cast %219 : vector<1x121x169xbf16> to vector<121x169xbf16>
    %cst_184 = arith.constant dense<0.000000e+00> : vector<8x169xf32>
    %221 = tpu.matmul %194, %220, %cst_184 {dimension_numbers = #tpu.dot_dimension_numbers<[1], [0], [0], [1], [0, 0, 1, 1], [], []>} : vector<8x121xbf16>, vector<121x169xbf16>, vector<8x169xf32> -> vector<8x169xf32>
    %c2_185 = arith.constant 2 : index
    %c0_186 = arith.constant 0 : index
    %c0_187 = arith.constant 0 : index
    %222 = vector.load %arg7[%c2_185, %c0_186, %c0_187] : memref<9x8x8xbf16, #tpu.memory_space<vmem>>, vector<1x8x8xbf16>
    %223 = vector.shape_cast %222 : vector<1x8x8xbf16> to vector<8x8xbf16>
    %224 = arith.truncf %221 : vector<8x169xf32> to vector<8x169xbf16>
    %cst_188 = arith.constant dense<0.000000e+00> : vector<8x169xf32>
    %225 = tpu.matmul %223, %224, %cst_188 {dimension_numbers = #tpu.dot_dimension_numbers<[1], [0], [0], [1], [0, 0, 1, 1], [], []>} : vector<8x8xbf16>, vector<8x169xbf16>, vector<8x169xf32> -> vector<8x169xf32>
    %226 = arith.addf %218, %225 : vector<8x169xf32>
    %c3_189 = arith.constant 3 : index
    %c0_190 = arith.constant 0 : index
    %c0_191 = arith.constant 0 : index
    %227 = vector.load %arg3[%c3_189, %c0_190, %c0_191] : memref<9x121x169xbf16, #tpu.memory_space<vmem>>, vector<1x121x169xbf16>
    %228 = vector.shape_cast %227 : vector<1x121x169xbf16> to vector<121x169xbf16>
    %cst_192 = arith.constant dense<0.000000e+00> : vector<8x169xf32>
    %229 = tpu.matmul %194, %228, %cst_192 {dimension_numbers = #tpu.dot_dimension_numbers<[1], [0], [0], [1], [0, 0, 1, 1], [], []>} : vector<8x121xbf16>, vector<121x169xbf16>, vector<8x169xf32> -> vector<8x169xf32>
    %c3_193 = arith.constant 3 : index
    %c0_194 = arith.constant 0 : index
    %c0_195 = arith.constant 0 : index
    %230 = vector.load %arg7[%c3_193, %c0_194, %c0_195] : memref<9x8x8xbf16, #tpu.memory_space<vmem>>, vector<1x8x8xbf16>
    %231 = vector.shape_cast %230 : vector<1x8x8xbf16> to vector<8x8xbf16>
    %232 = arith.truncf %229 : vector<8x169xf32> to vector<8x169xbf16>
    %cst_196 = arith.constant dense<0.000000e+00> : vector<8x169xf32>
    %233 = tpu.matmul %231, %232, %cst_196 {dimension_numbers = #tpu.dot_dimension_numbers<[1], [0], [0], [1], [0, 0, 1, 1], [], []>} : vector<8x8xbf16>, vector<8x169xbf16>, vector<8x169xf32> -> vector<8x169xf32>
    %234 = arith.addf %226, %233 : vector<8x169xf32>
    %c4_197 = arith.constant 4 : index
    %c0_198 = arith.constant 0 : index
    %c0_199 = arith.constant 0 : index
    %235 = vector.load %arg3[%c4_197, %c0_198, %c0_199] : memref<9x121x169xbf16, #tpu.memory_space<vmem>>, vector<1x121x169xbf16>
    %236 = vector.shape_cast %235 : vector<1x121x169xbf16> to vector<121x169xbf16>
    %cst_200 = arith.constant dense<0.000000e+00> : vector<8x169xf32>
    %237 = tpu.matmul %194, %236, %cst_200 {dimension_numbers = #tpu.dot_dimension_numbers<[1], [0], [0], [1], [0, 0, 1, 1], [], []>} : vector<8x121xbf16>, vector<121x169xbf16>, vector<8x169xf32> -> vector<8x169xf32>
    %c4_201 = arith.constant 4 : index
    %c0_202 = arith.constant 0 : index
    %c0_203 = arith.constant 0 : index
    %238 = vector.load %arg7[%c4_201, %c0_202, %c0_203] : memref<9x8x8xbf16, #tpu.memory_space<vmem>>, vector<1x8x8xbf16>
    %239 = vector.shape_cast %238 : vector<1x8x8xbf16> to vector<8x8xbf16>
    %240 = arith.truncf %237 : vector<8x169xf32> to vector<8x169xbf16>
    %cst_204 = arith.constant dense<0.000000e+00> : vector<8x169xf32>
    %241 = tpu.matmul %239, %240, %cst_204 {dimension_numbers = #tpu.dot_dimension_numbers<[1], [0], [0], [1], [0, 0, 1, 1], [], []>} : vector<8x8xbf16>, vector<8x169xbf16>, vector<8x169xf32> -> vector<8x169xf32>
    %242 = arith.addf %234, %241 : vector<8x169xf32>
    %c5_205 = arith.constant 5 : index
    %c0_206 = arith.constant 0 : index
    %c0_207 = arith.constant 0 : index
    %243 = vector.load %arg3[%c5_205, %c0_206, %c0_207] : memref<9x121x169xbf16, #tpu.memory_space<vmem>>, vector<1x121x169xbf16>
    %244 = vector.shape_cast %243 : vector<1x121x169xbf16> to vector<121x169xbf16>
    %cst_208 = arith.constant dense<0.000000e+00> : vector<8x169xf32>
    %245 = tpu.matmul %194, %244, %cst_208 {dimension_numbers = #tpu.dot_dimension_numbers<[1], [0], [0], [1], [0, 0, 1, 1], [], []>} : vector<8x121xbf16>, vector<121x169xbf16>, vector<8x169xf32> -> vector<8x169xf32>
    %c5_209 = arith.constant 5 : index
    %c0_210 = arith.constant 0 : index
    %c0_211 = arith.constant 0 : index
    %246 = vector.load %arg7[%c5_209, %c0_210, %c0_211] : memref<9x8x8xbf16, #tpu.memory_space<vmem>>, vector<1x8x8xbf16>
    %247 = vector.shape_cast %246 : vector<1x8x8xbf16> to vector<8x8xbf16>
    %248 = arith.truncf %245 : vector<8x169xf32> to vector<8x169xbf16>
    %cst_212 = arith.constant dense<0.000000e+00> : vector<8x169xf32>
    %249 = tpu.matmul %247, %248, %cst_212 {dimension_numbers = #tpu.dot_dimension_numbers<[1], [0], [0], [1], [0, 0, 1, 1], [], []>} : vector<8x8xbf16>, vector<8x169xbf16>, vector<8x169xf32> -> vector<8x169xf32>
    %250 = arith.addf %242, %249 : vector<8x169xf32>
    %c6_213 = arith.constant 6 : index
    %c0_214 = arith.constant 0 : index
    %c0_215 = arith.constant 0 : index
    %251 = vector.load %arg3[%c6_213, %c0_214, %c0_215] : memref<9x121x169xbf16, #tpu.memory_space<vmem>>, vector<1x121x169xbf16>
    %252 = vector.shape_cast %251 : vector<1x121x169xbf16> to vector<121x169xbf16>
    %cst_216 = arith.constant dense<0.000000e+00> : vector<8x169xf32>
    %253 = tpu.matmul %194, %252, %cst_216 {dimension_numbers = #tpu.dot_dimension_numbers<[1], [0], [0], [1], [0, 0, 1, 1], [], []>} : vector<8x121xbf16>, vector<121x169xbf16>, vector<8x169xf32> -> vector<8x169xf32>
    %c6_217 = arith.constant 6 : index
    %c0_218 = arith.constant 0 : index
    %c0_219 = arith.constant 0 : index
    %254 = vector.load %arg7[%c6_217, %c0_218, %c0_219] : memref<9x8x8xbf16, #tpu.memory_space<vmem>>, vector<1x8x8xbf16>
    %255 = vector.shape_cast %254 : vector<1x8x8xbf16> to vector<8x8xbf16>
    %256 = arith.truncf %253 : vector<8x169xf32> to vector<8x169xbf16>
    %cst_220 = arith.constant dense<0.000000e+00> : vector<8x169xf32>
    %257 = tpu.matmul %255, %256, %cst_220 {dimension_numbers = #tpu.dot_dimension_numbers<[1], [0], [0], [1], [0, 0, 1, 1], [], []>} : vector<8x8xbf16>, vector<8x169xbf16>, vector<8x169xf32> -> vector<8x169xf32>
    %258 = arith.addf %250, %257 : vector<8x169xf32>
    %c7_221 = arith.constant 7 : index
    %c0_222 = arith.constant 0 : index
    %c0_223 = arith.constant 0 : index
    %259 = vector.load %arg3[%c7_221, %c0_222, %c0_223] : memref<9x121x169xbf16, #tpu.memory_space<vmem>>, vector<1x121x169xbf16>
    %260 = vector.shape_cast %259 : vector<1x121x169xbf16> to vector<121x169xbf16>
    %cst_224 = arith.constant dense<0.000000e+00> : vector<8x169xf32>
    %261 = tpu.matmul %194, %260, %cst_224 {dimension_numbers = #tpu.dot_dimension_numbers<[1], [0], [0], [1], [0, 0, 1, 1], [], []>} : vector<8x121xbf16>, vector<121x169xbf16>, vector<8x169xf32> -> vector<8x169xf32>
    %c7_225 = arith.constant 7 : index
    %c0_226 = arith.constant 0 : index
    %c0_227 = arith.constant 0 : index
    %262 = vector.load %arg7[%c7_225, %c0_226, %c0_227] : memref<9x8x8xbf16, #tpu.memory_space<vmem>>, vector<1x8x8xbf16>
    %263 = vector.shape_cast %262 : vector<1x8x8xbf16> to vector<8x8xbf16>
    %264 = arith.truncf %261 : vector<8x169xf32> to vector<8x169xbf16>
    %cst_228 = arith.constant dense<0.000000e+00> : vector<8x169xf32>
    %265 = tpu.matmul %263, %264, %cst_228 {dimension_numbers = #tpu.dot_dimension_numbers<[1], [0], [0], [1], [0, 0, 1, 1], [], []>} : vector<8x8xbf16>, vector<8x169xbf16>, vector<8x169xf32> -> vector<8x169xf32>
    %266 = arith.addf %258, %265 : vector<8x169xf32>
    %c8_229 = arith.constant 8 : index
    %c0_230 = arith.constant 0 : index
    %c0_231 = arith.constant 0 : index
    %267 = vector.load %arg3[%c8_229, %c0_230, %c0_231] : memref<9x121x169xbf16, #tpu.memory_space<vmem>>, vector<1x121x169xbf16>
    %268 = vector.shape_cast %267 : vector<1x121x169xbf16> to vector<121x169xbf16>
    %cst_232 = arith.constant dense<0.000000e+00> : vector<8x169xf32>
    %269 = tpu.matmul %194, %268, %cst_232 {dimension_numbers = #tpu.dot_dimension_numbers<[1], [0], [0], [1], [0, 0, 1, 1], [], []>} : vector<8x121xbf16>, vector<121x169xbf16>, vector<8x169xf32> -> vector<8x169xf32>
    %c8_233 = arith.constant 8 : index
    %c0_234 = arith.constant 0 : index
    %c0_235 = arith.constant 0 : index
    %270 = vector.load %arg7[%c8_233, %c0_234, %c0_235] : memref<9x8x8xbf16, #tpu.memory_space<vmem>>, vector<1x8x8xbf16>
    %271 = vector.shape_cast %270 : vector<1x8x8xbf16> to vector<8x8xbf16>
    %272 = arith.truncf %269 : vector<8x169xf32> to vector<8x169xbf16>
    %cst_236 = arith.constant dense<0.000000e+00> : vector<8x169xf32>
    %273 = tpu.matmul %271, %272, %cst_236 {dimension_numbers = #tpu.dot_dimension_numbers<[1], [0], [0], [1], [0, 0, 1, 1], [], []>} : vector<8x8xbf16>, vector<8x169xbf16>, vector<8x169xf32> -> vector<8x169xf32>
    %274 = arith.addf %266, %273 : vector<8x169xf32>
    %275 = vector.broadcast %201 : vector<8x1xf32> to vector<8x169xf32>
    %276 = arith.addf %274, %275 : vector<8x169xf32>
    %cst_237 = arith.constant 0.000000e+00 : f32
    %277 = vector.broadcast %cst_237 : f32 to vector<8x169xf32>
    %278 = arith.maximumf %276, %277 : vector<8x169xf32>
    %cst_238 = arith.constant 0.000000e+00 : f32
    %279 = vector.broadcast %cst_238 : f32 to vector<8x169xf32>
    %c0_239 = arith.constant 0 : index
    %c0_240 = arith.constant 0 : index
    %c0_241 = arith.constant 0 : index
    %280 = vector.load %arg3[%c0_239, %c0_240, %c0_241] : memref<9x121x169xbf16, #tpu.memory_space<vmem>>, vector<1x121x169xbf16>
    %281 = vector.shape_cast %280 : vector<1x121x169xbf16> to vector<121x169xbf16>
    %cst_242 = arith.constant dense<0.000000e+00> : vector<8x169xf32>
    %282 = tpu.matmul %199, %281, %cst_242 {dimension_numbers = #tpu.dot_dimension_numbers<[1], [0], [0], [1], [0, 0, 1, 1], [], []>} : vector<8x121xbf16>, vector<121x169xbf16>, vector<8x169xf32> -> vector<8x169xf32>
    %c0_243 = arith.constant 0 : index
    %c0_244 = arith.constant 0 : index
    %c0_245 = arith.constant 0 : index
    %283 = vector.load %arg7[%c0_243, %c0_244, %c0_245] : memref<9x8x8xbf16, #tpu.memory_space<vmem>>, vector<1x8x8xbf16>
    %284 = vector.shape_cast %283 : vector<1x8x8xbf16> to vector<8x8xbf16>
    %285 = arith.truncf %282 : vector<8x169xf32> to vector<8x169xbf16>
    %cst_246 = arith.constant dense<0.000000e+00> : vector<8x169xf32>
    %286 = tpu.matmul %284, %285, %cst_246 {dimension_numbers = #tpu.dot_dimension_numbers<[1], [0], [0], [1], [0, 0, 1, 1], [], []>} : vector<8x8xbf16>, vector<8x169xbf16>, vector<8x169xf32> -> vector<8x169xf32>
    %287 = arith.addf %279, %286 : vector<8x169xf32>
    %c1_247 = arith.constant 1 : index
    %c0_248 = arith.constant 0 : index
    %c0_249 = arith.constant 0 : index
    %288 = vector.load %arg3[%c1_247, %c0_248, %c0_249] : memref<9x121x169xbf16, #tpu.memory_space<vmem>>, vector<1x121x169xbf16>
    %289 = vector.shape_cast %288 : vector<1x121x169xbf16> to vector<121x169xbf16>
    %cst_250 = arith.constant dense<0.000000e+00> : vector<8x169xf32>
    %290 = tpu.matmul %199, %289, %cst_250 {dimension_numbers = #tpu.dot_dimension_numbers<[1], [0], [0], [1], [0, 0, 1, 1], [], []>} : vector<8x121xbf16>, vector<121x169xbf16>, vector<8x169xf32> -> vector<8x169xf32>
    %c1_251 = arith.constant 1 : index
    %c0_252 = arith.constant 0 : index
    %c0_253 = arith.constant 0 : index
    %291 = vector.load %arg7[%c1_251, %c0_252, %c0_253] : memref<9x8x8xbf16, #tpu.memory_space<vmem>>, vector<1x8x8xbf16>
    %292 = vector.shape_cast %291 : vector<1x8x8xbf16> to vector<8x8xbf16>
    %293 = arith.truncf %290 : vector<8x169xf32> to vector<8x169xbf16>
    %cst_254 = arith.constant dense<0.000000e+00> : vector<8x169xf32>
    %294 = tpu.matmul %292, %293, %cst_254 {dimension_numbers = #tpu.dot_dimension_numbers<[1], [0], [0], [1], [0, 0, 1, 1], [], []>} : vector<8x8xbf16>, vector<8x169xbf16>, vector<8x169xf32> -> vector<8x169xf32>
    %295 = arith.addf %287, %294 : vector<8x169xf32>
    %c2_255 = arith.constant 2 : index
    %c0_256 = arith.constant 0 : index
    %c0_257 = arith.constant 0 : index
    %296 = vector.load %arg3[%c2_255, %c0_256, %c0_257] : memref<9x121x169xbf16, #tpu.memory_space<vmem>>, vector<1x121x169xbf16>
    %297 = vector.shape_cast %296 : vector<1x121x169xbf16> to vector<121x169xbf16>
    %cst_258 = arith.constant dense<0.000000e+00> : vector<8x169xf32>
    %298 = tpu.matmul %199, %297, %cst_258 {dimension_numbers = #tpu.dot_dimension_numbers<[1], [0], [0], [1], [0, 0, 1, 1], [], []>} : vector<8x121xbf16>, vector<121x169xbf16>, vector<8x169xf32> -> vector<8x169xf32>
    %c2_259 = arith.constant 2 : index
    %c0_260 = arith.constant 0 : index
    %c0_261 = arith.constant 0 : index
    %299 = vector.load %arg7[%c2_259, %c0_260, %c0_261] : memref<9x8x8xbf16, #tpu.memory_space<vmem>>, vector<1x8x8xbf16>
    %300 = vector.shape_cast %299 : vector<1x8x8xbf16> to vector<8x8xbf16>
    %301 = arith.truncf %298 : vector<8x169xf32> to vector<8x169xbf16>
    %cst_262 = arith.constant dense<0.000000e+00> : vector<8x169xf32>
    %302 = tpu.matmul %300, %301, %cst_262 {dimension_numbers = #tpu.dot_dimension_numbers<[1], [0], [0], [1], [0, 0, 1, 1], [], []>} : vector<8x8xbf16>, vector<8x169xbf16>, vector<8x169xf32> -> vector<8x169xf32>
    %303 = arith.addf %295, %302 : vector<8x169xf32>
    %c3_263 = arith.constant 3 : index
    %c0_264 = arith.constant 0 : index
    %c0_265 = arith.constant 0 : index
    %304 = vector.load %arg3[%c3_263, %c0_264, %c0_265] : memref<9x121x169xbf16, #tpu.memory_space<vmem>>, vector<1x121x169xbf16>
    %305 = vector.shape_cast %304 : vector<1x121x169xbf16> to vector<121x169xbf16>
    %cst_266 = arith.constant dense<0.000000e+00> : vector<8x169xf32>
    %306 = tpu.matmul %199, %305, %cst_266 {dimension_numbers = #tpu.dot_dimension_numbers<[1], [0], [0], [1], [0, 0, 1, 1], [], []>} : vector<8x121xbf16>, vector<121x169xbf16>, vector<8x169xf32> -> vector<8x169xf32>
    %c3_267 = arith.constant 3 : index
    %c0_268 = arith.constant 0 : index
    %c0_269 = arith.constant 0 : index
    %307 = vector.load %arg7[%c3_267, %c0_268, %c0_269] : memref<9x8x8xbf16, #tpu.memory_space<vmem>>, vector<1x8x8xbf16>
    %308 = vector.shape_cast %307 : vector<1x8x8xbf16> to vector<8x8xbf16>
    %309 = arith.truncf %306 : vector<8x169xf32> to vector<8x169xbf16>
    %cst_270 = arith.constant dense<0.000000e+00> : vector<8x169xf32>
    %310 = tpu.matmul %308, %309, %cst_270 {dimension_numbers = #tpu.dot_dimension_numbers<[1], [0], [0], [1], [0, 0, 1, 1], [], []>} : vector<8x8xbf16>, vector<8x169xbf16>, vector<8x169xf32> -> vector<8x169xf32>
    %311 = arith.addf %303, %310 : vector<8x169xf32>
    %c4_271 = arith.constant 4 : index
    %c0_272 = arith.constant 0 : index
    %c0_273 = arith.constant 0 : index
    %312 = vector.load %arg3[%c4_271, %c0_272, %c0_273] : memref<9x121x169xbf16, #tpu.memory_space<vmem>>, vector<1x121x169xbf16>
    %313 = vector.shape_cast %312 : vector<1x121x169xbf16> to vector<121x169xbf16>
    %cst_274 = arith.constant dense<0.000000e+00> : vector<8x169xf32>
    %314 = tpu.matmul %199, %313, %cst_274 {dimension_numbers = #tpu.dot_dimension_numbers<[1], [0], [0], [1], [0, 0, 1, 1], [], []>} : vector<8x121xbf16>, vector<121x169xbf16>, vector<8x169xf32> -> vector<8x169xf32>
    %c4_275 = arith.constant 4 : index
    %c0_276 = arith.constant 0 : index
    %c0_277 = arith.constant 0 : index
    %315 = vector.load %arg7[%c4_275, %c0_276, %c0_277] : memref<9x8x8xbf16, #tpu.memory_space<vmem>>, vector<1x8x8xbf16>
    %316 = vector.shape_cast %315 : vector<1x8x8xbf16> to vector<8x8xbf16>
    %317 = arith.truncf %314 : vector<8x169xf32> to vector<8x169xbf16>
    %cst_278 = arith.constant dense<0.000000e+00> : vector<8x169xf32>
    %318 = tpu.matmul %316, %317, %cst_278 {dimension_numbers = #tpu.dot_dimension_numbers<[1], [0], [0], [1], [0, 0, 1, 1], [], []>} : vector<8x8xbf16>, vector<8x169xbf16>, vector<8x169xf32> -> vector<8x169xf32>
    %319 = arith.addf %311, %318 : vector<8x169xf32>
    %c5_279 = arith.constant 5 : index
    %c0_280 = arith.constant 0 : index
    %c0_281 = arith.constant 0 : index
    %320 = vector.load %arg3[%c5_279, %c0_280, %c0_281] : memref<9x121x169xbf16, #tpu.memory_space<vmem>>, vector<1x121x169xbf16>
    %321 = vector.shape_cast %320 : vector<1x121x169xbf16> to vector<121x169xbf16>
    %cst_282 = arith.constant dense<0.000000e+00> : vector<8x169xf32>
    %322 = tpu.matmul %199, %321, %cst_282 {dimension_numbers = #tpu.dot_dimension_numbers<[1], [0], [0], [1], [0, 0, 1, 1], [], []>} : vector<8x121xbf16>, vector<121x169xbf16>, vector<8x169xf32> -> vector<8x169xf32>
    %c5_283 = arith.constant 5 : index
    %c0_284 = arith.constant 0 : index
    %c0_285 = arith.constant 0 : index
    %323 = vector.load %arg7[%c5_283, %c0_284, %c0_285] : memref<9x8x8xbf16, #tpu.memory_space<vmem>>, vector<1x8x8xbf16>
    %324 = vector.shape_cast %323 : vector<1x8x8xbf16> to vector<8x8xbf16>
    %325 = arith.truncf %322 : vector<8x169xf32> to vector<8x169xbf16>
    %cst_286 = arith.constant dense<0.000000e+00> : vector<8x169xf32>
    %326 = tpu.matmul %324, %325, %cst_286 {dimension_numbers = #tpu.dot_dimension_numbers<[1], [0], [0], [1], [0, 0, 1, 1], [], []>} : vector<8x8xbf16>, vector<8x169xbf16>, vector<8x169xf32> -> vector<8x169xf32>
    %327 = arith.addf %319, %326 : vector<8x169xf32>
    %c6_287 = arith.constant 6 : index
    %c0_288 = arith.constant 0 : index
    %c0_289 = arith.constant 0 : index
    %328 = vector.load %arg3[%c6_287, %c0_288, %c0_289] : memref<9x121x169xbf16, #tpu.memory_space<vmem>>, vector<1x121x169xbf16>
    %329 = vector.shape_cast %328 : vector<1x121x169xbf16> to vector<121x169xbf16>
    %cst_290 = arith.constant dense<0.000000e+00> : vector<8x169xf32>
    %330 = tpu.matmul %199, %329, %cst_290 {dimension_numbers = #tpu.dot_dimension_numbers<[1], [0], [0], [1], [0, 0, 1, 1], [], []>} : vector<8x121xbf16>, vector<121x169xbf16>, vector<8x169xf32> -> vector<8x169xf32>
    %c6_291 = arith.constant 6 : index
    %c0_292 = arith.constant 0 : index
    %c0_293 = arith.constant 0 : index
    %331 = vector.load %arg7[%c6_291, %c0_292, %c0_293] : memref<9x8x8xbf16, #tpu.memory_space<vmem>>, vector<1x8x8xbf16>
    %332 = vector.shape_cast %331 : vector<1x8x8xbf16> to vector<8x8xbf16>
    %333 = arith.truncf %330 : vector<8x169xf32> to vector<8x169xbf16>
    %cst_294 = arith.constant dense<0.000000e+00> : vector<8x169xf32>
    %334 = tpu.matmul %332, %333, %cst_294 {dimension_numbers = #tpu.dot_dimension_numbers<[1], [0], [0], [1], [0, 0, 1, 1], [], []>} : vector<8x8xbf16>, vector<8x169xbf16>, vector<8x169xf32> -> vector<8x169xf32>
    %335 = arith.addf %327, %334 : vector<8x169xf32>
    %c7_295 = arith.constant 7 : index
    %c0_296 = arith.constant 0 : index
    %c0_297 = arith.constant 0 : index
    %336 = vector.load %arg3[%c7_295, %c0_296, %c0_297] : memref<9x121x169xbf16, #tpu.memory_space<vmem>>, vector<1x121x169xbf16>
    %337 = vector.shape_cast %336 : vector<1x121x169xbf16> to vector<121x169xbf16>
    %cst_298 = arith.constant dense<0.000000e+00> : vector<8x169xf32>
    %338 = tpu.matmul %199, %337, %cst_298 {dimension_numbers = #tpu.dot_dimension_numbers<[1], [0], [0], [1], [0, 0, 1, 1], [], []>} : vector<8x121xbf16>, vector<121x169xbf16>, vector<8x169xf32> -> vector<8x169xf32>
    %c7_299 = arith.constant 7 : index
    %c0_300 = arith.constant 0 : index
    %c0_301 = arith.constant 0 : index
    %339 = vector.load %arg7[%c7_299, %c0_300, %c0_301] : memref<9x8x8xbf16, #tpu.memory_space<vmem>>, vector<1x8x8xbf16>
    %340 = vector.shape_cast %339 : vector<1x8x8xbf16> to vector<8x8xbf16>
    %341 = arith.truncf %338 : vector<8x169xf32> to vector<8x169xbf16>
    %cst_302 = arith.constant dense<0.000000e+00> : vector<8x169xf32>
    %342 = tpu.matmul %340, %341, %cst_302 {dimension_numbers = #tpu.dot_dimension_numbers<[1], [0], [0], [1], [0, 0, 1, 1], [], []>} : vector<8x8xbf16>, vector<8x169xbf16>, vector<8x169xf32> -> vector<8x169xf32>
    %343 = arith.addf %335, %342 : vector<8x169xf32>
    %c8_303 = arith.constant 8 : index
    %c0_304 = arith.constant 0 : index
    %c0_305 = arith.constant 0 : index
    %344 = vector.load %arg3[%c8_303, %c0_304, %c0_305] : memref<9x121x169xbf16, #tpu.memory_space<vmem>>, vector<1x121x169xbf16>
    %345 = vector.shape_cast %344 : vector<1x121x169xbf16> to vector<121x169xbf16>
    %cst_306 = arith.constant dense<0.000000e+00> : vector<8x169xf32>
    %346 = tpu.matmul %199, %345, %cst_306 {dimension_numbers = #tpu.dot_dimension_numbers<[1], [0], [0], [1], [0, 0, 1, 1], [], []>} : vector<8x121xbf16>, vector<121x169xbf16>, vector<8x169xf32> -> vector<8x169xf32>
    %c8_307 = arith.constant 8 : index
    %c0_308 = arith.constant 0 : index
    %c0_309 = arith.constant 0 : index
    %347 = vector.load %arg7[%c8_307, %c0_308, %c0_309] : memref<9x8x8xbf16, #tpu.memory_space<vmem>>, vector<1x8x8xbf16>
    %348 = vector.shape_cast %347 : vector<1x8x8xbf16> to vector<8x8xbf16>
    %349 = arith.truncf %346 : vector<8x169xf32> to vector<8x169xbf16>
    %cst_310 = arith.constant dense<0.000000e+00> : vector<8x169xf32>
    %350 = tpu.matmul %348, %349, %cst_310 {dimension_numbers = #tpu.dot_dimension_numbers<[1], [0], [0], [1], [0, 0, 1, 1], [], []>} : vector<8x8xbf16>, vector<8x169xbf16>, vector<8x169xf32> -> vector<8x169xf32>
    %351 = arith.addf %343, %350 : vector<8x169xf32>
    %352 = vector.broadcast %201 : vector<8x1xf32> to vector<8x169xf32>
    %353 = arith.addf %351, %352 : vector<8x169xf32>
    %cst_311 = arith.constant 0.000000e+00 : f32
    %354 = vector.broadcast %cst_311 : f32 to vector<8x169xf32>
    %355 = arith.maximumf %353, %354 : vector<8x169xf32>
    %cst_312 = arith.constant dense<0.000000e+00> : vector<8xf32>
    %356 = vector.multi_reduction <add>, %278, %cst_312 [1] : vector<8x169xf32> to vector<8xf32>
    %357 = vector.shape_cast %356 : vector<8xf32> to vector<8x1xf32>
    %358 = arith.mulf %278, %278 : vector<8x169xf32>
    %cst_313 = arith.constant dense<0.000000e+00> : vector<8xf32>
    %359 = vector.multi_reduction <add>, %358, %cst_313 [1] : vector<8x169xf32> to vector<8xf32>
    %360 = vector.shape_cast %359 : vector<8xf32> to vector<8x1xf32>
    %cst_314 = arith.constant dense<0.000000e+00> : vector<8xf32>
    %361 = vector.multi_reduction <add>, %355, %cst_314 [1] : vector<8x169xf32> to vector<8xf32>
    %362 = vector.shape_cast %361 : vector<8xf32> to vector<8x1xf32>
    %363 = arith.addf %357, %362 : vector<8x1xf32>
    %364 = arith.mulf %355, %355 : vector<8x169xf32>
    %cst_315 = arith.constant dense<0.000000e+00> : vector<8xf32>
    %365 = vector.multi_reduction <add>, %364, %cst_315 [1] : vector<8x169xf32> to vector<8xf32>
    %366 = vector.shape_cast %365 : vector<8xf32> to vector<8x1xf32>
    %367 = arith.addf %360, %366 : vector<8x1xf32>
    %cst_316 = arith.constant 2.958580e-03 : f32
    %368 = vector.broadcast %cst_316 : f32 to vector<8x1xf32>
    %369 = arith.mulf %363, %368 : vector<8x1xf32>
    %cst_317 = arith.constant 2.958580e-03 : f32
    %370 = vector.broadcast %cst_317 : f32 to vector<8x1xf32>
    %371 = arith.mulf %367, %370 : vector<8x1xf32>
    %372 = arith.mulf %369, %369 : vector<8x1xf32>
    %373 = arith.subf %371, %372 : vector<8x1xf32>
    %cst_318 = arith.constant 0.000000e+00 : f32
    %374 = vector.broadcast %cst_318 : f32 to vector<8x1xf32>
    %375 = arith.maximumf %373, %374 : vector<8x1xf32>
    %c1_319 = arith.constant 1 : index
    %c0_320 = arith.constant 0 : index
    %c0_321 = arith.constant 0 : index
    %376 = vector.load %arg11[%c1_319, %c0_320, %c0_321] : memref<4x8x1xf32, #tpu.memory_space<vmem>>, vector<1x8x1xf32>
    %377 = vector.shape_cast %376 : vector<1x8x1xf32> to vector<8x1xf32>
    %cst_322 = arith.constant 9.99999974E-6 : f32
    %378 = vector.broadcast %cst_322 : f32 to vector<8x1xf32>
    %379 = arith.addf %375, %378 : vector<8x1xf32>
    %380 = math.rsqrt %379 : vector<8x1xf32>
    %381 = arith.mulf %377, %380 : vector<8x1xf32>
    %c1_323 = arith.constant 1 : index
    %c0_324 = arith.constant 0 : index
    %c0_325 = arith.constant 0 : index
    %382 = vector.load %arg12[%c1_323, %c0_324, %c0_325] : memref<4x8x1xf32, #tpu.memory_space<vmem>>, vector<1x8x1xf32>
    %383 = vector.shape_cast %382 : vector<1x8x1xf32> to vector<8x1xf32>
    %384 = arith.mulf %369, %381 : vector<8x1xf32>
    %385 = arith.subf %383, %384 : vector<8x1xf32>
    %386 = vector.broadcast %381 : vector<8x1xf32> to vector<8x169xf32>
    %387 = arith.mulf %278, %386 : vector<8x169xf32>
    %388 = vector.broadcast %385 : vector<8x1xf32> to vector<8x169xf32>
    %389 = arith.addf %387, %388 : vector<8x169xf32>
    %390 = arith.truncf %389 : vector<8x169xf32> to vector<8x169xbf16>
    %391 = vector.broadcast %381 : vector<8x1xf32> to vector<8x169xf32>
    %392 = arith.mulf %355, %391 : vector<8x169xf32>
    %393 = vector.broadcast %385 : vector<8x1xf32> to vector<8x169xf32>
    %394 = arith.addf %392, %393 : vector<8x169xf32>
    %395 = arith.truncf %394 : vector<8x169xf32> to vector<8x169xbf16>
    %c2_326 = arith.constant 2 : index
    %c0_327 = arith.constant 0 : index
    %c0_328 = arith.constant 0 : index
    %396 = vector.load %arg10[%c2_326, %c0_327, %c0_328] : memref<4x8x1xf32, #tpu.memory_space<vmem>>, vector<1x8x1xf32>
    %397 = vector.shape_cast %396 : vector<1x8x1xf32> to vector<8x1xf32>
    %cst_329 = arith.constant 0.000000e+00 : f32
    %398 = vector.broadcast %cst_329 : f32 to vector<8x256xf32>
    %c0_330 = arith.constant 0 : index
    %c0_331 = arith.constant 0 : index
    %c0_332 = arith.constant 0 : index
    %399 = vector.load %arg4[%c0_330, %c0_331, %c0_332] : memref<9x169x256xbf16, #tpu.memory_space<vmem>>, vector<1x169x256xbf16>
    %400 = vector.shape_cast %399 : vector<1x169x256xbf16> to vector<169x256xbf16>
    %cst_333 = arith.constant dense<0.000000e+00> : vector<8x256xf32>
    %401 = tpu.matmul %390, %400, %cst_333 {dimension_numbers = #tpu.dot_dimension_numbers<[1], [0], [0], [1], [0, 0, 1, 1], [], []>} : vector<8x169xbf16>, vector<169x256xbf16>, vector<8x256xf32> -> vector<8x256xf32>
    %c0_334 = arith.constant 0 : index
    %c0_335 = arith.constant 0 : index
    %c0_336 = arith.constant 0 : index
    %402 = vector.load %arg8[%c0_334, %c0_335, %c0_336] : memref<9x8x8xbf16, #tpu.memory_space<vmem>>, vector<1x8x8xbf16>
    %403 = vector.shape_cast %402 : vector<1x8x8xbf16> to vector<8x8xbf16>
    %404 = arith.truncf %401 : vector<8x256xf32> to vector<8x256xbf16>
    %cst_337 = arith.constant dense<0.000000e+00> : vector<8x256xf32>
    %405 = tpu.matmul %403, %404, %cst_337 {dimension_numbers = #tpu.dot_dimension_numbers<[1], [0], [0], [1], [0, 0, 1, 1], [], []>} : vector<8x8xbf16>, vector<8x256xbf16>, vector<8x256xf32> -> vector<8x256xf32>
    %406 = arith.addf %398, %405 : vector<8x256xf32>
    %c1_338 = arith.constant 1 : index
    %c0_339 = arith.constant 0 : index
    %c0_340 = arith.constant 0 : index
    %407 = vector.load %arg4[%c1_338, %c0_339, %c0_340] : memref<9x169x256xbf16, #tpu.memory_space<vmem>>, vector<1x169x256xbf16>
    %408 = vector.shape_cast %407 : vector<1x169x256xbf16> to vector<169x256xbf16>
    %cst_341 = arith.constant dense<0.000000e+00> : vector<8x256xf32>
    %409 = tpu.matmul %390, %408, %cst_341 {dimension_numbers = #tpu.dot_dimension_numbers<[1], [0], [0], [1], [0, 0, 1, 1], [], []>} : vector<8x169xbf16>, vector<169x256xbf16>, vector<8x256xf32> -> vector<8x256xf32>
    %c1_342 = arith.constant 1 : index
    %c0_343 = arith.constant 0 : index
    %c0_344 = arith.constant 0 : index
    %410 = vector.load %arg8[%c1_342, %c0_343, %c0_344] : memref<9x8x8xbf16, #tpu.memory_space<vmem>>, vector<1x8x8xbf16>
    %411 = vector.shape_cast %410 : vector<1x8x8xbf16> to vector<8x8xbf16>
    %412 = arith.truncf %409 : vector<8x256xf32> to vector<8x256xbf16>
    %cst_345 = arith.constant dense<0.000000e+00> : vector<8x256xf32>
    %413 = tpu.matmul %411, %412, %cst_345 {dimension_numbers = #tpu.dot_dimension_numbers<[1], [0], [0], [1], [0, 0, 1, 1], [], []>} : vector<8x8xbf16>, vector<8x256xbf16>, vector<8x256xf32> -> vector<8x256xf32>
    %414 = arith.addf %406, %413 : vector<8x256xf32>
    %c2_346 = arith.constant 2 : index
    %c0_347 = arith.constant 0 : index
    %c0_348 = arith.constant 0 : index
    %415 = vector.load %arg4[%c2_346, %c0_347, %c0_348] : memref<9x169x256xbf16, #tpu.memory_space<vmem>>, vector<1x169x256xbf16>
    %416 = vector.shape_cast %415 : vector<1x169x256xbf16> to vector<169x256xbf16>
    %cst_349 = arith.constant dense<0.000000e+00> : vector<8x256xf32>
    %417 = tpu.matmul %390, %416, %cst_349 {dimension_numbers = #tpu.dot_dimension_numbers<[1], [0], [0], [1], [0, 0, 1, 1], [], []>} : vector<8x169xbf16>, vector<169x256xbf16>, vector<8x256xf32> -> vector<8x256xf32>
    %c2_350 = arith.constant 2 : index
    %c0_351 = arith.constant 0 : index
    %c0_352 = arith.constant 0 : index
    %418 = vector.load %arg8[%c2_350, %c0_351, %c0_352] : memref<9x8x8xbf16, #tpu.memory_space<vmem>>, vector<1x8x8xbf16>
    %419 = vector.shape_cast %418 : vector<1x8x8xbf16> to vector<8x8xbf16>
    %420 = arith.truncf %417 : vector<8x256xf32> to vector<8x256xbf16>
    %cst_353 = arith.constant dense<0.000000e+00> : vector<8x256xf32>
    %421 = tpu.matmul %419, %420, %cst_353 {dimension_numbers = #tpu.dot_dimension_numbers<[1], [0], [0], [1], [0, 0, 1, 1], [], []>} : vector<8x8xbf16>, vector<8x256xbf16>, vector<8x256xf32> -> vector<8x256xf32>
    %422 = arith.addf %414, %421 : vector<8x256xf32>
    %c3_354 = arith.constant 3 : index
    %c0_355 = arith.constant 0 : index
    %c0_356 = arith.constant 0 : index
    %423 = vector.load %arg4[%c3_354, %c0_355, %c0_356] : memref<9x169x256xbf16, #tpu.memory_space<vmem>>, vector<1x169x256xbf16>
    %424 = vector.shape_cast %423 : vector<1x169x256xbf16> to vector<169x256xbf16>
    %cst_357 = arith.constant dense<0.000000e+00> : vector<8x256xf32>
    %425 = tpu.matmul %390, %424, %cst_357 {dimension_numbers = #tpu.dot_dimension_numbers<[1], [0], [0], [1], [0, 0, 1, 1], [], []>} : vector<8x169xbf16>, vector<169x256xbf16>, vector<8x256xf32> -> vector<8x256xf32>
    %c3_358 = arith.constant 3 : index
    %c0_359 = arith.constant 0 : index
    %c0_360 = arith.constant 0 : index
    %426 = vector.load %arg8[%c3_358, %c0_359, %c0_360] : memref<9x8x8xbf16, #tpu.memory_space<vmem>>, vector<1x8x8xbf16>
    %427 = vector.shape_cast %426 : vector<1x8x8xbf16> to vector<8x8xbf16>
    %428 = arith.truncf %425 : vector<8x256xf32> to vector<8x256xbf16>
    %cst_361 = arith.constant dense<0.000000e+00> : vector<8x256xf32>
    %429 = tpu.matmul %427, %428, %cst_361 {dimension_numbers = #tpu.dot_dimension_numbers<[1], [0], [0], [1], [0, 0, 1, 1], [], []>} : vector<8x8xbf16>, vector<8x256xbf16>, vector<8x256xf32> -> vector<8x256xf32>
    %430 = arith.addf %422, %429 : vector<8x256xf32>
    %c4_362 = arith.constant 4 : index
    %c0_363 = arith.constant 0 : index
    %c0_364 = arith.constant 0 : index
    %431 = vector.load %arg4[%c4_362, %c0_363, %c0_364] : memref<9x169x256xbf16, #tpu.memory_space<vmem>>, vector<1x169x256xbf16>
    %432 = vector.shape_cast %431 : vector<1x169x256xbf16> to vector<169x256xbf16>
    %cst_365 = arith.constant dense<0.000000e+00> : vector<8x256xf32>
    %433 = tpu.matmul %390, %432, %cst_365 {dimension_numbers = #tpu.dot_dimension_numbers<[1], [0], [0], [1], [0, 0, 1, 1], [], []>} : vector<8x169xbf16>, vector<169x256xbf16>, vector<8x256xf32> -> vector<8x256xf32>
    %c4_366 = arith.constant 4 : index
    %c0_367 = arith.constant 0 : index
    %c0_368 = arith.constant 0 : index
    %434 = vector.load %arg8[%c4_366, %c0_367, %c0_368] : memref<9x8x8xbf16, #tpu.memory_space<vmem>>, vector<1x8x8xbf16>
    %435 = vector.shape_cast %434 : vector<1x8x8xbf16> to vector<8x8xbf16>
    %436 = arith.truncf %433 : vector<8x256xf32> to vector<8x256xbf16>
    %cst_369 = arith.constant dense<0.000000e+00> : vector<8x256xf32>
    %437 = tpu.matmul %435, %436, %cst_369 {dimension_numbers = #tpu.dot_dimension_numbers<[1], [0], [0], [1], [0, 0, 1, 1], [], []>} : vector<8x8xbf16>, vector<8x256xbf16>, vector<8x256xf32> -> vector<8x256xf32>
    %438 = arith.addf %430, %437 : vector<8x256xf32>
    %c5_370 = arith.constant 5 : index
    %c0_371 = arith.constant 0 : index
    %c0_372 = arith.constant 0 : index
    %439 = vector.load %arg4[%c5_370, %c0_371, %c0_372] : memref<9x169x256xbf16, #tpu.memory_space<vmem>>, vector<1x169x256xbf16>
    %440 = vector.shape_cast %439 : vector<1x169x256xbf16> to vector<169x256xbf16>
    %cst_373 = arith.constant dense<0.000000e+00> : vector<8x256xf32>
    %441 = tpu.matmul %390, %440, %cst_373 {dimension_numbers = #tpu.dot_dimension_numbers<[1], [0], [0], [1], [0, 0, 1, 1], [], []>} : vector<8x169xbf16>, vector<169x256xbf16>, vector<8x256xf32> -> vector<8x256xf32>
    %c5_374 = arith.constant 5 : index
    %c0_375 = arith.constant 0 : index
    %c0_376 = arith.constant 0 : index
    %442 = vector.load %arg8[%c5_374, %c0_375, %c0_376] : memref<9x8x8xbf16, #tpu.memory_space<vmem>>, vector<1x8x8xbf16>
    %443 = vector.shape_cast %442 : vector<1x8x8xbf16> to vector<8x8xbf16>
    %444 = arith.truncf %441 : vector<8x256xf32> to vector<8x256xbf16>
    %cst_377 = arith.constant dense<0.000000e+00> : vector<8x256xf32>
    %445 = tpu.matmul %443, %444, %cst_377 {dimension_numbers = #tpu.dot_dimension_numbers<[1], [0], [0], [1], [0, 0, 1, 1], [], []>} : vector<8x8xbf16>, vector<8x256xbf16>, vector<8x256xf32> -> vector<8x256xf32>
    %446 = arith.addf %438, %445 : vector<8x256xf32>
    %c6_378 = arith.constant 6 : index
    %c0_379 = arith.constant 0 : index
    %c0_380 = arith.constant 0 : index
    %447 = vector.load %arg4[%c6_378, %c0_379, %c0_380] : memref<9x169x256xbf16, #tpu.memory_space<vmem>>, vector<1x169x256xbf16>
    %448 = vector.shape_cast %447 : vector<1x169x256xbf16> to vector<169x256xbf16>
    %cst_381 = arith.constant dense<0.000000e+00> : vector<8x256xf32>
    %449 = tpu.matmul %390, %448, %cst_381 {dimension_numbers = #tpu.dot_dimension_numbers<[1], [0], [0], [1], [0, 0, 1, 1], [], []>} : vector<8x169xbf16>, vector<169x256xbf16>, vector<8x256xf32> -> vector<8x256xf32>
    %c6_382 = arith.constant 6 : index
    %c0_383 = arith.constant 0 : index
    %c0_384 = arith.constant 0 : index
    %450 = vector.load %arg8[%c6_382, %c0_383, %c0_384] : memref<9x8x8xbf16, #tpu.memory_space<vmem>>, vector<1x8x8xbf16>
    %451 = vector.shape_cast %450 : vector<1x8x8xbf16> to vector<8x8xbf16>
    %452 = arith.truncf %449 : vector<8x256xf32> to vector<8x256xbf16>
    %cst_385 = arith.constant dense<0.000000e+00> : vector<8x256xf32>
    %453 = tpu.matmul %451, %452, %cst_385 {dimension_numbers = #tpu.dot_dimension_numbers<[1], [0], [0], [1], [0, 0, 1, 1], [], []>} : vector<8x8xbf16>, vector<8x256xbf16>, vector<8x256xf32> -> vector<8x256xf32>
    %454 = arith.addf %446, %453 : vector<8x256xf32>
    %c7_386 = arith.constant 7 : index
    %c0_387 = arith.constant 0 : index
    %c0_388 = arith.constant 0 : index
    %455 = vector.load %arg4[%c7_386, %c0_387, %c0_388] : memref<9x169x256xbf16, #tpu.memory_space<vmem>>, vector<1x169x256xbf16>
    %456 = vector.shape_cast %455 : vector<1x169x256xbf16> to vector<169x256xbf16>
    %cst_389 = arith.constant dense<0.000000e+00> : vector<8x256xf32>
    %457 = tpu.matmul %390, %456, %cst_389 {dimension_numbers = #tpu.dot_dimension_numbers<[1], [0], [0], [1], [0, 0, 1, 1], [], []>} : vector<8x169xbf16>, vector<169x256xbf16>, vector<8x256xf32> -> vector<8x256xf32>
    %c7_390 = arith.constant 7 : index
    %c0_391 = arith.constant 0 : index
    %c0_392 = arith.constant 0 : index
    %458 = vector.load %arg8[%c7_390, %c0_391, %c0_392] : memref<9x8x8xbf16, #tpu.memory_space<vmem>>, vector<1x8x8xbf16>
    %459 = vector.shape_cast %458 : vector<1x8x8xbf16> to vector<8x8xbf16>
    %460 = arith.truncf %457 : vector<8x256xf32> to vector<8x256xbf16>
    %cst_393 = arith.constant dense<0.000000e+00> : vector<8x256xf32>
    %461 = tpu.matmul %459, %460, %cst_393 {dimension_numbers = #tpu.dot_dimension_numbers<[1], [0], [0], [1], [0, 0, 1, 1], [], []>} : vector<8x8xbf16>, vector<8x256xbf16>, vector<8x256xf32> -> vector<8x256xf32>
    %462 = arith.addf %454, %461 : vector<8x256xf32>
    %c8_394 = arith.constant 8 : index
    %c0_395 = arith.constant 0 : index
    %c0_396 = arith.constant 0 : index
    %463 = vector.load %arg4[%c8_394, %c0_395, %c0_396] : memref<9x169x256xbf16, #tpu.memory_space<vmem>>, vector<1x169x256xbf16>
    %464 = vector.shape_cast %463 : vector<1x169x256xbf16> to vector<169x256xbf16>
    %cst_397 = arith.constant dense<0.000000e+00> : vector<8x256xf32>
    %465 = tpu.matmul %390, %464, %cst_397 {dimension_numbers = #tpu.dot_dimension_numbers<[1], [0], [0], [1], [0, 0, 1, 1], [], []>} : vector<8x169xbf16>, vector<169x256xbf16>, vector<8x256xf32> -> vector<8x256xf32>
    %c8_398 = arith.constant 8 : index
    %c0_399 = arith.constant 0 : index
    %c0_400 = arith.constant 0 : index
    %466 = vector.load %arg8[%c8_398, %c0_399, %c0_400] : memref<9x8x8xbf16, #tpu.memory_space<vmem>>, vector<1x8x8xbf16>
    %467 = vector.shape_cast %466 : vector<1x8x8xbf16> to vector<8x8xbf16>
    %468 = arith.truncf %465 : vector<8x256xf32> to vector<8x256xbf16>
    %cst_401 = arith.constant dense<0.000000e+00> : vector<8x256xf32>
    %469 = tpu.matmul %467, %468, %cst_401 {dimension_numbers = #tpu.dot_dimension_numbers<[1], [0], [0], [1], [0, 0, 1, 1], [], []>} : vector<8x8xbf16>, vector<8x256xbf16>, vector<8x256xf32> -> vector<8x256xf32>
    %470 = arith.addf %462, %469 : vector<8x256xf32>
    %471 = vector.broadcast %397 : vector<8x1xf32> to vector<8x256xf32>
    %472 = arith.addf %470, %471 : vector<8x256xf32>
    %cst_402 = arith.constant 0.000000e+00 : f32
    %473 = vector.broadcast %cst_402 : f32 to vector<8x256xf32>
    %474 = arith.maximumf %472, %473 : vector<8x256xf32>
    %cst_403 = arith.constant 0.000000e+00 : f32
    %475 = vector.broadcast %cst_403 : f32 to vector<8x256xf32>
    %c0_404 = arith.constant 0 : index
    %c0_405 = arith.constant 0 : index
    %c0_406 = arith.constant 0 : index
    %476 = vector.load %arg4[%c0_404, %c0_405, %c0_406] : memref<9x169x256xbf16, #tpu.memory_space<vmem>>, vector<1x169x256xbf16>
    %477 = vector.shape_cast %476 : vector<1x169x256xbf16> to vector<169x256xbf16>
    %cst_407 = arith.constant dense<0.000000e+00> : vector<8x256xf32>
    %478 = tpu.matmul %395, %477, %cst_407 {dimension_numbers = #tpu.dot_dimension_numbers<[1], [0], [0], [1], [0, 0, 1, 1], [], []>} : vector<8x169xbf16>, vector<169x256xbf16>, vector<8x256xf32> -> vector<8x256xf32>
    %c0_408 = arith.constant 0 : index
    %c0_409 = arith.constant 0 : index
    %c0_410 = arith.constant 0 : index
    %479 = vector.load %arg8[%c0_408, %c0_409, %c0_410] : memref<9x8x8xbf16, #tpu.memory_space<vmem>>, vector<1x8x8xbf16>
    %480 = vector.shape_cast %479 : vector<1x8x8xbf16> to vector<8x8xbf16>
    %481 = arith.truncf %478 : vector<8x256xf32> to vector<8x256xbf16>
    %cst_411 = arith.constant dense<0.000000e+00> : vector<8x256xf32>
    %482 = tpu.matmul %480, %481, %cst_411 {dimension_numbers = #tpu.dot_dimension_numbers<[1], [0], [0], [1], [0, 0, 1, 1], [], []>} : vector<8x8xbf16>, vector<8x256xbf16>, vector<8x256xf32> -> vector<8x256xf32>
    %483 = arith.addf %475, %482 : vector<8x256xf32>
    %c1_412 = arith.constant 1 : index
    %c0_413 = arith.constant 0 : index
    %c0_414 = arith.constant 0 : index
    %484 = vector.load %arg4[%c1_412, %c0_413, %c0_414] : memref<9x169x256xbf16, #tpu.memory_space<vmem>>, vector<1x169x256xbf16>
    %485 = vector.shape_cast %484 : vector<1x169x256xbf16> to vector<169x256xbf16>
    %cst_415 = arith.constant dense<0.000000e+00> : vector<8x256xf32>
    %486 = tpu.matmul %395, %485, %cst_415 {dimension_numbers = #tpu.dot_dimension_numbers<[1], [0], [0], [1], [0, 0, 1, 1], [], []>} : vector<8x169xbf16>, vector<169x256xbf16>, vector<8x256xf32> -> vector<8x256xf32>
    %c1_416 = arith.constant 1 : index
    %c0_417 = arith.constant 0 : index
    %c0_418 = arith.constant 0 : index
    %487 = vector.load %arg8[%c1_416, %c0_417, %c0_418] : memref<9x8x8xbf16, #tpu.memory_space<vmem>>, vector<1x8x8xbf16>
    %488 = vector.shape_cast %487 : vector<1x8x8xbf16> to vector<8x8xbf16>
    %489 = arith.truncf %486 : vector<8x256xf32> to vector<8x256xbf16>
    %cst_419 = arith.constant dense<0.000000e+00> : vector<8x256xf32>
    %490 = tpu.matmul %488, %489, %cst_419 {dimension_numbers = #tpu.dot_dimension_numbers<[1], [0], [0], [1], [0, 0, 1, 1], [], []>} : vector<8x8xbf16>, vector<8x256xbf16>, vector<8x256xf32> -> vector<8x256xf32>
    %491 = arith.addf %483, %490 : vector<8x256xf32>
    %c2_420 = arith.constant 2 : index
    %c0_421 = arith.constant 0 : index
    %c0_422 = arith.constant 0 : index
    %492 = vector.load %arg4[%c2_420, %c0_421, %c0_422] : memref<9x169x256xbf16, #tpu.memory_space<vmem>>, vector<1x169x256xbf16>
    %493 = vector.shape_cast %492 : vector<1x169x256xbf16> to vector<169x256xbf16>
    %cst_423 = arith.constant dense<0.000000e+00> : vector<8x256xf32>
    %494 = tpu.matmul %395, %493, %cst_423 {dimension_numbers = #tpu.dot_dimension_numbers<[1], [0], [0], [1], [0, 0, 1, 1], [], []>} : vector<8x169xbf16>, vector<169x256xbf16>, vector<8x256xf32> -> vector<8x256xf32>
    %c2_424 = arith.constant 2 : index
    %c0_425 = arith.constant 0 : index
    %c0_426 = arith.constant 0 : index
    %495 = vector.load %arg8[%c2_424, %c0_425, %c0_426] : memref<9x8x8xbf16, #tpu.memory_space<vmem>>, vector<1x8x8xbf16>
    %496 = vector.shape_cast %495 : vector<1x8x8xbf16> to vector<8x8xbf16>
    %497 = arith.truncf %494 : vector<8x256xf32> to vector<8x256xbf16>
    %cst_427 = arith.constant dense<0.000000e+00> : vector<8x256xf32>
    %498 = tpu.matmul %496, %497, %cst_427 {dimension_numbers = #tpu.dot_dimension_numbers<[1], [0], [0], [1], [0, 0, 1, 1], [], []>} : vector<8x8xbf16>, vector<8x256xbf16>, vector<8x256xf32> -> vector<8x256xf32>
    %499 = arith.addf %491, %498 : vector<8x256xf32>
    %c3_428 = arith.constant 3 : index
    %c0_429 = arith.constant 0 : index
    %c0_430 = arith.constant 0 : index
    %500 = vector.load %arg4[%c3_428, %c0_429, %c0_430] : memref<9x169x256xbf16, #tpu.memory_space<vmem>>, vector<1x169x256xbf16>
    %501 = vector.shape_cast %500 : vector<1x169x256xbf16> to vector<169x256xbf16>
    %cst_431 = arith.constant dense<0.000000e+00> : vector<8x256xf32>
    %502 = tpu.matmul %395, %501, %cst_431 {dimension_numbers = #tpu.dot_dimension_numbers<[1], [0], [0], [1], [0, 0, 1, 1], [], []>} : vector<8x169xbf16>, vector<169x256xbf16>, vector<8x256xf32> -> vector<8x256xf32>
    %c3_432 = arith.constant 3 : index
    %c0_433 = arith.constant 0 : index
    %c0_434 = arith.constant 0 : index
    %503 = vector.load %arg8[%c3_432, %c0_433, %c0_434] : memref<9x8x8xbf16, #tpu.memory_space<vmem>>, vector<1x8x8xbf16>
    %504 = vector.shape_cast %503 : vector<1x8x8xbf16> to vector<8x8xbf16>
    %505 = arith.truncf %502 : vector<8x256xf32> to vector<8x256xbf16>
    %cst_435 = arith.constant dense<0.000000e+00> : vector<8x256xf32>
    %506 = tpu.matmul %504, %505, %cst_435 {dimension_numbers = #tpu.dot_dimension_numbers<[1], [0], [0], [1], [0, 0, 1, 1], [], []>} : vector<8x8xbf16>, vector<8x256xbf16>, vector<8x256xf32> -> vector<8x256xf32>
    %507 = arith.addf %499, %506 : vector<8x256xf32>
    %c4_436 = arith.constant 4 : index
    %c0_437 = arith.constant 0 : index
    %c0_438 = arith.constant 0 : index
    %508 = vector.load %arg4[%c4_436, %c0_437, %c0_438] : memref<9x169x256xbf16, #tpu.memory_space<vmem>>, vector<1x169x256xbf16>
    %509 = vector.shape_cast %508 : vector<1x169x256xbf16> to vector<169x256xbf16>
    %cst_439 = arith.constant dense<0.000000e+00> : vector<8x256xf32>
    %510 = tpu.matmul %395, %509, %cst_439 {dimension_numbers = #tpu.dot_dimension_numbers<[1], [0], [0], [1], [0, 0, 1, 1], [], []>} : vector<8x169xbf16>, vector<169x256xbf16>, vector<8x256xf32> -> vector<8x256xf32>
    %c4_440 = arith.constant 4 : index
    %c0_441 = arith.constant 0 : index
    %c0_442 = arith.constant 0 : index
    %511 = vector.load %arg8[%c4_440, %c0_441, %c0_442] : memref<9x8x8xbf16, #tpu.memory_space<vmem>>, vector<1x8x8xbf16>
    %512 = vector.shape_cast %511 : vector<1x8x8xbf16> to vector<8x8xbf16>
    %513 = arith.truncf %510 : vector<8x256xf32> to vector<8x256xbf16>
    %cst_443 = arith.constant dense<0.000000e+00> : vector<8x256xf32>
    %514 = tpu.matmul %512, %513, %cst_443 {dimension_numbers = #tpu.dot_dimension_numbers<[1], [0], [0], [1], [0, 0, 1, 1], [], []>} : vector<8x8xbf16>, vector<8x256xbf16>, vector<8x256xf32> -> vector<8x256xf32>
    %515 = arith.addf %507, %514 : vector<8x256xf32>
    %c5_444 = arith.constant 5 : index
    %c0_445 = arith.constant 0 : index
    %c0_446 = arith.constant 0 : index
    %516 = vector.load %arg4[%c5_444, %c0_445, %c0_446] : memref<9x169x256xbf16, #tpu.memory_space<vmem>>, vector<1x169x256xbf16>
    %517 = vector.shape_cast %516 : vector<1x169x256xbf16> to vector<169x256xbf16>
    %cst_447 = arith.constant dense<0.000000e+00> : vector<8x256xf32>
    %518 = tpu.matmul %395, %517, %cst_447 {dimension_numbers = #tpu.dot_dimension_numbers<[1], [0], [0], [1], [0, 0, 1, 1], [], []>} : vector<8x169xbf16>, vector<169x256xbf16>, vector<8x256xf32> -> vector<8x256xf32>
    %c5_448 = arith.constant 5 : index
    %c0_449 = arith.constant 0 : index
    %c0_450 = arith.constant 0 : index
    %519 = vector.load %arg8[%c5_448, %c0_449, %c0_450] : memref<9x8x8xbf16, #tpu.memory_space<vmem>>, vector<1x8x8xbf16>
    %520 = vector.shape_cast %519 : vector<1x8x8xbf16> to vector<8x8xbf16>
    %521 = arith.truncf %518 : vector<8x256xf32> to vector<8x256xbf16>
    %cst_451 = arith.constant dense<0.000000e+00> : vector<8x256xf32>
    %522 = tpu.matmul %520, %521, %cst_451 {dimension_numbers = #tpu.dot_dimension_numbers<[1], [0], [0], [1], [0, 0, 1, 1], [], []>} : vector<8x8xbf16>, vector<8x256xbf16>, vector<8x256xf32> -> vector<8x256xf32>
    %523 = arith.addf %515, %522 : vector<8x256xf32>
    %c6_452 = arith.constant 6 : index
    %c0_453 = arith.constant 0 : index
    %c0_454 = arith.constant 0 : index
    %524 = vector.load %arg4[%c6_452, %c0_453, %c0_454] : memref<9x169x256xbf16, #tpu.memory_space<vmem>>, vector<1x169x256xbf16>
    %525 = vector.shape_cast %524 : vector<1x169x256xbf16> to vector<169x256xbf16>
    %cst_455 = arith.constant dense<0.000000e+00> : vector<8x256xf32>
    %526 = tpu.matmul %395, %525, %cst_455 {dimension_numbers = #tpu.dot_dimension_numbers<[1], [0], [0], [1], [0, 0, 1, 1], [], []>} : vector<8x169xbf16>, vector<169x256xbf16>, vector<8x256xf32> -> vector<8x256xf32>
    %c6_456 = arith.constant 6 : index
    %c0_457 = arith.constant 0 : index
    %c0_458 = arith.constant 0 : index
    %527 = vector.load %arg8[%c6_456, %c0_457, %c0_458] : memref<9x8x8xbf16, #tpu.memory_space<vmem>>, vector<1x8x8xbf16>
    %528 = vector.shape_cast %527 : vector<1x8x8xbf16> to vector<8x8xbf16>
    %529 = arith.truncf %526 : vector<8x256xf32> to vector<8x256xbf16>
    %cst_459 = arith.constant dense<0.000000e+00> : vector<8x256xf32>
    %530 = tpu.matmul %528, %529, %cst_459 {dimension_numbers = #tpu.dot_dimension_numbers<[1], [0], [0], [1], [0, 0, 1, 1], [], []>} : vector<8x8xbf16>, vector<8x256xbf16>, vector<8x256xf32> -> vector<8x256xf32>
    %531 = arith.addf %523, %530 : vector<8x256xf32>
    %c7_460 = arith.constant 7 : index
    %c0_461 = arith.constant 0 : index
    %c0_462 = arith.constant 0 : index
    %532 = vector.load %arg4[%c7_460, %c0_461, %c0_462] : memref<9x169x256xbf16, #tpu.memory_space<vmem>>, vector<1x169x256xbf16>
    %533 = vector.shape_cast %532 : vector<1x169x256xbf16> to vector<169x256xbf16>
    %cst_463 = arith.constant dense<0.000000e+00> : vector<8x256xf32>
    %534 = tpu.matmul %395, %533, %cst_463 {dimension_numbers = #tpu.dot_dimension_numbers<[1], [0], [0], [1], [0, 0, 1, 1], [], []>} : vector<8x169xbf16>, vector<169x256xbf16>, vector<8x256xf32> -> vector<8x256xf32>
    %c7_464 = arith.constant 7 : index
    %c0_465 = arith.constant 0 : index
    %c0_466 = arith.constant 0 : index
    %535 = vector.load %arg8[%c7_464, %c0_465, %c0_466] : memref<9x8x8xbf16, #tpu.memory_space<vmem>>, vector<1x8x8xbf16>
    %536 = vector.shape_cast %535 : vector<1x8x8xbf16> to vector<8x8xbf16>
    %537 = arith.truncf %534 : vector<8x256xf32> to vector<8x256xbf16>
    %cst_467 = arith.constant dense<0.000000e+00> : vector<8x256xf32>
    %538 = tpu.matmul %536, %537, %cst_467 {dimension_numbers = #tpu.dot_dimension_numbers<[1], [0], [0], [1], [0, 0, 1, 1], [], []>} : vector<8x8xbf16>, vector<8x256xbf16>, vector<8x256xf32> -> vector<8x256xf32>
    %539 = arith.addf %531, %538 : vector<8x256xf32>
    %c8_468 = arith.constant 8 : index
    %c0_469 = arith.constant 0 : index
    %c0_470 = arith.constant 0 : index
    %540 = vector.load %arg4[%c8_468, %c0_469, %c0_470] : memref<9x169x256xbf16, #tpu.memory_space<vmem>>, vector<1x169x256xbf16>
    %541 = vector.shape_cast %540 : vector<1x169x256xbf16> to vector<169x256xbf16>
    %cst_471 = arith.constant dense<0.000000e+00> : vector<8x256xf32>
    %542 = tpu.matmul %395, %541, %cst_471 {dimension_numbers = #tpu.dot_dimension_numbers<[1], [0], [0], [1], [0, 0, 1, 1], [], []>} : vector<8x169xbf16>, vector<169x256xbf16>, vector<8x256xf32> -> vector<8x256xf32>
    %c8_472 = arith.constant 8 : index
    %c0_473 = arith.constant 0 : index
    %c0_474 = arith.constant 0 : index
    %543 = vector.load %arg8[%c8_472, %c0_473, %c0_474] : memref<9x8x8xbf16, #tpu.memory_space<vmem>>, vector<1x8x8xbf16>
    %544 = vector.shape_cast %543 : vector<1x8x8xbf16> to vector<8x8xbf16>
    %545 = arith.truncf %542 : vector<8x256xf32> to vector<8x256xbf16>
    %cst_475 = arith.constant dense<0.000000e+00> : vector<8x256xf32>
    %546 = tpu.matmul %544, %545, %cst_475 {dimension_numbers = #tpu.dot_dimension_numbers<[1], [0], [0], [1], [0, 0, 1, 1], [], []>} : vector<8x8xbf16>, vector<8x256xbf16>, vector<8x256xf32> -> vector<8x256xf32>
    %547 = arith.addf %539, %546 : vector<8x256xf32>
    %548 = vector.broadcast %397 : vector<8x1xf32> to vector<8x256xf32>
    %549 = arith.addf %547, %548 : vector<8x256xf32>
    %cst_476 = arith.constant 0.000000e+00 : f32
    %550 = vector.broadcast %cst_476 : f32 to vector<8x256xf32>
    %551 = arith.maximumf %549, %550 : vector<8x256xf32>
    %cst_477 = arith.constant dense<0.000000e+00> : vector<8xf32>
    %552 = vector.multi_reduction <add>, %474, %cst_477 [1] : vector<8x256xf32> to vector<8xf32>
    %553 = vector.shape_cast %552 : vector<8xf32> to vector<8x1xf32>
    %554 = arith.mulf %474, %474 : vector<8x256xf32>
    %cst_478 = arith.constant dense<0.000000e+00> : vector<8xf32>
    %555 = vector.multi_reduction <add>, %554, %cst_478 [1] : vector<8x256xf32> to vector<8xf32>
    %556 = vector.shape_cast %555 : vector<8xf32> to vector<8x1xf32>
    %cst_479 = arith.constant dense<0.000000e+00> : vector<8xf32>
    %557 = vector.multi_reduction <add>, %551, %cst_479 [1] : vector<8x256xf32> to vector<8xf32>
    %558 = vector.shape_cast %557 : vector<8xf32> to vector<8x1xf32>
    %559 = arith.addf %553, %558 : vector<8x1xf32>
    %560 = arith.mulf %551, %551 : vector<8x256xf32>
    %cst_480 = arith.constant dense<0.000000e+00> : vector<8xf32>
    %561 = vector.multi_reduction <add>, %560, %cst_480 [1] : vector<8x256xf32> to vector<8xf32>
    %562 = vector.shape_cast %561 : vector<8xf32> to vector<8x1xf32>
    %563 = arith.addf %556, %562 : vector<8x1xf32>
    %cst_481 = arith.constant 0.001953125 : f32
    %564 = vector.broadcast %cst_481 : f32 to vector<8x1xf32>
    %565 = arith.mulf %559, %564 : vector<8x1xf32>
    %cst_482 = arith.constant 0.001953125 : f32
    %566 = vector.broadcast %cst_482 : f32 to vector<8x1xf32>
    %567 = arith.mulf %563, %566 : vector<8x1xf32>
    %568 = arith.mulf %565, %565 : vector<8x1xf32>
    %569 = arith.subf %567, %568 : vector<8x1xf32>
    %cst_483 = arith.constant 0.000000e+00 : f32
    %570 = vector.broadcast %cst_483 : f32 to vector<8x1xf32>
    %571 = arith.maximumf %569, %570 : vector<8x1xf32>
    %c2_484 = arith.constant 2 : index
    %c0_485 = arith.constant 0 : index
    %c0_486 = arith.constant 0 : index
    %572 = vector.load %arg11[%c2_484, %c0_485, %c0_486] : memref<4x8x1xf32, #tpu.memory_space<vmem>>, vector<1x8x1xf32>
    %573 = vector.shape_cast %572 : vector<1x8x1xf32> to vector<8x1xf32>
    %cst_487 = arith.constant 9.99999974E-6 : f32
    %574 = vector.broadcast %cst_487 : f32 to vector<8x1xf32>
    %575 = arith.addf %571, %574 : vector<8x1xf32>
    %576 = math.rsqrt %575 : vector<8x1xf32>
    %577 = arith.mulf %573, %576 : vector<8x1xf32>
    %c2_488 = arith.constant 2 : index
    %c0_489 = arith.constant 0 : index
    %c0_490 = arith.constant 0 : index
    %578 = vector.load %arg12[%c2_488, %c0_489, %c0_490] : memref<4x8x1xf32, #tpu.memory_space<vmem>>, vector<1x8x1xf32>
    %579 = vector.shape_cast %578 : vector<1x8x1xf32> to vector<8x1xf32>
    %580 = arith.mulf %565, %577 : vector<8x1xf32>
    %581 = arith.subf %579, %580 : vector<8x1xf32>
    %582 = vector.broadcast %577 : vector<8x1xf32> to vector<8x256xf32>
    %583 = arith.mulf %474, %582 : vector<8x256xf32>
    %584 = vector.broadcast %581 : vector<8x1xf32> to vector<8x256xf32>
    %585 = arith.addf %583, %584 : vector<8x256xf32>
    %586 = arith.truncf %585 : vector<8x256xf32> to vector<8x256xbf16>
    %587 = vector.broadcast %577 : vector<8x1xf32> to vector<8x256xf32>
    %588 = arith.mulf %551, %587 : vector<8x256xf32>
    %589 = vector.broadcast %581 : vector<8x1xf32> to vector<8x256xf32>
    %590 = arith.addf %588, %589 : vector<8x256xf32>
    %591 = arith.truncf %590 : vector<8x256xf32> to vector<8x256xbf16>
    %c3_491 = arith.constant 3 : index
    %c0_492 = arith.constant 0 : index
    %c0_493 = arith.constant 0 : index
    %592 = vector.load %arg10[%c3_491, %c0_492, %c0_493] : memref<4x8x1xf32, #tpu.memory_space<vmem>>, vector<1x8x1xf32>
    %593 = vector.shape_cast %592 : vector<1x8x1xf32> to vector<8x1xf32>
    %cst_494 = arith.constant 0.000000e+00 : f32
    %594 = vector.broadcast %cst_494 : f32 to vector<8x256xf32>
    %c0_495 = arith.constant 0 : index
    %c0_496 = arith.constant 0 : index
    %c0_497 = arith.constant 0 : index
    %595 = vector.load %arg5[%c0_495, %c0_496, %c0_497] : memref<9x256x256xbf16, #tpu.memory_space<vmem>>, vector<1x256x256xbf16>
    %596 = vector.shape_cast %595 : vector<1x256x256xbf16> to vector<256x256xbf16>
    %cst_498 = arith.constant dense<0.000000e+00> : vector<8x256xf32>
    %597 = tpu.matmul %586, %596, %cst_498 {dimension_numbers = #tpu.dot_dimension_numbers<[1], [0], [0], [1], [0, 0, 1, 1], [], []>} : vector<8x256xbf16>, vector<256x256xbf16>, vector<8x256xf32> -> vector<8x256xf32>
    %c0_499 = arith.constant 0 : index
    %c0_500 = arith.constant 0 : index
    %c0_501 = arith.constant 0 : index
    %598 = vector.load %arg9[%c0_499, %c0_500, %c0_501] : memref<9x8x8xbf16, #tpu.memory_space<vmem>>, vector<1x8x8xbf16>
    %599 = vector.shape_cast %598 : vector<1x8x8xbf16> to vector<8x8xbf16>
    %600 = arith.truncf %597 : vector<8x256xf32> to vector<8x256xbf16>
    %cst_502 = arith.constant dense<0.000000e+00> : vector<8x256xf32>
    %601 = tpu.matmul %599, %600, %cst_502 {dimension_numbers = #tpu.dot_dimension_numbers<[1], [0], [0], [1], [0, 0, 1, 1], [], []>} : vector<8x8xbf16>, vector<8x256xbf16>, vector<8x256xf32> -> vector<8x256xf32>
    %602 = arith.addf %594, %601 : vector<8x256xf32>
    %c1_503 = arith.constant 1 : index
    %c0_504 = arith.constant 0 : index
    %c0_505 = arith.constant 0 : index
    %603 = vector.load %arg5[%c1_503, %c0_504, %c0_505] : memref<9x256x256xbf16, #tpu.memory_space<vmem>>, vector<1x256x256xbf16>
    %604 = vector.shape_cast %603 : vector<1x256x256xbf16> to vector<256x256xbf16>
    %cst_506 = arith.constant dense<0.000000e+00> : vector<8x256xf32>
    %605 = tpu.matmul %586, %604, %cst_506 {dimension_numbers = #tpu.dot_dimension_numbers<[1], [0], [0], [1], [0, 0, 1, 1], [], []>} : vector<8x256xbf16>, vector<256x256xbf16>, vector<8x256xf32> -> vector<8x256xf32>
    %c1_507 = arith.constant 1 : index
    %c0_508 = arith.constant 0 : index
    %c0_509 = arith.constant 0 : index
    %606 = vector.load %arg9[%c1_507, %c0_508, %c0_509] : memref<9x8x8xbf16, #tpu.memory_space<vmem>>, vector<1x8x8xbf16>
    %607 = vector.shape_cast %606 : vector<1x8x8xbf16> to vector<8x8xbf16>
    %608 = arith.truncf %605 : vector<8x256xf32> to vector<8x256xbf16>
    %cst_510 = arith.constant dense<0.000000e+00> : vector<8x256xf32>
    %609 = tpu.matmul %607, %608, %cst_510 {dimension_numbers = #tpu.dot_dimension_numbers<[1], [0], [0], [1], [0, 0, 1, 1], [], []>} : vector<8x8xbf16>, vector<8x256xbf16>, vector<8x256xf32> -> vector<8x256xf32>
    %610 = arith.addf %602, %609 : vector<8x256xf32>
    %c2_511 = arith.constant 2 : index
    %c0_512 = arith.constant 0 : index
    %c0_513 = arith.constant 0 : index
    %611 = vector.load %arg5[%c2_511, %c0_512, %c0_513] : memref<9x256x256xbf16, #tpu.memory_space<vmem>>, vector<1x256x256xbf16>
    %612 = vector.shape_cast %611 : vector<1x256x256xbf16> to vector<256x256xbf16>
    %cst_514 = arith.constant dense<0.000000e+00> : vector<8x256xf32>
    %613 = tpu.matmul %586, %612, %cst_514 {dimension_numbers = #tpu.dot_dimension_numbers<[1], [0], [0], [1], [0, 0, 1, 1], [], []>} : vector<8x256xbf16>, vector<256x256xbf16>, vector<8x256xf32> -> vector<8x256xf32>
    %c2_515 = arith.constant 2 : index
    %c0_516 = arith.constant 0 : index
    %c0_517 = arith.constant 0 : index
    %614 = vector.load %arg9[%c2_515, %c0_516, %c0_517] : memref<9x8x8xbf16, #tpu.memory_space<vmem>>, vector<1x8x8xbf16>
    %615 = vector.shape_cast %614 : vector<1x8x8xbf16> to vector<8x8xbf16>
    %616 = arith.truncf %613 : vector<8x256xf32> to vector<8x256xbf16>
    %cst_518 = arith.constant dense<0.000000e+00> : vector<8x256xf32>
    %617 = tpu.matmul %615, %616, %cst_518 {dimension_numbers = #tpu.dot_dimension_numbers<[1], [0], [0], [1], [0, 0, 1, 1], [], []>} : vector<8x8xbf16>, vector<8x256xbf16>, vector<8x256xf32> -> vector<8x256xf32>
    %618 = arith.addf %610, %617 : vector<8x256xf32>
    %c3_519 = arith.constant 3 : index
    %c0_520 = arith.constant 0 : index
    %c0_521 = arith.constant 0 : index
    %619 = vector.load %arg5[%c3_519, %c0_520, %c0_521] : memref<9x256x256xbf16, #tpu.memory_space<vmem>>, vector<1x256x256xbf16>
    %620 = vector.shape_cast %619 : vector<1x256x256xbf16> to vector<256x256xbf16>
    %cst_522 = arith.constant dense<0.000000e+00> : vector<8x256xf32>
    %621 = tpu.matmul %586, %620, %cst_522 {dimension_numbers = #tpu.dot_dimension_numbers<[1], [0], [0], [1], [0, 0, 1, 1], [], []>} : vector<8x256xbf16>, vector<256x256xbf16>, vector<8x256xf32> -> vector<8x256xf32>
    %c3_523 = arith.constant 3 : index
    %c0_524 = arith.constant 0 : index
    %c0_525 = arith.constant 0 : index
    %622 = vector.load %arg9[%c3_523, %c0_524, %c0_525] : memref<9x8x8xbf16, #tpu.memory_space<vmem>>, vector<1x8x8xbf16>
    %623 = vector.shape_cast %622 : vector<1x8x8xbf16> to vector<8x8xbf16>
    %624 = arith.truncf %621 : vector<8x256xf32> to vector<8x256xbf16>
    %cst_526 = arith.constant dense<0.000000e+00> : vector<8x256xf32>
    %625 = tpu.matmul %623, %624, %cst_526 {dimension_numbers = #tpu.dot_dimension_numbers<[1], [0], [0], [1], [0, 0, 1, 1], [], []>} : vector<8x8xbf16>, vector<8x256xbf16>, vector<8x256xf32> -> vector<8x256xf32>
    %626 = arith.addf %618, %625 : vector<8x256xf32>
    %c4_527 = arith.constant 4 : index
    %c0_528 = arith.constant 0 : index
    %c0_529 = arith.constant 0 : index
    %627 = vector.load %arg5[%c4_527, %c0_528, %c0_529] : memref<9x256x256xbf16, #tpu.memory_space<vmem>>, vector<1x256x256xbf16>
    %628 = vector.shape_cast %627 : vector<1x256x256xbf16> to vector<256x256xbf16>
    %cst_530 = arith.constant dense<0.000000e+00> : vector<8x256xf32>
    %629 = tpu.matmul %586, %628, %cst_530 {dimension_numbers = #tpu.dot_dimension_numbers<[1], [0], [0], [1], [0, 0, 1, 1], [], []>} : vector<8x256xbf16>, vector<256x256xbf16>, vector<8x256xf32> -> vector<8x256xf32>
    %c4_531 = arith.constant 4 : index
    %c0_532 = arith.constant 0 : index
    %c0_533 = arith.constant 0 : index
    %630 = vector.load %arg9[%c4_531, %c0_532, %c0_533] : memref<9x8x8xbf16, #tpu.memory_space<vmem>>, vector<1x8x8xbf16>
    %631 = vector.shape_cast %630 : vector<1x8x8xbf16> to vector<8x8xbf16>
    %632 = arith.truncf %629 : vector<8x256xf32> to vector<8x256xbf16>
    %cst_534 = arith.constant dense<0.000000e+00> : vector<8x256xf32>
    %633 = tpu.matmul %631, %632, %cst_534 {dimension_numbers = #tpu.dot_dimension_numbers<[1], [0], [0], [1], [0, 0, 1, 1], [], []>} : vector<8x8xbf16>, vector<8x256xbf16>, vector<8x256xf32> -> vector<8x256xf32>
    %634 = arith.addf %626, %633 : vector<8x256xf32>
    %c5_535 = arith.constant 5 : index
    %c0_536 = arith.constant 0 : index
    %c0_537 = arith.constant 0 : index
    %635 = vector.load %arg5[%c5_535, %c0_536, %c0_537] : memref<9x256x256xbf16, #tpu.memory_space<vmem>>, vector<1x256x256xbf16>
    %636 = vector.shape_cast %635 : vector<1x256x256xbf16> to vector<256x256xbf16>
    %cst_538 = arith.constant dense<0.000000e+00> : vector<8x256xf32>
    %637 = tpu.matmul %586, %636, %cst_538 {dimension_numbers = #tpu.dot_dimension_numbers<[1], [0], [0], [1], [0, 0, 1, 1], [], []>} : vector<8x256xbf16>, vector<256x256xbf16>, vector<8x256xf32> -> vector<8x256xf32>
    %c5_539 = arith.constant 5 : index
    %c0_540 = arith.constant 0 : index
    %c0_541 = arith.constant 0 : index
    %638 = vector.load %arg9[%c5_539, %c0_540, %c0_541] : memref<9x8x8xbf16, #tpu.memory_space<vmem>>, vector<1x8x8xbf16>
    %639 = vector.shape_cast %638 : vector<1x8x8xbf16> to vector<8x8xbf16>
    %640 = arith.truncf %637 : vector<8x256xf32> to vector<8x256xbf16>
    %cst_542 = arith.constant dense<0.000000e+00> : vector<8x256xf32>
    %641 = tpu.matmul %639, %640, %cst_542 {dimension_numbers = #tpu.dot_dimension_numbers<[1], [0], [0], [1], [0, 0, 1, 1], [], []>} : vector<8x8xbf16>, vector<8x256xbf16>, vector<8x256xf32> -> vector<8x256xf32>
    %642 = arith.addf %634, %641 : vector<8x256xf32>
    %c6_543 = arith.constant 6 : index
    %c0_544 = arith.constant 0 : index
    %c0_545 = arith.constant 0 : index
    %643 = vector.load %arg5[%c6_543, %c0_544, %c0_545] : memref<9x256x256xbf16, #tpu.memory_space<vmem>>, vector<1x256x256xbf16>
    %644 = vector.shape_cast %643 : vector<1x256x256xbf16> to vector<256x256xbf16>
    %cst_546 = arith.constant dense<0.000000e+00> : vector<8x256xf32>
    %645 = tpu.matmul %586, %644, %cst_546 {dimension_numbers = #tpu.dot_dimension_numbers<[1], [0], [0], [1], [0, 0, 1, 1], [], []>} : vector<8x256xbf16>, vector<256x256xbf16>, vector<8x256xf32> -> vector<8x256xf32>
    %c6_547 = arith.constant 6 : index
    %c0_548 = arith.constant 0 : index
    %c0_549 = arith.constant 0 : index
    %646 = vector.load %arg9[%c6_547, %c0_548, %c0_549] : memref<9x8x8xbf16, #tpu.memory_space<vmem>>, vector<1x8x8xbf16>
    %647 = vector.shape_cast %646 : vector<1x8x8xbf16> to vector<8x8xbf16>
    %648 = arith.truncf %645 : vector<8x256xf32> to vector<8x256xbf16>
    %cst_550 = arith.constant dense<0.000000e+00> : vector<8x256xf32>
    %649 = tpu.matmul %647, %648, %cst_550 {dimension_numbers = #tpu.dot_dimension_numbers<[1], [0], [0], [1], [0, 0, 1, 1], [], []>} : vector<8x8xbf16>, vector<8x256xbf16>, vector<8x256xf32> -> vector<8x256xf32>
    %650 = arith.addf %642, %649 : vector<8x256xf32>
    %c7_551 = arith.constant 7 : index
    %c0_552 = arith.constant 0 : index
    %c0_553 = arith.constant 0 : index
    %651 = vector.load %arg5[%c7_551, %c0_552, %c0_553] : memref<9x256x256xbf16, #tpu.memory_space<vmem>>, vector<1x256x256xbf16>
    %652 = vector.shape_cast %651 : vector<1x256x256xbf16> to vector<256x256xbf16>
    %cst_554 = arith.constant dense<0.000000e+00> : vector<8x256xf32>
    %653 = tpu.matmul %586, %652, %cst_554 {dimension_numbers = #tpu.dot_dimension_numbers<[1], [0], [0], [1], [0, 0, 1, 1], [], []>} : vector<8x256xbf16>, vector<256x256xbf16>, vector<8x256xf32> -> vector<8x256xf32>
    %c7_555 = arith.constant 7 : index
    %c0_556 = arith.constant 0 : index
    %c0_557 = arith.constant 0 : index
    %654 = vector.load %arg9[%c7_555, %c0_556, %c0_557] : memref<9x8x8xbf16, #tpu.memory_space<vmem>>, vector<1x8x8xbf16>
    %655 = vector.shape_cast %654 : vector<1x8x8xbf16> to vector<8x8xbf16>
    %656 = arith.truncf %653 : vector<8x256xf32> to vector<8x256xbf16>
    %cst_558 = arith.constant dense<0.000000e+00> : vector<8x256xf32>
    %657 = tpu.matmul %655, %656, %cst_558 {dimension_numbers = #tpu.dot_dimension_numbers<[1], [0], [0], [1], [0, 0, 1, 1], [], []>} : vector<8x8xbf16>, vector<8x256xbf16>, vector<8x256xf32> -> vector<8x256xf32>
    %658 = arith.addf %650, %657 : vector<8x256xf32>
    %c8_559 = arith.constant 8 : index
    %c0_560 = arith.constant 0 : index
    %c0_561 = arith.constant 0 : index
    %659 = vector.load %arg5[%c8_559, %c0_560, %c0_561] : memref<9x256x256xbf16, #tpu.memory_space<vmem>>, vector<1x256x256xbf16>
    %660 = vector.shape_cast %659 : vector<1x256x256xbf16> to vector<256x256xbf16>
    %cst_562 = arith.constant dense<0.000000e+00> : vector<8x256xf32>
    %661 = tpu.matmul %586, %660, %cst_562 {dimension_numbers = #tpu.dot_dimension_numbers<[1], [0], [0], [1], [0, 0, 1, 1], [], []>} : vector<8x256xbf16>, vector<256x256xbf16>, vector<8x256xf32> -> vector<8x256xf32>
    %c8_563 = arith.constant 8 : index
    %c0_564 = arith.constant 0 : index
    %c0_565 = arith.constant 0 : index
    %662 = vector.load %arg9[%c8_563, %c0_564, %c0_565] : memref<9x8x8xbf16, #tpu.memory_space<vmem>>, vector<1x8x8xbf16>
    %663 = vector.shape_cast %662 : vector<1x8x8xbf16> to vector<8x8xbf16>
    %664 = arith.truncf %661 : vector<8x256xf32> to vector<8x256xbf16>
    %cst_566 = arith.constant dense<0.000000e+00> : vector<8x256xf32>
    %665 = tpu.matmul %663, %664, %cst_566 {dimension_numbers = #tpu.dot_dimension_numbers<[1], [0], [0], [1], [0, 0, 1, 1], [], []>} : vector<8x8xbf16>, vector<8x256xbf16>, vector<8x256xf32> -> vector<8x256xf32>
    %666 = arith.addf %658, %665 : vector<8x256xf32>
    %667 = vector.broadcast %593 : vector<8x1xf32> to vector<8x256xf32>
    %668 = arith.addf %666, %667 : vector<8x256xf32>
    %cst_567 = arith.constant 0.000000e+00 : f32
    %669 = vector.broadcast %cst_567 : f32 to vector<8x256xf32>
    %670 = arith.maximumf %668, %669 : vector<8x256xf32>
    %cst_568 = arith.constant 0.000000e+00 : f32
    %671 = vector.broadcast %cst_568 : f32 to vector<8x256xf32>
    %c0_569 = arith.constant 0 : index
    %c0_570 = arith.constant 0 : index
    %c0_571 = arith.constant 0 : index
    %672 = vector.load %arg5[%c0_569, %c0_570, %c0_571] : memref<9x256x256xbf16, #tpu.memory_space<vmem>>, vector<1x256x256xbf16>
    %673 = vector.shape_cast %672 : vector<1x256x256xbf16> to vector<256x256xbf16>
    %cst_572 = arith.constant dense<0.000000e+00> : vector<8x256xf32>
    %674 = tpu.matmul %591, %673, %cst_572 {dimension_numbers = #tpu.dot_dimension_numbers<[1], [0], [0], [1], [0, 0, 1, 1], [], []>} : vector<8x256xbf16>, vector<256x256xbf16>, vector<8x256xf32> -> vector<8x256xf32>
    %c0_573 = arith.constant 0 : index
    %c0_574 = arith.constant 0 : index
    %c0_575 = arith.constant 0 : index
    %675 = vector.load %arg9[%c0_573, %c0_574, %c0_575] : memref<9x8x8xbf16, #tpu.memory_space<vmem>>, vector<1x8x8xbf16>
    %676 = vector.shape_cast %675 : vector<1x8x8xbf16> to vector<8x8xbf16>
    %677 = arith.truncf %674 : vector<8x256xf32> to vector<8x256xbf16>
    %cst_576 = arith.constant dense<0.000000e+00> : vector<8x256xf32>
    %678 = tpu.matmul %676, %677, %cst_576 {dimension_numbers = #tpu.dot_dimension_numbers<[1], [0], [0], [1], [0, 0, 1, 1], [], []>} : vector<8x8xbf16>, vector<8x256xbf16>, vector<8x256xf32> -> vector<8x256xf32>
    %679 = arith.addf %671, %678 : vector<8x256xf32>
    %c1_577 = arith.constant 1 : index
    %c0_578 = arith.constant 0 : index
    %c0_579 = arith.constant 0 : index
    %680 = vector.load %arg5[%c1_577, %c0_578, %c0_579] : memref<9x256x256xbf16, #tpu.memory_space<vmem>>, vector<1x256x256xbf16>
    %681 = vector.shape_cast %680 : vector<1x256x256xbf16> to vector<256x256xbf16>
    %cst_580 = arith.constant dense<0.000000e+00> : vector<8x256xf32>
    %682 = tpu.matmul %591, %681, %cst_580 {dimension_numbers = #tpu.dot_dimension_numbers<[1], [0], [0], [1], [0, 0, 1, 1], [], []>} : vector<8x256xbf16>, vector<256x256xbf16>, vector<8x256xf32> -> vector<8x256xf32>
    %c1_581 = arith.constant 1 : index
    %c0_582 = arith.constant 0 : index
    %c0_583 = arith.constant 0 : index
    %683 = vector.load %arg9[%c1_581, %c0_582, %c0_583] : memref<9x8x8xbf16, #tpu.memory_space<vmem>>, vector<1x8x8xbf16>
    %684 = vector.shape_cast %683 : vector<1x8x8xbf16> to vector<8x8xbf16>
    %685 = arith.truncf %682 : vector<8x256xf32> to vector<8x256xbf16>
    %cst_584 = arith.constant dense<0.000000e+00> : vector<8x256xf32>
    %686 = tpu.matmul %684, %685, %cst_584 {dimension_numbers = #tpu.dot_dimension_numbers<[1], [0], [0], [1], [0, 0, 1, 1], [], []>} : vector<8x8xbf16>, vector<8x256xbf16>, vector<8x256xf32> -> vector<8x256xf32>
    %687 = arith.addf %679, %686 : vector<8x256xf32>
    %c2_585 = arith.constant 2 : index
    %c0_586 = arith.constant 0 : index
    %c0_587 = arith.constant 0 : index
    %688 = vector.load %arg5[%c2_585, %c0_586, %c0_587] : memref<9x256x256xbf16, #tpu.memory_space<vmem>>, vector<1x256x256xbf16>
    %689 = vector.shape_cast %688 : vector<1x256x256xbf16> to vector<256x256xbf16>
    %cst_588 = arith.constant dense<0.000000e+00> : vector<8x256xf32>
    %690 = tpu.matmul %591, %689, %cst_588 {dimension_numbers = #tpu.dot_dimension_numbers<[1], [0], [0], [1], [0, 0, 1, 1], [], []>} : vector<8x256xbf16>, vector<256x256xbf16>, vector<8x256xf32> -> vector<8x256xf32>
    %c2_589 = arith.constant 2 : index
    %c0_590 = arith.constant 0 : index
    %c0_591 = arith.constant 0 : index
    %691 = vector.load %arg9[%c2_589, %c0_590, %c0_591] : memref<9x8x8xbf16, #tpu.memory_space<vmem>>, vector<1x8x8xbf16>
    %692 = vector.shape_cast %691 : vector<1x8x8xbf16> to vector<8x8xbf16>
    %693 = arith.truncf %690 : vector<8x256xf32> to vector<8x256xbf16>
    %cst_592 = arith.constant dense<0.000000e+00> : vector<8x256xf32>
    %694 = tpu.matmul %692, %693, %cst_592 {dimension_numbers = #tpu.dot_dimension_numbers<[1], [0], [0], [1], [0, 0, 1, 1], [], []>} : vector<8x8xbf16>, vector<8x256xbf16>, vector<8x256xf32> -> vector<8x256xf32>
    %695 = arith.addf %687, %694 : vector<8x256xf32>
    %c3_593 = arith.constant 3 : index
    %c0_594 = arith.constant 0 : index
    %c0_595 = arith.constant 0 : index
    %696 = vector.load %arg5[%c3_593, %c0_594, %c0_595] : memref<9x256x256xbf16, #tpu.memory_space<vmem>>, vector<1x256x256xbf16>
    %697 = vector.shape_cast %696 : vector<1x256x256xbf16> to vector<256x256xbf16>
    %cst_596 = arith.constant dense<0.000000e+00> : vector<8x256xf32>
    %698 = tpu.matmul %591, %697, %cst_596 {dimension_numbers = #tpu.dot_dimension_numbers<[1], [0], [0], [1], [0, 0, 1, 1], [], []>} : vector<8x256xbf16>, vector<256x256xbf16>, vector<8x256xf32> -> vector<8x256xf32>
    %c3_597 = arith.constant 3 : index
    %c0_598 = arith.constant 0 : index
    %c0_599 = arith.constant 0 : index
    %699 = vector.load %arg9[%c3_597, %c0_598, %c0_599] : memref<9x8x8xbf16, #tpu.memory_space<vmem>>, vector<1x8x8xbf16>
    %700 = vector.shape_cast %699 : vector<1x8x8xbf16> to vector<8x8xbf16>
    %701 = arith.truncf %698 : vector<8x256xf32> to vector<8x256xbf16>
    %cst_600 = arith.constant dense<0.000000e+00> : vector<8x256xf32>
    %702 = tpu.matmul %700, %701, %cst_600 {dimension_numbers = #tpu.dot_dimension_numbers<[1], [0], [0], [1], [0, 0, 1, 1], [], []>} : vector<8x8xbf16>, vector<8x256xbf16>, vector<8x256xf32> -> vector<8x256xf32>
    %703 = arith.addf %695, %702 : vector<8x256xf32>
    %c4_601 = arith.constant 4 : index
    %c0_602 = arith.constant 0 : index
    %c0_603 = arith.constant 0 : index
    %704 = vector.load %arg5[%c4_601, %c0_602, %c0_603] : memref<9x256x256xbf16, #tpu.memory_space<vmem>>, vector<1x256x256xbf16>
    %705 = vector.shape_cast %704 : vector<1x256x256xbf16> to vector<256x256xbf16>
    %cst_604 = arith.constant dense<0.000000e+00> : vector<8x256xf32>
    %706 = tpu.matmul %591, %705, %cst_604 {dimension_numbers = #tpu.dot_dimension_numbers<[1], [0], [0], [1], [0, 0, 1, 1], [], []>} : vector<8x256xbf16>, vector<256x256xbf16>, vector<8x256xf32> -> vector<8x256xf32>
    %c4_605 = arith.constant 4 : index
    %c0_606 = arith.constant 0 : index
    %c0_607 = arith.constant 0 : index
    %707 = vector.load %arg9[%c4_605, %c0_606, %c0_607] : memref<9x8x8xbf16, #tpu.memory_space<vmem>>, vector<1x8x8xbf16>
    %708 = vector.shape_cast %707 : vector<1x8x8xbf16> to vector<8x8xbf16>
    %709 = arith.truncf %706 : vector<8x256xf32> to vector<8x256xbf16>
    %cst_608 = arith.constant dense<0.000000e+00> : vector<8x256xf32>
    %710 = tpu.matmul %708, %709, %cst_608 {dimension_numbers = #tpu.dot_dimension_numbers<[1], [0], [0], [1], [0, 0, 1, 1], [], []>} : vector<8x8xbf16>, vector<8x256xbf16>, vector<8x256xf32> -> vector<8x256xf32>
    %711 = arith.addf %703, %710 : vector<8x256xf32>
    %c5_609 = arith.constant 5 : index
    %c0_610 = arith.constant 0 : index
    %c0_611 = arith.constant 0 : index
    %712 = vector.load %arg5[%c5_609, %c0_610, %c0_611] : memref<9x256x256xbf16, #tpu.memory_space<vmem>>, vector<1x256x256xbf16>
    %713 = vector.shape_cast %712 : vector<1x256x256xbf16> to vector<256x256xbf16>
    %cst_612 = arith.constant dense<0.000000e+00> : vector<8x256xf32>
    %714 = tpu.matmul %591, %713, %cst_612 {dimension_numbers = #tpu.dot_dimension_numbers<[1], [0], [0], [1], [0, 0, 1, 1], [], []>} : vector<8x256xbf16>, vector<256x256xbf16>, vector<8x256xf32> -> vector<8x256xf32>
    %c5_613 = arith.constant 5 : index
    %c0_614 = arith.constant 0 : index
    %c0_615 = arith.constant 0 : index
    %715 = vector.load %arg9[%c5_613, %c0_614, %c0_615] : memref<9x8x8xbf16, #tpu.memory_space<vmem>>, vector<1x8x8xbf16>
    %716 = vector.shape_cast %715 : vector<1x8x8xbf16> to vector<8x8xbf16>
    %717 = arith.truncf %714 : vector<8x256xf32> to vector<8x256xbf16>
    %cst_616 = arith.constant dense<0.000000e+00> : vector<8x256xf32>
    %718 = tpu.matmul %716, %717, %cst_616 {dimension_numbers = #tpu.dot_dimension_numbers<[1], [0], [0], [1], [0, 0, 1, 1], [], []>} : vector<8x8xbf16>, vector<8x256xbf16>, vector<8x256xf32> -> vector<8x256xf32>
    %719 = arith.addf %711, %718 : vector<8x256xf32>
    %c6_617 = arith.constant 6 : index
    %c0_618 = arith.constant 0 : index
    %c0_619 = arith.constant 0 : index
    %720 = vector.load %arg5[%c6_617, %c0_618, %c0_619] : memref<9x256x256xbf16, #tpu.memory_space<vmem>>, vector<1x256x256xbf16>
    %721 = vector.shape_cast %720 : vector<1x256x256xbf16> to vector<256x256xbf16>
    %cst_620 = arith.constant dense<0.000000e+00> : vector<8x256xf32>
    %722 = tpu.matmul %591, %721, %cst_620 {dimension_numbers = #tpu.dot_dimension_numbers<[1], [0], [0], [1], [0, 0, 1, 1], [], []>} : vector<8x256xbf16>, vector<256x256xbf16>, vector<8x256xf32> -> vector<8x256xf32>
    %c6_621 = arith.constant 6 : index
    %c0_622 = arith.constant 0 : index
    %c0_623 = arith.constant 0 : index
    %723 = vector.load %arg9[%c6_621, %c0_622, %c0_623] : memref<9x8x8xbf16, #tpu.memory_space<vmem>>, vector<1x8x8xbf16>
    %724 = vector.shape_cast %723 : vector<1x8x8xbf16> to vector<8x8xbf16>
    %725 = arith.truncf %722 : vector<8x256xf32> to vector<8x256xbf16>
    %cst_624 = arith.constant dense<0.000000e+00> : vector<8x256xf32>
    %726 = tpu.matmul %724, %725, %cst_624 {dimension_numbers = #tpu.dot_dimension_numbers<[1], [0], [0], [1], [0, 0, 1, 1], [], []>} : vector<8x8xbf16>, vector<8x256xbf16>, vector<8x256xf32> -> vector<8x256xf32>
    %727 = arith.addf %719, %726 : vector<8x256xf32>
    %c7_625 = arith.constant 7 : index
    %c0_626 = arith.constant 0 : index
    %c0_627 = arith.constant 0 : index
    %728 = vector.load %arg5[%c7_625, %c0_626, %c0_627] : memref<9x256x256xbf16, #tpu.memory_space<vmem>>, vector<1x256x256xbf16>
    %729 = vector.shape_cast %728 : vector<1x256x256xbf16> to vector<256x256xbf16>
    %cst_628 = arith.constant dense<0.000000e+00> : vector<8x256xf32>
    %730 = tpu.matmul %591, %729, %cst_628 {dimension_numbers = #tpu.dot_dimension_numbers<[1], [0], [0], [1], [0, 0, 1, 1], [], []>} : vector<8x256xbf16>, vector<256x256xbf16>, vector<8x256xf32> -> vector<8x256xf32>
    %c7_629 = arith.constant 7 : index
    %c0_630 = arith.constant 0 : index
    %c0_631 = arith.constant 0 : index
    %731 = vector.load %arg9[%c7_629, %c0_630, %c0_631] : memref<9x8x8xbf16, #tpu.memory_space<vmem>>, vector<1x8x8xbf16>
    %732 = vector.shape_cast %731 : vector<1x8x8xbf16> to vector<8x8xbf16>
    %733 = arith.truncf %730 : vector<8x256xf32> to vector<8x256xbf16>
    %cst_632 = arith.constant dense<0.000000e+00> : vector<8x256xf32>
    %734 = tpu.matmul %732, %733, %cst_632 {dimension_numbers = #tpu.dot_dimension_numbers<[1], [0], [0], [1], [0, 0, 1, 1], [], []>} : vector<8x8xbf16>, vector<8x256xbf16>, vector<8x256xf32> -> vector<8x256xf32>
    %735 = arith.addf %727, %734 : vector<8x256xf32>
    %c8_633 = arith.constant 8 : index
    %c0_634 = arith.constant 0 : index
    %c0_635 = arith.constant 0 : index
    %736 = vector.load %arg5[%c8_633, %c0_634, %c0_635] : memref<9x256x256xbf16, #tpu.memory_space<vmem>>, vector<1x256x256xbf16>
    %737 = vector.shape_cast %736 : vector<1x256x256xbf16> to vector<256x256xbf16>
    %cst_636 = arith.constant dense<0.000000e+00> : vector<8x256xf32>
    %738 = tpu.matmul %591, %737, %cst_636 {dimension_numbers = #tpu.dot_dimension_numbers<[1], [0], [0], [1], [0, 0, 1, 1], [], []>} : vector<8x256xbf16>, vector<256x256xbf16>, vector<8x256xf32> -> vector<8x256xf32>
    %c8_637 = arith.constant 8 : index
    %c0_638 = arith.constant 0 : index
    %c0_639 = arith.constant 0 : index
    %739 = vector.load %arg9[%c8_637, %c0_638, %c0_639] : memref<9x8x8xbf16, #tpu.memory_space<vmem>>, vector<1x8x8xbf16>
    %740 = vector.shape_cast %739 : vector<1x8x8xbf16> to vector<8x8xbf16>
    %741 = arith.truncf %738 : vector<8x256xf32> to vector<8x256xbf16>
    %cst_640 = arith.constant dense<0.000000e+00> : vector<8x256xf32>
    %742 = tpu.matmul %740, %741, %cst_640 {dimension_numbers = #tpu.dot_dimension_numbers<[1], [0], [0], [1], [0, 0, 1, 1], [], []>} : vector<8x8xbf16>, vector<8x256xbf16>, vector<8x256xf32> -> vector<8x256xf32>
    %743 = arith.addf %735, %742 : vector<8x256xf32>
    %744 = vector.broadcast %593 : vector<8x1xf32> to vector<8x256xf32>
    %745 = arith.addf %743, %744 : vector<8x256xf32>
    %cst_641 = arith.constant 0.000000e+00 : f32
    %746 = vector.broadcast %cst_641 : f32 to vector<8x256xf32>
    %747 = arith.maximumf %745, %746 : vector<8x256xf32>
    %cst_642 = arith.constant dense<0.000000e+00> : vector<8xf32>
    %748 = vector.multi_reduction <add>, %670, %cst_642 [1] : vector<8x256xf32> to vector<8xf32>
    %749 = vector.shape_cast %748 : vector<8xf32> to vector<8x1xf32>
    %750 = arith.mulf %670, %670 : vector<8x256xf32>
    %cst_643 = arith.constant dense<0.000000e+00> : vector<8xf32>
    %751 = vector.multi_reduction <add>, %750, %cst_643 [1] : vector<8x256xf32> to vector<8xf32>
    %752 = vector.shape_cast %751 : vector<8xf32> to vector<8x1xf32>
    %cst_644 = arith.constant dense<0.000000e+00> : vector<8xf32>
    %753 = vector.multi_reduction <add>, %747, %cst_644 [1] : vector<8x256xf32> to vector<8xf32>
    %754 = vector.shape_cast %753 : vector<8xf32> to vector<8x1xf32>
    %755 = arith.addf %749, %754 : vector<8x1xf32>
    %756 = arith.mulf %747, %747 : vector<8x256xf32>
    %cst_645 = arith.constant dense<0.000000e+00> : vector<8xf32>
    %757 = vector.multi_reduction <add>, %756, %cst_645 [1] : vector<8x256xf32> to vector<8xf32>
    %758 = vector.shape_cast %757 : vector<8xf32> to vector<8x1xf32>
    %759 = arith.addf %752, %758 : vector<8x1xf32>
    %cst_646 = arith.constant 0.001953125 : f32
    %760 = vector.broadcast %cst_646 : f32 to vector<8x1xf32>
    %761 = arith.mulf %755, %760 : vector<8x1xf32>
    %cst_647 = arith.constant 0.001953125 : f32
    %762 = vector.broadcast %cst_647 : f32 to vector<8x1xf32>
    %763 = arith.mulf %759, %762 : vector<8x1xf32>
    %764 = arith.mulf %761, %761 : vector<8x1xf32>
    %765 = arith.subf %763, %764 : vector<8x1xf32>
    %cst_648 = arith.constant 0.000000e+00 : f32
    %766 = vector.broadcast %cst_648 : f32 to vector<8x1xf32>
    %767 = arith.maximumf %765, %766 : vector<8x1xf32>
    %c3_649 = arith.constant 3 : index
    %c0_650 = arith.constant 0 : index
    %c0_651 = arith.constant 0 : index
    %768 = vector.load %arg11[%c3_649, %c0_650, %c0_651] : memref<4x8x1xf32, #tpu.memory_space<vmem>>, vector<1x8x1xf32>
    %769 = vector.shape_cast %768 : vector<1x8x1xf32> to vector<8x1xf32>
    %cst_652 = arith.constant 9.99999974E-6 : f32
    %770 = vector.broadcast %cst_652 : f32 to vector<8x1xf32>
    %771 = arith.addf %767, %770 : vector<8x1xf32>
    %772 = math.rsqrt %771 : vector<8x1xf32>
    %773 = arith.mulf %769, %772 : vector<8x1xf32>
    %c3_653 = arith.constant 3 : index
    %c0_654 = arith.constant 0 : index
    %c0_655 = arith.constant 0 : index
    %774 = vector.load %arg12[%c3_653, %c0_654, %c0_655] : memref<4x8x1xf32, #tpu.memory_space<vmem>>, vector<1x8x1xf32>
    %775 = vector.shape_cast %774 : vector<1x8x1xf32> to vector<8x1xf32>
    %776 = arith.mulf %761, %773 : vector<8x1xf32>
    %777 = arith.subf %775, %776 : vector<8x1xf32>
    %778 = vector.broadcast %773 : vector<8x1xf32> to vector<8x256xf32>
    %779 = arith.mulf %670, %778 : vector<8x256xf32>
    %780 = vector.broadcast %777 : vector<8x1xf32> to vector<8x256xf32>
    %781 = arith.addf %779, %780 : vector<8x256xf32>
    %782 = arith.truncf %781 : vector<8x256xf32> to vector<8x256xbf16>
    %783 = vector.broadcast %773 : vector<8x1xf32> to vector<8x256xf32>
    %784 = arith.mulf %747, %783 : vector<8x256xf32>
    %785 = vector.broadcast %777 : vector<8x1xf32> to vector<8x256xf32>
    %786 = arith.addf %784, %785 : vector<8x256xf32>
    %787 = arith.truncf %786 : vector<8x256xf32> to vector<8x256xbf16>
    %c0_656 = arith.constant 0 : index
    %c0_657 = arith.constant 0 : index
    %788 = vector.load %arg13[%c0_656, %c0_657] : memref<8x8xbf16, #tpu.memory_space<vmem>>, vector<8x8xbf16>
    %c0_658 = arith.constant 0 : index
    %c0_659 = arith.constant 0 : index
    %789 = vector.load %arg14[%c0_658, %c0_659] : memref<8x1xf32, #tpu.memory_space<vmem>>, vector<8x1xf32>
    %cst_660 = arith.constant dense<0.000000e+00> : vector<8x256xf32>
    %790 = tpu.matmul %788, %782, %cst_660 {dimension_numbers = #tpu.dot_dimension_numbers<[1], [0], [0], [1], [0, 0, 1, 1], [], []>} : vector<8x8xbf16>, vector<8x256xbf16>, vector<8x256xf32> -> vector<8x256xf32>
    %791 = vector.broadcast %789 : vector<8x1xf32> to vector<8x256xf32>
    %792 = arith.addf %790, %791 : vector<8x256xf32>
    %c0_661 = arith.constant 0 : index
    %c0_662 = arith.constant 0 : index
    %c0_663 = arith.constant 0 : index
    %793 = vector.load %arg15[%c0_661, %c0_662, %c0_663] : memref<2x8x256xf32, #tpu.memory_space<vmem>>, vector<1x8x256xf32>
    %794 = vector.shape_cast %793 : vector<1x8x256xf32> to vector<8x256xf32>
    %795 = vector.shape_cast %792 : vector<8x256xf32> to vector<1x8x256xf32>
    tpu.vector_store %arg15[%c0_661, %c0_662, %c0_663], %795 {strides = array<i32>} : memref<2x8x256xf32, #tpu.memory_space<vmem>>, vector<1x8x256xf32>,
    %cst_664 = arith.constant dense<0.000000e+00> : vector<8x256xf32>
    %796 = tpu.matmul %788, %787, %cst_664 {dimension_numbers = #tpu.dot_dimension_numbers<[1], [0], [0], [1], [0, 0, 1, 1], [], []>} : vector<8x8xbf16>, vector<8x256xbf16>, vector<8x256xf32> -> vector<8x256xf32>
    %797 = vector.broadcast %789 : vector<8x1xf32> to vector<8x256xf32>
    %798 = arith.addf %796, %797 : vector<8x256xf32>
    %c1_665 = arith.constant 1 : index
    %c0_666 = arith.constant 0 : index
    %c0_667 = arith.constant 0 : index
    %799 = vector.load %arg15[%c1_665, %c0_666, %c0_667] : memref<2x8x256xf32, #tpu.memory_space<vmem>>, vector<1x8x256xf32>
    %800 = vector.shape_cast %799 : vector<1x8x256xf32> to vector<8x256xf32>
    %801 = vector.shape_cast %798 : vector<8x256xf32> to vector<1x8x256xf32>
    tpu.vector_store %arg15[%c1_665, %c0_666, %c0_667], %801 {strides = array<i32>} : memref<2x8x256xf32, #tpu.memory_space<vmem>>, vector<1x8x256xf32>,
    return
  }
  func.func @transform_0(%arg0: i32) -> (i32, i32, i32) {
    %c0_i32 = arith.constant 0 : i32
    %c0_i32_0 = arith.constant 0 : i32
    %c0_i32_1 = arith.constant 0 : i32
    %c0_i32_2 = arith.constant 0 : i32
    return %c0_i32, %c0_i32_0, %c0_i32_1 : i32, i32, i32
  }
  func.func @transform_1(%arg0: i32) -> (i32, i32, i32) {
    %c0_i32 = arith.constant 0 : i32
    %c0_i32_0 = arith.constant 0 : i32
    %c0_i32_1 = arith.constant 0 : i32
    %c0_i32_2 = arith.constant 0 : i32
    return %c0_i32, %c0_i32_0, %c0_i32_1 : i32, i32, i32
  }
  func.func @transform_2(%arg0: i32) -> (i32, i32, i32) {
    %c0_i32 = arith.constant 0 : i32
    %c0_i32_0 = arith.constant 0 : i32
    %c0_i32_1 = arith.constant 0 : i32
    %c0_i32_2 = arith.constant 0 : i32
    return %c0_i32, %c0_i32_0, %c0_i32_1 : i32, i32, i32
  }
  func.func @transform_3(%arg0: i32) -> (i32, i32, i32) {
    %c0_i32 = arith.constant 0 : i32
    %c0_i32_0 = arith.constant 0 : i32
    %c0_i32_1 = arith.constant 0 : i32
    %c0_i32_2 = arith.constant 0 : i32
    return %c0_i32, %c0_i32_0, %c0_i32_1 : i32, i32, i32
  }
  func.func @transform_4(%arg0: i32) -> (i32, i32, i32) {
    %c0_i32 = arith.constant 0 : i32
    %c0_i32_0 = arith.constant 0 : i32
    %c0_i32_1 = arith.constant 0 : i32
    %c0_i32_2 = arith.constant 0 : i32
    return %c0_i32, %c0_i32_0, %c0_i32_1 : i32, i32, i32
  }
  func.func @transform_5(%arg0: i32) -> (i32, i32, i32) {
    %c0_i32 = arith.constant 0 : i32
    %c0_i32_0 = arith.constant 0 : i32
    %c0_i32_1 = arith.constant 0 : i32
    %c0_i32_2 = arith.constant 0 : i32
    return %c0_i32, %c0_i32_0, %c0_i32_1 : i32, i32, i32
  }
  func.func @transform_6(%arg0: i32) -> (i32, i32, i32) {
    %c0_i32 = arith.constant 0 : i32
    %c0_i32_0 = arith.constant 0 : i32
    %c0_i32_1 = arith.constant 0 : i32
    %c0_i32_2 = arith.constant 0 : i32
    return %c0_i32, %c0_i32_0, %c0_i32_1 : i32, i32, i32
  }
  func.func @transform_7(%arg0: i32) -> (i32, i32, i32) {
    %c0_i32 = arith.constant 0 : i32
    %c0_i32_0 = arith.constant 0 : i32
    %c0_i32_1 = arith.constant 0 : i32
    %c0_i32_2 = arith.constant 0 : i32
    return %c0_i32, %c0_i32_0, %c0_i32_1 : i32, i32, i32
  }
  func.func @transform_8(%arg0: i32) -> (i32, i32, i32) {
    %c0_i32 = arith.constant 0 : i32
    %c0_i32_0 = arith.constant 0 : i32
    %c0_i32_1 = arith.constant 0 : i32
    %c0_i32_2 = arith.constant 0 : i32
    return %c0_i32, %c0_i32_0, %c0_i32_1 : i32, i32, i32
  }
  func.func @transform_9(%arg0: i32) -> (i32, i32, i32) {
    %c0_i32 = arith.constant 0 : i32
    %c0_i32_0 = arith.constant 0 : i32
    %c0_i32_1 = arith.constant 0 : i32
    %c0_i32_2 = arith.constant 0 : i32
    return %c0_i32, %c0_i32_0, %c0_i32_1 : i32, i32, i32
  }
  func.func @transform_10(%arg0: i32) -> (i32, i32, i32) {
    %c0_i32 = arith.constant 0 : i32
    %c0_i32_0 = arith.constant 0 : i32
    %c0_i32_1 = arith.constant 0 : i32
    %c0_i32_2 = arith.constant 0 : i32
    return %c0_i32, %c0_i32_0, %c0_i32_1 : i32, i32, i32
  }
  func.func @transform_11(%arg0: i32) -> (i32, i32, i32) {
    %c0_i32 = arith.constant 0 : i32
    %c0_i32_0 = arith.constant 0 : i32
    %c0_i32_1 = arith.constant 0 : i32
    %c0_i32_2 = arith.constant 0 : i32
    return %c0_i32, %c0_i32_0, %c0_i32_1 : i32, i32, i32
  }
  func.func @transform_12(%arg0: i32) -> (i32, i32) {
    %c0_i32 = arith.constant 0 : i32
    %c0_i32_0 = arith.constant 0 : i32
    %c0_i32_1 = arith.constant 0 : i32
    return %c0_i32, %c0_i32_0 : i32, i32
  }
  func.func @transform_13(%arg0: i32) -> (i32, i32) {
    %c0_i32 = arith.constant 0 : i32
    %c0_i32_0 = arith.constant 0 : i32
    %c0_i32_1 = arith.constant 0 : i32
    return %c0_i32, %c0_i32_0 : i32, i32
  }
  func.func @transform_14(%arg0: i32) -> (i32, i32, i32) {
    %c0_i32 = arith.constant 0 : i32
    %c0_i32_0 = arith.constant 0 : i32
    %c0_i32_1 = arith.constant 0 : i32
    %c0_i32_2 = arith.constant 0 : i32
    return %c0_i32, %c0_i32_0, %c0_i32_1 : i32, i32, i32
  }
}

</mosaic_0001>

<bundles_post_ra>
// kernel: forward.1
= control target key start
LH: loop header
LB: loop body
LE: loop exit
PB: predicated region body
PF: predicated region fallthrough
CT: control target
= control target key end

     0   :  { %v14599_v0 = vmov 0.0   ;;  %vm14600_vm0 = vmmov 0   ;;  %vm84_vm1 = vcmask 523264   ;;  %vm210_vm2 = vcmask 1043456   ;;  %s20204_s1 = inlined_call_operand.vmem [shape: bf16[9,64,121], index: 1, kind: input, shape index: {}]   ;;  %s20205_s0 = inlined_call_operand.vmem [shape: bf16[2,8,64], index: 0, kind: input, shape index: {}]   ;;  %s20206_s5 = inlined_call_operand.vmem [shape: bf16[9,8,8], index: 5, kind: input, shape index: {}]   ;;  %s20207_s9 = inlined_call_operand.vmem [shape: f32[4,8,1], index: 9, kind: input, shape index: {}]   ;;  %s20208_s2 = inlined_call_operand.vmem [shape: bf16[9,121,169], index: 2, kind: input, shape index: {}]   ;;  %s20209_s10 = inlined_call_operand.vmem [shape: f32[4,8,1], index: 10, kind: input, shape index: {}]   ;;  %s20210_s11 = inlined_call_operand.vmem [shape: f32[4,8,1], index: 11, kind: input, shape index: {}]   ;;  %s20211_s6 = inlined_call_operand.vmem [shape: bf16[9,8,8], index: 6, kind: input, shape index: {}]   ;;  %s20212_s3 = inlined_call_operand.vmem [shape: bf16[9,169,256], index: 3, kind: input, shape index: {}]   ;;  %s20213_s7 = inlined_call_operand.vmem [shape: bf16[9,8,8], index: 7, kind: input, shape index: {}]   ;;  %s20214_s4 = inlined_call_operand.vmem [shape: bf16[9,256,256], index: 4, kind: input, shape index: {}]   ;;  %s20215_s8 = inlined_call_operand.vmem [shape: bf16[9,8,8], index: 8, kind: input, shape index: {}]   ;;  %s20216_s13 = inlined_call_operand.vmem [shape: f32[8,1], index: 13, kind: input, shape index: {}]   ;;  %s20217_s12 = inlined_call_operand.vmem [shape: bf16[8,8], index: 12, kind: input, shape index: {}]   ;;  %s20218_s14 = inlined_call_operand.vmem [shape: f32[2,8,256], index: 14, kind: output, shape index: {}]  }
   0x1   :  { %12929 = vmatprep.subr.bf16.mxu1 %v14599_v0  ;;  %12917 = vmatprep.subr.bf16.mxu0 %v14599_v0  ;;  %v14683_v1 = vld [vmem:[%s20204_s1 + $0x20] sm:$0xff]   ;;  %v14698_v3 = vld [vmem:[%s20204_s1 + $0x28] sm:$0xff]   ;;  %v14712_v5 = vld [vmem:[%s20204_s1 + $0x30] sm:$0xff]   ;;  %vm206_vm3 = vcmask 64512   ;;  %vm1936_vm4 = vcmask 990208   ;;  %vm2080_vm5 = vcmask 1044480  }
   0x2   :  { %v14688_v2 = vld [vmem:[%s20204_s1] sm:$0xff]   ;;  %12937 = vmatprep.mubr.msk.bf16.mxu1 %vm14600_vm0, %v14599_v0  ;;  %12925 = vmatprep.mubr.msk.bf16.mxu0 %vm14600_vm0, %v14599_v0  ;;  %v14705_v4 = vld [vmem:[%s20204_s1 + $0x8] sm:$0xff]   ;;  %v14719_v6 = vld [vmem:[%s20204_s1 + $0x10] sm:$0xff]   ;;  %vm4605_vm6 = vcmask 334848  }
   0x3   :  { %12930 = vmatpush3.bf16.msra.mxu1 %v14683_v1  ;;  %12918 = vmatpush3.bf16.msra.mxu0 %v14688_v2  ;;  %v14725_v7 = vld [vmem:[%s20204_s1 + $0x38] sm:$0xff]   ;;  %v14739_v9 = vld [vmem:[%s20205_s0] sm:$0xf]  ;;  %v14758_v21 = vld [vmem:[%s20206_s5 + $0x4] sm:$0xf] }
   0x4   :  { %12931 = vmatprep.subr.bf16.mxu1 %v14599_v0  ;;  %12919 = vmatprep.subr.bf16.mxu0 %v14599_v0  ;;  %v14730_v8 = vld [vmem:[%s20204_s1 + $0x18] sm:$0xff]   ;;  %v14763_v22 = vld [vmem:[%s20204_s1 + $0x40] sm:$0xff]   ;;  %v14780_v25 = vld [vmem:[%s20204_s1 + $0x48] sm:$0xff]  }
   0x5   :  { %v14769_v24 = vld [vmem:[%s20206_s5] sm:$0xf]  ;;  %v14791_v26 = vld [vmem:[%s20204_s1 + $0x50] sm:$0xff]   ;;  %v14798_v27 = vld [vmem:[%s20204_s1 + $0x58] sm:$0xff]  }
   0x6   :  { %v14811_v43 = vld [vmem:[%s20206_s5 + $0x8] sm:$0xf]  ;;  %v14816_v44 = vld [vmem:[%s20204_s1 + $0x60] sm:$0xff]   ;;  %v14834_v46 = vld [vmem:[%s20204_s1 + $0x70] sm:$0xff]  }
   0x7   :  { %12932 = vmatpush3.bf16.msra.mxu1 %v14698_v3  ;;  %12920 = vmatpush3.bf16.msra.mxu0 %v14705_v4  ;;  %v14825_v45 = vld [vmem:[%s20204_s1 + $0x68] sm:$0xff]   ;;  %v14841_v47 = vld [vmem:[%s20204_s1 + $0x78] sm:$0xff]   ;;  %v14859_v60 = vld [vmem:[%s20204_s1 + $0x80] sm:$0xff]  }
   0x8   :  { %12933 = vmatprep.subr.bf16.mxu1 %v14599_v0  ;;  %12921 = vmatprep.subr.bf16.mxu0 %v14599_v0  ;;  %v14854_v59 = vld [vmem:[%s20206_s5 + $0xc] sm:$0xf]  ;;  %v14877_v62 = vld [vmem:[%s20204_s1 + $0x90] sm:$0xff]   ;;  %v14884_v63 = vld [vmem:[%s20204_s1 + $0x98] sm:$0xff]  }
   0x9   :  { %v14868_v61 = vld [vmem:[%s20204_s1 + $0x88] sm:$0xff]  }
   0xb   :  { %12934 = vmatpush3.bf16.msra.mxu1 %v14712_v5  ;;  %12922 = vmatpush3.bf16.msra.mxu0 %v14719_v6 }
   0xc   :  { %12935 = vmatprep.subr.bf16.mxu1 %v14599_v0  ;;  %12923 = vmatprep.subr.bf16.mxu0 %v14599_v0 }
   0xf   :  { %12936 = vmatpush3.bf16.msra.mxu1 %v14725_v7  ;;  %12924 = vmatpush3.bf16.msra.mxu0 %v14730_v8 }
  0x10   :  { %12947 = vmatprep.subr.bf16.mxu1 %v14599_v0  ;;  %12941 = vmatprep.subr.bf16.mxu0 %v14599_v0 }
  0x12   :  { %12938 = vmatmul.mubr.msk.bf16.vlgmr.msra.gmra.mrb[0].mxu1 %vm84_vm1, %v14739_v9  ;;  %12926 = vmatmul.mubr.msk.bf16.vlgmr.msra.gmra.mrb[0].mxu0 %vm84_vm1, %v14739_v9 }
  0x13   :  { %12949 = vmatprep.mubr.msk.bf16.mxu1 %vm14600_vm0, %v14599_v0  ;;  %12943 = vmatprep.mubr.msk.bf16.mxu0 %vm14600_vm0, %v14599_v0 }
  0xe5   :  { %v197_v10 = vpop.f32.mrb[0].mxu1  ;;  %v122_v12 = vpop.f32.mrb[0].mxu0 }
  0xe6   :  { %v205_v11 = vpack.c.bf16 %v197_v10, %v197_v10  ;;  %v12939_v13 = vpop.f32.mrb[1].mxu1  ;;  %v129_v14 = vpack.c.bf16 %v122_v12, %v122_v12  ;;  %v12927_v16 = vpop.f32.mrb[1].mxu0 }
  0xe7   :  { %v200_v15 = vpop.f32.mrb[2].mxu1  ;;  %v125_v19 = vpop.f32.mrb[2].mxu0 }
  0xe8   :  { %v12940_v17 = vpop.f32.mrb[3].mxu1  ;;  %v212_v18 = vsel %vm210_vm2, %v205_v11, 0  ;;  %v258_v20 = vsel %vm210_vm2, %v129_v14, 0  ;;  %v12928_v23 = vpop.f32.mrb[3].mxu0 }
  0xe9   :  { %12942 = vmatpush3.bf16.msra.mxu0 %v212_v18  ;;  %12948 = vmatpush3.bf16.msra.mxu1 %v258_v20  ;;  %v14897_v23 = vld [vmem:[%s20206_s5 + $0x10] sm:$0xf] }
  0xea   :  { %12953 = vmatprep.subr.bf16.mxu0 %v14599_v0  ;;  %12965 = vmatprep.subr.bf16.mxu1 %v14599_v0 }
  0xec   :  { %12944 = vmatmul.mubr.msk.bf16.vlgmr.msra.gmra.mrb[4].mxu0 %vm206_vm3, %v14758_v21  ;;  %12950 = vmatmul.mubr.msk.bf16.vlgmr.msra.gmra.mrb[4].mxu1 %vm206_vm3, %v14769_v24 }
  0xed   :  { %12954 = vmatpush3.bf16.msra.mxu0 %v14763_v22  ;;  %12961 = vmatprep.mubr.msk.bf16.mxu0 %vm14600_vm0, %v14599_v0 }
  0xee   :  { %12955 = vmatprep.subr.bf16.mxu0 %v14599_v0  ;;  %12967 = vmatprep.mubr.msk.bf16.mxu1 %vm14600_vm0, %v14599_v0 }
  0xf1   :  { %12956 = vmatpush3.bf16.msra.mxu0 %v14780_v25 }
  0xf2   :  { %12957 = vmatprep.subr.bf16.mxu0 %v14599_v0 }
  0xf5   :  { %12958 = vmatpush3.bf16.msra.mxu0 %v14791_v26 }
  0xf6   :  { %12959 = vmatprep.subr.bf16.mxu0 %v14599_v0 }
  0xf9   :  { %12960 = vmatpush3.bf16.msra.mxu0 %v14798_v27 }
  0xfa   :  { %12983 = vmatprep.subr.bf16.mxu0 %v14599_v0 }
  0xfc   :  { %12962 = vmatmul.mubr.msk.bf16.vlgmr.msra.gmra.mrb[8].mxu0 %vm84_vm1, %v14739_v9 }
  0xfd   :  { %12985 = vmatprep.mubr.msk.bf16.mxu0 %vm14600_vm0, %v14599_v0 }
 0x1bf   :  { %v248_v28 = vpop.f32.mrb[4].mxu0  ;;  %v294_v30 = vpop.f32.mrb[4].mxu1 }
 0x1c0   :  { %v12945_v29 = vpop.f32.mrb[5].mxu0  ;;  %v295_v31 = vadd.f32 %v294_v30, %v248_v28  ;;  %v12951_v33 = vpop.f32.mrb[5].mxu1  ;;  %v14902_v28 = vld [vmem:[%s20204_s1 + $0xa0] sm:$0xff]   ;;  %v14920_v30 = vld [vmem:[%s20204_s1 + $0xb0] sm:$0xff]  }
 0x1c1   :  { %v251_v32 = vpop.f32.mrb[6].mxu0  ;;  %v297_v35 = vpop.f32.mrb[6].mxu1  ;;  %v14911_v29 = vld [vmem:[%s20204_s1 + $0xa8] sm:$0xff]  }
 0x1c2   :  { %v12946_v34 = vpop.f32.mrb[7].mxu0  ;;  %v12952_v36 = vpop.f32.mrb[7].mxu1 }
 0x1cf   :  { %v367_v37 = vpop.f32.mrb[8].mxu0 }
 0x1d0   :  { %v375_v38 = vpack.c.bf16 %v367_v37, %v367_v37  ;;  %v12963_v39 = vpop.f32.mrb[9].mxu0 }
 0x1d1   :  { %v370_v40 = vpop.f32.mrb[10].mxu0 }
 0x1d2   :  { %v12964_v41 = vpop.f32.mrb[11].mxu0  ;;  %v380_v42 = vsel %vm210_vm2, %v375_v38, 0 }
 0x1d3   :  { %12966 = vmatpush3.bf16.msra.mxu1 %v380_v42 }
 0x1d4   :  { %12971 = vmatprep.subr.bf16.mxu1 %v14599_v0 }
 0x1d6   :  { %12968 = vmatmul.mubr.msk.bf16.vlgmr.msra.gmra.mrb[8].mxu1 %vm206_vm3, %v14811_v43 }
 0x1d7   :  { %12972 = vmatpush3.bf16.msra.mxu1 %v14816_v44  ;;  %12979 = vmatprep.mubr.msk.bf16.mxu1 %vm14600_vm0, %v14599_v0 }
 0x1d8   :  { %12973 = vmatprep.subr.bf16.mxu1 %v14599_v0 }
 0x1db   :  { %12974 = vmatpush3.bf16.msra.mxu1 %v14825_v45 }
 0x1dc   :  { %12975 = vmatprep.subr.bf16.mxu1 %v14599_v0 }
 0x1df   :  { %12976 = vmatpush3.bf16.msra.mxu1 %v14834_v46 }
 0x1e0   :  { %12977 = vmatprep.subr.bf16.mxu1 %v14599_v0 }
 0x1e3   :  { %12978 = vmatpush3.bf16.msra.mxu1 %v14841_v47 }
 0x1e4   :  { %13001 = vmatprep.subr.bf16.mxu1 %v14599_v0 }
 0x1e6   :  { %12980 = vmatmul.mubr.msk.bf16.vlgmr.msra.gmra.mrb[12].mxu1 %vm84_vm1, %v14739_v9 }
 0x1e7   :  { %13003 = vmatprep.mubr.msk.bf16.mxu1 %vm14600_vm0, %v14599_v0 }
 0x2a9   :  { %v416_v48 = vpop.f32.mrb[8].mxu1 }
 0x2aa   :  { %v422_v49 = vadd.f32 %v416_v48, %v295_v31  ;;  %v12969_v50 = vpop.f32.mrb[9].mxu1  ;;  %v14927_v31 = vld [vmem:[%s20204_s1 + $0xb8] sm:$0xff]   ;;  %v14940_v48 = vld [vmem:[%s20206_s5 + $0x14] sm:$0xf] }
 0x2ab   :  { %v419_v51 = vpop.f32.mrb[10].mxu1  ;;  %v14954_v50 = vld [vmem:[%s20204_s1 + $0xc8] sm:$0xff]  }
 0x2ac   :  { %v12970_v52 = vpop.f32.mrb[11].mxu1  ;;  %v14963_v51 = vld [vmem:[%s20204_s1 + $0xd0] sm:$0xff]  }
 0x2ad   :  { %v14970_v52 = vld [vmem:[%s20204_s1 + $0xd8] sm:$0xff]  }
 0x2b9   :  { %v490_v53 = vpop.f32.mrb[12].mxu1 }
 0x2ba   :  { %v498_v54 = vpack.c.bf16 %v490_v53, %v490_v53  ;;  %v12981_v55 = vpop.f32.mrb[13].mxu1 }
 0x2bb   :  { %v493_v56 = vpop.f32.mrb[14].mxu1 }
 0x2bc   :  { %v12982_v57 = vpop.f32.mrb[15].mxu1  ;;  %v503_v58 = vsel %vm210_vm2, %v498_v54, 0 }
 0x2bd   :  { %12984 = vmatpush3.bf16.msra.mxu0 %v503_v58 }
 0x2be   :  { %12989 = vmatprep.subr.bf16.mxu0 %v14599_v0 }
 0x2c0   :  { %12986 = vmatmul.mubr.msk.bf16.vlgmr.msra.gmra.mrb[12].mxu0 %vm206_vm3, %v14854_v59 }
 0x2c1   :  { %12990 = vmatpush3.bf16.msra.mxu0 %v14859_v60  ;;  %12997 = vmatprep.mubr.msk.bf16.mxu0 %vm14600_vm0, %v14599_v0 }
 0x2c2   :  { %12991 = vmatprep.subr.bf16.mxu0 %v14599_v0 }
 0x2c5   :  { %12992 = vmatpush3.bf16.msra.mxu0 %v14868_v61 }
 0x2c6   :  { %12993 = vmatprep.subr.bf16.mxu0 %v14599_v0 }
 0x2c9   :  { %12994 = vmatpush3.bf16.msra.mxu0 %v14877_v62 }
 0x2ca   :  { %12995 = vmatprep.subr.bf16.mxu0 %v14599_v0 }
 0x2cd   :  { %12996 = vmatpush3.bf16.msra.mxu0 %v14884_v63 }
 0x2ce   :  { %13019 = vmatprep.subr.bf16.mxu0 %v14599_v0 }
 0x2d0   :  { %12998 = vmatmul.mubr.msk.bf16.vlgmr.msra.gmra.mrb[16].mxu0 %vm84_vm1, %v14739_v9 }
 0x2d1   :  { %13021 = vmatprep.mubr.msk.bf16.mxu0 %vm14600_vm0, %v14599_v0 }
 0x393   :  { %v539_v10 = vpop.f32.mrb[12].mxu0 }
 0x394   :  { %v545_v11 = vadd.f32 %v539_v10, %v422_v49  ;;  %v12987_v12 = vpop.f32.mrb[13].mxu0  ;;  %v14945_v49 = vld [vmem:[%s20204_s1 + $0xc0] sm:$0xff]  }
 0x395   :  { %v542_v13 = vpop.f32.mrb[14].mxu0 }
 0x396   :  { %v12988_v14 = vpop.f32.mrb[15].mxu0 }
 0x3a3   :  { %v613_v15 = vpop.f32.mrb[16].mxu0 }
 0x3a4   :  { %v621_v16 = vpack.c.bf16 %v613_v15, %v613_v15  ;;  %v12999_v17 = vpop.f32.mrb[17].mxu0  ;;  %v14983_v15 = vld [vmem:[%s20206_s5 + $0x18] sm:$0xf] }
 0x3a5   :  { %v616_v18 = vpop.f32.mrb[18].mxu0  ;;  %v14997_v17 = vld [vmem:[%s20204_s1 + $0xe8] sm:$0xff]  }
 0x3a6   :  { %v13000_v19 = vpop.f32.mrb[19].mxu0  ;;  %v626_v20 = vsel %vm210_vm2, %v621_v16, 0  ;;  %v14988_v16 = vld [vmem:[%s20204_s1 + $0xe0] sm:$0xff]   ;;  %v15006_v18 = vld [vmem:[%s20204_s1 + $0xf0] sm:$0xff]  }
 0x3a7   :  { %13002 = vmatpush3.bf16.msra.mxu1 %v626_v20  ;;  %v15013_v19 = vld [vmem:[%s20204_s1 + $0xf8] sm:$0xff]  }
 0x3a8   :  { %13007 = vmatprep.subr.bf16.mxu1 %v14599_v0 }
 0x3aa   :  { %13004 = vmatmul.mubr.msk.bf16.vlgmr.msra.gmra.mrb[16].mxu1 %vm206_vm3, %v14897_v23 }
 0x3ab   :  { %13008 = vmatpush3.bf16.msra.mxu1 %v14902_v28  ;;  %13015 = vmatprep.mubr.msk.bf16.mxu1 %vm14600_vm0, %v14599_v0 }
 0x3ac   :  { %13009 = vmatprep.subr.bf16.mxu1 %v14599_v0 }
 0x3af   :  { %13010 = vmatpush3.bf16.msra.mxu1 %v14911_v29 }
 0x3b0   :  { %13011 = vmatprep.subr.bf16.mxu1 %v14599_v0 }
 0x3b3   :  { %13012 = vmatpush3.bf16.msra.mxu1 %v14920_v30 }
 0x3b4   :  { %13013 = vmatprep.subr.bf16.mxu1 %v14599_v0 }
 0x3b7   :  { %13014 = vmatpush3.bf16.msra.mxu1 %v14927_v31 }
 0x3b8   :  { %13037 = vmatprep.subr.bf16.mxu1 %v14599_v0 }
 0x3ba   :  { %13016 = vmatmul.mubr.msk.bf16.vlgmr.msra.gmra.mrb[20].mxu1 %vm84_vm1, %v14739_v9 }
 0x3bb   :  { %13039 = vmatprep.mubr.msk.bf16.mxu1 %vm14600_vm0, %v14599_v0 }
 0x47d   :  { %v662_v32 = vpop.f32.mrb[16].mxu1 }
 0x47e   :  { %v668_v33 = vadd.f32 %v662_v32, %v545_v11  ;;  %v13005_v34 = vpop.f32.mrb[17].mxu1 }
 0x47f   :  { %v665_v35 = vpop.f32.mrb[18].mxu1 }
 0x480   :  { %v13006_v36 = vpop.f32.mrb[19].mxu1 }
 0x48d   :  { %v736_v37 = vpop.f32.mrb[20].mxu1 }
 0x48e   :  { %v744_v38 = vpack.c.bf16 %v736_v37, %v736_v37  ;;  %v13017_v39 = vpop.f32.mrb[21].mxu1 }
 0x48f   :  { %v739_v40 = vpop.f32.mrb[22].mxu1 }
 0x490   :  { %v13018_v41 = vpop.f32.mrb[23].mxu1  ;;  %v749_v42 = vsel %vm210_vm2, %v744_v38, 0 }
 0x491   :  { %13020 = vmatpush3.bf16.msra.mxu0 %v749_v42  ;;  %v15026_v42 = vld [vmem:[%s20206_s5 + $0x1c] sm:$0xf] }
 0x492   :  { %13025 = vmatprep.subr.bf16.mxu0 %v14599_v0 }
 0x494   :  { %13022 = vmatmul.mubr.msk.bf16.vlgmr.msra.gmra.mrb[20].mxu0 %vm206_vm3, %v14940_v48 }
 0x495   :  { %13026 = vmatpush3.bf16.msra.mxu0 %v14945_v49  ;;  %13033 = vmatprep.mubr.msk.bf16.mxu0 %vm14600_vm0, %v14599_v0 }
 0x496   :  { %13027 = vmatprep.subr.bf16.mxu0 %v14599_v0 }
 0x499   :  { %13028 = vmatpush3.bf16.msra.mxu0 %v14954_v50 }
 0x49a   :  { %13029 = vmatprep.subr.bf16.mxu0 %v14599_v0 }
 0x49d   :  { %13030 = vmatpush3.bf16.msra.mxu0 %v14963_v51 }
 0x49e   :  { %13031 = vmatprep.subr.bf16.mxu0 %v14599_v0 }
 0x4a1   :  { %13032 = vmatpush3.bf16.msra.mxu0 %v14970_v52 }
 0x4a2   :  { %13055 = vmatprep.subr.bf16.mxu0 %v14599_v0 }
 0x4a4   :  { %13034 = vmatmul.mubr.msk.bf16.vlgmr.msra.gmra.mrb[24].mxu0 %vm84_vm1, %v14739_v9 }
 0x4a5   :  { %13057 = vmatprep.mubr.msk.bf16.mxu0 %vm14600_vm0, %v14599_v0 }
 0x567   :  { %v785_v53 = vpop.f32.mrb[20].mxu0 }
 0x568   :  { %v791_v54 = vadd.f32 %v785_v53, %v668_v33  ;;  %v13023_v55 = vpop.f32.mrb[21].mxu0  ;;  %v15031_v53 = vld [vmem:[%s20204_s1 + $0x100] sm:$0xff]  }
 0x569   :  { %v788_v56 = vpop.f32.mrb[22].mxu0  ;;  %v15049_v55 = vld [vmem:[%s20204_s1 + $0x110] sm:$0xff]  }
 0x56a   :  { %v13024_v57 = vpop.f32.mrb[23].mxu0  ;;  %v15056_v56 = vld [vmem:[%s20204_s1 + $0x118] sm:$0xff]  }
 0x577   :  { %v859_v58 = vpop.f32.mrb[24].mxu0 }
 0x578   :  { %v867_v10 = vpack.c.bf16 %v859_v58, %v859_v58  ;;  %v13035_v11 = vpop.f32.mrb[25].mxu0 }
 0x579   :  { %v862_v12 = vpop.f32.mrb[26].mxu0 }
 0x57a   :  { %v13036_v13 = vpop.f32.mrb[27].mxu0  ;;  %v872_v14 = vsel %vm210_vm2, %v867_v10, 0 }
 0x57b   :  { %13038 = vmatpush3.bf16.msra.mxu1 %v872_v14 }
 0x57c   :  { %13043 = vmatprep.subr.bf16.mxu1 %v14599_v0 }
 0x57e   :  { %13040 = vmatmul.mubr.msk.bf16.vlgmr.msra.gmra.mrb[24].mxu1 %vm206_vm3, %v14983_v15 }
 0x57f   :  { %13044 = vmatpush3.bf16.msra.mxu1 %v14988_v16  ;;  %13051 = vmatprep.mubr.msk.bf16.mxu1 %vm14600_vm0, %v14599_v0 }
 0x580   :  { %13045 = vmatprep.subr.bf16.mxu1 %v14599_v0 }
 0x583   :  { %13046 = vmatpush3.bf16.msra.mxu1 %v14997_v17 }
 0x584   :  { %13047 = vmatprep.subr.bf16.mxu1 %v14599_v0 }
 0x587   :  { %13048 = vmatpush3.bf16.msra.mxu1 %v15006_v18 }
 0x588   :  { %13049 = vmatprep.subr.bf16.mxu1 %v14599_v0 }
 0x58b   :  { %13050 = vmatpush3.bf16.msra.mxu1 %v15013_v19 }
 0x58c   :  { %13073 = vmatprep.subr.bf16.mxu1 %v14599_v0 }
 0x58e   :  { %13052 = vmatmul.mubr.msk.bf16.vlgmr.msra.gmra.mrb[28].mxu1 %vm84_vm1, %v14739_v9 }
 0x58f   :  { %13075 = vmatprep.mubr.msk.bf16.mxu1 %vm14600_vm0, %v14599_v0 }
 0x651   :  { %v908_v20 = vpop.f32.mrb[24].mxu1 }
 0x652   :  { %v914_v32 = vadd.f32 %v908_v20, %v791_v54  ;;  %v13041_v33 = vpop.f32.mrb[25].mxu1  ;;  %v15040_v54 = vld [vmem:[%s20204_s1 + $0x108] sm:$0xff]  }
 0x653   :  { %v911_v34 = vpop.f32.mrb[26].mxu1 }
 0x654   :  { %v13042_v35 = vpop.f32.mrb[27].mxu1  ;;  %v15091_v34 = vld [vmem:[%s20206_s5 + $0x20] sm:$0xf] }
 0x661   :  { %v982_v36 = vpop.f32.mrb[28].mxu1 }
 0x662   :  { %v990_v37 = vpack.c.bf16 %v982_v36, %v982_v36  ;;  %v13053_v38 = vpop.f32.mrb[29].mxu1 }
 0x663   :  { %v985_v39 = vpop.f32.mrb[30].mxu1 }
 0x664   :  { %v13054_v40 = vpop.f32.mrb[31].mxu1  ;;  %v995_v41 = vsel %vm210_vm2, %v990_v37, 0 }
 0x665   :  { %13056 = vmatpush3.bf16.msra.mxu0 %v995_v41 }
 0x666   :  { %13061 = vmatprep.subr.bf16.mxu0 %v14599_v0 }
 0x668   :  { %13058 = vmatmul.mubr.msk.bf16.vlgmr.msra.gmra.mrb[28].mxu0 %vm206_vm3, %v15026_v42 }
 0x669   :  { %13062 = vmatpush3.bf16.msra.mxu0 %v15031_v53  ;;  %13069 = vmatprep.mubr.msk.bf16.mxu0 %vm14600_vm0, %v14599_v0 }
 0x66a   :  { %13063 = vmatprep.subr.bf16.mxu0 %v14599_v0 }
 0x66d   :  { %13064 = vmatpush3.bf16.msra.mxu0 %v15040_v54 }
 0x66e   :  { %13065 = vmatprep.subr.bf16.mxu0 %v14599_v0 }
 0x671   :  { %13066 = vmatpush3.bf16.msra.mxu0 %v15049_v55 }
 0x672   :  { %13067 = vmatprep.subr.bf16.mxu0 %v14599_v0 }
 0x675   :  { %13068 = vmatpush3.bf16.msra.mxu0 %v15056_v56 }
 0x676   :  { %13091 = vmatprep.subr.bf16.mxu0 %v14599_v0 }
 0x678   :  { %13070 = vmatmul.mubr.msk.bf16.vlgmr.msra.gmra.mrb[32].mxu0 %vm84_vm1, %v14739_v9  ;;  %v15075_v9 = vld [vmem:[%s20205_s0 + $0x4] sm:$0xf] }
 0x679   :  { %13092 = vmatpush3.bf16.msra.mxu0 %v14683_v1  ;;  %13099 = vmatprep.mubr.msk.bf16.mxu0 %vm14600_vm0, %v14599_v0  ;;  %v20219_v1 = vmov 0  }
 0x67a   :  { %13093 = vmatprep.subr.bf16.mxu0 %v14599_v0  ;;  %13245 = vset.pattern.permute.xlu0 %v20219_v1 }
 0x67b   :  { %13246 = vset.pattern.permute.xlu1 %v20219_v1 }
 0x67d   :  { %13094 = vmatpush3.bf16.msra.mxu0 %v14698_v3  ;;  %v51_v3 = vld [vmem:[%s20207_s9] sm:$0xff] }
 0x67e   :  { %13095 = vmatprep.subr.bf16.mxu0 %v14599_v0  ;;  %1163 = vperm.xlu0 %13245, %v51_v3  }
 0x681   :  { %13096 = vmatpush3.bf16.msra.mxu0 %v14712_v5 }
 0x682   :  { %13097 = vmatprep.subr.bf16.mxu0 %v14599_v0 }
 0x685   :  { %13098 = vmatpush3.bf16.msra.mxu0 %v14725_v7 }
 0x686   :  { %13109 = vmatprep.subr.bf16.mxu0 %v14599_v0 }
 0x688   :  { %13100 = vmatmul.mubr.msk.bf16.vlgmr.msra.gmra.mrb[36].mxu0 %vm84_vm1, %v15075_v9 }
 0x689   :  { %13111 = vmatprep.mubr.msk.bf16.mxu0 %vm14600_vm0, %v14599_v0 }
 0x73b   :  { %v1031_v5 = vpop.f32.mrb[28].mxu0 }
 0x73c   :  { %v1037_v7 = vadd.f32 %v1031_v5, %v914_v32  ;;  %v13059_v57 = vpop.f32.mrb[29].mxu0 }
 0x73d   :  { %v1034_v58 = vpop.f32.mrb[30].mxu0 }
 0x73e   :  { %v13060_v10 = vpop.f32.mrb[31].mxu0 }
 0x74b   :  { %v1105_v11 = vpop.f32.mrb[32].mxu0 }
 0x74c   :  { %v1113_v12 = vpack.c.bf16 %v1105_v11, %v1105_v11  ;;  %v13071_v13 = vpop.f32.mrb[33].mxu0 }
 0x74d   :  { %v1108_v14 = vpop.f32.mrb[34].mxu0 }
 0x74e   :  { %v13072_v20 = vpop.f32.mrb[35].mxu0  ;;  %v1118_v33 = vsel %vm210_vm2, %v1113_v12, 0 }
 0x74f   :  { %13074 = vmatpush3.bf16.msra.mxu1 %v1118_v33 }
 0x750   :  { %13079 = vmatprep.subr.bf16.mxu1 %v14599_v0 }
 0x752   :  { %13076 = vmatmul.mubr.msk.bf16.vlgmr.msra.gmra.mrb[32].mxu1 %vm206_vm3, %v15091_v34 }
 0x753   :  { %13080 = vmatpush3.bf16.msra.mxu1 %v14688_v2  ;;  %13087 = vmatprep.mubr.msk.bf16.mxu1 %vm14600_vm0, %v14599_v0 }
 0x754   :  { %13081 = vmatprep.subr.bf16.mxu1 %v14599_v0 }
 0x757   :  { %13082 = vmatpush3.bf16.msra.mxu1 %v14705_v4 }
 0x758   :  { %13083 = vmatprep.subr.bf16.mxu1 %v14599_v0 }
 0x75b   :  { %13084 = vmatpush3.bf16.msra.mxu1 %v14719_v6  ;;  %v1246_v32 = vpop.f32.mrb[36].mxu0  ;;  %v15128_v6 = vpop.permute.xlu0 %1163 }
 0x75c   :  { %13085 = vmatprep.subr.bf16.mxu1 %v14599_v0  ;;  %v1252_v35 = vpack.c.bf16 %v1246_v32, %v1246_v32  ;;  %v13101_v36 = vpop.f32.mrb[37].mxu0 }
 0x75d   :  { %v1249_v37 = vpop.f32.mrb[38].mxu0 }
 0x75e   :  { %v13102_v38 = vpop.f32.mrb[39].mxu0  ;;  %v1254_v2 = vsel %vm210_vm2, %v1252_v35, 0 }
 0x75f   :  { %13086 = vmatpush3.bf16.msra.mxu1 %v14730_v8 }
 0x760   :  { %13103 = vmatprep.subr.bf16.mxu1 %v14599_v0 }
 0x762   :  { %13088 = vmatmul.mubr.msk.bf16.vlgmr.msra.gmra.mrb[36].mxu1 %vm84_vm1, %v15075_v9 }
 0x763   :  { %13104 = vmatpush3.bf16.msra.mxu1 %v1254_v2  ;;  %13105 = vmatprep.mubr.msk.bf16.mxu1 %vm14600_vm0, %v14599_v0 }
 0x764   :  { %13115 = vmatprep.subr.bf16.mxu1 %v14599_v0 }
 0x76a   :  { %13106 = vmatmul.mubr.msk.bf16.vlgmr.msra.gmra.mrb[40].mxu1 %vm206_vm3, %v14758_v21 }
 0x76b   :  { %13116 = vmatpush3.bf16.msra.mxu1 %v14763_v22  ;;  %13123 = vmatprep.mubr.msk.bf16.mxu1 %vm14600_vm0, %v14599_v0 }
 0x76c   :  { %13117 = vmatprep.subr.bf16.mxu1 %v14599_v0 }
 0x76f   :  { %13118 = vmatpush3.bf16.msra.mxu1 %v14780_v25 }
 0x770   :  { %13119 = vmatprep.subr.bf16.mxu1 %v14599_v0 }
 0x773   :  { %13120 = vmatpush3.bf16.msra.mxu1 %v14791_v26 }
 0x774   :  { %13121 = vmatprep.subr.bf16.mxu1 %v14599_v0 }
 0x777   :  { %13122 = vmatpush3.bf16.msra.mxu1 %v14798_v27 }
 0x778   :  { %13145 = vmatprep.subr.bf16.mxu1 %v14599_v0 }
 0x77a   :  { %13124 = vmatmul.mubr.msk.bf16.vlgmr.msra.gmra.mrb[44].mxu1 %vm84_vm1, %v15075_v9 }
 0x77b   :  { %13147 = vmatprep.mubr.msk.bf16.mxu1 %vm14600_vm0, %v14599_v0 }
 0x825   :  { %v1154_v4 = vpop.f32.mrb[32].mxu1 }
 0x826   :  { %v1160_v8 = vadd.f32 %v1154_v4, %v1037_v7  ;;  %v13077_v21 = vpop.f32.mrb[33].mxu1 }
 0x827   :  { %v1157_v22 = vpop.f32.mrb[34].mxu1 }
 0x828   :  { %v1166_v25 = vadd.f32 %v15128_v6, %v1160_v8  ;;  %v13078_v26 = vpop.f32.mrb[35].mxu1 }
 0x82a   :  { %v15131_v39 = vmax.f32 %v1166_v25, 0.0 }
 0x82c   :  { %v1937_v27 = vsel %vm1936_vm4, %v15131_v39, 0.0  ;;  %v1940_v40 = vmul.f32 %v15131_v39, %v15131_v39 }
 0x82d   :  { %1938 = vadd.xlane.f32.xlu0 %v1937_v27 }
 0x82e   :  { %v1941_v41 = vsel %vm1936_vm4, %v1940_v40, 0.0 }
 0x82f   :  { %1942 = vadd.xlane.f32.xlu1 %v1941_v41 }
 0x835   :  { %v1205_v3 = vpop.f32.mrb[36].mxu1 }
 0x836   :  { %v1211_v5 = vpack.c.bf16 %v1205_v3, %v1205_v3  ;;  %v13089_v7 = vpop.f32.mrb[37].mxu1 }
 0x837   :  { %v1208_v57 = vpop.f32.mrb[38].mxu1 }
 0x838   :  { %v1297_v58 = vsel %vm210_vm2, %v1211_v5, 0  ;;  %v13090_v10 = vpop.f32.mrb[39].mxu1 }
 0x839   :  { %13110 = vmatpush3.bf16.msra.mxu0 %v1297_v58 }
 0x83a   :  { %13127 = vmatprep.subr.bf16.mxu0 %v14599_v0 }
 0x83c   :  { %13112 = vmatmul.mubr.msk.bf16.vlgmr.msra.gmra.mrb[40].mxu0 %vm206_vm3, %v14769_v24 }
 0x83d   :  { %v1290_v11 = vpop.f32.mrb[40].mxu1  ;;  %13129 = vmatprep.mubr.msk.bf16.mxu0 %vm14600_vm0, %v14599_v0 }
 0x83e   :  { %v13107_v12 = vpop.f32.mrb[41].mxu1 }
 0x83f   :  { %v1293_v13 = vpop.f32.mrb[42].mxu1 }
 0x840   :  { %v13108_v14 = vpop.f32.mrb[43].mxu1 }
 0x84d   :  { %v1373_v20 = vpop.f32.mrb[44].mxu1 }
 0x84e   :  { %v1379_v33 = vpack.c.bf16 %v1373_v20, %v1373_v20  ;;  %v13125_v32 = vpop.f32.mrb[45].mxu1 }
 0x84f   :  { %v1376_v35 = vpop.f32.mrb[46].mxu1 }
 0x850   :  { %v1381_v36 = vsel %vm210_vm2, %v1379_v33, 0  ;;  %v13126_v37 = vpop.f32.mrb[47].mxu1 }
 0x851   :  { %13128 = vmatpush3.bf16.msra.mxu0 %v1381_v36 }
 0x852   :  { %13133 = vmatprep.subr.bf16.mxu0 %v14599_v0 }
 0x854   :  { %13130 = vmatmul.mubr.msk.bf16.vlgmr.msra.gmra.mrb[44].mxu0 %vm206_vm3, %v14811_v43 }
 0x855   :  { %13134 = vmatpush3.bf16.msra.mxu0 %v14816_v44  ;;  %13141 = vmatprep.mubr.msk.bf16.mxu0 %vm14600_vm0, %v14599_v0 }
 0x856   :  { %13135 = vmatprep.subr.bf16.mxu0 %v14599_v0 }
 0x859   :  { %13136 = vmatpush3.bf16.msra.mxu0 %v14825_v45 }
 0x85a   :  { %13137 = vmatprep.subr.bf16.mxu0 %v14599_v0 }
 0x85d   :  { %13138 = vmatpush3.bf16.msra.mxu0 %v14834_v46 }
 0x85e   :  { %13139 = vmatprep.subr.bf16.mxu0 %v14599_v0 }
 0x861   :  { %13140 = vmatpush3.bf16.msra.mxu0 %v14841_v47 }
 0x862   :  { %13163 = vmatprep.subr.bf16.mxu0 %v14599_v0 }
 0x864   :  { %13142 = vmatmul.mubr.msk.bf16.vlgmr.msra.gmra.mrb[48].mxu0 %vm84_vm1, %v15075_v9 }
 0x865   :  { %13165 = vmatprep.mubr.msk.bf16.mxu0 %vm14600_vm0, %v14599_v0 }
 0x90f   :  { %v1333_v24 = vpop.f32.mrb[40].mxu0 }
 0x910   :  { %v1334_v43 = vadd.f32 %v1333_v24, %v1290_v11  ;;  %v13113_v44 = vpop.f32.mrb[41].mxu0 }
 0x911   :  { %v1336_v45 = vpop.f32.mrb[42].mxu0 }
 0x912   :  { %v13114_v38 = vpop.f32.mrb[43].mxu0 }
 0x927   :  { %v1417_v2 = vpop.f32.mrb[44].mxu0 }
 0x928   :  { %v1423_v4 = vadd.f32 %v1417_v2, %v1334_v43  ;;  %v13131_v46 = vpop.f32.mrb[45].mxu0 }
 0x929   :  { %v1420_v8 = vpop.f32.mrb[46].mxu0 }
 0x92a   :  { %v13132_v21 = vpop.f32.mrb[47].mxu0 }
 0x937   :  { %v1458_v22 = vpop.f32.mrb[48].mxu0 }
 0x938   :  { %v1464_v47 = vpack.c.bf16 %v1458_v22, %v1458_v22  ;;  %v13143_v25 = vpop.f32.mrb[49].mxu0 }
 0x939   :  { %v1461_v26 = vpop.f32.mrb[50].mxu0 }
 0x93a   :  { %v1466_v27 = vsel %vm210_vm2, %v1464_v47, 0  ;;  %v13144_v40 = vpop.f32.mrb[51].mxu0 }
 0x93b   :  { %13146 = vmatpush3.bf16.msra.mxu1 %v1466_v27 }
 0x93c   :  { %13151 = vmatprep.subr.bf16.mxu1 %v14599_v0 }
 0x93e   :  { %13148 = vmatmul.mubr.msk.bf16.vlgmr.msra.gmra.mrb[48].mxu1 %vm206_vm3, %v14854_v59 }
 0x93f   :  { %13152 = vmatpush3.bf16.msra.mxu1 %v14859_v60  ;;  %13159 = vmatprep.mubr.msk.bf16.mxu1 %vm14600_vm0, %v14599_v0 }
 0x940   :  { %13153 = vmatprep.subr.bf16.mxu1 %v14599_v0 }
 0x943   :  { %13154 = vmatpush3.bf16.msra.mxu1 %v14868_v61 }
 0x944   :  { %13155 = vmatprep.subr.bf16.mxu1 %v14599_v0 }
 0x947   :  { %13156 = vmatpush3.bf16.msra.mxu1 %v14877_v62 }
 0x948   :  { %13157 = vmatprep.subr.bf16.mxu1 %v14599_v0 }
 0x94b   :  { %13158 = vmatpush3.bf16.msra.mxu1 %v14884_v63 }
 0x94c   :  { %13181 = vmatprep.subr.bf16.mxu1 %v14599_v0 }
 0x94e   :  { %13160 = vmatmul.mubr.msk.bf16.vlgmr.msra.gmra.mrb[52].mxu1 %vm84_vm1, %v15075_v9 }
 0x94f   :  { %13183 = vmatprep.mubr.msk.bf16.mxu1 %vm14600_vm0, %v14599_v0 }
 0xa11   :  { %v1502_v59 = vpop.f32.mrb[48].mxu1 }
 0xa12   :  { %v1508_v60 = vadd.f32 %v1502_v59, %v1423_v4  ;;  %v13149_v41 = vpop.f32.mrb[49].mxu1 }
 0xa13   :  { %v1505_v61 = vpop.f32.mrb[50].mxu1 }
 0xa14   :  { %v13150_v3 = vpop.f32.mrb[51].mxu1 }
 0xa15   :  { %v13283_v3 = vld [vmem:[%s20208_s2] ss:$8 sps:$4 sm:$0xff]  }
 0xa21   :  { %v1543_v5 = vpop.f32.mrb[52].mxu1 }
 0xa22   :  { %v1549_v7 = vpack.c.bf16 %v1543_v5, %v1543_v5  ;;  %v13161_v62 = vpop.f32.mrb[53].mxu1  ;;  %v13286_v5 = vld [vmem:[%s20208_s2 + $0x80] ss:$8 sps:$4 sm:$0xff]  }
 0xa23   :  { %v1546_v57 = vpop.f32.mrb[54].mxu1  ;;  %v13289_v62 = vld [vmem:[%s20208_s2 + $0x10] ss:$8 sps:$4 sm:$0xff]  }
 0xa24   :  { %v1551_v58 = vsel %vm210_vm2, %v1549_v7, 0  ;;  %v13162_v63 = vpop.f32.mrb[55].mxu1  ;;  %v13288_v7 = vld [vmem:[%s20208_s2 + $0x84] ss:$8 sps:$4 sm:$0xff]   ;;  %v13291_v57 = vld [vmem:[%s20208_s2 + $0x14] ss:$8 sps:$4 sm:$0xff]  }
 0xa25   :  { %13164 = vmatpush3.bf16.msra.mxu0 %v1551_v58  ;;  %v13292_v58 = vld [vmem:[%s20208_s2 + $0x90] ss:$8 sps:$4 sm:$0xff]   ;;  %v13294_v63 = vld [vmem:[%s20208_s2 + $0x94] ss:$8 sps:$4 sm:$0xff]  }
 0xa26   :  { %13169 = vmatprep.subr.bf16.mxu0 %v14599_v0 }
 0xa28   :  { %13166 = vmatmul.mubr.msk.bf16.vlgmr.msra.gmra.mrb[52].mxu0 %vm206_vm3, %v14897_v23 }
 0xa29   :  { %13170 = vmatpush3.bf16.msra.mxu0 %v14902_v28  ;;  %13177 = vmatprep.mubr.msk.bf16.mxu0 %vm14600_vm0, %v14599_v0 }
 0xa2a   :  { %13171 = vmatprep.subr.bf16.mxu0 %v14599_v0 }
 0xa2d   :  { %13172 = vmatpush3.bf16.msra.mxu0 %v14911_v29 }
 0xa2e   :  { %13173 = vmatprep.subr.bf16.mxu0 %v14599_v0 }
 0xa31   :  { %13174 = vmatpush3.bf16.msra.mxu0 %v14920_v30 }
 0xa32   :  { %13175 = vmatprep.subr.bf16.mxu0 %v14599_v0 }
 0xa35   :  { %13176 = vmatpush3.bf16.msra.mxu0 %v14927_v31 }
 0xa36   :  { %13199 = vmatprep.subr.bf16.mxu0 %v14599_v0 }
 0xa38   :  { %13178 = vmatmul.mubr.msk.bf16.vlgmr.msra.gmra.mrb[56].mxu0 %vm84_vm1, %v15075_v9 }
 0xa39   :  { %13201 = vmatprep.mubr.msk.bf16.mxu0 %vm14600_vm0, %v14599_v0 }
 0xafb   :  { %v1587_v23 = vpop.f32.mrb[52].mxu0 }
 0xafc   :  { %v1593_v28 = vadd.f32 %v1587_v23, %v1508_v60  ;;  %v13167_v10 = vpop.f32.mrb[53].mxu0  ;;  %v13297_v23 = vld [vmem:[%s20208_s2 + $0x24] ss:$8 sps:$4 sm:$0xff]  }
 0xafd   :  { %v1590_v29 = vpop.f32.mrb[54].mxu0  ;;  %v13300_v10 = vld [vmem:[%s20208_s2 + $0xa4] ss:$8 sps:$4 sm:$0xff]  }
 0xafe   :  { %v13168_v11 = vpop.f32.mrb[55].mxu0  ;;  %v13298_v29 = vld [vmem:[%s20208_s2 + $0xa0] ss:$8 sps:$4 sm:$0xff]  }
 0xaff   :  { %v13303_v11 = vld [vmem:[%s20208_s2 + $0x34] ss:$8 sps:$4 sm:$0xff]  }
 0xb0b   :  { %v1628_v12 = vpop.f32.mrb[56].mxu0 }
 0xb0c   :  { %v1634_v13 = vpack.c.bf16 %v1628_v12, %v1628_v12  ;;  %v13179_v30 = vpop.f32.mrb[57].mxu0  ;;  %v13306_v12 = vld [vmem:[%s20208_s2 + $0xb4] ss:$8 sps:$4 sm:$0xff]  }
 0xb0d   :  { %v1631_v14 = vpop.f32.mrb[58].mxu0  ;;  %v13304_v30 = vld [vmem:[%s20208_s2 + $0xb0] ss:$8 sps:$4 sm:$0xff]  }
 0xb0e   :  { %v1636_v20 = vsel %vm210_vm2, %v1634_v13, 0  ;;  %v13180_v31 = vpop.f32.mrb[59].mxu0  ;;  %v13301_v13 = vld [vmem:[%s20208_s2 + $0x30] ss:$8 sps:$4 sm:$0xff]   ;;  %v13309_v14 = vld [vmem:[%s20208_s2 + $0x44] ss:$8 sps:$4 sm:$0xff]  }
 0xb0f   :  { %13182 = vmatpush3.bf16.msra.mxu1 %v1636_v20  ;;  %v13307_v20 = vld [vmem:[%s20208_s2 + $0x40] ss:$8 sps:$4 sm:$0xff]   ;;  %v13312_v31 = vld [vmem:[%s20208_s2 + $0xc4] ss:$8 sps:$4 sm:$0xff]  }
 0xb10   :  { %13187 = vmatprep.subr.bf16.mxu1 %v14599_v0 }
 0xb12   :  { %13184 = vmatmul.mubr.msk.bf16.vlgmr.msra.gmra.mrb[56].mxu1 %vm206_vm3, %v14940_v48 }
 0xb13   :  { %13188 = vmatpush3.bf16.msra.mxu1 %v14945_v49  ;;  %13195 = vmatprep.mubr.msk.bf16.mxu1 %vm14600_vm0, %v14599_v0 }
 0xb14   :  { %13189 = vmatprep.subr.bf16.mxu1 %v14599_v0 }
 0xb17   :  { %13190 = vmatpush3.bf16.msra.mxu1 %v14954_v50 }
 0xb18   :  { %13191 = vmatprep.subr.bf16.mxu1 %v14599_v0 }
 0xb1b   :  { %13192 = vmatpush3.bf16.msra.mxu1 %v14963_v51 }
 0xb1c   :  { %13193 = vmatprep.subr.bf16.mxu1 %v14599_v0 }
 0xb1f   :  { %13194 = vmatpush3.bf16.msra.mxu1 %v14970_v52 }
 0xb20   :  { %13217 = vmatprep.subr.bf16.mxu1 %v14599_v0 }
 0xb22   :  { %13196 = vmatmul.mubr.msk.bf16.vlgmr.msra.gmra.mrb[60].mxu1 %vm84_vm1, %v15075_v9 }
 0xb23   :  { %13219 = vmatprep.mubr.msk.bf16.mxu1 %vm14600_vm0, %v14599_v0 }
 0xbe5   :  { %v1672_v48 = vpop.f32.mrb[56].mxu1 }
 0xbe6   :  { %v1678_v49 = vadd.f32 %v1672_v48, %v1593_v28  ;;  %v13185_v33 = vpop.f32.mrb[57].mxu1  ;;  %v13295_v28 = vld [vmem:[%s20208_s2 + $0x20] ss:$8 sps:$4 sm:$0xff]  }
 0xbe7   :  { %v1675_v50 = vpop.f32.mrb[58].mxu1  ;;  %v13310_v48 = vld [vmem:[%s20208_s2 + $0xc0] ss:$8 sps:$4 sm:$0xff]   ;;  %v13318_v33 = vld [vmem:[%s20208_s2 + $0xd4] ss:$8 sps:$4 sm:$0xff]  }
 0xbe8   :  { %v13186_v32 = vpop.f32.mrb[59].mxu1  ;;  %v13313_v50 = vld [vmem:[%s20208_s2 + $0x50] ss:$8 sps:$4 sm:$0xff]  }
 0xbe9   :  { %v13316_v32 = vld [vmem:[%s20208_s2 + $0xd0] ss:$8 sps:$4 sm:$0xff]  }
 0xbf5   :  { %v1713_v35 = vpop.f32.mrb[60].mxu1 }
 0xbf6   :  { %v1719_v36 = vpack.c.bf16 %v1713_v35, %v1713_v35  ;;  %v13197_v51 = vpop.f32.mrb[61].mxu1  ;;  %v1943_v35 = vpop.xlane.xlu1 %1942 }
 0xbf7   :  { %v1716_v37 = vpop.f32.mrb[62].mxu1 }
 0xbf8   :  { %v1721_v24 = vsel %vm210_vm2, %v1719_v36, 0  ;;  %v13198_v52 = vpop.f32.mrb[63].mxu1  ;;  %v1939_v36 = vpop.xlane.xlu0 %1938 }
 0xbf9   :  { %13200 = vmatpush3.bf16.msra.mxu0 %v1721_v24 }
 0xbfa   :  { %13205 = vmatprep.subr.bf16.mxu0 %v14599_v0 }
 0xbfc   :  { %13202 = vmatmul.mubr.msk.bf16.vlgmr.msra.gmra.mrb[60].mxu0 %vm206_vm3, %v14983_v15 }
 0xbfd   :  { %13206 = vmatpush3.bf16.msra.mxu0 %v14988_v16  ;;  %13213 = vmatprep.mubr.msk.bf16.mxu0 %vm14600_vm0, %v14599_v0 }
 0xbfe   :  { %13207 = vmatprep.subr.bf16.mxu0 %v14599_v0 }
 0xc01   :  { %13208 = vmatpush3.bf16.msra.mxu0 %v14997_v17 }
 0xc02   :  { %13209 = vmatprep.subr.bf16.mxu0 %v14599_v0 }
 0xc05   :  { %13210 = vmatpush3.bf16.msra.mxu0 %v15006_v18 }
 0xc06   :  { %13211 = vmatprep.subr.bf16.mxu0 %v14599_v0 }
 0xc09   :  { %13212 = vmatpush3.bf16.msra.mxu0 %v15013_v19 }
 0xc0a   :  { %13235 = vmatprep.subr.bf16.mxu0 %v14599_v0 }
 0xc0c   :  { %13214 = vmatmul.mubr.msk.bf16.vlgmr.msra.gmra.mrb[64].mxu0 %vm84_vm1, %v15075_v9 }
 0xc0d   :  { %13237 = vmatprep.mubr.msk.bf16.mxu0 %vm14600_vm0, %v14599_v0 }
 0xccf   :  { %v1757_v15 = vpop.f32.mrb[60].mxu0 }
 0xcd0   :  { %v1763_v16 = vadd.f32 %v1757_v15, %v1678_v49  ;;  %v13203_v43 = vpop.f32.mrb[61].mxu0  ;;  %v13315_v49 = vld [vmem:[%s20208_s2 + $0x54] ss:$8 sps:$4 sm:$0xff]  }
 0xcd1   :  { %v1760_v17 = vpop.f32.mrb[62].mxu0 }
 0xcd2   :  { %v13204_v44 = vpop.f32.mrb[63].mxu0 }
 0xcdf   :  { %v1798_v45 = vpop.f32.mrb[64].mxu0 }
 0xce0   :  { %v1804_v38 = vpack.c.bf16 %v1798_v45, %v1798_v45  ;;  %v13215_v18 = vpop.f32.mrb[65].mxu0 }
 0xce1   :  { %v1801_v2 = vpop.f32.mrb[66].mxu0 }
 0xce2   :  { %v1806_v4 = vsel %vm210_vm2, %v1804_v38, 0  ;;  %v13216_v19 = vpop.f32.mrb[67].mxu0  ;;  %v1958_v38 = vld [vmem:[%s20209_s10] sm:$0xff] }
 0xce3   :  { %13218 = vmatpush3.bf16.msra.mxu1 %v1806_v4  ;;  %v15340_v4 = vld [vmem:[%s20208_s2 + $0x64] ss:$8 sps:$4 sm:$0xff]  }
 0xce4   :  { %13223 = vmatprep.subr.bf16.mxu1 %v14599_v0  ;;  %v15345_v19 = vld [vmem:[%s20208_s2 + $0xe4] ss:$8 sps:$4 sm:$0xff]  }
 0xce6   :  { %13220 = vmatmul.mubr.msk.bf16.vlgmr.msra.gmra.mrb[64].mxu1 %vm206_vm3, %v15026_v42 }
 0xce7   :  { %13224 = vmatpush3.bf16.msra.mxu1 %v15031_v53  ;;  %13231 = vmatprep.mubr.msk.bf16.mxu1 %vm14600_vm0, %v14599_v0 }
 0xce8   :  { %13225 = vmatprep.subr.bf16.mxu1 %v14599_v0 }
 0xceb   :  { %13226 = vmatpush3.bf16.msra.mxu1 %v15040_v54 }
 0xcec   :  { %13227 = vmatprep.subr.bf16.mxu1 %v14599_v0 }
 0xcef   :  { %13228 = vmatpush3.bf16.msra.mxu1 %v15049_v55 }
 0xcf0   :  { %13229 = vmatprep.subr.bf16.mxu1 %v14599_v0 }
 0xcf3   :  { %13230 = vmatpush3.bf16.msra.mxu1 %v15056_v56 }
 0xcf4   :  { %2234 = vmatprep.subr.bf16.mxu1 %v13288_v7 }
 0xcf6   :  { %13232 = vmatmul.mubr.msk.bf16.vlgmr.msra.gmra.mrb[68].mxu1 %vm84_vm1, %v15075_v9 }
 0xcf7   :  { %2266 = vmatprep.mubr.bf16.mxu1 %v20219_v1  ;;  %2235 = vmatpush1.bf16.msra.mxu1 %v13286_v5 }
 0xcf8   :  { %2236 = vmatprep.subr.bf16.mxu1 %v13294_v63 }
 0xcfb   :  { %2237 = vmatpush1.bf16.msra.mxu1 %v13292_v58 }
 0xcfc   :  { %2238 = vmatprep.subr.bf16.mxu1 %v13300_v10 }
 0xcff   :  { %2239 = vmatpush1.bf16.msra.mxu1 %v13298_v29 }
 0xd00   :  { %2240 = vmatprep.subr.bf16.mxu1 %v13306_v12 }
 0xd03   :  { %2241 = vmatpush1.bf16.msra.mxu1 %v13304_v30 }
 0xd04   :  { %2242 = vmatprep.subr.bf16.mxu1 %v13312_v31  ;;  %v15427_v31 = vld [vmem:[%s20211_s6] sm:$0xf] }
 0xd07   :  { %2243 = vmatpush1.bf16.msra.mxu1 %v13310_v48  ;;  %v15432_v48 = vld [vmem:[%s20208_s2 + $0x100] ss:$8 sps:$4 sm:$0xff]  }
 0xd08   :  { %2244 = vmatprep.subr.bf16.mxu1 %v13318_v33  ;;  %v15448_v33 = vld [vmem:[%s20208_s2 + $0x110] ss:$8 sps:$4 sm:$0xff]  }
 0xd0b   :  { %2245 = vmatpush1.bf16.msra.mxu1 %v13316_v32  ;;  %v15462_v32 = vld [vmem:[%s20208_s2 + $0x120] ss:$8 sps:$4 sm:$0xff]  }
 0xd0c   :  { %2246 = vmatprep.subr.bf16.mxu1 %v15345_v19 }
 0xdb9   :  { %v1842_v42 = vpop.f32.mrb[64].mxu1 }
 0xdba   :  { %v1848_v53 = vadd.f32 %v1842_v42, %v1763_v16  ;;  %v13221_v46 = vpop.f32.mrb[65].mxu1  ;;  %v1962_v42 = vld [vmem:[%s20210_s11] sm:$0xff] }
 0xdbb   :  { %v1845_v8 = vpop.f32.mrb[66].mxu1  ;;  %v15358_v46 = vld [vmem:[%s20208_s2 + $0xe0] ss:$8 sps:$4 sm:$0xff]  }
 0xdbc   :  { %v13222_v21 = vpop.f32.mrb[67].mxu1  ;;  %2247 = vmatpush1.bf16.msra.mxu1 %v15358_v46 }
 0xdbd   :  { %v13327_v21 = vld [vmem:[%s20208_s2 + $0x74] ss:$8 sps:$4 sm:$0x1f]  }
 0xdc9   :  { %v1883_v22 = vpop.f32.mrb[68].mxu1 }
 0xdca   :  { %v1889_v54 = vpack.c.bf16 %v1883_v22, %v1883_v22  ;;  %v13233_v47 = vpop.f32.mrb[69].mxu1  ;;  %v14602_v22 = vmov 65535  }
 0xdcb   :  { %v1886_v25 = vpop.f32.mrb[70].mxu1  ;;  %v13325_v47 = vld [vmem:[%s20208_s2 + $0x70] ss:$8 sps:$4 sm:$0x1f]  }
 0xdcc   :  { %v1891_v55 = vsel %vm210_vm2, %v1889_v54, 0  ;;  %v13234_v26 = vpop.f32.mrb[71].mxu1  ;;  %v2081_v54 = vsel %vm210_vm2, 4294967295, %v14602_v22 }
 0xdcd   :  { %13236 = vmatpush3.bf16.msra.mxu0 %v1891_v55  ;;  %v15370_v25 = vsel %vm2080_vm5, %v2081_v54, 0 }
 0xdce   :  { %20377 = vst [vmem:[#allocation2_spill] sm:$0xff] %v15370_v25  ;;  %v15374_v26 = vand.u32 %v13327_v21, %v15370_v25 }
 0xdd0   :  { %13238 = vmatmul.mubr.msk.bf16.vlgmr.msra.gmra.mrb[68].mxu0 %vm206_vm3, %v15091_v34 }
 0xdd1   :  { %2121 = vmatprep.mubr.bf16.mxu0 %v20219_v1 }
 0xea3   :  { %v1927_v0 = vpop.f32.mrb[68].mxu0 }
 0xea4   :  { %v1933_v56 = vadd.f32 %v1927_v0, %v1848_v53  ;;  %v13239_v9 = vpop.f32.mrb[69].mxu0  ;;  %v15353_v53 = vld [vmem:[%s20208_s2 + $0x60] ss:$8 sps:$4 sm:$0xff]   ;;  %v13328_v0 = vld [vmem:[%s20208_s2 + $0xf0] ss:$8 sps:$4 sm:$0x1f]  }
 0xea5   :  { %v1930_v27 = vpop.f32.mrb[70].mxu0  ;;  %v15383_v9 = vand.u32 %v13325_v47, %v15370_v25 }
 0xea6   :  { %v1934_v40 = vadd.f32 %v1933_v56, %v15128_v6  ;;  %v13240_v59 = vpop.f32.mrb[71].mxu0  ;;  %v13285_v6 = vld [vmem:[%s20208_s2 + $0x4] ss:$8 sps:$4 sm:$0xff]   ;;  %v13330_v56 = vld [vmem:[%s20208_s2 + $0xf4] ss:$8 sps:$4 sm:$0x1f]  }
 0xea7   :  { %2089 = vmatprep.subr.bf16.mxu0 %v13285_v6  ;;  %v15387_v27 = vand.u32 %v13330_v56, %v15370_v25  ;;  %v11418_v59 = vld [vmem:[%s20207_s9 + $0x8] sm:$0xff] }
 0xea8   :  { %v15255_v60 = vmax.f32 %v1934_v40, 0.0  ;;  %2090 = vmatpush1.bf16.msra.mxu0 %v13283_v3  ;;  %v15390_v40 = vand.u32 %v13328_v0, %v15370_v25 }
 0xea9   :  { %2091 = vmatprep.subr.bf16.mxu0 %v13291_v57  ;;  %2248 = vmatprep.subr.bf16.mxu1 %v15387_v27 }
 0xeaa   :  { %v1944_v41 = vsel %vm1936_vm4, %v15255_v60, 0.0  ;;  %v1948_v61 = vmul.f32 %v15255_v60, %v15255_v60  ;;  %2249 = vmatpush1.bf16.msra.mxu1 %v15390_v40 }
 0xeab   :  { %1945 = vadd.xlane.f32.xlu1 %v1944_v41 }
 0xeac   :  { %v1949_v34 = vsel %vm1936_vm4, %v1948_v61, 0.0  ;;  %2092 = vmatpush1.bf16.msra.mxu0 %v13289_v62 }
 0xead   :  { %2093 = vmatprep.subr.bf16.mxu0 %v13297_v23 }
 0xeaf   :  { %1950 = vadd.xlane.f32.xlu1 %v1949_v34 }
 0xeb0   :  { %2094 = vmatpush1.bf16.msra.mxu0 %v13295_v28 }
 0xeb1   :  { %2095 = vmatprep.subr.bf16.mxu0 %v13303_v11  ;;  %v15413_v11 = vld [vmem:[%s20208_s2 + $0x104] ss:$8 sps:$4 sm:$0xff]  }
 0xeb4   :  { %2096 = vmatpush1.bf16.msra.mxu0 %v13301_v13 }
 0xeb5   :  { %2097 = vmatprep.subr.bf16.mxu0 %v13309_v14 }
 0xeb8   :  { %2098 = vmatpush1.bf16.msra.mxu0 %v13307_v20  ;;  %v15422_v20 = vld [vmem:[%s20211_s6 + $0x4] sm:$0xf] }
 0xeb9   :  { %2099 = vmatprep.subr.bf16.mxu0 %v13315_v49  ;;  %v15438_v49 = vld [vmem:[%s20208_s2 + $0x114] ss:$8 sps:$4 sm:$0xff]  }
 0xebc   :  { %2100 = vmatpush1.bf16.msra.mxu0 %v13313_v50  ;;  %v15455_v50 = vld [vmem:[%s20208_s2 + $0x124] ss:$8 sps:$4 sm:$0xff]  }
 0xebd   :  { %2101 = vmatprep.subr.bf16.mxu0 %v15340_v4 }
 0xec0   :  { %2102 = vmatpush1.bf16.msra.mxu0 %v15353_v53 }
 0xec1   :  { %2103 = vmatprep.subr.bf16.mxu0 %v15374_v26 }
 0xec4   :  { %2104 = vmatpush1.bf16.msra.mxu0 %v15383_v9 }
 0xf38   :  { %v1946_v51 = vpop.xlane.xlu1 %1945 }
 0xf39   :  { %v1947_v37 = vadd.f32 %v1946_v51, %v1939_v36  ;;  %v15474_v36 = vld [vmem:[%s20208_s2 + $0x130] ss:$8 sps:$4 sm:$0xff]   ;;  %v15480_v51 = vld [vmem:[%s20208_s2 + $0x144] ss:$8 sps:$4 sm:$0xff]  }
 0xf3b   :  { %v1953_v24 = vmul.f32 0.004132231, %v1947_v37  ;;  %v15486_v37 = vld [vmem:[%s20208_s2 + $0x140] ss:$8 sps:$4 sm:$0xff]  }
 0xf3c   :  { %v1951_v52 = vpop.xlane.xlu1 %1950 }
 0xf3d   :  { %v1952_v15 = vadd.f32 %v1951_v52, %v1943_v35  ;;  %v1955_v16 = vmul.f32 %v1953_v24, %v1953_v24  ;;  %v15468_v35 = vld [vmem:[%s20208_s2 + $0x134] ss:$8 sps:$4 sm:$0xff]   ;;  %v15498_v52 = vld [vmem:[%s20208_s2 + $0x150] ss:$8 sps:$4 sm:$0xff]  }
 0xf3f   :  { %v1954_v43 = vmul.f32 0.004132231, %v1952_v15  ;;  %v15504_v15 = vld [vmem:[%s20208_s2 + $0x164] ss:$8 sps:$4 sm:$0xff]  }
 0xf41   :  { %v1956_v17 = vsub.f32 %v1954_v43, %v1955_v16  ;;  %v13354_v16 = vld [vmem:[%s20208_s2 + $0x174] ss:$8 sps:$4 sm:$0x1f]   ;;  %v15513_v43 = vld [vmem:[%s20208_s2 + $0x160] ss:$8 sps:$4 sm:$0xff]  }
 0xf43   :  { %v1957_v44 = vmax.f32 %v1956_v17, 0.0  ;;  %v13352_v17 = vld [vmem:[%s20208_s2 + $0x170] ss:$8 sps:$4 sm:$0x1f]  }
 0xf45   :  { %v1959_v45 = vadd.f32 1e-05, %v1957_v44  ;;  %v15520_v44 = vand.u32 %v13354_v16, %v15370_v25  ;;  %v15624_v16 = vld [vmem:[%s20208_s2 + $0x1e0] ss:$8 sps:$4 sm:$0xff]  }
 0xf47   :  { %14228 = vrsqrt.f32 %v1959_v45  ;;  %v15524_v45 = vand.u32 %v13352_v17, %v15370_v25  ;;  %v13376_v17 = vld [vmem:[%s20208_s2 + $0x1f0] ss:$8 sps:$4 sm:$0x1f]  }
 0xf51   :  { %v14229_v18 = vpop.eup %14228 }
 0xf52   :  { %v1961_v2 = vmul.f32 %v14229_v18, %v1958_v38 }
 0xf54   :  { %1967 = vperm.xlu1 %13246, %v1961_v2   ;;  %v1963_v8 = vmul.f32 %v1961_v2, %v1953_v24  ;;  %v15492_v24 = vld [vmem:[%s20208_s2 + $0x154] ss:$8 sps:$4 sm:$0xff]  }
 0xf56   :  { %v1964_v55 = vsub.f32 %v1962_v42, %v1963_v8 }
 0xf58   :  { %1973 = vperm.xlu1 %13246, %v1964_v55  }
 0xf5c   :  { %3767 = vperm.xlu1 %13246, %v11418_v59  }
 0xfd3   :  { %v1968_v41 = vpop.permute.xlu1 %1967 }
 0xfd4   :  { %v1970_v61 = vmul.f32 %v1968_v41, %v15131_v39  ;;  %v1978_v34 = vmul.f32 %v1968_v41, %v15255_v60 }
 0xfd7   :  { %v1974_v3 = vpop.permute.xlu1 %1973 }
 0xfd8   :  { %v1976_v6 = vadd.f32 %v1974_v3, %v1970_v61  ;;  %v15400_v5 = vadd.f32 %v1978_v34, %v1974_v3  ;;  %v15534_v34 = vld [vmem:[%s20208_s2 + $0x184] ss:$8 sps:$4 sm:$0xff]  }
 0xfda   :  { %v15402_v7 = vpack.c.bf16 %v1976_v6, %v1976_v6 }
 0xfdc   :  { %11435 = vmatmul.mubr.msk.bf16.vlgmr.msra.gmra.mrb[72].mxu0 %vm1936_vm4, %v15402_v7  ;;  %11468 = vmatmul.mubr.msk.bf16.vlgmr.msra.gmra.mrb[72].mxu1 %vm1936_vm4, %v15402_v7 }
 0xfdd   :  { %2320 = vmatprep.mubr.bf16.mxu0 %v20219_v1  ;;  %2370 = vmatprep.mubr.bf16.mxu1 %v20219_v1 }
0x10af   :  { %v2123_v62 = vpop.f32.mrb[72].mxu0  ;;  %v2268_v39 = vpop.f32.mrb[72].mxu1 }
0x10b0   :  { %v2131_v57 = vpack.c.bf16 %v2123_v62, %v2123_v62  ;;  %v2277_v60 = vpack.c.bf16 %v2268_v39, %v2268_v39  ;;  %v2125_v58 = vpop.f32.mrb[73].mxu0  ;;  %v2270_v63 = vpop.f32.mrb[73].mxu1  ;;  %v15541_v62 = vld [vmem:[%s20211_s6 + $0x8] sm:$0xf] }
0x10b1   :  { %v2132_v23 = vpack.c.bf16 %v2125_v58, %v2125_v58  ;;  %v2278_v28 = vpack.c.bf16 %v2270_v63, %v2270_v63  ;;  %v2127_v10 = vpop.f32.mrb[74].mxu0  ;;  %v2272_v29 = vpop.f32.mrb[74].mxu1  ;;  %v15546_v39 = vld [vmem:[%s20208_s2 + $0x180] ss:$8 sps:$4 sm:$0xff]   ;;  %v15567_v58 = vld [vmem:[%s20208_s2 + $0x1a4] ss:$8 sps:$4 sm:$0xff]  }
0x10b2   :  { %v2333_v12 = vsel %vm210_vm2, %v2131_v57, 0  ;;  %v2283_v13 = vsel %vm210_vm2, %v2277_v60, 0  ;;  %v2128_v30 = vpop.f32.mrb[75].mxu0  ;;  %v2273_v14 = vpop.f32.mrb[75].mxu1  ;;  %v15552_v57 = vld [vmem:[%s20208_s2 + $0x194] ss:$8 sps:$4 sm:$0xff]  }
0x10b3   :  { %11470 = vmatprep.subr.msk.bf16.mxu0 %vm210_vm2, %v2278_v28  ;;  %11472 = vmatprep.subr.msk.bf16.mxu1 %vm210_vm2, %v2132_v23  ;;  %v15560_v60 = vld [vmem:[%s20208_s2 + $0x190] ss:$8 sps:$4 sm:$0xff]   ;;  %v15573_v63 = vld [vmem:[%s20208_s2 + $0x1a0] ss:$8 sps:$4 sm:$0xff]   ;;  %v15579_v23 = vld [vmem:[%s20208_s2 + $0x1b4] ss:$8 sps:$4 sm:$0xff]  }
0x10b4   :  { %2289 = vmatpush1.bf16.msra.mxu0 %v2283_v13  ;;  %2339 = vmatpush1.bf16.msra.mxu1 %v2333_v12  ;;  %v15585_v28 = vld [vmem:[%s20208_s2 + $0x1b0] ss:$8 sps:$4 sm:$0xff]   ;;  %v15591_v10 = vld [vmem:[%s20208_s2 + $0x1c4] ss:$8 sps:$4 sm:$0xff]   ;;  %v15597_v29 = vld [vmem:[%s20208_s2 + $0x1c0] ss:$8 sps:$4 sm:$0xff]  }
0x10b5   :  { %2480 = vmatprep.subr.bf16.mxu0 %v15413_v11  ;;  %v15603_v12 = vld [vmem:[%s20208_s2 + $0x1d4] ss:$8 sps:$4 sm:$0xff]   ;;  %v15609_v13 = vld [vmem:[%s20208_s2 + $0x1d0] ss:$8 sps:$4 sm:$0xff]   ;;  %v15615_v30 = vld [vmem:[%s20208_s2 + $0x1e4] ss:$8 sps:$4 sm:$0xff]  }
0x10b6   :  { %v13378_v14 = vld [vmem:[%s20208_s2 + $0x1f4] ss:$8 sps:$4 sm:$0x1f]  }
0x10b7   :  { %11471 = vmatmul.mubr.msk.bf16.vlgmr.msra.gmra.mrb[76].mxu0 %vm206_vm3, %v15422_v20  ;;  %11473 = vmatmul.mubr.msk.bf16.vlgmr.msra.gmra.mrb[76].mxu1 %vm206_vm3, %v15427_v31 }
0x10b8   :  { %2481 = vmatpush1.bf16.msra.mxu0 %v15432_v48  ;;  %2512 = vmatprep.mubr.bf16.mxu0 %v20219_v1 }
0x10b9   :  { %2482 = vmatprep.subr.bf16.mxu0 %v15438_v49  ;;  %2566 = vmatprep.mubr.bf16.mxu1 %v20219_v1 }
0x10bc   :  { %2483 = vmatpush1.bf16.msra.mxu0 %v15448_v33 }
0x10bd   :  { %2484 = vmatprep.subr.bf16.mxu0 %v15455_v50 }
0x10c0   :  { %2485 = vmatpush1.bf16.msra.mxu0 %v15462_v32 }
0x10c1   :  { %2486 = vmatprep.subr.bf16.mxu0 %v15468_v35 }
0x10c4   :  { %2487 = vmatpush1.bf16.msra.mxu0 %v15474_v36 }
0x10c5   :  { %2488 = vmatprep.subr.bf16.mxu0 %v15480_v51 }
0x10c8   :  { %2489 = vmatpush1.bf16.msra.mxu0 %v15486_v37 }
0x10c9   :  { %2490 = vmatprep.subr.bf16.mxu0 %v15492_v24 }
0x10cc   :  { %2491 = vmatpush1.bf16.msra.mxu0 %v15498_v52 }
0x10cd   :  { %2492 = vmatprep.subr.bf16.mxu0 %v15504_v15 }
0x10d0   :  { %2493 = vmatpush1.bf16.msra.mxu0 %v15513_v43 }
0x10d1   :  { %2494 = vmatprep.subr.bf16.mxu0 %v15520_v44 }
0x10d4   :  { %2495 = vmatpush1.bf16.msra.mxu0 %v15524_v45 }
0x10d7   :  { %11506 = vmatmul.mubr.msk.bf16.vlgmr.msra.gmra.mrb[80].mxu0 %vm1936_vm4, %v15402_v7 }
0x10d8   :  { %2764 = vmatprep.mubr.bf16.mxu0 %v20219_v1 }
0x118a   :  { %v2322_v38 = vpop.f32.mrb[76].mxu0  ;;  %v2372_v18 = vpop.f32.mrb[76].mxu1 }
0x118b   :  { %v2373_v2 = vadd.f32 %v2372_v18, %v2322_v38  ;;  %v2324_v42 = vpop.f32.mrb[77].mxu0  ;;  %v2374_v8 = vpop.f32.mrb[77].mxu1  ;;  %v15631_v38 = vand.u32 %v13378_v14, %v15370_v25  ;;  %v15635_v18 = vand.u32 %v13376_v17, %v15370_v25  ;;  %v15663_v17 = vld [vmem:[%s20208_s2 + $0x214] ss:$8 sps:$4 sm:$0xff]  }
0x118c   :  { %v2375_v21 = vadd.f32 %v2374_v8, %v2324_v42  ;;  %v2326_v22 = vpop.f32.mrb[78].mxu0  ;;  %v2376_v54 = vpop.f32.mrb[78].mxu1  ;;  %20380 = vst [vmem:[#allocation5_spill] sm:$0xff] %v15663_v17 }
0x118d   :  { %v2327_v47 = vpop.f32.mrb[79].mxu0  ;;  %v2377_v55 = vpop.f32.mrb[79].mxu1 }
0x11aa   :  { %v2514_v0 = vpop.f32.mrb[80].mxu0 }
0x11ab   :  { %v2523_v56 = vpack.c.bf16 %v2514_v0, %v2514_v0  ;;  %v2516_v59 = vpop.f32.mrb[81].mxu0 }
0x11ac   :  { %v2524_v41 = vpack.c.bf16 %v2516_v59, %v2516_v59  ;;  %v2518_v61 = vpop.f32.mrb[82].mxu0 }
0x11ad   :  { %v2529_v3 = vsel %vm210_vm2, %v2523_v56, 0  ;;  %v2519_v6 = vpop.f32.mrb[83].mxu0 }
0x11ae   :  { %11508 = vmatprep.subr.msk.bf16.mxu1 %vm210_vm2, %v2524_v41 }
0x11af   :  { %2535 = vmatpush1.bf16.msra.mxu1 %v2529_v3  ;;  %v15645_v3 = vld [vmem:[%s20208_s2 + $0x204] ss:$8 sps:$4 sm:$0xff]  }
0x11b0   :  { %2678 = vmatprep.subr.bf16.mxu1 %v15534_v34 }
0x11b2   :  { %11509 = vmatmul.mubr.msk.bf16.vlgmr.msra.gmra.mrb[80].mxu1 %vm206_vm3, %v15541_v62 }
0x11b3   :  { %2679 = vmatpush1.bf16.msra.mxu1 %v15546_v39  ;;  %2710 = vmatprep.mubr.bf16.mxu1 %v20219_v1 }
0x11b4   :  { %2680 = vmatprep.subr.bf16.mxu1 %v15552_v57 }
0x11b7   :  { %2681 = vmatpush1.bf16.msra.mxu1 %v15560_v60 }
0x11b8   :  { %2682 = vmatprep.subr.bf16.mxu1 %v15567_v58 }
0x11bb   :  { %2683 = vmatpush1.bf16.msra.mxu1 %v15573_v63 }
0x11bc   :  { %2684 = vmatprep.subr.bf16.mxu1 %v15579_v23 }
0x11bf   :  { %2685 = vmatpush1.bf16.msra.mxu1 %v15585_v28 }
0x11c0   :  { %2686 = vmatprep.subr.bf16.mxu1 %v15591_v10 }
0x11c3   :  { %2687 = vmatpush1.bf16.msra.mxu1 %v15597_v29 }
0x11c4   :  { %2688 = vmatprep.subr.bf16.mxu1 %v15603_v12 }
0x11c7   :  { %2689 = vmatpush1.bf16.msra.mxu1 %v15609_v13 }
0x11c8   :  { %2690 = vmatprep.subr.bf16.mxu1 %v15615_v30 }
0x11cb   :  { %2691 = vmatpush1.bf16.msra.mxu1 %v15624_v16 }
0x11cc   :  { %2692 = vmatprep.subr.bf16.mxu1 %v15631_v38 }
0x11cf   :  { %2693 = vmatpush1.bf16.msra.mxu1 %v15635_v18 }
0x11d2   :  { %11542 = vmatmul.mubr.msk.bf16.vlgmr.msra.gmra.mrb[84].mxu1 %vm1936_vm4, %v15402_v7 }
0x11d3   :  { %2962 = vmatprep.mubr.bf16.mxu1 %v20219_v1 }
0x1285   :  { %v2568_v42 = vpop.f32.mrb[80].mxu1 }
0x1286   :  { %v2575_v8 = vadd.f32 %v2568_v42, %v2373_v2  ;;  %v2570_v22 = vpop.f32.mrb[81].mxu1  ;;  %v15652_v2 = vld [vmem:[%s20211_s6 + $0xc] sm:$0xf]  ;;  %v15671_v42 = vld [vmem:[%s20208_s2 + $0x210] ss:$8 sps:$4 sm:$0xff]  }
0x1287   :  { %v2576_v54 = vadd.f32 %v2570_v22, %v2375_v21  ;;  %v2572_v47 = vpop.f32.mrb[82].mxu1  ;;  %20378 = vst [vmem:[#allocation3_spill] sm:$0xff] %v15652_v2  ;;  %v15657_v21 = vld [vmem:[%s20208_s2 + $0x200] ss:$8 sps:$4 sm:$0xff]   ;;  %20381 = vst [vmem:[#allocation6_spill] sm:$0xff] %v15671_v42 }
0x1288   :  { %v2573_v55 = vpop.f32.mrb[83].mxu1  ;;  %20379 = vst [vmem:[#allocation4_spill] sm:$0xff] %v15657_v21  ;;  %v15678_v22 = vld [vmem:[%s20208_s2 + $0x224] ss:$8 sps:$4 sm:$0xff]   ;;  %v15684_v47 = vld [vmem:[%s20208_s2 + $0x220] ss:$8 sps:$4 sm:$0xff]  }
0x1289   :  { %20382 = vst [vmem:[#allocation7_spill] sm:$0xff] %v15678_v22  ;;  %20383 = vst [vmem:[#allocation8_spill] sm:$0xff] %v15684_v47  ;;  %v15690_v55 = vld [vmem:[%s20208_s2 + $0x234] ss:$8 sps:$4 sm:$0xff]  }
0x128a   :  { %20384 = vst [vmem:[#allocation9_spill] sm:$0xff] %v15690_v55 }
0x12a5   :  { %v2712_v0 = vpop.f32.mrb[84].mxu1 }
0x12a6   :  { %v2721_v56 = vpack.c.bf16 %v2712_v0, %v2712_v0  ;;  %v2714_v59 = vpop.f32.mrb[85].mxu1  ;;  %v15696_v0 = vld [vmem:[%s20208_s2 + $0x230] ss:$8 sps:$4 sm:$0xff]  }
0x12a7   :  { %v2722_v41 = vpack.c.bf16 %v2714_v59, %v2714_v59  ;;  %v2716_v61 = vpop.f32.mrb[86].mxu1  ;;  %20385 = vst [vmem:[#allocation10_spill] sm:$0xff] %v15696_v0  ;;  %v15708_v59 = vld [vmem:[%s20208_s2 + $0x240] ss:$8 sps:$4 sm:$0xff]  }
0x12a8   :  { %v2727_v6 = vsel %vm210_vm2, %v2721_v56, 0  ;;  %v2717_v14 = vpop.f32.mrb[87].mxu1  ;;  %v15702_v56 = vld [vmem:[%s20208_s2 + $0x244] ss:$8 sps:$4 sm:$0xff]   ;;  %20387 = vst [vmem:[#allocation12_spill] sm:$0xff] %v15708_v59 }
0x12a9   :  { %11544 = vmatprep.subr.msk.bf16.mxu0 %vm210_vm2, %v2722_v41  ;;  %20386 = vst [vmem:[#allocation11_spill] sm:$0xff] %v15702_v56  ;;  %v15714_v41 = vld [vmem:[%s20208_s2 + $0x254] ss:$8 sps:$4 sm:$0xff]   ;;  %v15720_v61 = vld [vmem:[%s20208_s2 + $0x250] ss:$8 sps:$4 sm:$0xff]  }
0x12aa   :  { %2733 = vmatpush1.bf16.msra.mxu0 %v2727_v6  ;;  %20388 = vst [vmem:[#allocation13_spill] sm:$0xff] %v15714_v41  ;;  %20389 = vst [vmem:[#allocation14_spill] sm:$0xff] %v15720_v61  ;;  %v15726_v6 = vld [vmem:[%s20208_s2 + $0x264] ss:$8 sps:$4 sm:$0xff]  }
0x12ab   :  { %2876 = vmatprep.subr.bf16.mxu0 %v15645_v3  ;;  %20390 = vst [vmem:[#allocation15_spill] sm:$0xff] %v15726_v6  ;;  %v13402_v14 = vld [vmem:[%s20208_s2 + $0x274] ss:$8 sps:$4 sm:$0x1f]  }
0x12ad   :  { %11545 = vmatmul.mubr.msk.bf16.vlgmr.msra.gmra.mrb[84].mxu0 %vm206_vm3, %v15652_v2 }
0x12ae   :  { %2877 = vmatpush1.bf16.msra.mxu0 %v15657_v21  ;;  %2908 = vmatprep.mubr.bf16.mxu0 %v20219_v1  ;;  %v15735_v1 = vld [vmem:[%s20208_s2 + $0x260] ss:$8 sps:$4 sm:$0xff]  }
0x12af   :  { %2878 = vmatprep.subr.bf16.mxu0 %v15663_v17  ;;  %20391 = vst [vmem:[#allocation16_spill] sm:$0xff] %v15735_v1 }
0x12b2   :  { %2879 = vmatpush1.bf16.msra.mxu0 %v15671_v42 }
0x12b3   :  { %2880 = vmatprep.subr.bf16.mxu0 %v15678_v22 }
0x12b6   :  { %2881 = vmatpush1.bf16.msra.mxu0 %v15684_v47 }
0x12b7   :  { %2882 = vmatprep.subr.bf16.mxu0 %v15690_v55 }
0x12ba   :  { %2883 = vmatpush1.bf16.msra.mxu0 %v15696_v0 }
0x12bb   :  { %2884 = vmatprep.subr.bf16.mxu0 %v15702_v56 }
0x12be   :  { %2885 = vmatpush1.bf16.msra.mxu0 %v15708_v59  ;;  %v15742_v59 = vand.u32 %v13402_v14, %v15370_v25 }
0x12bf   :  { %2886 = vmatprep.subr.bf16.mxu0 %v15714_v41  ;;  %v13400_v41 = vld [vmem:[%s20208_s2 + $0x270] ss:$8 sps:$4 sm:$0x1f]  }
0x12c0   :  { %20392 = vst [vmem:[#allocation17_spill] sm:$0xff] %v15742_v59  ;;  %v15746_v56 = vand.u32 %v13400_v41, %v15370_v25 }
0x12c2   :  { %2887 = vmatpush1.bf16.msra.mxu0 %v15720_v61  ;;  %20393 = vst [vmem:[#allocation18_spill] sm:$0xff] %v15746_v56  ;;  %v20394_v61 = vmov 0  }
0x12c3   :  { %2888 = vmatprep.subr.bf16.mxu0 %v15726_v6 }
0x12c6   :  { %2889 = vmatpush1.bf16.msra.mxu0 %v15735_v1 }
0x12c7   :  { %2890 = vmatprep.subr.bf16.mxu0 %v15742_v59 }
0x12ca   :  { %2891 = vmatpush1.bf16.msra.mxu0 %v15746_v56  ;;  %v15756_v56 = vld [vmem:[%s20208_s2 + $0x284] ss:$8 sps:$4 sm:$0xff]  }
0x12cb   :  { %20395 = vst [vmem:[#allocation19_spill] sm:$0xff] %v15756_v56 }
0x12cd   :  { %11578 = vmatmul.mubr.msk.bf16.vlgmr.msra.gmra.mrb[88].mxu0 %vm1936_vm4, %v15402_v7 }
0x12ce   :  { %3160 = vmatprep.mubr.bf16.mxu0 %v20394_v61 }
0x1380   :  { %v2766_v0 = vpop.f32.mrb[84].mxu0 }
0x1381   :  { %v2773_v55 = vadd.f32 %v2766_v0, %v2575_v8  ;;  %v2768_v6 = vpop.f32.mrb[85].mxu0  ;;  %v15763_v8 = vld [vmem:[%s20211_s6 + $0x10] sm:$0xf]  ;;  %v15813_v0 = vld [vmem:[%s20208_s2 + $0x2c4] ss:$8 sps:$4 sm:$0xff]  }
0x1382   :  { %v2774_v47 = vadd.f32 %v2768_v6, %v2576_v54  ;;  %v2770_v14 = vpop.f32.mrb[86].mxu0  ;;  %20396 = vst [vmem:[#allocation20_spill] sm:$0xff] %v15763_v8  ;;  %v15768_v54 = vld [vmem:[%s20208_s2 + $0x280] ss:$8 sps:$4 sm:$0xff]   ;;  %20404 = vst [vmem:[#allocation28_spill] sm:$0xff] %v15813_v0 }
0x1383   :  { %v2771_v22 = vpop.f32.mrb[87].mxu0  ;;  %20397 = vst [vmem:[#allocation21_spill] sm:$0xff] %v15768_v54  ;;  %v15825_v6 = vld [vmem:[%s20208_s2 + $0x2d4] ss:$8 sps:$4 sm:$0xff]   ;;  %v15831_v14 = vld [vmem:[%s20208_s2 + $0x2d0] ss:$8 sps:$4 sm:$0xff]  }
0x1384   :  { %v15807_v22 = vld [vmem:[%s20208_s2 + $0x2b0] ss:$8 sps:$4 sm:$0xff]   ;;  %20406 = vst [vmem:[#allocation30_spill] sm:$0xff] %v15825_v6  ;;  %20407 = vst [vmem:[#allocation31_spill] sm:$0xff] %v15831_v14 }
0x1385   :  { %20403 = vst [vmem:[#allocation27_spill] sm:$0xff] %v15807_v22 }
0x13a0   :  { %v2910_v42 = vpop.f32.mrb[88].mxu0 }
0x13a1   :  { %v2919_v1 = vpack.c.bf16 %v2910_v42, %v2910_v42  ;;  %v2912_v17 = vpop.f32.mrb[89].mxu0  ;;  %v15801_v42 = vld [vmem:[%s20208_s2 + $0x2b4] ss:$8 sps:$4 sm:$0xff]  }
0x13a2   :  { %v2920_v41 = vpack.c.bf16 %v2912_v17, %v2912_v17  ;;  %v2914_v21 = vpop.f32.mrb[90].mxu0  ;;  %v15795_v17 = vld [vmem:[%s20208_s2 + $0x2a0] ss:$8 sps:$4 sm:$0xff]   ;;  %20402 = vst [vmem:[#allocation26_spill] sm:$0xff] %v15801_v42 }
0x13a3   :  { %v2925_v59 = vsel %vm210_vm2, %v2919_v1, 0  ;;  %v2915_v2 = vpop.f32.mrb[91].mxu0  ;;  %v15774_v1 = vld [vmem:[%s20208_s2 + $0x294] ss:$8 sps:$4 sm:$0xff]   ;;  %v15789_v21 = vld [vmem:[%s20208_s2 + $0x2a4] ss:$8 sps:$4 sm:$0xff]  }
0x13a4   :  { %11580 = vmatprep.subr.msk.bf16.mxu1 %vm210_vm2, %v2920_v41  ;;  %20398 = vst [vmem:[#allocation22_spill] sm:$0xff] %v15774_v1  ;;  %v15782_v2 = vld [vmem:[%s20208_s2 + $0x290] ss:$8 sps:$4 sm:$0xff]   ;;  %20400 = vst [vmem:[#allocation24_spill] sm:$0xff] %v15789_v21  ;;  %v15837_v41 = vld [vmem:[%s20208_s2 + $0x2e4] ss:$8 sps:$4 sm:$0xff]  }
0x13a5   :  { %2931 = vmatpush1.bf16.msra.mxu1 %v2925_v59  ;;  %20399 = vst [vmem:[#allocation23_spill] sm:$0xff] %v15782_v2  ;;  %20401 = vst [vmem:[#allocation25_spill] sm:$0xff] %v15795_v17  ;;  %v15819_v59 = vld [vmem:[%s20208_s2 + $0x2c0] ss:$8 sps:$4 sm:$0xff]  }
0x13a6   :  { %3074 = vmatprep.subr.bf16.mxu1 %v15756_v56  ;;  %20405 = vst [vmem:[#allocation29_spill] sm:$0xff] %v15819_v59  ;;  %20408 = vst [vmem:[#allocation32_spill] sm:$0xff] %v15837_v41 }
0x13a8   :  { %11581 = vmatmul.mubr.msk.bf16.vlgmr.msra.gmra.mrb[88].mxu1 %vm206_vm3, %v15763_v8 }
0x13a9   :  { %3075 = vmatpush1.bf16.msra.mxu1 %v15768_v54  ;;  %3106 = vmatprep.mubr.bf16.mxu1 %v20394_v61 }
0x13aa   :  { %3076 = vmatprep.subr.bf16.mxu1 %v15774_v1 }
0x13ad   :  { %3077 = vmatpush1.bf16.msra.mxu1 %v15782_v2 }
0x13ae   :  { %3078 = vmatprep.subr.bf16.mxu1 %v15789_v21 }
0x13b1   :  { %3079 = vmatpush1.bf16.msra.mxu1 %v15795_v17 }
0x13b2   :  { %3080 = vmatprep.subr.bf16.mxu1 %v15801_v42 }
0x13b5   :  { %3081 = vmatpush1.bf16.msra.mxu1 %v15807_v22 }
0x13b6   :  { %3082 = vmatprep.subr.bf16.mxu1 %v15813_v0  ;;  %v13426_v0 = vld [vmem:[%s20208_s2 + $0x2f4] ss:$8 sps:$4 sm:$0x1f]  }
0x13b7   :  { %v15853_v22 = vand.u32 %v13426_v0, %v15370_v25 }
0x13b9   :  { %3083 = vmatpush1.bf16.msra.mxu1 %v15819_v59  ;;  %v15846_v59 = vld [vmem:[%s20208_s2 + $0x2e0] ss:$8 sps:$4 sm:$0xff]   ;;  %20410 = vst [vmem:[#allocation34_spill] sm:$0xff] %v15853_v22 }
0x13ba   :  { %3084 = vmatprep.subr.bf16.mxu1 %v15825_v6  ;;  %20409 = vst [vmem:[#allocation33_spill] sm:$0xff] %v15846_v59  ;;  %v13424_v6 = vld [vmem:[%s20208_s2 + $0x2f0] ss:$8 sps:$4 sm:$0x1f]  }
0x13bb   :  { %v15857_v42 = vand.u32 %v13424_v6, %v15370_v25 }
0x13bd   :  { %3085 = vmatpush1.bf16.msra.mxu1 %v15831_v14  ;;  %20411 = vst [vmem:[#allocation35_spill] sm:$0xff] %v15857_v42 }
0x13be   :  { %3086 = vmatprep.subr.bf16.mxu1 %v15837_v41 }
0x13c1   :  { %3087 = vmatpush1.bf16.msra.mxu1 %v15846_v59 }
0x13c2   :  { %3088 = vmatprep.subr.bf16.mxu1 %v15853_v22 }
0x13c5   :  { %3089 = vmatpush1.bf16.msra.mxu1 %v15857_v42  ;;  %v15867_v42 = vld [vmem:[%s20208_s2 + $0x304] ss:$8 sps:$4 sm:$0xff]  }
0x13c6   :  { %20412 = vst [vmem:[#allocation36_spill] sm:$0xff] %v15867_v42 }
0x13c8   :  { %11614 = vmatmul.mubr.msk.bf16.vlgmr.msra.gmra.mrb[92].mxu1 %vm1936_vm4, %v15402_v7 }
0x13c9   :  { %3358 = vmatprep.mubr.bf16.mxu1 %v20394_v61 }
0x147b   :  { %v2964_v14 = vpop.f32.mrb[88].mxu1 }
0x147c   :  { %v2971_v17 = vadd.f32 %v2964_v14, %v2773_v55  ;;  %v2966_v41 = vpop.f32.mrb[89].mxu1  ;;  %v15879_v55 = vld [vmem:[%s20208_s2 + $0x300] ss:$8 sps:$4 sm:$0xff]  }
0x147d   :  { %v2972_v21 = vadd.f32 %v2966_v41, %v2774_v47  ;;  %v2968_v0 = vpop.f32.mrb[90].mxu1  ;;  %v15874_v47 = vld [vmem:[%s20211_s6 + $0x14] sm:$0xf]  ;;  %20414 = vst [vmem:[#allocation38_spill] sm:$0xff] %v15879_v55  ;;  %v15930_v14 = vld [vmem:[%s20208_s2 + $0x340] ss:$8 sps:$4 sm:$0xff]  }
0x147e   :  { %v2969_v2 = vpop.f32.mrb[91].mxu1  ;;  %20413 = vst [vmem:[#allocation37_spill] sm:$0xff] %v15874_v47  ;;  %20422 = vst [vmem:[#allocation46_spill] sm:$0xff] %v15930_v14  ;;  %v15936_v41 = vld [vmem:[%s20208_s2 + $0x354] ss:$8 sps:$4 sm:$0xff]  }
0x147f   :  { %v15912_v2 = vld [vmem:[%s20208_s2 + $0x334] ss:$8 sps:$4 sm:$0xff]   ;;  %20423 = vst [vmem:[#allocation47_spill] sm:$0xff] %v15936_v41  ;;  %v15942_v0 = vld [vmem:[%s20208_s2 + $0x350] ss:$8 sps:$4 sm:$0xff]  }
0x1480   :  { %20419 = vst [vmem:[#allocation43_spill] sm:$0xff] %v15912_v2  ;;  %20424 = vst [vmem:[#allocation48_spill] sm:$0xff] %v15942_v0 }
0x149b   :  { %v3108_v1 = vpop.f32.mrb[92].mxu1 }
0x149c   :  { %v3117_v59 = vpack.c.bf16 %v3108_v1, %v3108_v1  ;;  %v3110_v54 = vpop.f32.mrb[93].mxu1  ;;  %v15906_v1 = vld [vmem:[%s20208_s2 + $0x320] ss:$8 sps:$4 sm:$0xff]  }
0x149d   :  { %v3118_v6 = vpack.c.bf16 %v3110_v54, %v3110_v54  ;;  %v3112_v8 = vpop.f32.mrb[94].mxu1  ;;  %v15900_v54 = vld [vmem:[%s20208_s2 + $0x324] ss:$8 sps:$4 sm:$0xff]   ;;  %20418 = vst [vmem:[#allocation42_spill] sm:$0xff] %v15906_v1 }
0x149e   :  { %v3123_v22 = vsel %vm210_vm2, %v3117_v59, 0  ;;  %v3113_v56 = vpop.f32.mrb[95].mxu1  ;;  %v15885_v8 = vld [vmem:[%s20208_s2 + $0x314] ss:$8 sps:$4 sm:$0xff]   ;;  %20417 = vst [vmem:[#allocation41_spill] sm:$0xff] %v15900_v54 }
0x149f   :  { %11616 = vmatprep.subr.msk.bf16.mxu0 %vm210_vm2, %v3118_v6  ;;  %20415 = vst [vmem:[#allocation39_spill] sm:$0xff] %v15885_v8  ;;  %v15893_v56 = vld [vmem:[%s20208_s2 + $0x310] ss:$8 sps:$4 sm:$0xff]   ;;  %v15924_v59 = vld [vmem:[%s20208_s2 + $0x344] ss:$8 sps:$4 sm:$0xff]  }
0x14a0   :  { %3129 = vmatpush1.bf16.msra.mxu0 %v3123_v22  ;;  %20416 = vst [vmem:[#allocation40_spill] sm:$0xff] %v15893_v56  ;;  %v15918_v22 = vld [vmem:[%s20208_s2 + $0x330] ss:$8 sps:$4 sm:$0xff]   ;;  %20421 = vst [vmem:[#allocation45_spill] sm:$0xff] %v15924_v59  ;;  %v15948_v6 = vld [vmem:[%s20208_s2 + $0x364] ss:$8 sps:$4 sm:$0xff]  }
0x14a1   :  { %3272 = vmatprep.subr.bf16.mxu0 %v15867_v42  ;;  %20420 = vst [vmem:[#allocation44_spill] sm:$0xff] %v15918_v22  ;;  %20425 = vst [vmem:[#allocation49_spill] sm:$0xff] %v15948_v6 }
0x14a3   :  { %11617 = vmatmul.mubr.msk.bf16.vlgmr.msra.gmra.mrb[92].mxu0 %vm206_vm3, %v15874_v47 }
0x14a4   :  { %3273 = vmatpush1.bf16.msra.mxu0 %v15879_v55  ;;  %3304 = vmatprep.mubr.bf16.mxu0 %v20394_v61 }
0x14a5   :  { %3274 = vmatprep.subr.bf16.mxu0 %v15885_v8 }
0x14a8   :  { %3275 = vmatpush1.bf16.msra.mxu0 %v15893_v56 }
0x14a9   :  { %3276 = vmatprep.subr.bf16.mxu0 %v15900_v54 }
0x14ac   :  { %3277 = vmatpush1.bf16.msra.mxu0 %v15906_v1 }
0x14ad   :  { %3278 = vmatprep.subr.bf16.mxu0 %v15912_v2 }
0x14b0   :  { %3279 = vmatpush1.bf16.msra.mxu0 %v15918_v22 }
0x14b1   :  { %3280 = vmatprep.subr.bf16.mxu0 %v15924_v59  ;;  %v13450_v59 = vld [vmem:[%s20208_s2 + $0x374] ss:$8 sps:$4 sm:$0x1f]  }
0x14b2   :  { %v15964_v22 = vand.u32 %v13450_v59, %v15370_v25 }
0x14b4   :  { %3281 = vmatpush1.bf16.msra.mxu0 %v15930_v14  ;;  %v15957_v14 = vld [vmem:[%s20208_s2 + $0x360] ss:$8 sps:$4 sm:$0xff]   ;;  %20427 = vst [vmem:[#allocation51_spill] sm:$0xff] %v15964_v22 }
0x14b5   :  { %3282 = vmatprep.subr.bf16.mxu0 %v15936_v41  ;;  %20426 = vst [vmem:[#allocation50_spill] sm:$0xff] %v15957_v14  ;;  %v13448_v41 = vld [vmem:[%s20208_s2 + $0x370] ss:$8 sps:$4 sm:$0x1f]  }
0x14b6   :  { %v15968_v2 = vand.u32 %v13448_v41, %v15370_v25 }
0x14b8   :  { %3283 = vmatpush1.bf16.msra.mxu0 %v15942_v0  ;;  %20428 = vst [vmem:[#allocation52_spill] sm:$0xff] %v15968_v2 }
0x14b9   :  { %3284 = vmatprep.subr.bf16.mxu0 %v15948_v6 }
0x14bc   :  { %3285 = vmatpush1.bf16.msra.mxu0 %v15957_v14 }
0x14bd   :  { %3286 = vmatprep.subr.bf16.mxu0 %v15964_v22 }
0x14c0   :  { %3287 = vmatpush1.bf16.msra.mxu0 %v15968_v2  ;;  %v15978_v2 = vld [vmem:[%s20208_s2 + $0x384] ss:$8 sps:$4 sm:$0xff]  }
0x14c1   :  { %20429 = vst [vmem:[#allocation53_spill] sm:$0xff] %v15978_v2 }
0x14c3   :  { %11650 = vmatmul.mubr.msk.bf16.vlgmr.msra.gmra.mrb[96].mxu0 %vm1936_vm4, %v15402_v7 }
0x14c4   :  { %3556 = vmatprep.mubr.bf16.mxu0 %v20394_v61 }
0x1576   :  { %v3162_v0 = vpop.f32.mrb[92].mxu0 }
0x1577   :  { %v3169_v1 = vadd.f32 %v3162_v0, %v2971_v17  ;;  %v3164_v6 = vpop.f32.mrb[93].mxu0  ;;  %v15990_v17 = vld [vmem:[%s20208_s2 + $0x380] ss:$8 sps:$4 sm:$0xff]  }
0x1578   :  { %v3170_v54 = vadd.f32 %v3164_v6, %v2972_v21  ;;  %v3166_v59 = vpop.f32.mrb[94].mxu0  ;;  %v15985_v21 = vld [vmem:[%s20211_s6 + $0x18] sm:$0xf]  ;;  %20431 = vst [vmem:[#allocation55_spill] sm:$0xff] %v15990_v17  ;;  %v16041_v0 = vld [vmem:[%s20208_s2 + $0x3c0] ss:$8 sps:$4 sm:$0xff]  }
0x1579   :  { %v3167_v56 = vpop.f32.mrb[95].mxu0  ;;  %20430 = vst [vmem:[#allocation54_spill] sm:$0xff] %v15985_v21  ;;  %20439 = vst [vmem:[#allocation63_spill] sm:$0xff] %v16041_v0  ;;  %v16047_v6 = vld [vmem:[%s20208_s2 + $0x3d4] ss:$8 sps:$4 sm:$0xff]  }
0x157a   :  { %v16023_v56 = vld [vmem:[%s20208_s2 + $0x3b4] ss:$8 sps:$4 sm:$0xff]   ;;  %20440 = vst [vmem:[#allocation64_spill] sm:$0xff] %v16047_v6  ;;  %v16053_v59 = vld [vmem:[%s20208_s2 + $0x3d0] ss:$8 sps:$4 sm:$0xff]  }
0x157b   :  { %20436 = vst [vmem:[#allocation60_spill] sm:$0xff] %v16023_v56  ;;  %20441 = vst [vmem:[#allocation65_spill] sm:$0xff] %v16053_v59 }
0x1596   :  { %v3306_v8 = vpop.f32.mrb[96].mxu0 }
0x1597   :  { %v3315_v14 = vpack.c.bf16 %v3306_v8, %v3306_v8  ;;  %v3308_v55 = vpop.f32.mrb[97].mxu0  ;;  %v16017_v8 = vld [vmem:[%s20208_s2 + $0x3a0] ss:$8 sps:$4 sm:$0xff]  }
0x1598   :  { %v3316_v41 = vpack.c.bf16 %v3308_v55, %v3308_v55  ;;  %v3310_v47 = vpop.f32.mrb[98].mxu0  ;;  %v16011_v55 = vld [vmem:[%s20208_s2 + $0x3a4] ss:$8 sps:$4 sm:$0xff]   ;;  %20435 = vst [vmem:[#allocation59_spill] sm:$0xff] %v16017_v8 }
0x1599   :  { %v3321_v22 = vsel %vm210_vm2, %v3315_v14, 0  ;;  %v3311_v42 = vpop.f32.mrb[99].mxu0  ;;  %v15996_v47 = vld [vmem:[%s20208_s2 + $0x394] ss:$8 sps:$4 sm:$0xff]   ;;  %20434 = vst [vmem:[#allocation58_spill] sm:$0xff] %v16011_v55 }
0x159a   :  { %11652 = vmatprep.subr.msk.bf16.mxu1 %vm210_vm2, %v3316_v41  ;;  %20432 = vst [vmem:[#allocation56_spill] sm:$0xff] %v15996_v47  ;;  %v16004_v42 = vld [vmem:[%s20208_s2 + $0x390] ss:$8 sps:$4 sm:$0xff]   ;;  %v16035_v14 = vld [vmem:[%s20208_s2 + $0x3c4] ss:$8 sps:$4 sm:$0xff]  }
0x159b   :  { %3327 = vmatpush1.bf16.msra.mxu1 %v3321_v22  ;;  %20433 = vst [vmem:[#allocation57_spill] sm:$0xff] %v16004_v42  ;;  %v16029_v22 = vld [vmem:[%s20208_s2 + $0x3b0] ss:$8 sps:$4 sm:$0xff]   ;;  %20438 = vst [vmem:[#allocation62_spill] sm:$0xff] %v16035_v14  ;;  %v16059_v41 = vld [vmem:[%s20208_s2 + $0x3e4] ss:$8 sps:$4 sm:$0xff]  }
0x159c   :  { %3470 = vmatprep.subr.bf16.mxu1 %v15978_v2  ;;  %20437 = vst [vmem:[#allocation61_spill] sm:$0xff] %v16029_v22  ;;  %20442 = vst [vmem:[#allocation66_spill] sm:$0xff] %v16059_v41 }
0x159e   :  { %11653 = vmatmul.mubr.msk.bf16.vlgmr.msra.gmra.mrb[96].mxu1 %vm206_vm3, %v15985_v21 }
0x159f   :  { %3471 = vmatpush1.bf16.msra.mxu1 %v15990_v17  ;;  %3502 = vmatprep.mubr.bf16.mxu1 %v20394_v61 }
0x15a0   :  { %3472 = vmatprep.subr.bf16.mxu1 %v15996_v47 }
0x15a3   :  { %3473 = vmatpush1.bf16.msra.mxu1 %v16004_v42 }
0x15a4   :  { %3474 = vmatprep.subr.bf16.mxu1 %v16011_v55 }
0x15a7   :  { %3475 = vmatpush1.bf16.msra.mxu1 %v16017_v8 }
0x15a8   :  { %3476 = vmatprep.subr.bf16.mxu1 %v16023_v56 }
0x15ab   :  { %3477 = vmatpush1.bf16.msra.mxu1 %v16029_v22 }
0x15ac   :  { %3478 = vmatprep.subr.bf16.mxu1 %v16035_v14  ;;  %v13474_v14 = vld [vmem:[%s20208_s2 + $0x3f4] ss:$8 sps:$4 sm:$0x1f]  }
0x15ad   :  { %v16075_v22 = vand.u32 %v13474_v14, %v15370_v25 }
0x15af   :  { %3479 = vmatpush1.bf16.msra.mxu1 %v16041_v0  ;;  %v16068_v0 = vld [vmem:[%s20208_s2 + $0x3e0] ss:$8 sps:$4 sm:$0xff]   ;;  %20444 = vst [vmem:[#allocation68_spill] sm:$0xff] %v16075_v22 }
0x15b0   :  { %3480 = vmatprep.subr.bf16.mxu1 %v16047_v6  ;;  %20443 = vst [vmem:[#allocation67_spill] sm:$0xff] %v16068_v0  ;;  %v13472_v6 = vld [vmem:[%s20208_s2 + $0x3f0] ss:$8 sps:$4 sm:$0x1f]  }
0x15b1   :  { %v16079_v56 = vand.u32 %v13472_v6, %v15370_v25 }
0x15b3   :  { %3481 = vmatpush1.bf16.msra.mxu1 %v16053_v59  ;;  %20445 = vst [vmem:[#allocation69_spill] sm:$0xff] %v16079_v56 }
0x15b4   :  { %3482 = vmatprep.subr.bf16.mxu1 %v16059_v41 }
0x15b7   :  { %3483 = vmatpush1.bf16.msra.mxu1 %v16068_v0 }
0x15b8   :  { %3484 = vmatprep.subr.bf16.mxu1 %v16075_v22 }
0x15bb   :  { %3485 = vmatpush1.bf16.msra.mxu1 %v16079_v56  ;;  %v16093_v56 = vld [vmem:[%s20208_s2 + $0x404] ss:$8 sps:$4 sm:$0xff]  }
0x15be   :  { %11686 = vmatmul.mubr.msk.bf16.vlgmr.msra.gmra.mrb[100].mxu1 %vm1936_vm4, %v15402_v7 }
0x15bf   :  { %3754 = vmatprep.mubr.bf16.mxu1 %v20394_v61 }
0x1671   :  { %v3360_v59 = vpop.f32.mrb[96].mxu1 }
0x1672   :  { %v16086_v8 = vadd.f32 %v3360_v59, %v3169_v1  ;;  %v3362_v41 = vpop.f32.mrb[97].mxu1  ;;  %v16105_v1 = vld [vmem:[%s20208_s2 + $0x400] ss:$8 sps:$4 sm:$0xff]   ;;  %v16162_v59 = vld [vmem:[%s20208_s2 + $0x454] ss:$8 sps:$4 sm:$0xff]  }
0x1673   :  { %v16088_v14 = vadd.f32 %v3362_v41, %v3170_v54  ;;  %v3364_v55 = vpop.f32.mrb[98].mxu1  ;;  %v16100_v54 = vld [vmem:[%s20211_s6 + $0x1c] sm:$0xf]  ;;  %20450 = vst [vmem:[#allocation74_spill] sm:$0xff] %v16162_v59  ;;  %v16168_v41 = vld [vmem:[%s20208_s2 + $0x450] ss:$8 sps:$4 sm:$0xff]  }
0x1674   :  { %v3365_v0 = vpop.f32.mrb[99].mxu1  ;;  %v16144_v55 = vld [vmem:[%s20208_s2 + $0x430] ss:$8 sps:$4 sm:$0xff]   ;;  %20451 = vst [vmem:[#allocation75_spill] sm:$0xff] %v16168_v41 }
0x1675   :  { %20447 = vst [vmem:[#allocation71_spill] sm:$0xff] %v16144_v55  ;;  %v16156_v0 = vld [vmem:[%s20208_s2 + $0x440] ss:$8 sps:$4 sm:$0xff]  }
0x1676   :  { %20449 = vst [vmem:[#allocation73_spill] sm:$0xff] %v16156_v0 }
0x1691   :  { %v3504_v42 = vpop.f32.mrb[100].mxu1 }
0x1692   :  { %v3513_v6 = vpack.c.bf16 %v3504_v42, %v3504_v42  ;;  %v3506_v47 = vpop.f32.mrb[101].mxu1  ;;  %v16138_v42 = vld [vmem:[%s20208_s2 + $0x434] ss:$8 sps:$4 sm:$0xff]  }
0x1693   :  { %v3514_v17 = vpack.c.bf16 %v3506_v47, %v3506_v47  ;;  %v3508_v22 = vpop.f32.mrb[102].mxu1  ;;  %v16111_v47 = vld [vmem:[%s20208_s2 + $0x414] ss:$8 sps:$4 sm:$0xff]   ;;  %20446 = vst [vmem:[#allocation70_spill] sm:$0xff] %v16138_v42 }
0x1694   :  { %v3519_v21 = vsel %vm210_vm2, %v3513_v6, 0  ;;  %v3509_v2 = vpop.f32.mrb[103].mxu1  ;;  %v16150_v22 = vld [vmem:[%s20208_s2 + $0x444] ss:$8 sps:$4 sm:$0xff]  }
0x1695   :  { %11688 = vmatprep.subr.msk.bf16.mxu0 %vm210_vm2, %v3514_v17  ;;  %v16119_v2 = vld [vmem:[%s20208_s2 + $0x410] ss:$8 sps:$4 sm:$0xff]   ;;  %v16132_v17 = vld [vmem:[%s20208_s2 + $0x420] ss:$8 sps:$4 sm:$0xff]   ;;  %20448 = vst [vmem:[#allocation72_spill] sm:$0xff] %v16150_v22 }
0x1696   :  { %3525 = vmatpush1.bf16.msra.mxu0 %v3519_v21  ;;  %v16126_v21 = vld [vmem:[%s20208_s2 + $0x424] ss:$8 sps:$4 sm:$0xff]  }
0x1697   :  { %3668 = vmatprep.subr.bf16.mxu0 %v16093_v56  ;;  %v16174_v6 = vld [vmem:[%s20208_s2 + $0x464] ss:$8 sps:$4 sm:$0xff]  }
0x1698   :  { %20452 = vst [vmem:[#allocation76_spill] sm:$0xff] %v16174_v6 }
0x1699   :  { %11689 = vmatmul.mubr.msk.bf16.vlgmr.msra.gmra.mrb[100].mxu0 %vm206_vm3, %v16100_v54 }
0x169a   :  { %3669 = vmatpush1.bf16.msra.mxu0 %v16105_v1  ;;  %3700 = vmatprep.mubr.bf16.mxu0 %v20394_v61 }
0x169b   :  { %3670 = vmatprep.subr.bf16.mxu0 %v16111_v47 }
0x169e   :  { %3671 = vmatpush1.bf16.msra.mxu0 %v16119_v2 }
0x169f   :  { %3672 = vmatprep.subr.bf16.mxu0 %v16126_v21 }
0x16a2   :  { %3673 = vmatpush1.bf16.msra.mxu0 %v16132_v17 }
0x16a3   :  { %3674 = vmatprep.subr.bf16.mxu0 %v16138_v42 }
0x16a6   :  { %3675 = vmatpush1.bf16.msra.mxu0 %v16144_v55 }
0x16a7   :  { %3676 = vmatprep.subr.bf16.mxu0 %v16150_v22  ;;  %v13498_v22 = vld [vmem:[%s20208_s2 + $0x474] ss:$8 sps:$4 sm:$0x1f]  }
0x16a8   :  { %v16190_v55 = vand.u32 %v13498_v22, %v15370_v25  ;;  %v14237_v22 = vld [vmem:[%s20208_s2 + $0x80] ss:$8 sps:$4 sm:$0xff]  }
0x16aa   :  { %3677 = vmatpush1.bf16.msra.mxu0 %v16156_v0  ;;  %v16183_v0 = vld [vmem:[%s20208_s2 + $0x460] ss:$8 sps:$4 sm:$0xff]   ;;  %20454 = vst [vmem:[#allocation78_spill] sm:$0xff] %v16190_v55 }
0x16ab   :  { %3678 = vmatprep.subr.bf16.mxu0 %v16162_v59  ;;  %20453 = vst [vmem:[#allocation77_spill] sm:$0xff] %v16183_v0  ;;  %v13496_v59 = vld [vmem:[%s20208_s2 + $0x470] ss:$8 sps:$4 sm:$0x1f]  }
0x16ac   :  { %v16194_v42 = vand.u32 %v13496_v59, %v15370_v25  ;;  %v14238_v59 = vld [vmem:[%s20208_s2 + $0x94] ss:$8 sps:$4 sm:$0xff]   ;;  %v14239_v25 = vld [vmem:[%s20208_s2 + $0x90] ss:$8 sps:$4 sm:$0xff]  }
0x16ae   :  { %3679 = vmatpush1.bf16.msra.mxu0 %v16168_v41  ;;  %20455 = vst [vmem:[#allocation79_spill] sm:$0xff] %v16194_v42  ;;  %v14236_v41 = vld [vmem:[%s20208_s2 + $0x84] ss:$8 sps:$4 sm:$0xff]  }
0x16af   :  { %3680 = vmatprep.subr.bf16.mxu0 %v16174_v6 }
0x16b2   :  { %3681 = vmatpush1.bf16.msra.mxu0 %v16183_v0 }
0x16b3   :  { %3682 = vmatprep.subr.bf16.mxu0 %v16190_v55 }
0x16b6   :  { %3683 = vmatpush1.bf16.msra.mxu0 %v16194_v42 }
0x16b7   :  { %3820 = vmatprep.subr.bf16.mxu0 %v14236_v41  ;;  %v14241_v41 = vld [vmem:[%s20208_s2 + $0xa0] ss:$8 sps:$4 sm:$0xff]  }
0x16b9   :  { %11722 = vmatmul.mubr.msk.bf16.vlgmr.msra.gmra.mrb[104].mxu0 %vm1936_vm4, %v15402_v7  ;;  %v14240_v7 = vld [vmem:[%s20208_s2 + $0xa4] ss:$8 sps:$4 sm:$0xff]  }
0x16ba   :  { %3821 = vmatpush1.bf16.msra.mxu0 %v14237_v22  ;;  %3852 = vmatprep.mubr.bf16.mxu0 %v20394_v61  ;;  %v14242_v22 = vld [vmem:[%s20208_s2 + $0xb4] ss:$8 sps:$4 sm:$0xff]  }
0x16bb   :  { %3822 = vmatprep.subr.bf16.mxu0 %v14238_v59  ;;  %v14243_v59 = vld [vmem:[%s20208_s2 + $0xb0] ss:$8 sps:$4 sm:$0xff]  }
0x16be   :  { %3823 = vmatpush1.bf16.msra.mxu0 %v14239_v25  ;;  %v14244_v25 = vld [vmem:[%s20208_s2 + $0xc4] ss:$8 sps:$4 sm:$0xff]  }
0x16bf   :  { %3824 = vmatprep.subr.bf16.mxu0 %v14240_v7  ;;  %v14245_v7 = vld [vmem:[%s20208_s2 + $0xc0] ss:$8 sps:$4 sm:$0xff]  }
0x16c2   :  { %3825 = vmatpush1.bf16.msra.mxu0 %v14241_v41  ;;  %v14246_v41 = vld [vmem:[%s20208_s2 + $0xd4] ss:$8 sps:$4 sm:$0xff]  }
0x16c3   :  { %3826 = vmatprep.subr.bf16.mxu0 %v14242_v22  ;;  %v14247_v22 = vld [vmem:[%s20208_s2 + $0xd0] ss:$8 sps:$4 sm:$0xff]  }
0x16c6   :  { %3827 = vmatpush1.bf16.msra.mxu0 %v14243_v59  ;;  %v16243_v59 = vpack.c.bf16 %v15400_v5, %v15400_v5 }
0x16c7   :  { %3828 = vmatprep.subr.bf16.mxu0 %v14244_v25 }
0x16ca   :  { %3829 = vmatpush1.bf16.msra.mxu0 %v14245_v7 }
0x16cb   :  { %3830 = vmatprep.subr.bf16.mxu0 %v14246_v41 }
0x16ce   :  { %3831 = vmatpush1.bf16.msra.mxu0 %v14247_v22 }
0x16cf   :  { %3832 = vmatprep.subr.bf16.mxu0 %v15345_v19 }
0x16d2   :  { %3833 = vmatpush1.bf16.msra.mxu0 %v15358_v46 }
0x16d3   :  { %3834 = vmatprep.subr.bf16.mxu0 %v15387_v27 }
0x16d6   :  { %3835 = vmatpush1.bf16.msra.mxu0 %v15390_v40 }
0x16d9   :  { %11727 = vmatmul.mubr.msk.bf16.vlgmr.msra.gmra.mrb[108].mxu0 %vm1936_vm4, %v16243_v59 }
0x16da   :  { %4038 = vmatprep.mubr.bf16.mxu0 %v20394_v61 }
0x176c   :  { %v3558_v25 = vpop.f32.mrb[100].mxu0 }
0x176d   :  { %v3565_v7 = vadd.f32 %v3558_v25, %v16086_v8  ;;  %v3560_v41 = vpop.f32.mrb[101].mxu0  ;;  %v16255_v8 = vld [vmem:[%s20211_s6 + $0x20] sm:$0xf] }
0x176e   :  { %v3566_v19 = vadd.f32 %v3560_v41, %v16088_v14  ;;  %v3562_v46 = vpop.f32.mrb[102].mxu0  ;;  %v14248_v14 = vld [vmem:[%s20208_s2 + $0x4] ss:$8 sps:$4 sm:$0xff]   ;;  %v14253_v25 = vld [vmem:[%s20208_s2 + $0x20] ss:$8 sps:$4 sm:$0xff]  }
0x176f   :  { %v3563_v22 = vpop.f32.mrb[103].mxu0  ;;  %v14254_v41 = vld [vmem:[%s20208_s2 + $0x34] ss:$8 sps:$4 sm:$0xff]   ;;  %v14255_v46 = vld [vmem:[%s20208_s2 + $0x30] ss:$8 sps:$4 sm:$0xff]  }
0x1770   :  { %v14256_v22 = vld [vmem:[%s20208_s2 + $0x44] ss:$8 sps:$4 sm:$0xff]  }
0x178c   :  { %v3702_v27 = vpop.f32.mrb[104].mxu0 }
0x178d   :  { %v3711_v42 = vpack.c.bf16 %v3702_v27, %v3702_v27  ;;  %v3704_v40 = vpop.f32.mrb[105].mxu0  ;;  %v14257_v27 = vld [vmem:[%s20208_s2 + $0x40] ss:$8 sps:$4 sm:$0xff]  }
0x178e   :  { %v3712_v55 = vpack.c.bf16 %v3704_v40, %v3704_v40  ;;  %v3706_v0 = vpop.f32.mrb[106].mxu0  ;;  %v14258_v40 = vld [vmem:[%s20208_s2 + $0x54] ss:$8 sps:$4 sm:$0xff]  }
0x178f   :  { %v3717_v5 = vsel %vm210_vm2, %v3711_v42, 0  ;;  %v3707_v6 = vpop.f32.mrb[107].mxu0  ;;  %v14249_v42 = vld [vmem:[%s20208_s2] ss:$8 sps:$4 sm:$0xff]   ;;  %v14251_v0 = vld [vmem:[%s20208_s2 + $0x10] ss:$8 sps:$4 sm:$0xff]  }
0x1790   :  { %11724 = vmatprep.subr.msk.bf16.mxu1 %vm210_vm2, %v3712_v55  ;;  %v14250_v55 = vld [vmem:[%s20208_s2 + $0x14] ss:$8 sps:$4 sm:$0xff]   ;;  %v14252_v6 = vld [vmem:[%s20208_s2 + $0x24] ss:$8 sps:$4 sm:$0xff]  }
0x1791   :  { %3723 = vmatpush1.bf16.msra.mxu1 %v3717_v5  ;;  %v14259_v5 = vld [vmem:[%s20208_s2 + $0x50] ss:$8 sps:$4 sm:$0xff]  }
0x1792   :  { %3777 = vmatprep.subr.bf16.mxu1 %v14248_v14 }
0x1794   :  { %11725 = vmatmul.mubr.msk.bf16.vlgmr.msra.gmra.mrb[104].mxu1 %vm206_vm3, %v16255_v8 }
0x1795   :  { %3778 = vmatpush1.bf16.msra.mxu1 %v14249_v42  ;;  %3809 = vmatprep.mubr.bf16.mxu1 %v20394_v61 }
0x1796   :  { %3779 = vmatprep.subr.bf16.mxu1 %v14250_v55 }
0x1799   :  { %3780 = vmatpush1.bf16.msra.mxu1 %v14251_v0 }
0x179a   :  { %3781 = vmatprep.subr.bf16.mxu1 %v14252_v6 }
0x179d   :  { %3782 = vmatpush1.bf16.msra.mxu1 %v14253_v25 }
0x179e   :  { %3783 = vmatprep.subr.bf16.mxu1 %v14254_v41 }
0x17a1   :  { %3784 = vmatpush1.bf16.msra.mxu1 %v14255_v46  ;;  %v16308_v46 = vpop.permute.xlu1 %3767 }
0x17a2   :  { %3785 = vmatprep.subr.bf16.mxu1 %v14256_v22 }
0x17a5   :  { %3786 = vmatpush1.bf16.msra.mxu1 %v14257_v27 }
0x17a6   :  { %3787 = vmatprep.subr.bf16.mxu1 %v14258_v40 }
0x17a9   :  { %3788 = vmatpush1.bf16.msra.mxu1 %v14259_v5 }
0x17aa   :  { %3789 = vmatprep.subr.bf16.mxu1 %v15340_v4 }
0x17ac   :  { %v3854_v14 = vpop.f32.mrb[108].mxu0 }
0x17ad   :  { %3790 = vmatpush1.bf16.msra.mxu1 %v15353_v53  ;;  %v3856_v42 = vpop.f32.mrb[109].mxu0  ;;  %v3861_v6 = vpack.c.bf16 %v3854_v14, %v3854_v14 }
0x17ae   :  { %v3858_v55 = vpop.f32.mrb[110].mxu0  ;;  %3791 = vmatprep.subr.bf16.mxu1 %v15374_v26  ;;  %v3862_v25 = vpack.c.bf16 %v3856_v42, %v3856_v42 }
0x17af   :  { %v3859_v0 = vpop.f32.mrb[111].mxu0  ;;  %v3864_v41 = vsel %vm210_vm2, %v3861_v6, 0 }
0x17b1   :  { %3792 = vmatpush1.bf16.msra.mxu1 %v15383_v9 }
0x17b2   :  { %11728 = vmatprep.subr.msk.bf16.mxu1 %vm210_vm2, %v3862_v25 }
0x17b4   :  { %11726 = vmatmul.mubr.msk.bf16.vlgmr.msra.gmra.mrb[108].mxu1 %vm1936_vm4, %v16243_v59 }
0x17b5   :  { %3870 = vmatpush1.bf16.msra.mxu1 %v3864_v41  ;;  %3901 = vmatprep.mubr.bf16.mxu1 %v20394_v61 }
0x17bc   :  { %11729 = vmatmul.mubr.msk.bf16.vlgmr.msra.gmra.mrb[112].mxu1 %vm206_vm3, %v15422_v20 }
0x17bd   :  { %3948 = vmatprep.mubr.bf16.mxu1 %v20394_v61 }
0x1867   :  { %v3756_v4 = vpop.f32.mrb[104].mxu1 }
0x1868   :  { %v3763_v53 = vadd.f32 %v3756_v4, %v3565_v7  ;;  %v3758_v26 = vpop.f32.mrb[105].mxu1 }
0x1869   :  { %v3764_v9 = vadd.f32 %v3758_v26, %v3566_v19  ;;  %v3760_v22 = vpop.f32.mrb[106].mxu1 }
0x186a   :  { %v3770_v27 = vadd.f32 %v16308_v46, %v3763_v53  ;;  %v3761_v40 = vpop.f32.mrb[107].mxu1 }
0x186b   :  { %v3771_v5 = vadd.f32 %v16308_v46, %v3764_v9 }
0x186c   :  { %v16314_v42 = vmax.f32 %v3770_v27, 0.0 }
0x186d   :  { %v16312_v14 = vmax.f32 %v3771_v5, 0.0 }
0x186e   :  { %v4610_v0 = vmul.f32 %v16314_v42, %v16314_v42 }
0x186f   :  { %v4606_v20 = vsel %vm4605_vm6, %v16312_v14, 0.0  ;;  %v4611_v7 = vmul.f32 %v16312_v14, %v16312_v14 }
0x1870   :  { %v4607_v55 = vadd.f32 %v4606_v20, %v16314_v42 }
0x1871   :  { %v4612_v19 = vsel %vm4605_vm6, %v4611_v7, 0.0  ;;  %v20465_v7 = vld [vmem:[#allocation12_spill] sm:$0xff] }
0x1872   :  { %4608 = vadd.xlane.f32.xlu0 %v4607_v55  ;;  %v4613_v6 = vadd.f32 %v4612_v19, %v4610_v0  ;;  %v20466_v55 = vld [vmem:[#allocation13_spill] sm:$0xff]  ;;  %v20467_v19 = vld [vmem:[#allocation14_spill] sm:$0xff]  ;;  %v20468_v0 = vld [vmem:[#allocation15_spill] sm:$0xff] }
0x1876   :  { %4614 = vadd.xlane.f32.xlu0 %v4613_v6  ;;  %v20469_v6 = vld [vmem:[#allocation16_spill] sm:$0xff] }
0x1887   :  { %v3811_v25 = vpop.f32.mrb[108].mxu1 }
0x1888   :  { %v3818_v41 = vpack.c.bf16 %v3811_v25, %v3811_v25  ;;  %v3813_v4 = vpop.f32.mrb[109].mxu1  ;;  %v20470_v25 = vld [vmem:[#allocation17_spill] sm:$0xff] }
0x1889   :  { %v3819_v53 = vpack.c.bf16 %v3813_v4, %v3813_v4  ;;  %v3815_v26 = vpop.f32.mrb[110].mxu1 }
0x188a   :  { %v3911_v9 = vsel %vm210_vm2, %v3818_v41, 0  ;;  %v3816_v22 = vpop.f32.mrb[111].mxu1  ;;  %v20471_v41 = vld [vmem:[#allocation18_spill] sm:$0xff] }
0x188b   :  { %11730 = vmatprep.subr.msk.bf16.mxu1 %vm210_vm2, %v3819_v53 }
0x188c   :  { %3917 = vmatpush1.bf16.msra.mxu1 %v3911_v9 }
0x188d   :  { %3957 = vmatprep.subr.bf16.mxu1 %v15413_v11 }
0x188f   :  { %11731 = vmatmul.mubr.msk.bf16.vlgmr.msra.gmra.mrb[116].mxu1 %vm206_vm3, %v15427_v31  ;;  %v3903_v27 = vpop.f32.mrb[112].mxu1 }
0x1890   :  { %3958 = vmatpush1.bf16.msra.mxu1 %v15432_v48  ;;  %3989 = vmatprep.mubr.bf16.mxu1 %v20394_v61  ;;  %v3905_v40 = vpop.f32.mrb[113].mxu1 }
0x1891   :  { %3959 = vmatprep.subr.bf16.mxu1 %v15438_v49  ;;  %v3907_v5 = vpop.f32.mrb[114].mxu1 }
0x1892   :  { %v3908_v20 = vpop.f32.mrb[115].mxu1 }
0x1894   :  { %3960 = vmatpush1.bf16.msra.mxu1 %v15448_v33 }
0x1895   :  { %3961 = vmatprep.subr.bf16.mxu1 %v15455_v50 }
0x1898   :  { %3962 = vmatpush1.bf16.msra.mxu1 %v15462_v32 }
0x1899   :  { %3963 = vmatprep.subr.bf16.mxu1 %v15468_v35 }
0x189c   :  { %3964 = vmatpush1.bf16.msra.mxu1 %v15474_v36 }
0x189d   :  { %3965 = vmatprep.subr.bf16.mxu1 %v15480_v51 }
0x18a0   :  { %3966 = vmatpush1.bf16.msra.mxu1 %v15486_v37 }
0x18a1   :  { %3967 = vmatprep.subr.bf16.mxu1 %v15492_v24 }
0x18a4   :  { %3968 = vmatpush1.bf16.msra.mxu1 %v15498_v52 }
0x18a5   :  { %3969 = vmatprep.subr.bf16.mxu1 %v15504_v15 }
0x18a8   :  { %3970 = vmatpush1.bf16.msra.mxu1 %v15513_v43 }
0x18a9   :  { %3971 = vmatprep.subr.bf16.mxu1 %v15520_v44 }
0x18ac   :  { %3972 = vmatpush1.bf16.msra.mxu1 %v15524_v45 }
0x18af   :  { %11732 = vmatmul.mubr.msk.bf16.vlgmr.msra.gmra.mrb[120].mxu1 %vm1936_vm4, %v16243_v59 }
0x18b0   :  { %4130 = vmatprep.mubr.bf16.mxu1 %v20394_v61 }
0x1962   :  { %v3950_v11 = vpop.f32.mrb[116].mxu1 }
0x1963   :  { %v3951_v31 = vadd.f32 %v3950_v11, %v3903_v27  ;;  %v3952_v48 = vpop.f32.mrb[117].mxu1 }
0x1964   :  { %v3953_v49 = vadd.f32 %v3952_v48, %v3905_v40  ;;  %v3954_v33 = vpop.f32.mrb[118].mxu1 }
0x1965   :  { %v3955_v50 = vpop.f32.mrb[119].mxu1  ;;  %v20472_v33 = vld [vmem:[#allocation19_spill] sm:$0xff] }
0x1966   :  { %v20473_v50 = vld [vmem:[#allocation20_spill] sm:$0xff] }
0x1982   :  { %v3991_v32 = vpop.f32.mrb[120].mxu1 }
0x1983   :  { %v3998_v35 = vpack.c.bf16 %v3991_v32, %v3991_v32  ;;  %v3993_v36 = vpop.f32.mrb[121].mxu1  ;;  %v20474_v32 = vld [vmem:[#allocation21_spill] sm:$0xff] }
0x1984   :  { %v3999_v51 = vpack.c.bf16 %v3993_v36, %v3993_v36  ;;  %v3995_v37 = vpop.f32.mrb[122].mxu1  ;;  %v20476_v36 = vld [vmem:[#allocation23_spill] sm:$0xff] }
0x1985   :  { %v4001_v24 = vsel %vm210_vm2, %v3998_v35, 0  ;;  %v3996_v52 = vpop.f32.mrb[123].mxu1  ;;  %v20475_v35 = vld [vmem:[#allocation22_spill] sm:$0xff]  ;;  %v20478_v37 = vld [vmem:[#allocation25_spill] sm:$0xff] }
0x1986   :  { %11733 = vmatprep.subr.msk.bf16.mxu0 %vm210_vm2, %v3999_v51  ;;  %v20477_v51 = vld [vmem:[#allocation24_spill] sm:$0xff]  ;;  %v20480_v52 = vld [vmem:[#allocation27_spill] sm:$0xff] }
0x1987   :  { %4007 = vmatpush1.bf16.msra.mxu0 %v4001_v24  ;;  %v20479_v24 = vld [vmem:[#allocation26_spill] sm:$0xff] }
0x1988   :  { %4049 = vmatprep.subr.bf16.mxu0 %v15534_v34 }
0x198a   :  { %11734 = vmatmul.mubr.msk.bf16.vlgmr.msra.gmra.mrb[112].mxu0 %vm206_vm3, %v15541_v62 }
0x198b   :  { %4050 = vmatpush1.bf16.msra.mxu0 %v15546_v39  ;;  %4081 = vmatprep.mubr.bf16.mxu0 %v20394_v61 }
0x198c   :  { %4051 = vmatprep.subr.bf16.mxu0 %v15552_v57 }
0x198f   :  { %4052 = vmatpush1.bf16.msra.mxu0 %v15560_v60 }
0x1990   :  { %4053 = vmatprep.subr.bf16.mxu0 %v15567_v58 }
0x1993   :  { %4054 = vmatpush1.bf16.msra.mxu0 %v15573_v63 }
0x1994   :  { %4055 = vmatprep.subr.bf16.mxu0 %v15579_v23 }
0x1997   :  { %4056 = vmatpush1.bf16.msra.mxu0 %v15585_v28 }
0x1998   :  { %4057 = vmatprep.subr.bf16.mxu0 %v15591_v10  ;;  %v20456_v10 = vld [vmem:[#allocation3_spill] sm:$0xff] }
0x199b   :  { %4058 = vmatpush1.bf16.msra.mxu0 %v15597_v29  ;;  %v20457_v29 = vld [vmem:[#allocation4_spill] sm:$0xff] }
0x199c   :  { %4059 = vmatprep.subr.bf16.mxu0 %v15603_v12  ;;  %v20458_v12 = vld [vmem:[#allocation5_spill] sm:$0xff] }
0x199f   :  { %4060 = vmatpush1.bf16.msra.mxu0 %v15609_v13  ;;  %v20459_v13 = vld [vmem:[#allocation6_spill] sm:$0xff] }
0x19a0   :  { %4061 = vmatprep.subr.bf16.mxu0 %v15615_v30  ;;  %v20460_v30 = vld [vmem:[#allocation7_spill] sm:$0xff] }
0x19a3   :  { %4062 = vmatpush1.bf16.msra.mxu0 %v15624_v16  ;;  %v20461_v16 = vld [vmem:[#allocation8_spill] sm:$0xff] }
0x19a4   :  { %4063 = vmatprep.subr.bf16.mxu0 %v15631_v38  ;;  %v20462_v38 = vld [vmem:[#allocation9_spill] sm:$0xff] }
0x19a7   :  { %4064 = vmatpush1.bf16.msra.mxu0 %v15635_v18  ;;  %v20463_v18 = vld [vmem:[#allocation10_spill] sm:$0xff] }
0x19aa   :  { %11735 = vmatmul.mubr.msk.bf16.vlgmr.msra.gmra.mrb[116].mxu0 %vm1936_vm4, %v16243_v59 }
0x19ab   :  { %4222 = vmatprep.mubr.bf16.mxu0 %v20394_v61 }
0x1a5d   :  { %v4040_v15 = vpop.f32.mrb[112].mxu0 }
0x1a5e   :  { %v4047_v43 = vadd.f32 %v4040_v15, %v3951_v31  ;;  %v4042_v44 = vpop.f32.mrb[113].mxu0  ;;  %v20481_v15 = vld [vmem:[#allocation28_spill] sm:$0xff] }
0x1a5f   :  { %v4048_v45 = vadd.f32 %v4042_v44, %v3953_v49  ;;  %v4044_v34 = vpop.f32.mrb[114].mxu0  ;;  %v20483_v44 = vld [vmem:[#allocation30_spill] sm:$0xff] }
0x1a60   :  { %v4045_v62 = vpop.f32.mrb[115].mxu0  ;;  %v20485_v34 = vld [vmem:[#allocation32_spill] sm:$0xff] }
0x1a61   :  { %v20486_v62 = vld [vmem:[#allocation33_spill] sm:$0xff] }
0x1a7d   :  { %v4083_v39 = vpop.f32.mrb[116].mxu0 }
0x1a7e   :  { %v4090_v57 = vpack.c.bf16 %v4083_v39, %v4083_v39  ;;  %v4085_v60 = vpop.f32.mrb[117].mxu0  ;;  %v20487_v39 = vld [vmem:[#allocation34_spill] sm:$0xff] }
0x1a7f   :  { %v4091_v58 = vpack.c.bf16 %v4085_v60, %v4085_v60  ;;  %v4087_v63 = vpop.f32.mrb[118].mxu0 }
0x1a80   :  { %v4093_v23 = vsel %vm210_vm2, %v4090_v57, 0  ;;  %v4088_v28 = vpop.f32.mrb[119].mxu0  ;;  %v20488_v57 = vld [vmem:[#allocation35_spill] sm:$0xff] }
0x1a81   :  { %11736 = vmatprep.subr.msk.bf16.mxu1 %vm210_vm2, %v4091_v58 }
0x1a82   :  { %4099 = vmatpush1.bf16.msra.mxu1 %v4093_v23 }
0x1a83   :  { %4141 = vmatprep.subr.bf16.mxu1 %v15645_v3  ;;  %v20464_v3 = vld [vmem:[#allocation11_spill] sm:$0xff] }
0x1a85   :  { %11737 = vmatmul.mubr.msk.bf16.vlgmr.msra.gmra.mrb[124].mxu1 %vm206_vm3, %v20456_v10 }
0x1a86   :  { %4142 = vmatpush1.bf16.msra.mxu1 %v20457_v29  ;;  %4173 = vmatprep.mubr.bf16.mxu1 %v20394_v61 }
0x1a87   :  { %4143 = vmatprep.subr.bf16.mxu1 %v20458_v12 }
0x1a8a   :  { %4144 = vmatpush1.bf16.msra.mxu1 %v20459_v13 }
0x1a8b   :  { %4145 = vmatprep.subr.bf16.mxu1 %v20460_v30 }
0x1a8e   :  { %4146 = vmatpush1.bf16.msra.mxu1 %v20461_v16 }
0x1a8f   :  { %4147 = vmatprep.subr.bf16.mxu1 %v20462_v38 }
0x1a92   :  { %4148 = vmatpush1.bf16.msra.mxu1 %v20463_v18 }
0x1a93   :  { %4149 = vmatprep.subr.bf16.mxu1 %v20464_v3  ;;  %v20489_v3 = vld [vmem:[#allocation36_spill] sm:$0xff] }
0x1a96   :  { %4150 = vmatpush1.bf16.msra.mxu1 %v20465_v7  ;;  %v20490_v7 = vld [vmem:[#allocation37_spill] sm:$0xff] }
0x1a97   :  { %4151 = vmatprep.subr.bf16.mxu1 %v20466_v55  ;;  %v20491_v55 = vld [vmem:[#allocation38_spill] sm:$0xff] }
0x1a9a   :  { %4152 = vmatpush1.bf16.msra.mxu1 %v20467_v19  ;;  %v20492_v19 = vld [vmem:[#allocation39_spill] sm:$0xff] }
0x1a9b   :  { %4153 = vmatprep.subr.bf16.mxu1 %v20468_v0  ;;  %v20493_v0 = vld [vmem:[#allocation40_spill] sm:$0xff] }
0x1a9e   :  { %4154 = vmatpush1.bf16.msra.mxu1 %v20469_v6  ;;  %v20494_v6 = vld [vmem:[#allocation41_spill] sm:$0xff] }
0x1a9f   :  { %4155 = vmatprep.subr.bf16.mxu1 %v20470_v25  ;;  %v20495_v25 = vld [vmem:[#allocation42_spill] sm:$0xff] }
0x1aa2   :  { %4156 = vmatpush1.bf16.msra.mxu1 %v20471_v41  ;;  %v20496_v41 = vld [vmem:[#allocation43_spill] sm:$0xff] }
0x1aa5   :  { %11738 = vmatmul.mubr.msk.bf16.vlgmr.msra.gmra.mrb[128].mxu1 %vm1936_vm4, %v16243_v59 }
0x1aa6   :  { %4314 = vmatprep.mubr.bf16.mxu1 %v20394_v61 }
0x1b58   :  { %v4132_v4 = vpop.f32.mrb[124].mxu1 }
0x1b59   :  { %v4139_v53 = vadd.f32 %v4132_v4, %v4047_v43  ;;  %v4134_v26 = vpop.f32.mrb[125].mxu1  ;;  %v20482_v43 = vld [vmem:[#allocation29_spill] sm:$0xff]  ;;  %v20497_v4 = vld [vmem:[#allocation44_spill] sm:$0xff] }
0x1b5a   :  { %v4140_v9 = vadd.f32 %v4134_v26, %v4048_v45  ;;  %v4136_v22 = vpop.f32.mrb[126].mxu1  ;;  %v20484_v45 = vld [vmem:[#allocation31_spill] sm:$0xff]  ;;  %v20499_v26 = vld [vmem:[#allocation46_spill] sm:$0xff] }
0x1b5b   :  { %v4137_v27 = vpop.f32.mrb[127].mxu1  ;;  %v20501_v22 = vld [vmem:[#allocation48_spill] sm:$0xff] }
0x1b5c   :  { %v20502_v27 = vld [vmem:[#allocation49_spill] sm:$0xff] }
0x1b78   :  { %v4175_v40 = vpop.f32.mrb[128].mxu1 }
0x1b79   :  { %v4182_v5 = vpack.c.bf16 %v4175_v40, %v4175_v40  ;;  %v4177_v20 = vpop.f32.mrb[129].mxu1  ;;  %v20503_v40 = vld [vmem:[#allocation50_spill] sm:$0xff] }
0x1b7a   :  { %v4183_v11 = vpack.c.bf16 %v4177_v20, %v4177_v20  ;;  %v4179_v31 = vpop.f32.mrb[130].mxu1  ;;  %v20505_v20 = vld [vmem:[#allocation52_spill] sm:$0xff] }
0x1b7b   :  { %v4185_v48 = vsel %vm210_vm2, %v4182_v5, 0  ;;  %v4180_v49 = vpop.f32.mrb[131].mxu1  ;;  %v20504_v5 = vld [vmem:[#allocation51_spill] sm:$0xff] }
0x1b7c   :  { %11739 = vmatprep.subr.msk.bf16.mxu0 %vm210_vm2, %v4183_v11 }
0x1b7d   :  { %4191 = vmatpush1.bf16.msra.mxu0 %v4185_v48 }
0x1b7e   :  { %4233 = vmatprep.subr.bf16.mxu0 %v20472_v33 }
0x1b80   :  { %11740 = vmatmul.mubr.msk.bf16.vlgmr.msra.gmra.mrb[120].mxu0 %vm206_vm3, %v20473_v50 }
0x1b81   :  { %4234 = vmatpush1.bf16.msra.mxu0 %v20474_v32  ;;  %4265 = vmatprep.mubr.bf16.mxu0 %v20394_v61 }
0x1b82   :  { %4235 = vmatprep.subr.bf16.mxu0 %v20475_v35 }
0x1b85   :  { %4236 = vmatpush1.bf16.msra.mxu0 %v20476_v36 }
0x1b86   :  { %4237 = vmatprep.subr.bf16.mxu0 %v20477_v51 }
0x1b89   :  { %4238 = vmatpush1.bf16.msra.mxu0 %v20478_v37 }
0x1b8a   :  { %4239 = vmatprep.subr.bf16.mxu0 %v20479_v24 }
0x1b8d   :  { %4240 = vmatpush1.bf16.msra.mxu0 %v20480_v52 }
0x1b8e   :  { %4241 = vmatprep.subr.bf16.mxu0 %v20481_v15  ;;  %v20506_v15 = vld [vmem:[#allocation53_spill] sm:$0xff] }
0x1b91   :  { %4242 = vmatpush1.bf16.msra.mxu0 %v20482_v43  ;;  %v20507_v43 = vld [vmem:[#allocation54_spill] sm:$0xff] }
0x1b92   :  { %4243 = vmatprep.subr.bf16.mxu0 %v20483_v44  ;;  %v20508_v44 = vld [vmem:[#allocation55_spill] sm:$0xff] }
0x1b95   :  { %4244 = vmatpush1.bf16.msra.mxu0 %v20484_v45  ;;  %v20509_v45 = vld [vmem:[#allocation56_spill] sm:$0xff] }
0x1b96   :  { %4245 = vmatprep.subr.bf16.mxu0 %v20485_v34  ;;  %v20510_v34 = vld [vmem:[#allocation57_spill] sm:$0xff] }
0x1b99   :  { %4246 = vmatpush1.bf16.msra.mxu0 %v20486_v62  ;;  %v20511_v62 = vld [vmem:[#allocation58_spill] sm:$0xff] }
0x1b9a   :  { %4247 = vmatprep.subr.bf16.mxu0 %v20487_v39  ;;  %v20512_v39 = vld [vmem:[#allocation59_spill] sm:$0xff] }
0x1b9d   :  { %4248 = vmatpush1.bf16.msra.mxu0 %v20488_v57  ;;  %v20513_v57 = vld [vmem:[#allocation60_spill] sm:$0xff] }
0x1ba0   :  { %11741 = vmatmul.mubr.msk.bf16.vlgmr.msra.gmra.mrb[124].mxu0 %vm1936_vm4, %v16243_v59 }
0x1ba1   :  { %4406 = vmatprep.mubr.bf16.mxu0 %v20394_v61 }
0x1c53   :  { %v4224_v60 = vpop.f32.mrb[120].mxu0 }
0x1c54   :  { %v4231_v58 = vadd.f32 %v4224_v60, %v4139_v53  ;;  %v4226_v63 = vpop.f32.mrb[121].mxu0  ;;  %v20498_v53 = vld [vmem:[#allocation45_spill] sm:$0xff] }
0x1c55   :  { %v4232_v23 = vadd.f32 %v4226_v63, %v4140_v9  ;;  %v4228_v28 = vpop.f32.mrb[122].mxu0  ;;  %v20500_v9 = vld [vmem:[#allocation47_spill] sm:$0xff]  ;;  %v20514_v60 = vld [vmem:[#allocation61_spill] sm:$0xff] }
0x1c56   :  { %v4229_v10 = vpop.f32.mrb[123].mxu0  ;;  %v20516_v63 = vld [vmem:[#allocation63_spill] sm:$0xff]  ;;  %v20518_v28 = vld [vmem:[#allocation65_spill] sm:$0xff] }
0x1c57   :  { %v20519_v10 = vld [vmem:[#allocation66_spill] sm:$0xff] }
0x1c73   :  { %v4267_v29 = vpop.f32.mrb[124].mxu0 }
0x1c74   :  { %v4274_v12 = vpack.c.bf16 %v4267_v29, %v4267_v29  ;;  %v4269_v13 = vpop.f32.mrb[125].mxu0  ;;  %v20520_v29 = vld [vmem:[#allocation67_spill] sm:$0xff] }
0x1c75   :  { %v4275_v30 = vpack.c.bf16 %v4269_v13, %v4269_v13  ;;  %v4271_v16 = vpop.f32.mrb[126].mxu0  ;;  %v20522_v13 = vld [vmem:[#allocation69_spill] sm:$0xff] }
0x1c76   :  { %v4277_v38 = vsel %vm210_vm2, %v4274_v12, 0  ;;  %v4272_v18 = vpop.f32.mrb[127].mxu0  ;;  %v20521_v12 = vld [vmem:[#allocation68_spill] sm:$0xff] }
0x1c77   :  { %11742 = vmatprep.subr.msk.bf16.mxu1 %vm210_vm2, %v4275_v30 }
0x1c78   :  { %4283 = vmatpush1.bf16.msra.mxu1 %v4277_v38 }
0x1c79   :  { %4325 = vmatprep.subr.bf16.mxu1 %v20489_v3 }
0x1c7b   :  { %11743 = vmatmul.mubr.msk.bf16.vlgmr.msra.gmra.mrb[132].mxu1 %vm206_vm3, %v20490_v7 }
0x1c7c   :  { %4326 = vmatpush1.bf16.msra.mxu1 %v20491_v55  ;;  %4357 = vmatprep.mubr.bf16.mxu1 %v20394_v61 }
0x1c7d   :  { %4327 = vmatprep.subr.bf16.mxu1 %v20492_v19 }
0x1c80   :  { %4328 = vmatpush1.bf16.msra.mxu1 %v20493_v0 }
0x1c81   :  { %4329 = vmatprep.subr.bf16.mxu1 %v20494_v6 }
0x1c84   :  { %4330 = vmatpush1.bf16.msra.mxu1 %v20495_v25 }
0x1c85   :  { %4331 = vmatprep.subr.bf16.mxu1 %v20496_v41 }
0x1c88   :  { %4332 = vmatpush1.bf16.msra.mxu1 %v20497_v4 }
0x1c89   :  { %4333 = vmatprep.subr.bf16.mxu1 %v20498_v53  ;;  %v20523_v53 = vld [vmem:[#allocation70_spill] sm:$0xff] }
0x1c8c   :  { %4334 = vmatpush1.bf16.msra.mxu1 %v20499_v26  ;;  %v20524_v26 = vld [vmem:[#allocation71_spill] sm:$0xff] }
0x1c8d   :  { %4335 = vmatprep.subr.bf16.mxu1 %v20500_v9  ;;  %v20526_v9 = vld [vmem:[#allocation73_spill] sm:$0xff] }
0x1c90   :  { %4336 = vmatpush1.bf16.msra.mxu1 %v20501_v22  ;;  %v20529_v22 = vld [vmem:[#allocation76_spill] sm:$0xff] }
0x1c91   :  { %4337 = vmatprep.subr.bf16.mxu1 %v20502_v27 }
0x1c94   :  { %4338 = vmatpush1.bf16.msra.mxu1 %v20503_v40 }
0x1c95   :  { %4339 = vmatprep.subr.bf16.mxu1 %v20504_v5 }
0x1c98   :  { %4340 = vmatpush1.bf16.msra.mxu1 %v20505_v20 }
0x1c9b   :  { %11744 = vmatmul.mubr.msk.bf16.vlgmr.msra.gmra.mrb[136].mxu1 %vm1936_vm4, %v16243_v59 }
0x1c9c   :  { %4498 = vmatprep.mubr.bf16.mxu1 %v20394_v61 }
0x1d4e   :  { %v4316_v11 = vpop.f32.mrb[132].mxu1 }
0x1d4f   :  { %v4323_v31 = vadd.f32 %v4316_v11, %v4231_v58  ;;  %v4318_v48 = vpop.f32.mrb[133].mxu1  ;;  %v20515_v58 = vld [vmem:[#allocation62_spill] sm:$0xff] }
0x1d50   :  { %v4324_v49 = vadd.f32 %v4318_v48, %v4232_v23  ;;  %v4320_v33 = vpop.f32.mrb[134].mxu1  ;;  %v20517_v23 = vld [vmem:[#allocation64_spill] sm:$0xff] }
0x1d51   :  { %v4321_v50 = vpop.f32.mrb[135].mxu1 }
0x1d6e   :  { %v4359_v32 = vpop.f32.mrb[136].mxu1 }
0x1d6f   :  { %v4366_v35 = vpack.c.bf16 %v4359_v32, %v4359_v32  ;;  %v4361_v36 = vpop.f32.mrb[137].mxu1 }
0x1d70   :  { %v4367_v51 = vpack.c.bf16 %v4361_v36, %v4361_v36  ;;  %v4363_v37 = vpop.f32.mrb[138].mxu1 }
0x1d71   :  { %v4369_v24 = vsel %vm210_vm2, %v4366_v35, 0  ;;  %v4364_v52 = vpop.f32.mrb[139].mxu1 }
0x1d72   :  { %11745 = vmatprep.subr.msk.bf16.mxu0 %vm210_vm2, %v4367_v51 }
0x1d73   :  { %4375 = vmatpush1.bf16.msra.mxu0 %v4369_v24 }
0x1d74   :  { %4417 = vmatprep.subr.bf16.mxu0 %v20506_v15 }
0x1d76   :  { %11746 = vmatmul.mubr.msk.bf16.vlgmr.msra.gmra.mrb[128].mxu0 %vm206_vm3, %v20507_v43 }
0x1d77   :  { %4418 = vmatpush1.bf16.msra.mxu0 %v20508_v44  ;;  %4449 = vmatprep.mubr.bf16.mxu0 %v20394_v61 }
0x1d78   :  { %4419 = vmatprep.subr.bf16.mxu0 %v20509_v45 }
0x1d7b   :  { %4420 = vmatpush1.bf16.msra.mxu0 %v20510_v34 }
0x1d7c   :  { %4421 = vmatprep.subr.bf16.mxu0 %v20511_v62 }
0x1d7f   :  { %4422 = vmatpush1.bf16.msra.mxu0 %v20512_v39 }
0x1d80   :  { %4423 = vmatprep.subr.bf16.mxu0 %v20513_v57 }
0x1d83   :  { %4424 = vmatpush1.bf16.msra.mxu0 %v20514_v60 }
0x1d84   :  { %4425 = vmatprep.subr.bf16.mxu0 %v20515_v58  ;;  %v13501_v58 = vld [vmem:[%s20212_s3 + $0x4] ss:$8 sps:$4 sm:$0xff]  }
0x1d87   :  { %4426 = vmatpush1.bf16.msra.mxu0 %v20516_v63  ;;  %v13502_v63 = vld [vmem:[%s20212_s3 + $0xb0] ss:$8 sps:$4 sm:$0xff]  }
0x1d88   :  { %4427 = vmatprep.subr.bf16.mxu0 %v20517_v23  ;;  %v13504_v23 = vld [vmem:[%s20212_s3 + $0xb4] ss:$8 sps:$4 sm:$0xff]  }
0x1d8b   :  { %4428 = vmatpush1.bf16.msra.mxu0 %v20518_v28  ;;  %v13505_v28 = vld [vmem:[%s20212_s3 + $0x10] ss:$8 sps:$4 sm:$0xff]  }
0x1d8c   :  { %4429 = vmatprep.subr.bf16.mxu0 %v20519_v10  ;;  %v13507_v10 = vld [vmem:[%s20212_s3 + $0x14] ss:$8 sps:$4 sm:$0xff]  }
0x1d8f   :  { %4430 = vmatpush1.bf16.msra.mxu0 %v20520_v29  ;;  %v13508_v29 = vld [vmem:[%s20212_s3 + $0xc0] ss:$8 sps:$4 sm:$0xff]  }
0x1d90   :  { %4431 = vmatprep.subr.bf16.mxu0 %v20521_v12  ;;  %v13510_v12 = vld [vmem:[%s20212_s3 + $0xc4] ss:$8 sps:$4 sm:$0xff]  }
0x1d93   :  { %4432 = vmatpush1.bf16.msra.mxu0 %v20522_v13  ;;  %v13513_v13 = vld [vmem:[%s20212_s3 + $0x24] ss:$8 sps:$4 sm:$0xff]  }
0x1d96   :  { %11747 = vmatmul.mubr.msk.bf16.vlgmr.msra.gmra.mrb[132].mxu0 %vm1936_vm4, %v16243_v59 }
0x1d97   :  { %4590 = vmatprep.mubr.bf16.mxu0 %v20394_v61 }
0x1e49   :  { %v4408_v30 = vpop.f32.mrb[128].mxu0 }
0x1e4a   :  { %v4415_v16 = vadd.f32 %v4408_v30, %v4323_v31  ;;  %v4410_v38 = vpop.f32.mrb[129].mxu0  ;;  %v13511_v30 = vld [vmem:[%s20212_s3 + $0x20] ss:$8 sps:$4 sm:$0xff]  }
0x1e4b   :  { %v4416_v18 = vadd.f32 %v4410_v38, %v4324_v49  ;;  %v4412_v3 = vpop.f32.mrb[130].mxu0  ;;  %v13514_v38 = vld [vmem:[%s20212_s3 + $0xd0] ss:$8 sps:$4 sm:$0xff]  }
0x1e4c   :  { %v4413_v7 = vpop.f32.mrb[131].mxu0  ;;  %v13522_v3 = vld [vmem:[%s20212_s3 + $0xe4] ss:$8 sps:$4 sm:$0xff]  }
0x1e4d   :  { %v13517_v7 = vld [vmem:[%s20212_s3 + $0x30] ss:$8 sps:$4 sm:$0xff]  }
0x1e69   :  { %v4451_v55 = vpop.f32.mrb[132].mxu0 }
0x1e6a   :  { %v4458_v19 = vpack.c.bf16 %v4451_v55, %v4451_v55  ;;  %v4453_v0 = vpop.f32.mrb[133].mxu0  ;;  %v13520_v55 = vld [vmem:[%s20212_s3 + $0xe0] ss:$8 sps:$4 sm:$0xff]  }
0x1e6b   :  { %v4459_v6 = vpack.c.bf16 %v4453_v0, %v4453_v0  ;;  %v4455_v25 = vpop.f32.mrb[134].mxu0  ;;  %v13528_v0 = vld [vmem:[%s20212_s3 + $0xf4] ss:$8 sps:$4 sm:$0xff]  }
0x1e6c   :  { %v4461_v41 = vsel %vm210_vm2, %v4458_v19, 0  ;;  %v4456_v4 = vpop.f32.mrb[135].mxu0  ;;  %v13525_v19 = vld [vmem:[%s20212_s3 + $0x44] ss:$8 sps:$4 sm:$0xff]   ;;  %v13526_v25 = vld [vmem:[%s20212_s3 + $0xf0] ss:$8 sps:$4 sm:$0xff]  }
0x1e6d   :  { %11748 = vmatprep.subr.msk.bf16.mxu1 %vm210_vm2, %v4459_v6  ;;  %v13523_v6 = vld [vmem:[%s20212_s3 + $0x40] ss:$8 sps:$4 sm:$0xff]   ;;  %v13534_v4 = vld [vmem:[%s20212_s3 + $0x104] ss:$8 sps:$4 sm:$0xff]  }
0x1e6e   :  { %4467 = vmatpush1.bf16.msra.mxu1 %v4461_v41  ;;  %v13531_v41 = vld [vmem:[%s20212_s3 + $0x54] ss:$8 sps:$4 sm:$0xff]  }
0x1e6f   :  { %4509 = vmatprep.subr.bf16.mxu1 %v16093_v56  ;;  %v20525_v56 = vld [vmem:[#allocation72_spill] sm:$0xff] }
0x1e71   :  { %11749 = vmatmul.mubr.msk.bf16.vlgmr.msra.gmra.mrb[140].mxu1 %vm206_vm3, %v16100_v54  ;;  %v20527_v54 = vld [vmem:[#allocation74_spill] sm:$0xff] }
0x1e72   :  { %4510 = vmatpush1.bf16.msra.mxu1 %v16105_v1  ;;  %4541 = vmatprep.mubr.bf16.mxu1 %v20394_v61  ;;  %v20528_v1 = vld [vmem:[#allocation75_spill] sm:$0xff] }
0x1e73   :  { %4511 = vmatprep.subr.bf16.mxu1 %v16111_v47  ;;  %v20530_v47 = vld [vmem:[#allocation77_spill] sm:$0xff] }
0x1e76   :  { %4512 = vmatpush1.bf16.msra.mxu1 %v16119_v2  ;;  %v20531_v2 = vld [vmem:[#allocation78_spill] sm:$0xff] }
0x1e77   :  { %4513 = vmatprep.subr.bf16.mxu1 %v16126_v21  ;;  %v20532_v21 = vld [vmem:[#allocation79_spill] sm:$0xff] }
0x1e7a   :  { %4514 = vmatpush1.bf16.msra.mxu1 %v16132_v17 }
0x1e7b   :  { %4515 = vmatprep.subr.bf16.mxu1 %v20523_v53  ;;  %v13529_v53 = vld [vmem:[%s20212_s3 + $0x50] ss:$8 sps:$4 sm:$0xff]  }
0x1e7e   :  { %4516 = vmatpush1.bf16.msra.mxu1 %v20524_v26  ;;  %v13532_v26 = vld [vmem:[%s20212_s3 + $0x100] ss:$8 sps:$4 sm:$0xff]  }
0x1e7f   :  { %4517 = vmatprep.subr.bf16.mxu1 %v20525_v56  ;;  %v13537_v56 = vld [vmem:[%s20212_s3 + $0x64] ss:$8 sps:$4 sm:$0xff]  }
0x1e82   :  { %4518 = vmatpush1.bf16.msra.mxu1 %v20526_v9  ;;  %v13535_v9 = vld [vmem:[%s20212_s3 + $0x60] ss:$8 sps:$4 sm:$0xff]  }
0x1e83   :  { %4519 = vmatprep.subr.bf16.mxu1 %v20527_v54  ;;  %v13540_v54 = vld [vmem:[%s20212_s3 + $0x114] ss:$8 sps:$4 sm:$0xff]  }
0x1e86   :  { %4520 = vmatpush1.bf16.msra.mxu1 %v20528_v1  ;;  %v13538_v1 = vld [vmem:[%s20212_s3 + $0x110] ss:$8 sps:$4 sm:$0xff]  }
0x1e87   :  { %4521 = vmatprep.subr.bf16.mxu1 %v20529_v22  ;;  %v13543_v22 = vld [vmem:[%s20212_s3 + $0x74] ss:$8 sps:$4 sm:$0xff]  }
0x1e8a   :  { %4522 = vmatpush1.bf16.msra.mxu1 %v20530_v47  ;;  %v13546_v47 = vld [vmem:[%s20212_s3 + $0x124] ss:$8 sps:$4 sm:$0xff]  }
0x1e8b   :  { %4523 = vmatprep.subr.bf16.mxu1 %v20531_v2  ;;  %v13541_v2 = vld [vmem:[%s20212_s3 + $0x70] ss:$8 sps:$4 sm:$0xff]  }
0x1e8e   :  { %4524 = vmatpush1.bf16.msra.mxu1 %v20532_v21  ;;  %v13544_v21 = vld [vmem:[%s20212_s3 + $0x120] ss:$8 sps:$4 sm:$0xff]  }
0x1e8f   :  { %4986 = vmatprep.subr.bf16.mxu1 %v13504_v23  ;;  %v20533_v23 = vld [vmem:[#allocation2_spill] sm:$0xff] }
0x1e91   :  { %11750 = vmatmul.mubr.msk.bf16.vlgmr.msra.gmra.mrb[144].mxu1 %vm1936_vm4, %v16243_v59 }
0x1e92   :  { %4987 = vmatpush1.bf16.msra.mxu1 %v13502_v63  ;;  %v13562_v63 = vld [vmem:[%s20212_s3 + $0x150] ss:$8 sps:$4 sm:$0x1f]  }
0x1e93   :  { %4988 = vmatprep.subr.bf16.mxu1 %v13510_v12  ;;  %v16657_v12 = vand.u32 %v13562_v63, %v20533_v23 }
0x1e96   :  { %4989 = vmatpush1.bf16.msra.mxu1 %v13508_v29 }
0x1f44   :  { %v4500_v17 = vpop.f32.mrb[140].mxu1 }
0x1f45   :  { %v4507_v27 = vadd.f32 %v4500_v17, %v4415_v16  ;;  %v4502_v40 = vpop.f32.mrb[141].mxu1  ;;  %v13516_v16 = vld [vmem:[%s20212_s3 + $0xd4] ss:$8 sps:$4 sm:$0xff]   ;;  %v13549_v17 = vld [vmem:[%s20212_s3 + $0x84] ss:$8 sps:$4 sm:$0xff]  }
0x1f46   :  { %v4508_v5 = vadd.f32 %v4502_v40, %v4416_v18  ;;  %v4504_v20 = vpop.f32.mrb[142].mxu1  ;;  %v13519_v18 = vld [vmem:[%s20212_s3 + $0x34] ss:$8 sps:$4 sm:$0xff]   ;;  %4990 = vmatprep.subr.bf16.mxu1 %v13516_v16  ;;  %v13547_v40 = vld [vmem:[%s20212_s3 + $0x80] ss:$8 sps:$4 sm:$0xff]  }
0x1f47   :  { %v4505_v11 = vpop.f32.mrb[143].mxu1  ;;  %4991 = vmatpush1.bf16.msra.mxu1 %v13514_v38  ;;  %v4609_v20 = vpop.xlane.xlu0 %4608 }
0x1f48   :  { %4992 = vmatprep.subr.bf16.mxu1 %v13522_v3 }
0x1f4b   :  { %4993 = vmatpush1.bf16.msra.mxu1 %v13520_v55  ;;  %v4615_v11 = vpop.xlane.xlu0 %4614 }
0x1f4c   :  { %4994 = vmatprep.subr.bf16.mxu1 %v13528_v0 }
0x1f4f   :  { %4995 = vmatpush1.bf16.msra.mxu1 %v13526_v25 }
0x1f50   :  { %4996 = vmatprep.subr.bf16.mxu1 %v13534_v4 }
0x1f53   :  { %4997 = vmatpush1.bf16.msra.mxu1 %v13532_v26 }
0x1f54   :  { %4998 = vmatprep.subr.bf16.mxu1 %v13540_v54 }
0x1f57   :  { %4999 = vmatpush1.bf16.msra.mxu1 %v13538_v1 }
0x1f58   :  { %5000 = vmatprep.subr.bf16.mxu1 %v13546_v47 }
0x1f5b   :  { %5001 = vmatpush1.bf16.msra.mxu1 %v13544_v21  ;;  %v13567_v21 = vld [vmem:[%s20212_s3 + $0x164] ss:$8 sps:$4 sm:$0xff]  }
0x1f64   :  { %v4543_v31 = vpop.f32.mrb[144].mxu1 }
0x1f65   :  { %v4550_v48 = vpack.c.bf16 %v4543_v31, %v4543_v31  ;;  %v4545_v49 = vpop.f32.mrb[145].mxu1 }
0x1f66   :  { %v4551_v33 = vpack.c.bf16 %v4545_v49, %v4545_v49  ;;  %v4547_v50 = vpop.f32.mrb[146].mxu1 }
0x1f67   :  { %v4553_v32 = vsel %vm210_vm2, %v4550_v48, 0  ;;  %v4548_v35 = vpop.f32.mrb[147].mxu1 }
0x1f68   :  { %11751 = vmatprep.subr.msk.bf16.mxu0 %vm210_vm2, %v4551_v33 }
0x1f69   :  { %4559 = vmatpush1.bf16.msra.mxu0 %v4553_v32 }
0x1f6a   :  { %4805 = vmatprep.subr.bf16.mxu0 %v13501_v58  ;;  %v13559_v58 = vld [vmem:[%s20212_s3 + $0xa0] ss:$8 sps:$4 sm:$0x1f]  }
0x1f6b   :  { %v16654_v29 = vand.u32 %v13559_v58, %v20533_v23 }
0x1f6c   :  { %11752 = vmatmul.mubr.msk.bf16.vlgmr.msra.gmra.mrb[136].mxu0 %vm206_vm3, %v16255_v8 }
0x203f   :  { %v4592_v59 = vpop.f32.mrb[136].mxu0 }
0x2040   :  { %v4599_v36 = vadd.f32 %v4592_v59, %v4507_v27  ;;  %v4594_v51 = vpop.f32.mrb[137].mxu0  ;;  %v13552_v27 = vld [vmem:[%s20212_s3 + $0x134] ss:$8 sps:$4 sm:$0xff]  }
0x2041   :  { %v4600_v37 = vadd.f32 %v4594_v51, %v4508_v5  ;;  %v4596_v24 = vpop.f32.mrb[138].mxu0  ;;  %v13550_v5 = vld [vmem:[%s20212_s3 + $0x130] ss:$8 sps:$4 sm:$0xff]   ;;  %5002 = vmatprep.subr.bf16.mxu1 %v13552_v27  ;;  %v13565_v27 = vld [vmem:[%s20212_s3 + $0x160] ss:$8 sps:$4 sm:$0xff]  }
0x2042   :  { %v4601_v52 = vadd.f32 %v4599_v36, %v16308_v46  ;;  %v4597_v15 = vpop.f32.mrb[139].mxu0  ;;  %5003 = vmatpush1.bf16.msra.mxu1 %v13550_v5  ;;  %v13570_v5 = vld [vmem:[%s20212_s3 + $0x174] ss:$8 sps:$4 sm:$0xff]  }
0x2043   :  { %v4602_v43 = vadd.f32 %v4600_v37, %v16308_v46  ;;  %v13499_v46 = vld [vmem:[%s20212_s3] ss:$8 sps:$4 sm:$0xff]  }
0x2044   :  { %v16497_v44 = vmax.f32 %v4601_v52, 0.0  ;;  %4806 = vmatpush1.bf16.msra.mxu0 %v13499_v46  ;;  %v11753_v37 = vld [vmem:[%s20209_s10 + $0x8] sm:$0xff] }
0x2045   :  { %v16499_v45 = vmax.f32 %v4602_v43, 0.0  ;;  %4807 = vmatprep.subr.bf16.mxu0 %v13507_v10  ;;  %v11754_v15 = vld [vmem:[%s20210_s11 + $0x8] sm:$0xff]  ;;  %v13555_v43 = vld [vmem:[%s20212_s3 + $0x94] ss:$8 sps:$4 sm:$0xff]  }
0x2046   :  { %v4621_v39 = vmul.f32 %v16497_v44, %v16497_v44 }
0x2047   :  { %v4616_v34 = vsel %vm4605_vm6, %v16499_v45, 0.0  ;;  %v4622_v8 = vmul.f32 %v16499_v45, %v16499_v45 }
0x2048   :  { %v4617_v62 = vadd.f32 %v4616_v34, %v16497_v44  ;;  %4808 = vmatpush1.bf16.msra.mxu0 %v13505_v28  ;;  %v13558_v34 = vld [vmem:[%s20212_s3 + $0x144] ss:$8 sps:$4 sm:$0xff]  }
0x2049   :  { %v4623_v57 = vsel %vm4605_vm6, %v4622_v8, 0.0  ;;  %4809 = vmatprep.subr.bf16.mxu0 %v13513_v13  ;;  %5004 = vmatprep.subr.bf16.mxu1 %v13558_v34  ;;  %v11755_v13 = vld [vmem:[%s20207_s9 + $0x10] sm:$0xff] }
0x204a   :  { %4618 = vadd.xlane.f32.xlu1 %v4617_v62  ;;  %v4624_v60 = vadd.f32 %v4623_v57, %v4621_v39  ;;  %v13553_v62 = vld [vmem:[%s20212_s3 + $0x90] ss:$8 sps:$4 sm:$0xff]   ;;  %v13556_v39 = vld [vmem:[%s20212_s3 + $0x140] ss:$8 sps:$4 sm:$0xff]  }
0x204b   :  { %v13561_v57 = vld [vmem:[%s20212_s3 + $0xa4] ss:$8 sps:$4 sm:$0x1f]   ;;  %5005 = vmatpush1.bf16.msra.mxu1 %v13556_v39  ;;  %v13592_v34 = vld [vmem:[%s20212_s3 + $0x1f0] ss:$8 sps:$4 sm:$0xff]  }
0x204c   :  { %4625 = vadd.xlane.f32.xlu0 %v4624_v60  ;;  %4810 = vmatpush1.bf16.msra.mxu0 %v13511_v30  ;;  %v13564_v60 = vld [vmem:[%s20212_s3 + $0x154] ss:$8 sps:$4 sm:$0x1f]   ;;  %v16648_v28 = vand.u32 %v13561_v57, %v20533_v23 }
0x204d   :  { %4811 = vmatprep.subr.bf16.mxu0 %v13519_v18  ;;  %v16651_v10 = vand.u32 %v13564_v60, %v20533_v23 }
0x204f   :  { %5006 = vmatprep.subr.bf16.mxu1 %v16651_v10 }
0x2050   :  { %4812 = vmatpush1.bf16.msra.mxu0 %v13517_v7  ;;  %5007 = vmatpush1.bf16.msra.mxu1 %v16657_v12 }
0x2051   :  { %4813 = vmatprep.subr.bf16.mxu0 %v13525_v19 }
0x2054   :  { %4814 = vmatpush1.bf16.msra.mxu0 %v13523_v6 }
0x2055   :  { %4815 = vmatprep.subr.bf16.mxu0 %v13531_v41 }
0x2058   :  { %4816 = vmatpush1.bf16.msra.mxu0 %v13529_v53 }
0x2059   :  { %4817 = vmatprep.subr.bf16.mxu0 %v13537_v56 }
0x205c   :  { %4818 = vmatpush1.bf16.msra.mxu0 %v13535_v9 }
0x205d   :  { %4819 = vmatprep.subr.bf16.mxu0 %v13543_v22 }
0x2060   :  { %4820 = vmatpush1.bf16.msra.mxu0 %v13541_v2  ;;  %v11824_v2 = vld [vmem:[%s20213_s7 + $0x4] sm:$0xf] }
0x2061   :  { %4821 = vmatprep.subr.bf16.mxu0 %v13549_v17 }
0x2064   :  { %4822 = vmatpush1.bf16.msra.mxu0 %v13547_v40  ;;  %v4846_v40 = vld [vmem:[%s20213_s7] sm:$0xf] }
0x2065   :  { %4823 = vmatprep.subr.bf16.mxu0 %v13555_v43  ;;  %v13597_v43 = vld [vmem:[%s20212_s3 + $0x204] ss:$8 sps:$4 sm:$0x1f]  }
0x2068   :  { %4824 = vmatpush1.bf16.msra.mxu0 %v13553_v62  ;;  %v16768_v62 = vand.u32 %v13597_v43, %v20533_v23 }
0x2069   :  { %4825 = vmatprep.subr.bf16.mxu0 %v16648_v28 }
0x206c   :  { %4826 = vmatpush1.bf16.msra.mxu0 %v16654_v29 }
0x20d7   :  { %v4619_v31 = vpop.xlane.xlu1 %4618 }
0x20d8   :  { %v4620_v48 = vadd.f32 %v4619_v31, %v4609_v20  ;;  %v13568_v20 = vld [vmem:[%s20212_s3 + $0x170] ss:$8 sps:$4 sm:$0xff]   ;;  %v13571_v31 = vld [vmem:[%s20212_s3 + $0x180] ss:$8 sps:$4 sm:$0xff]  }
0x20d9   :  { %v4626_v49 = vpop.xlane.xlu0 %4625 }
0x20da   :  { %v4628_v33 = vmul.f32 0.00295858, %v4620_v48  ;;  %v4627_v50 = vadd.f32 %v4626_v49, %v4615_v11  ;;  %v13573_v11 = vld [vmem:[%s20212_s3 + $0x184] ss:$8 sps:$4 sm:$0xff]   ;;  %v13576_v48 = vld [vmem:[%s20212_s3 + $0x194] ss:$8 sps:$4 sm:$0xff]  }
0x20db   :  { %v13574_v49 = vld [vmem:[%s20212_s3 + $0x190] ss:$8 sps:$4 sm:$0xff]  }
0x20dc   :  { %v4630_v32 = vmul.f32 %v4628_v33, %v4628_v33  ;;  %v4629_v35 = vmul.f32 0.00295858, %v4627_v50  ;;  %v13577_v50 = vld [vmem:[%s20212_s3 + $0x1a0] ss:$8 sps:$4 sm:$0xff]  }
0x20de   :  { %v4631_v59 = vsub.f32 %v4629_v35, %v4630_v32  ;;  %v13582_v32 = vld [vmem:[%s20212_s3 + $0x1b4] ss:$8 sps:$4 sm:$0xff]   ;;  %v13580_v35 = vld [vmem:[%s20212_s3 + $0x1b0] ss:$8 sps:$4 sm:$0xff]  }
0x20e0   :  { %v4632_v36 = vmax.f32 %v4631_v59, 0.0  ;;  %v13585_v59 = vld [vmem:[%s20212_s3 + $0x1c4] ss:$8 sps:$4 sm:$0xff]  }
0x20e2   :  { %v4635_v51 = vadd.f32 1e-05, %v4632_v36  ;;  %v13583_v36 = vld [vmem:[%s20212_s3 + $0x1c0] ss:$8 sps:$4 sm:$0xff]  }
0x20e4   :  { %14230 = vrsqrt.f32 %v4635_v51  ;;  %v13588_v51 = vld [vmem:[%s20212_s3 + $0x1d4] ss:$8 sps:$4 sm:$0xff]  }
0x20ee   :  { %v14231_v24 = vpop.eup %14230 }
0x20ef   :  { %v4637_v52 = vmul.f32 %v14231_v24, %v11753_v37  ;;  %v13586_v37 = vld [vmem:[%s20212_s3 + $0x1d0] ss:$8 sps:$4 sm:$0xff]   ;;  %v13591_v24 = vld [vmem:[%s20212_s3 + $0x1e4] ss:$8 sps:$4 sm:$0xff]  }
0x20f1   :  { %4644 = vperm.xlu0 %13245, %v4637_v52   ;;  %v4640_v8 = vmul.f32 %v4637_v52, %v4628_v33  ;;  %v13579_v33 = vld [vmem:[%s20212_s3 + $0x1a4] ss:$8 sps:$4 sm:$0xff]   ;;  %v13589_v52 = vld [vmem:[%s20212_s3 + $0x1e0] ss:$8 sps:$4 sm:$0xff]  }
0x20f3   :  { %v4641_v46 = vsub.f32 %v11754_v15, %v4640_v8  ;;  %v13594_v15 = vld [vmem:[%s20212_s3 + $0x1f4] ss:$8 sps:$4 sm:$0xff]   ;;  %v13595_v8 = vld [vmem:[%s20212_s3 + $0x200] ss:$8 sps:$4 sm:$0x1f]  }
0x20f4   :  { %v16771_v39 = vand.u32 %v13595_v8, %v20533_v23 }
0x20f5   :  { %4651 = vperm.xlu0 %13245, %v4641_v46  }
0x20f9   :  { %6771 = vperm.xlu0 %13245, %v11755_v13  }
0x2170   :  { %v4645_v30 = vpop.permute.xlu0 %4644 }
0x2171   :  { %v4647_v16 = vmul.f32 %v4645_v30, %v16314_v42  ;;  %v4648_v38 = vmul.f32 %v4645_v30, %v16312_v14  ;;  %v4658_v18 = vmul.f32 %v4645_v30, %v16497_v44  ;;  %v4659_v3 = vmul.f32 %v4645_v30, %v16499_v45 }
0x2174   :  { %v4652_v7 = vpop.permute.xlu0 %4651 }
0x2175   :  { %v4654_v55 = vadd.f32 %v4652_v7, %v4647_v16  ;;  %v4655_v19 = vadd.f32 %v4652_v7, %v4648_v38  ;;  %v16670_v0 = vadd.f32 %v4658_v18, %v4652_v7  ;;  %v16672_v6 = vadd.f32 %v4659_v3, %v4652_v7 }
0x2177   :  { %v16674_v25 = vpack.c.bf16 %v4654_v55, %v4654_v55  ;;  %v16676_v41 = vpack.c.bf16 %v4655_v19, %v4655_v19 }
0x2179   :  { %11778 = vmatprep.mubr.msk.bf16.mxu0 %vm4605_vm6, %v16676_v41  ;;  %11823 = vmatprep.mubr.msk.bf16.mxu1 %vm4605_vm6, %v16676_v41 }
0x217a   :  { %4838 = vmatmul.mubr.bf16.vlgmr.msra.gmra.mrb[140].mxu0 %v16674_v25  ;;  %5019 = vmatmul.mubr.bf16.vlgmr.msra.gmra.mrb[148].mxu1 %v16674_v25 }
0x217b   :  { %5072 = vmatprep.mubr.bf16.mxu0 %v20394_v61  ;;  %5354 = vmatprep.mubr.bf16.mxu1 %v20394_v61 }
0x224d   :  { %v4839_v14 = vpop.f32.mrb[140].mxu0  ;;  %v5020_v42 = vpop.f32.mrb[148].mxu1 }
0x224e   :  { %v5029_v44 = vpack.c.bf16 %v5020_v42, %v5020_v42  ;;  %v4841_v45 = vpop.f32.mrb[141].mxu0  ;;  %v5022_v4 = vpop.f32.mrb[149].mxu1  ;;  %v4847_v22 = vpack.c.bf16 %v4839_v14, %v4839_v14  ;;  %v13600_v42 = vld [vmem:[%s20212_s3 + $0x214] ss:$8 sps:$4 sm:$0xff]  }
0x224f   :  { %v5030_v53 = vpack.c.bf16 %v5022_v4, %v5022_v4  ;;  %v4843_v26 = vpop.f32.mrb[142].mxu0  ;;  %v5024_v56 = vpop.f32.mrb[150].mxu1  ;;  %v4848_v47 = vpack.c.bf16 %v4841_v45, %v4841_v45  ;;  %v11874_v4 = vld [vmem:[%s20213_s7 + $0x8] sm:$0xf] }
0x2250   :  { %v5035_v9 = vsel %vm210_vm2, %v5029_v44, 0  ;;  %v4844_v54 = vpop.f32.mrb[143].mxu0  ;;  %v5025_v1 = vpop.f32.mrb[151].mxu1  ;;  %v5085_v17 = vsel %vm210_vm2, %v4847_v22, 0  ;;  %v13603_v26 = vld [vmem:[%s20212_s3 + $0x224] ss:$8 sps:$4 sm:$0xff]  }
0x2251   :  { %11825 = vmatprep.subr.msk.bf16.mxu0 %vm210_vm2, %v5030_v53  ;;  %v13598_v53 = vld [vmem:[%s20212_s3 + $0x210] ss:$8 sps:$4 sm:$0xff]   ;;  %v13601_v56 = vld [vmem:[%s20212_s3 + $0x220] ss:$8 sps:$4 sm:$0xff]   ;;  %v13609_v1 = vld [vmem:[%s20212_s3 + $0x244] ss:$8 sps:$4 sm:$0xff]  }
0x2252   :  { %5041 = vmatpush1.bf16.msra.mxu0 %v5035_v9  ;;  %v13606_v9 = vld [vmem:[%s20212_s3 + $0x234] ss:$8 sps:$4 sm:$0xff]   ;;  %v13604_v54 = vld [vmem:[%s20212_s3 + $0x230] ss:$8 sps:$4 sm:$0xff]   ;;  %v13607_v22 = vld [vmem:[%s20212_s3 + $0x240] ss:$8 sps:$4 sm:$0xff]  }
0x2253   :  { %11827 = vmatprep.subr.msk.bf16.mxu0 %vm210_vm2, %v4848_v47  ;;  %v13612_v47 = vld [vmem:[%s20212_s3 + $0x254] ss:$8 sps:$4 sm:$0xff]  }
0x2255   :  { %11826 = vmatmul.mubr.msk.bf16.vlgmr.msra.gmra.mrb[144].mxu0 %vm206_vm3, %v11824_v2  ;;  %v13610_v2 = vld [vmem:[%s20212_s3 + $0x250] ss:$8 sps:$4 sm:$0xff]  }
0x2256   :  { %5091 = vmatpush1.bf16.msra.mxu0 %v5085_v17  ;;  %5122 = vmatprep.mubr.bf16.mxu0 %v20394_v61  ;;  %v13613_v17 = vld [vmem:[%s20212_s3 + $0x260] ss:$8 sps:$4 sm:$0xff]  }
0x2257   :  { %5268 = vmatprep.subr.bf16.mxu0 %v13567_v21  ;;  %v13615_v21 = vld [vmem:[%s20212_s3 + $0x264] ss:$8 sps:$4 sm:$0xff]  }
0x225d   :  { %11828 = vmatmul.mubr.msk.bf16.vlgmr.msra.gmra.mrb[148].mxu0 %vm206_vm3, %v4846_v40  ;;  %v13616_v40 = vld [vmem:[%s20212_s3 + $0x270] ss:$8 sps:$4 sm:$0xff]  }
0x225e   :  { %5269 = vmatpush1.bf16.msra.mxu0 %v13565_v27  ;;  %11873 = vmatprep.mubr.msk.bf16.mxu0 %vm4605_vm6, %v16676_v41  ;;  %v13618_v27 = vld [vmem:[%s20212_s3 + $0x274] ss:$8 sps:$4 sm:$0xff]  }
0x225f   :  { %5270 = vmatprep.subr.bf16.mxu0 %v13570_v5  ;;  %v13621_v5 = vld [vmem:[%s20212_s3 + $0x284] ss:$8 sps:$4 sm:$0xff]  }
0x2262   :  { %5271 = vmatpush1.bf16.msra.mxu0 %v13568_v20  ;;  %v13619_v20 = vld [vmem:[%s20212_s3 + $0x280] ss:$8 sps:$4 sm:$0xff]  }
0x2263   :  { %5272 = vmatprep.subr.bf16.mxu0 %v13573_v11  ;;  %v13624_v11 = vld [vmem:[%s20212_s3 + $0x294] ss:$8 sps:$4 sm:$0xff]  }
0x2266   :  { %5273 = vmatpush1.bf16.msra.mxu0 %v13571_v31  ;;  %v13622_v31 = vld [vmem:[%s20212_s3 + $0x290] ss:$8 sps:$4 sm:$0xff]  }
0x2267   :  { %5274 = vmatprep.subr.bf16.mxu0 %v13576_v48  ;;  %v13627_v48 = vld [vmem:[%s20212_s3 + $0x2a4] ss:$8 sps:$4 sm:$0xff]  }
0x226a   :  { %5275 = vmatpush1.bf16.msra.mxu0 %v13574_v49  ;;  %v13630_v49 = vld [vmem:[%s20212_s3 + $0x2b4] ss:$8 sps:$4 sm:$0x1f]  }
0x226b   :  { %5276 = vmatprep.subr.bf16.mxu0 %v13579_v33  ;;  %v16852_v33 = vld [vmem:[%s20212_s3 + $0x2a0] ss:$8 sps:$4 sm:$0xff]  }
0x226e   :  { %5277 = vmatpush1.bf16.msra.mxu0 %v13577_v50  ;;  %v13628_v50 = vld [vmem:[%s20212_s3 + $0x2b0] ss:$8 sps:$4 sm:$0x1f]  }
0x226f   :  { %5278 = vmatprep.subr.bf16.mxu0 %v13582_v32  ;;  %v16858_v32 = vand.u32 %v13630_v49, %v20533_v23 }
0x2272   :  { %5279 = vmatpush1.bf16.msra.mxu0 %v13580_v35  ;;  %v16862_v35 = vand.u32 %v13628_v50, %v20533_v23 }
0x2273   :  { %5280 = vmatprep.subr.bf16.mxu0 %v13585_v59 }
0x2276   :  { %5281 = vmatpush1.bf16.msra.mxu0 %v13583_v36 }
0x2277   :  { %5282 = vmatprep.subr.bf16.mxu0 %v13588_v51 }
0x227a   :  { %5283 = vmatpush1.bf16.msra.mxu0 %v13586_v37 }
0x227b   :  { %5284 = vmatprep.subr.bf16.mxu0 %v13591_v24 }
0x227e   :  { %5285 = vmatpush1.bf16.msra.mxu0 %v13589_v52 }
0x227f   :  { %5286 = vmatprep.subr.bf16.mxu0 %v13594_v15 }
0x2282   :  { %5287 = vmatpush1.bf16.msra.mxu0 %v13592_v34 }
0x2283   :  { %5288 = vmatprep.subr.bf16.mxu0 %v16768_v62 }
0x2286   :  { %5289 = vmatpush1.bf16.msra.mxu0 %v16771_v39 }
0x2289   :  { %5301 = vmatmul.mubr.bf16.vlgmr.msra.gmra.mrb[152].mxu0 %v16674_v25 }
0x228a   :  { %5588 = vmatprep.mubr.bf16.mxu0 %v20394_v61 }
0x2328   :  { %v5074_v57 = vpop.f32.mrb[144].mxu0 }
0x2329   :  { %v5076_v60 = vpop.f32.mrb[145].mxu0 }
0x232a   :  { %v5078_v46 = vpop.f32.mrb[146].mxu0 }
0x232b   :  { %v5079_v58 = vpop.f32.mrb[147].mxu0 }
0x2330   :  { %v5124_v63 = vpop.f32.mrb[148].mxu0 }
0x2331   :  { %v16777_v13 = vadd.f32 %v5124_v63, %v5074_v57  ;;  %v5126_v30 = vpop.f32.mrb[149].mxu0  ;;  %v16884_v63 = vld [vmem:[%s20213_s7 + $0xc] sm:$0xf] }
0x2332   :  { %v16779_v16 = vadd.f32 %v5126_v30, %v5076_v60  ;;  %v5128_v38 = vpop.f32.mrb[150].mxu0  ;;  %v16877_v60 = vld [vmem:[%s20212_s3 + $0x2c4] ss:$8 sps:$4 sm:$0xff]   ;;  %v16895_v30 = vld [vmem:[%s20212_s3 + $0x2d4] ss:$8 sps:$4 sm:$0xff]  }
0x2333   :  { %v5129_v18 = vpop.f32.mrb[151].mxu0  ;;  %v16911_v38 = vld [vmem:[%s20212_s3 + $0x2e4] ss:$8 sps:$4 sm:$0xff]  }
0x2334   :  { %v16917_v18 = vld [vmem:[%s20212_s3 + $0x2e0] ss:$8 sps:$4 sm:$0xff]  }
0x235c   :  { %v5302_v3 = vpop.f32.mrb[152].mxu0 }
0x235d   :  { %v5311_v7 = vpack.c.bf16 %v5302_v3, %v5302_v3  ;;  %v5304_v55 = vpop.f32.mrb[153].mxu0  ;;  %v16923_v3 = vld [vmem:[%s20212_s3 + $0x2f4] ss:$8 sps:$4 sm:$0xff]  }
0x235e   :  { %v5312_v19 = vpack.c.bf16 %v5304_v55, %v5304_v55  ;;  %v5306_v14 = vpop.f32.mrb[154].mxu0  ;;  %v16935_v55 = vld [vmem:[%s20212_s3 + $0x304] ss:$8 sps:$4 sm:$0xff]  }
0x235f   :  { %v5317_v44 = vsel %vm210_vm2, %v5311_v7, 0  ;;  %v5307_v45 = vpop.f32.mrb[155].mxu0  ;;  %v16929_v7 = vld [vmem:[%s20212_s3 + $0x2f0] ss:$8 sps:$4 sm:$0xff]   ;;  %v16947_v14 = vld [vmem:[%s20212_s3 + $0x314] ss:$8 sps:$4 sm:$0xff]  }
0x2360   :  { %11875 = vmatprep.subr.msk.bf16.mxu1 %vm210_vm2, %v5312_v19  ;;  %v16941_v19 = vld [vmem:[%s20212_s3 + $0x300] ss:$8 sps:$4 sm:$0xff]  }
0x2361   :  { %5323 = vmatpush1.bf16.msra.mxu1 %v5317_v44  ;;  %v16959_v44 = vld [vmem:[%s20212_s3 + $0x324] ss:$8 sps:$4 sm:$0xff]   ;;  %v16965_v45 = vld [vmem:[%s20212_s3 + $0x320] ss:$8 sps:$4 sm:$0xff]  }
0x2362   :  { %5502 = vmatprep.subr.bf16.mxu1 %v13600_v42  ;;  %v16953_v42 = vld [vmem:[%s20212_s3 + $0x310] ss:$8 sps:$4 sm:$0xff]  }
0x2364   :  { %11876 = vmatmul.mubr.msk.bf16.vlgmr.msra.gmra.mrb[152].mxu1 %vm206_vm3, %v11874_v4  ;;  %v16971_v4 = vld [vmem:[%s20212_s3 + $0x334] ss:$8 sps:$4 sm:$0xff]  }
0x2365   :  { %5503 = vmatpush1.bf16.msra.mxu1 %v13598_v53  ;;  %11921 = vmatprep.mubr.msk.bf16.mxu1 %vm4605_vm6, %v16676_v41  ;;  %v16977_v53 = vld [vmem:[%s20212_s3 + $0x330] ss:$8 sps:$4 sm:$0xff]  }
0x2366   :  { %5504 = vmatprep.subr.bf16.mxu1 %v13603_v26  ;;  %v16983_v26 = vld [vmem:[%s20212_s3 + $0x344] ss:$8 sps:$4 sm:$0xff]  }
0x2369   :  { %5505 = vmatpush1.bf16.msra.mxu1 %v13601_v56  ;;  %v16989_v56 = vld [vmem:[%s20212_s3 + $0x340] ss:$8 sps:$4 sm:$0xff]  }
0x236a   :  { %5506 = vmatprep.subr.bf16.mxu1 %v13606_v9  ;;  %v16995_v9 = vld [vmem:[%s20212_s3 + $0x354] ss:$8 sps:$4 sm:$0xff]  }
0x236d   :  { %5507 = vmatpush1.bf16.msra.mxu1 %v13604_v54  ;;  %v13663_v54 = vld [vmem:[%s20212_s3 + $0x364] ss:$8 sps:$4 sm:$0x1f]  }
0x236e   :  { %5508 = vmatprep.subr.bf16.mxu1 %v13609_v1  ;;  %v17004_v1 = vld [vmem:[%s20212_s3 + $0x350] ss:$8 sps:$4 sm:$0xff]  }
0x2371   :  { %5509 = vmatpush1.bf16.msra.mxu1 %v13607_v22  ;;  %v13661_v22 = vld [vmem:[%s20212_s3 + $0x360] ss:$8 sps:$4 sm:$0x1f]  }
0x2372   :  { %5510 = vmatprep.subr.bf16.mxu1 %v13612_v47  ;;  %v17011_v47 = vand.u32 %v13663_v54, %v20533_v23  ;;  %v17100_v54 = vld [vmem:[%s20212_s3 + $0x3c4] ss:$8 sps:$4 sm:$0xff]  }
0x2373   :  { %20534 = vst [vmem:[#allocation3_spill] sm:$0xff] %v17100_v54 }
0x2375   :  { %5511 = vmatpush1.bf16.msra.mxu1 %v13610_v2  ;;  %v17015_v2 = vand.u32 %v13661_v22, %v20533_v23  ;;  %v17106_v22 = vld [vmem:[%s20212_s3 + $0x3c0] ss:$8 sps:$4 sm:$0xff]  }
0x2376   :  { %5512 = vmatprep.subr.bf16.mxu1 %v13615_v21  ;;  %20535 = vst [vmem:[#allocation4_spill] sm:$0xff] %v17106_v22 }
0x2379   :  { %5513 = vmatpush1.bf16.msra.mxu1 %v13613_v17 }
0x237a   :  { %5514 = vmatprep.subr.bf16.mxu1 %v13618_v27 }
0x237d   :  { %5515 = vmatpush1.bf16.msra.mxu1 %v13616_v40 }
0x237e   :  { %5516 = vmatprep.subr.bf16.mxu1 %v13621_v5 }
0x2381   :  { %5517 = vmatpush1.bf16.msra.mxu1 %v13619_v20 }
0x2382   :  { %5518 = vmatprep.subr.bf16.mxu1 %v13624_v11 }
0x2385   :  { %5519 = vmatpush1.bf16.msra.mxu1 %v13622_v31 }
0x2386   :  { %5520 = vmatprep.subr.bf16.mxu1 %v13627_v48 }
0x2389   :  { %5521 = vmatpush1.bf16.msra.mxu1 %v16852_v33 }
0x238a   :  { %5522 = vmatprep.subr.bf16.mxu1 %v16858_v32 }
0x238d   :  { %5523 = vmatpush1.bf16.msra.mxu1 %v16862_v35 }
0x2390   :  { %5535 = vmatmul.mubr.bf16.vlgmr.msra.gmra.mrb[156].mxu1 %v16674_v25 }
0x2391   :  { %5822 = vmatprep.mubr.bf16.mxu1 %v20394_v61 }
0x2437   :  { %v5356_v59 = vpop.f32.mrb[152].mxu1 }
0x2438   :  { %v16869_v36 = vadd.f32 %v5356_v59, %v16777_v13  ;;  %v5358_v51 = vpop.f32.mrb[153].mxu1  ;;  %v16889_v13 = vld [vmem:[%s20212_s3 + $0x2c0] ss:$8 sps:$4 sm:$0xff]   ;;  %v17030_v59 = vld [vmem:[%s20212_s3 + $0x374] ss:$8 sps:$4 sm:$0xff]  }
0x2439   :  { %v16872_v37 = vadd.f32 %v5358_v51, %v16779_v16  ;;  %v5360_v24 = vpop.f32.mrb[154].mxu1  ;;  %v16905_v16 = vld [vmem:[%s20212_s3 + $0x2d0] ss:$8 sps:$4 sm:$0xff]  }
0x243a   :  { %v5361_v52 = vpop.f32.mrb[155].mxu1  ;;  %v17042_v24 = vld [vmem:[%s20212_s3 + $0x370] ss:$8 sps:$4 sm:$0xff]  }
0x243b   :  { %v17048_v52 = vld [vmem:[%s20212_s3 + $0x384] ss:$8 sps:$4 sm:$0xff]  }
0x2463   :  { %v5536_v15 = vpop.f32.mrb[156].mxu1 }
0x2464   :  { %v5545_v43 = vpack.c.bf16 %v5536_v15, %v5536_v15  ;;  %v5538_v34 = vpop.f32.mrb[157].mxu1  ;;  %v17058_v15 = vld [vmem:[%s20212_s3 + $0x380] ss:$8 sps:$4 sm:$0xff]  }
0x2465   :  { %v5546_v8 = vpack.c.bf16 %v5538_v34, %v5538_v34  ;;  %v5540_v57 = vpop.f32.mrb[158].mxu1  ;;  %v17070_v34 = vld [vmem:[%s20212_s3 + $0x390] ss:$8 sps:$4 sm:$0xff]  }
0x2466   :  { %v5551_v46 = vsel %vm210_vm2, %v5545_v43, 0  ;;  %v5541_v58 = vpop.f32.mrb[159].mxu1  ;;  %v17064_v43 = vld [vmem:[%s20212_s3 + $0x394] ss:$8 sps:$4 sm:$0xff]   ;;  %v17082_v57 = vld [vmem:[%s20212_s3 + $0x3a0] ss:$8 sps:$4 sm:$0xff]  }
0x2467   :  { %11923 = vmatprep.subr.msk.bf16.mxu0 %vm210_vm2, %v5546_v8  ;;  %v17076_v8 = vld [vmem:[%s20212_s3 + $0x3a4] ss:$8 sps:$4 sm:$0xff]   ;;  %v17094_v58 = vld [vmem:[%s20212_s3 + $0x3b0] ss:$8 sps:$4 sm:$0xff]  }
0x2468   :  { %5557 = vmatpush1.bf16.msra.mxu0 %v5551_v46  ;;  %v17088_v46 = vld [vmem:[%s20212_s3 + $0x3b4] ss:$8 sps:$4 sm:$0xff]  }
0x2469   :  { %5736 = vmatprep.subr.bf16.mxu0 %v16877_v60 }
0x246b   :  { %11924 = vmatmul.mubr.msk.bf16.vlgmr.msra.gmra.mrb[156].mxu0 %vm206_vm3, %v16884_v63 }
0x246c   :  { %5737 = vmatpush1.bf16.msra.mxu0 %v16889_v13  ;;  %11969 = vmatprep.mubr.msk.bf16.mxu0 %vm4605_vm6, %v16676_v41 }
0x246d   :  { %5738 = vmatprep.subr.bf16.mxu0 %v16895_v30 }
0x2470   :  { %5739 = vmatpush1.bf16.msra.mxu0 %v16905_v16 }
0x2471   :  { %5740 = vmatprep.subr.bf16.mxu0 %v16911_v38 }
0x2474   :  { %5741 = vmatpush1.bf16.msra.mxu0 %v16917_v18 }
0x2475   :  { %5742 = vmatprep.subr.bf16.mxu0 %v16923_v3 }
0x2478   :  { %5743 = vmatpush1.bf16.msra.mxu0 %v16929_v7 }
0x2479   :  { %5744 = vmatprep.subr.bf16.mxu0 %v16935_v55 }
0x247c   :  { %5745 = vmatpush1.bf16.msra.mxu0 %v16941_v19 }
0x247d   :  { %5746 = vmatprep.subr.bf16.mxu0 %v16947_v14 }
0x2480   :  { %5747 = vmatpush1.bf16.msra.mxu0 %v16953_v42 }
0x2481   :  { %5748 = vmatprep.subr.bf16.mxu0 %v16959_v44 }
0x2484   :  { %5749 = vmatpush1.bf16.msra.mxu0 %v16965_v45 }
0x2485   :  { %5750 = vmatprep.subr.bf16.mxu0 %v16971_v4 }
0x2488   :  { %5751 = vmatpush1.bf16.msra.mxu0 %v16977_v53 }
0x2489   :  { %5752 = vmatprep.subr.bf16.mxu0 %v16983_v26 }
0x248c   :  { %5753 = vmatpush1.bf16.msra.mxu0 %v16989_v56 }
0x248d   :  { %5754 = vmatprep.subr.bf16.mxu0 %v16995_v9 }
0x2490   :  { %5755 = vmatpush1.bf16.msra.mxu0 %v17004_v1 }
0x2491   :  { %5756 = vmatprep.subr.bf16.mxu0 %v17011_v47 }
0x2494   :  { %5757 = vmatpush1.bf16.msra.mxu0 %v17015_v2 }
0x2497   :  { %5769 = vmatmul.mubr.bf16.vlgmr.msra.gmra.mrb[160].mxu0 %v16674_v25 }
0x2498   :  { %6056 = vmatprep.mubr.bf16.mxu0 %v20394_v61 }
0x253e   :  { %v5590_v21 = vpop.f32.mrb[156].mxu0 }
0x253f   :  { %v17022_v17 = vadd.f32 %v5590_v21, %v16869_v36  ;;  %v5592_v27 = vpop.f32.mrb[157].mxu0  ;;  %v17112_v21 = vld [vmem:[%s20212_s3 + $0x3d4] ss:$8 sps:$4 sm:$0xff]  }
0x2540   :  { %v17025_v40 = vadd.f32 %v5592_v27, %v16872_v37  ;;  %v5594_v5 = vpop.f32.mrb[158].mxu0  ;;  %v17037_v37 = vld [vmem:[%s20213_s7 + $0x10] sm:$0xf]  ;;  %20536 = vst [vmem:[#allocation5_spill] sm:$0xff] %v17112_v21 }
0x2541   :  { %v5595_v20 = vpop.f32.mrb[159].mxu0  ;;  %v17118_v27 = vld [vmem:[%s20212_s3 + $0x3d0] ss:$8 sps:$4 sm:$0xff]   ;;  %v17124_v5 = vld [vmem:[%s20212_s3 + $0x3e4] ss:$8 sps:$4 sm:$0xff]  }
0x2542   :  { %20537 = vst [vmem:[#allocation6_spill] sm:$0xff] %v17118_v27  ;;  %20538 = vst [vmem:[#allocation7_spill] sm:$0xff] %v17124_v5  ;;  %v17130_v20 = vld [vmem:[%s20212_s3 + $0x3e0] ss:$8 sps:$4 sm:$0xff]  }
0x2543   :  { %20539 = vst [vmem:[#allocation8_spill] sm:$0xff] %v17130_v20 }
0x256a   :  { %v5770_v11 = vpop.f32.mrb[160].mxu0 }
0x256b   :  { %v5779_v31 = vpack.c.bf16 %v5770_v11, %v5770_v11  ;;  %v5772_v48 = vpop.f32.mrb[161].mxu0  ;;  %v17136_v11 = vld [vmem:[%s20212_s3 + $0x3f4] ss:$8 sps:$4 sm:$0xff]  }
0x256c   :  { %v5780_v49 = vpack.c.bf16 %v5772_v48, %v5772_v48  ;;  %v5774_v50 = vpop.f32.mrb[162].mxu0  ;;  %20540 = vst [vmem:[#allocation9_spill] sm:$0xff] %v17136_v11  ;;  %v17148_v48 = vld [vmem:[%s20212_s3 + $0x404] ss:$8 sps:$4 sm:$0xff]  }
0x256d   :  { %v5785_v51 = vsel %vm210_vm2, %v5779_v31, 0  ;;  %v5775_v36 = vpop.f32.mrb[163].mxu0  ;;  %v17142_v31 = vld [vmem:[%s20212_s3 + $0x3f0] ss:$8 sps:$4 sm:$0xff]   ;;  %20542 = vst [vmem:[#allocation11_spill] sm:$0xff] %v17148_v48 }
0x256e   :  { %11971 = vmatprep.subr.msk.bf16.mxu1 %vm210_vm2, %v5780_v49  ;;  %20541 = vst [vmem:[#allocation10_spill] sm:$0xff] %v17142_v31  ;;  %v13696_v49 = vld [vmem:[%s20212_s3 + $0x414] ss:$8 sps:$4 sm:$0x1f]   ;;  %v17157_v50 = vld [vmem:[%s20212_s3 + $0x400] ss:$8 sps:$4 sm:$0xff]  }
0x256f   :  { %5791 = vmatpush1.bf16.msra.mxu1 %v5785_v51  ;;  %20543 = vst [vmem:[#allocation12_spill] sm:$0xff] %v17157_v50  ;;  %v13694_v51 = vld [vmem:[%s20212_s3 + $0x410] ss:$8 sps:$4 sm:$0x1f]   ;;  %v17164_v36 = vand.u32 %v13696_v49, %v20533_v23 }
0x2570   :  { %5970 = vmatprep.subr.bf16.mxu1 %v17030_v59 }
0x2571   :  { %20544 = vst [vmem:[#allocation13_spill] sm:$0xff] %v17164_v36 }
0x2572   :  { %11972 = vmatmul.mubr.msk.bf16.vlgmr.msra.gmra.mrb[160].mxu1 %vm206_vm3, %v17037_v37 }
0x2573   :  { %5971 = vmatpush1.bf16.msra.mxu1 %v17042_v24  ;;  %12017 = vmatprep.mubr.msk.bf16.mxu1 %vm4605_vm6, %v16676_v41 }
0x2574   :  { %5972 = vmatprep.subr.bf16.mxu1 %v17048_v52 }
0x2577   :  { %5973 = vmatpush1.bf16.msra.mxu1 %v17058_v15 }
0x2578   :  { %5974 = vmatprep.subr.bf16.mxu1 %v17064_v43 }
0x257b   :  { %5975 = vmatpush1.bf16.msra.mxu1 %v17070_v34 }
0x257c   :  { %5976 = vmatprep.subr.bf16.mxu1 %v17076_v8 }
0x257f   :  { %5977 = vmatpush1.bf16.msra.mxu1 %v17082_v57 }
0x2580   :  { %5978 = vmatprep.subr.bf16.mxu1 %v17088_v46 }
0x2583   :  { %5979 = vmatpush1.bf16.msra.mxu1 %v17094_v58 }
0x2584   :  { %5980 = vmatprep.subr.bf16.mxu1 %v17100_v54 }
0x2587   :  { %5981 = vmatpush1.bf16.msra.mxu1 %v17106_v22 }
0x2588   :  { %5982 = vmatprep.subr.bf16.mxu1 %v17112_v21 }
0x258b   :  { %5983 = vmatpush1.bf16.msra.mxu1 %v17118_v27 }
0x258c   :  { %5984 = vmatprep.subr.bf16.mxu1 %v17124_v5 }
0x258f   :  { %5985 = vmatpush1.bf16.msra.mxu1 %v17130_v20 }
0x2590   :  { %5986 = vmatprep.subr.bf16.mxu1 %v17136_v11  ;;  %v17168_v11 = vand.u32 %v13694_v51, %v20533_v23 }
0x2592   :  { %20545 = vst [vmem:[#allocation14_spill] sm:$0xff] %v17168_v11 }
0x2593   :  { %5987 = vmatpush1.bf16.msra.mxu1 %v17142_v31 }
0x2594   :  { %5988 = vmatprep.subr.bf16.mxu1 %v17148_v48 }
0x2597   :  { %5989 = vmatpush1.bf16.msra.mxu1 %v17157_v50 }
0x2598   :  { %5990 = vmatprep.subr.bf16.mxu1 %v17164_v36 }
0x259b   :  { %5991 = vmatpush1.bf16.msra.mxu1 %v17168_v11  ;;  %v17183_v11 = vld [vmem:[%s20212_s3 + $0x424] ss:$8 sps:$4 sm:$0xff]  }
0x259c   :  { %20546 = vst [vmem:[#allocation15_spill] sm:$0xff] %v17183_v11 }
0x259e   :  { %6003 = vmatmul.mubr.bf16.vlgmr.msra.gmra.mrb[164].mxu1 %v16674_v25 }
0x259f   :  { %6290 = vmatprep.mubr.bf16.mxu1 %v20394_v61 }
0x2645   :  { %v5824_v31 = vpop.f32.mrb[160].mxu1 }
0x2646   :  { %v17175_v20 = vadd.f32 %v5824_v31, %v17022_v17  ;;  %v5826_v48 = vpop.f32.mrb[161].mxu1  ;;  %v17229_v31 = vld [vmem:[%s20212_s3 + $0x454] ss:$8 sps:$4 sm:$0xff]  }
0x2647   :  { %v17178_v49 = vadd.f32 %v5826_v48, %v17025_v40  ;;  %v5828_v50 = vpop.f32.mrb[162].mxu1  ;;  %v17190_v40 = vld [vmem:[%s20213_s7 + $0x14] sm:$0xf]  ;;  %20553 = vst [vmem:[#allocation22_spill] sm:$0xff] %v17229_v31  ;;  %v17235_v48 = vld [vmem:[%s20212_s3 + $0x450] ss:$8 sps:$4 sm:$0xff]  }
0x2648   :  { %v5829_v5 = vpop.f32.mrb[163].mxu1  ;;  %20547 = vst [vmem:[#allocation16_spill] sm:$0xff] %v17190_v40  ;;  %20554 = vst [vmem:[#allocation23_spill] sm:$0xff] %v17235_v48  ;;  %v17241_v50 = vld [vmem:[%s20212_s3 + $0x464] ss:$8 sps:$4 sm:$0xff]  }
0x2649   :  { %v17223_v5 = vld [vmem:[%s20212_s3 + $0x440] ss:$8 sps:$4 sm:$0xff]   ;;  %20555 = vst [vmem:[#allocation24_spill] sm:$0xff] %v17241_v50 }
0x264a   :  { %20552 = vst [vmem:[#allocation21_spill] sm:$0xff] %v17223_v5 }
0x2671   :  { %v6004_v51 = vpop.f32.mrb[164].mxu1 }
0x2672   :  { %v6013_v27 = vpack.c.bf16 %v6004_v51, %v6004_v51  ;;  %v6006_v21 = vpop.f32.mrb[165].mxu1  ;;  %v17253_v51 = vld [vmem:[%s20212_s3 + $0x474] ss:$8 sps:$4 sm:$0xff]  }
0x2673   :  { %v6014_v36 = vpack.c.bf16 %v6006_v21, %v6006_v21  ;;  %v6008_v22 = vpop.f32.mrb[166].mxu1  ;;  %v17201_v21 = vld [vmem:[%s20212_s3 + $0x434] ss:$8 sps:$4 sm:$0xff]   ;;  %20557 = vst [vmem:[#allocation26_spill] sm:$0xff] %v17253_v51 }
0x2674   :  { %v6019_v54 = vsel %vm210_vm2, %v6013_v27, 0  ;;  %v6009_v17 = vpop.f32.mrb[167].mxu1  ;;  %v17195_v22 = vld [vmem:[%s20212_s3 + $0x420] ss:$8 sps:$4 sm:$0xff]   ;;  %20549 = vst [vmem:[#allocation18_spill] sm:$0xff] %v17201_v21 }
0x2675   :  { %12019 = vmatprep.subr.msk.bf16.mxu0 %vm210_vm2, %v6014_v36  ;;  %20548 = vst [vmem:[#allocation17_spill] sm:$0xff] %v17195_v22  ;;  %v17217_v27 = vld [vmem:[%s20212_s3 + $0x444] ss:$8 sps:$4 sm:$0xff]   ;;  %v17247_v36 = vld [vmem:[%s20212_s3 + $0x460] ss:$8 sps:$4 sm:$0xff]  }
0x2676   :  { %6025 = vmatpush1.bf16.msra.mxu0 %v6019_v54  ;;  %v17211_v54 = vld [vmem:[%s20212_s3 + $0x430] ss:$8 sps:$4 sm:$0xff]   ;;  %20551 = vst [vmem:[#allocation20_spill] sm:$0xff] %v17217_v27  ;;  %20556 = vst [vmem:[#allocation25_spill] sm:$0xff] %v17247_v36 }
0x2677   :  { %6204 = vmatprep.subr.bf16.mxu0 %v17183_v11  ;;  %20550 = vst [vmem:[#allocation19_spill] sm:$0xff] %v17211_v54  ;;  %v17259_v17 = vld [vmem:[%s20212_s3 + $0x470] ss:$8 sps:$4 sm:$0xff]  }
0x2678   :  { %20558 = vst [vmem:[#allocation27_spill] sm:$0xff] %v17259_v17 }
0x2679   :  { %12020 = vmatmul.mubr.msk.bf16.vlgmr.msra.gmra.mrb[164].mxu0 %vm206_vm3, %v17190_v40 }
0x267a   :  { %6205 = vmatpush1.bf16.msra.mxu0 %v17195_v22  ;;  %12065 = vmatprep.mubr.msk.bf16.mxu0 %vm4605_vm6, %v16676_v41 }
0x267b   :  { %6206 = vmatprep.subr.bf16.mxu0 %v17201_v21 }
0x267e   :  { %6207 = vmatpush1.bf16.msra.mxu0 %v17211_v54 }
0x267f   :  { %6208 = vmatprep.subr.bf16.mxu0 %v17217_v27 }
0x2682   :  { %6209 = vmatpush1.bf16.msra.mxu0 %v17223_v5 }
0x2683   :  { %6210 = vmatprep.subr.bf16.mxu0 %v17229_v31 }
0x2686   :  { %6211 = vmatpush1.bf16.msra.mxu0 %v17235_v48  ;;  %v17265_v48 = vld [vmem:[%s20212_s3 + $0x484] ss:$8 sps:$4 sm:$0xff]  }
0x2687   :  { %6212 = vmatprep.subr.bf16.mxu0 %v17241_v50  ;;  %20559 = vst [vmem:[#allocation28_spill] sm:$0xff] %v17265_v48  ;;  %v17271_v50 = vld [vmem:[%s20212_s3 + $0x480] ss:$8 sps:$4 sm:$0xff]  }
0x2688   :  { %20560 = vst [vmem:[#allocation29_spill] sm:$0xff] %v17271_v50 }
0x268a   :  { %6213 = vmatpush1.bf16.msra.mxu0 %v17247_v36  ;;  %v17277_v36 = vld [vmem:[%s20212_s3 + $0x494] ss:$8 sps:$4 sm:$0xff]  }
0x268b   :  { %6214 = vmatprep.subr.bf16.mxu0 %v17253_v51  ;;  %20561 = vst [vmem:[#allocation30_spill] sm:$0xff] %v17277_v36  ;;  %v17283_v51 = vld [vmem:[%s20212_s3 + $0x490] ss:$8 sps:$4 sm:$0xff]  }
0x268c   :  { %20562 = vst [vmem:[#allocation31_spill] sm:$0xff] %v17283_v51 }
0x268e   :  { %6215 = vmatpush1.bf16.msra.mxu0 %v17259_v17  ;;  %v17289_v17 = vld [vmem:[%s20212_s3 + $0x4a4] ss:$8 sps:$4 sm:$0xff]  }
0x268f   :  { %6216 = vmatprep.subr.bf16.mxu0 %v17265_v48  ;;  %20563 = vst [vmem:[#allocation32_spill] sm:$0xff] %v17289_v17  ;;  %v17295_v48 = vld [vmem:[%s20212_s3 + $0x4a0] ss:$8 sps:$4 sm:$0xff]  }
0x2690   :  { %20564 = vst [vmem:[#allocation33_spill] sm:$0xff] %v17295_v48 }
0x2692   :  { %6217 = vmatpush1.bf16.msra.mxu0 %v17271_v50  ;;  %v17301_v50 = vld [vmem:[%s20212_s3 + $0x4b4] ss:$8 sps:$4 sm:$0xff]  }
0x2693   :  { %6218 = vmatprep.subr.bf16.mxu0 %v17277_v36  ;;  %20565 = vst [vmem:[#allocation34_spill] sm:$0xff] %v17301_v50  ;;  %v13729_v36 = vld [vmem:[%s20212_s3 + $0x4c4] ss:$8 sps:$4 sm:$0x1f]  }
0x2694   :  { %v17317_v31 = vand.u32 %v13729_v36, %v20533_v23 }
0x2696   :  { %6219 = vmatpush1.bf16.msra.mxu0 %v17283_v51  ;;  %v17310_v51 = vld [vmem:[%s20212_s3 + $0x4b0] ss:$8 sps:$4 sm:$0xff]   ;;  %20567 = vst [vmem:[#allocation36_spill] sm:$0xff] %v17317_v31 }
0x2697   :  { %6220 = vmatprep.subr.bf16.mxu0 %v17289_v17  ;;  %20566 = vst [vmem:[#allocation35_spill] sm:$0xff] %v17310_v51  ;;  %v13727_v17 = vld [vmem:[%s20212_s3 + $0x4c0] ss:$8 sps:$4 sm:$0x1f]  }
0x2698   :  { %v17321_v5 = vand.u32 %v13727_v17, %v20533_v23 }
0x269a   :  { %6221 = vmatpush1.bf16.msra.mxu0 %v17295_v48  ;;  %20568 = vst [vmem:[#allocation37_spill] sm:$0xff] %v17321_v5 }
0x269b   :  { %6222 = vmatprep.subr.bf16.mxu0 %v17301_v50 }
0x269e   :  { %6223 = vmatpush1.bf16.msra.mxu0 %v17310_v51 }
0x269f   :  { %6224 = vmatprep.subr.bf16.mxu0 %v17317_v31 }
0x26a2   :  { %6225 = vmatpush1.bf16.msra.mxu0 %v17321_v5  ;;  %v17336_v5 = vld [vmem:[%s20212_s3 + $0x4d4] ss:$8 sps:$4 sm:$0xff]  }
0x26a3   :  { %20569 = vst [vmem:[#allocation38_spill] sm:$0xff] %v17336_v5 }
0x26a5   :  { %6237 = vmatmul.mubr.bf16.vlgmr.msra.gmra.mrb[168].mxu0 %v16674_v25 }
0x26a6   :  { %6524 = vmatprep.mubr.bf16.mxu0 %v20394_v61 }
0x274c   :  { %v6058_v48 = vpop.f32.mrb[164].mxu0 }
0x274d   :  { %v17328_v27 = vadd.f32 %v6058_v48, %v17175_v20  ;;  %v6060_v50 = vpop.f32.mrb[165].mxu0  ;;  %v17388_v48 = vld [vmem:[%s20212_s3 + $0x500] ss:$8 sps:$4 sm:$0xff]  }
0x274e   :  { %v17331_v36 = vadd.f32 %v6060_v50, %v17178_v49  ;;  %v6062_v51 = vpop.f32.mrb[166].mxu0  ;;  %v17343_v49 = vld [vmem:[%s20213_s7 + $0x18] sm:$0xf]  ;;  %20577 = vst [vmem:[#allocation46_spill] sm:$0xff] %v17388_v48  ;;  %v17394_v50 = vld [vmem:[%s20212_s3 + $0x514] ss:$8 sps:$4 sm:$0xff]  }
0x274f   :  { %v6063_v54 = vpop.f32.mrb[167].mxu0  ;;  %20570 = vst [vmem:[#allocation39_spill] sm:$0xff] %v17343_v49  ;;  %20578 = vst [vmem:[#allocation47_spill] sm:$0xff] %v17394_v50  ;;  %v17400_v51 = vld [vmem:[%s20212_s3 + $0x510] ss:$8 sps:$4 sm:$0xff]  }
0x2750   :  { %v17376_v54 = vld [vmem:[%s20212_s3 + $0x4f0] ss:$8 sps:$4 sm:$0xff]   ;;  %20579 = vst [vmem:[#allocation48_spill] sm:$0xff] %v17400_v51 }
0x2751   :  { %20575 = vst [vmem:[#allocation44_spill] sm:$0xff] %v17376_v54 }
0x2778   :  { %v6238_v17 = vpop.f32.mrb[168].mxu0 }
0x2779   :  { %v6247_v21 = vpack.c.bf16 %v6238_v17, %v6238_v17  ;;  %v6240_v22 = vpop.f32.mrb[169].mxu0  ;;  %v17406_v17 = vld [vmem:[%s20212_s3 + $0x524] ss:$8 sps:$4 sm:$0xff]  }
0x277a   :  { %v6248_v31 = vpack.c.bf16 %v6240_v22, %v6240_v22  ;;  %v6242_v40 = vpop.f32.mrb[170].mxu0  ;;  %v17354_v22 = vld [vmem:[%s20212_s3 + $0x4e4] ss:$8 sps:$4 sm:$0xff]   ;;  %20580 = vst [vmem:[#allocation49_spill] sm:$0xff] %v17406_v17 }
0x277b   :  { %v6253_v11 = vsel %vm210_vm2, %v6247_v21, 0  ;;  %v6243_v20 = vpop.f32.mrb[171].mxu0  ;;  %v17348_v40 = vld [vmem:[%s20212_s3 + $0x4d0] ss:$8 sps:$4 sm:$0xff]   ;;  %20572 = vst [vmem:[#allocation41_spill] sm:$0xff] %v17354_v22 }
0x277c   :  { %12067 = vmatprep.subr.msk.bf16.mxu1 %vm210_vm2, %v6248_v31  ;;  %20571 = vst [vmem:[#allocation40_spill] sm:$0xff] %v17348_v40  ;;  %v17370_v21 = vld [vmem:[%s20212_s3 + $0x4f4] ss:$8 sps:$4 sm:$0xff]   ;;  %v17382_v31 = vld [vmem:[%s20212_s3 + $0x504] ss:$8 sps:$4 sm:$0xff]  }
0x277d   :  { %6259 = vmatpush1.bf16.msra.mxu1 %v6253_v11  ;;  %v17364_v11 = vld [vmem:[%s20212_s3 + $0x4e0] ss:$8 sps:$4 sm:$0xff]   ;;  %20574 = vst [vmem:[#allocation43_spill] sm:$0xff] %v17370_v21  ;;  %20576 = vst [vmem:[#allocation45_spill] sm:$0xff] %v17382_v31 }
0x277e   :  { %6438 = vmatprep.subr.bf16.mxu1 %v17336_v5  ;;  %20573 = vst [vmem:[#allocation42_spill] sm:$0xff] %v17364_v11  ;;  %v17412_v20 = vld [vmem:[%s20212_s3 + $0x520] ss:$8 sps:$4 sm:$0xff]  }
0x277f   :  { %20581 = vst [vmem:[#allocation50_spill] sm:$0xff] %v17412_v20 }
0x2780   :  { %12068 = vmatmul.mubr.msk.bf16.vlgmr.msra.gmra.mrb[168].mxu1 %vm206_vm3, %v17343_v49 }
0x2781   :  { %6439 = vmatpush1.bf16.msra.mxu1 %v17348_v40  ;;  %12113 = vmatprep.mubr.msk.bf16.mxu1 %vm4605_vm6, %v16676_v41 }
0x2782   :  { %6440 = vmatprep.subr.bf16.mxu1 %v17354_v22 }
0x2785   :  { %6441 = vmatpush1.bf16.msra.mxu1 %v17364_v11 }
0x2786   :  { %6442 = vmatprep.subr.bf16.mxu1 %v17370_v21 }
0x2789   :  { %6443 = vmatpush1.bf16.msra.mxu1 %v17376_v54 }
0x278a   :  { %6444 = vmatprep.subr.bf16.mxu1 %v17382_v31 }
0x278d   :  { %6445 = vmatpush1.bf16.msra.mxu1 %v17388_v48  ;;  %v17418_v48 = vld [vmem:[%s20212_s3 + $0x534] ss:$8 sps:$4 sm:$0xff]  }
0x278e   :  { %6446 = vmatprep.subr.bf16.mxu1 %v17394_v50  ;;  %20582 = vst [vmem:[#allocation51_spill] sm:$0xff] %v17418_v48  ;;  %v17424_v50 = vld [vmem:[%s20212_s3 + $0x530] ss:$8 sps:$4 sm:$0xff]  }
0x278f   :  { %20583 = vst [vmem:[#allocation52_spill] sm:$0xff] %v17424_v50 }
0x2791   :  { %6447 = vmatpush1.bf16.msra.mxu1 %v17400_v51  ;;  %v17430_v51 = vld [vmem:[%s20212_s3 + $0x544] ss:$8 sps:$4 sm:$0xff]  }
0x2792   :  { %6448 = vmatprep.subr.bf16.mxu1 %v17406_v17  ;;  %20584 = vst [vmem:[#allocation53_spill] sm:$0xff] %v17430_v51  ;;  %v17436_v17 = vld [vmem:[%s20212_s3 + $0x540] ss:$8 sps:$4 sm:$0xff]  }
0x2793   :  { %20585 = vst [vmem:[#allocation54_spill] sm:$0xff] %v17436_v17 }
0x2795   :  { %6449 = vmatpush1.bf16.msra.mxu1 %v17412_v20  ;;  %v17442_v20 = vld [vmem:[%s20212_s3 + $0x554] ss:$8 sps:$4 sm:$0xff]  }
0x2796   :  { %6450 = vmatprep.subr.bf16.mxu1 %v17418_v48  ;;  %20586 = vst [vmem:[#allocation55_spill] sm:$0xff] %v17442_v20  ;;  %v17448_v48 = vld [vmem:[%s20212_s3 + $0x550] ss:$8 sps:$4 sm:$0xff]  }
0x2797   :  { %20587 = vst [vmem:[#allocation56_spill] sm:$0xff] %v17448_v48 }
0x2799   :  { %6451 = vmatpush1.bf16.msra.mxu1 %v17424_v50  ;;  %v17454_v50 = vld [vmem:[%s20212_s3 + $0x564] ss:$8 sps:$4 sm:$0xff]  }
0x279a   :  { %6452 = vmatprep.subr.bf16.mxu1 %v17430_v51  ;;  %20588 = vst [vmem:[#allocation57_spill] sm:$0xff] %v17454_v50  ;;  %v13762_v51 = vld [vmem:[%s20212_s3 + $0x574] ss:$8 sps:$4 sm:$0x1f]  }
0x279b   :  { %v17470_v31 = vand.u32 %v13762_v51, %v20533_v23 }
0x279d   :  { %6453 = vmatpush1.bf16.msra.mxu1 %v17436_v17  ;;  %v17463_v17 = vld [vmem:[%s20212_s3 + $0x560] ss:$8 sps:$4 sm:$0xff]   ;;  %20590 = vst [vmem:[#allocation59_spill] sm:$0xff] %v17470_v31 }
0x279e   :  { %6454 = vmatprep.subr.bf16.mxu1 %v17442_v20  ;;  %20589 = vst [vmem:[#allocation58_spill] sm:$0xff] %v17463_v17  ;;  %v13760_v20 = vld [vmem:[%s20212_s3 + $0x570] ss:$8 sps:$4 sm:$0x1f]  }
0x279f   :  { %v17474_v54 = vand.u32 %v13760_v20, %v20533_v23 }
0x27a1   :  { %6455 = vmatpush1.bf16.msra.mxu1 %v17448_v48  ;;  %20591 = vst [vmem:[#allocation60_spill] sm:$0xff] %v17474_v54 }
0x27a2   :  { %6456 = vmatprep.subr.bf16.mxu1 %v17454_v50 }
0x27a5   :  { %6457 = vmatpush1.bf16.msra.mxu1 %v17463_v17 }
0x27a6   :  { %6458 = vmatprep.subr.bf16.mxu1 %v17470_v31 }
0x27a9   :  { %6459 = vmatpush1.bf16.msra.mxu1 %v17474_v54  ;;  %v17489_v54 = vld [vmem:[%s20212_s3 + $0x584] ss:$8 sps:$4 sm:$0xff]  }
0x27ac   :  { %6471 = vmatmul.mubr.bf16.vlgmr.msra.gmra.mrb[172].mxu1 %v16674_v25 }
0x27ad   :  { %6758 = vmatprep.mubr.bf16.mxu1 %v20394_v61 }
0x2853   :  { %v6292_v48 = vpop.f32.mrb[168].mxu1 }
0x2854   :  { %v17481_v21 = vadd.f32 %v6292_v48, %v17328_v27  ;;  %v6294_v50 = vpop.f32.mrb[169].mxu1  ;;  %v17547_v48 = vld [vmem:[%s20212_s3 + $0x5c4] ss:$8 sps:$4 sm:$0xff]  }
0x2855   :  { %v17484_v51 = vadd.f32 %v6294_v50, %v17331_v36  ;;  %v6296_v17 = vpop.f32.mrb[170].mxu1  ;;  %v17496_v36 = vld [vmem:[%s20213_s7 + $0x1c] sm:$0xf]  ;;  %20596 = vst [vmem:[#allocation65_spill] sm:$0xff] %v17547_v48  ;;  %v17553_v50 = vld [vmem:[%s20212_s3 + $0x5c0] ss:$8 sps:$4 sm:$0xff]  }
0x2856   :  { %v6297_v11 = vpop.f32.mrb[171].mxu1  ;;  %20597 = vst [vmem:[#allocation66_spill] sm:$0xff] %v17553_v50  ;;  %v17559_v17 = vld [vmem:[%s20212_s3 + $0x5d4] ss:$8 sps:$4 sm:$0xff]  }
0x2857   :  { %v17529_v11 = vld [vmem:[%s20212_s3 + $0x5a0] ss:$8 sps:$4 sm:$0xff]   ;;  %20598 = vst [vmem:[#allocation67_spill] sm:$0xff] %v17559_v17 }
0x2858   :  { %20593 = vst [vmem:[#allocation62_spill] sm:$0xff] %v17529_v11 }
0x287f   :  { %v6472_v20 = vpop.f32.mrb[172].mxu1 }
0x2880   :  { %v6481_v22 = vpack.c.bf16 %v6472_v20, %v6472_v20  ;;  %v6474_v40 = vpop.f32.mrb[173].mxu1  ;;  %v17565_v20 = vld [vmem:[%s20212_s3 + $0x5d0] ss:$8 sps:$4 sm:$0xff]  }
0x2881   :  { %v6482_v31 = vpack.c.bf16 %v6474_v40, %v6474_v40  ;;  %v6476_v49 = vpop.f32.mrb[174].mxu1  ;;  %v17507_v40 = vld [vmem:[%s20212_s3 + $0x594] ss:$8 sps:$4 sm:$0xff]   ;;  %20599 = vst [vmem:[#allocation68_spill] sm:$0xff] %v17565_v20 }
0x2882   :  { %v6487_v5 = vsel %vm210_vm2, %v6481_v22, 0  ;;  %v6477_v27 = vpop.f32.mrb[175].mxu1  ;;  %v17501_v49 = vld [vmem:[%s20212_s3 + $0x580] ss:$8 sps:$4 sm:$0xff]   ;;  %v17523_v22 = vld [vmem:[%s20212_s3 + $0x5a4] ss:$8 sps:$4 sm:$0xff]  }
0x2883   :  { %12115 = vmatprep.subr.msk.bf16.mxu0 %vm210_vm2, %v6482_v31  ;;  %20592 = vst [vmem:[#allocation61_spill] sm:$0xff] %v17523_v22  ;;  %v17541_v31 = vld [vmem:[%s20212_s3 + $0x5b0] ss:$8 sps:$4 sm:$0xff]   ;;  %v17571_v27 = vld [vmem:[%s20212_s3 + $0x5e4] ss:$8 sps:$4 sm:$0xff]  }
0x2884   :  { %6493 = vmatpush1.bf16.msra.mxu0 %v6487_v5  ;;  %v17517_v5 = vld [vmem:[%s20212_s3 + $0x590] ss:$8 sps:$4 sm:$0xff]   ;;  %20595 = vst [vmem:[#allocation64_spill] sm:$0xff] %v17541_v31  ;;  %20600 = vst [vmem:[#allocation69_spill] sm:$0xff] %v17571_v27 }
0x2885   :  { %6672 = vmatprep.subr.bf16.mxu0 %v17489_v54 }
0x2887   :  { %12116 = vmatmul.mubr.msk.bf16.vlgmr.msra.gmra.mrb[172].mxu0 %vm206_vm3, %v17496_v36 }
0x2888   :  { %6673 = vmatpush1.bf16.msra.mxu0 %v17501_v49  ;;  %12161 = vmatprep.mubr.msk.bf16.mxu0 %vm4605_vm6, %v16676_v41  ;;  %v17535_v41 = vld [vmem:[%s20212_s3 + $0x5b4] ss:$8 sps:$4 sm:$0xff]  }
0x2889   :  { %6674 = vmatprep.subr.bf16.mxu0 %v17507_v40  ;;  %20594 = vst [vmem:[#allocation63_spill] sm:$0xff] %v17535_v41 }
0x288c   :  { %6675 = vmatpush1.bf16.msra.mxu0 %v17517_v5 }
0x288d   :  { %6676 = vmatprep.subr.bf16.mxu0 %v17523_v22 }
0x2890   :  { %6677 = vmatpush1.bf16.msra.mxu0 %v17529_v11 }
0x2891   :  { %6678 = vmatprep.subr.bf16.mxu0 %v17535_v41 }
0x2894   :  { %6679 = vmatpush1.bf16.msra.mxu0 %v17541_v31 }
0x2895   :  { %6680 = vmatprep.subr.bf16.mxu0 %v17547_v48  ;;  %v17577_v48 = vld [vmem:[%s20212_s3 + $0x5e0] ss:$8 sps:$4 sm:$0xff]  }
0x2896   :  { %20601 = vst [vmem:[#allocation70_spill] sm:$0xff] %v17577_v48 }
0x2898   :  { %6681 = vmatpush1.bf16.msra.mxu0 %v17553_v50  ;;  %v17583_v50 = vld [vmem:[%s20212_s3 + $0x5f4] ss:$8 sps:$4 sm:$0xff]  }
0x2899   :  { %6682 = vmatprep.subr.bf16.mxu0 %v17559_v17  ;;  %20602 = vst [vmem:[#allocation71_spill] sm:$0xff] %v17583_v50  ;;  %v17589_v17 = vld [vmem:[%s20212_s3 + $0x5f0] ss:$8 sps:$4 sm:$0xff]  }
0x289a   :  { %20603 = vst [vmem:[#allocation72_spill] sm:$0xff] %v17589_v17 }
0x289c   :  { %6683 = vmatpush1.bf16.msra.mxu0 %v17565_v20  ;;  %v17595_v20 = vld [vmem:[%s20212_s3 + $0x604] ss:$8 sps:$4 sm:$0xff]  }
0x289d   :  { %6684 = vmatprep.subr.bf16.mxu0 %v17571_v27  ;;  %20604 = vst [vmem:[#allocation73_spill] sm:$0xff] %v17595_v20  ;;  %v17601_v27 = vld [vmem:[%s20212_s3 + $0x600] ss:$8 sps:$4 sm:$0xff]  }
0x289e   :  { %20605 = vst [vmem:[#allocation74_spill] sm:$0xff] %v17601_v27 }
0x28a0   :  { %6685 = vmatpush1.bf16.msra.mxu0 %v17577_v48  ;;  %v17607_v48 = vld [vmem:[%s20212_s3 + $0x614] ss:$8 sps:$4 sm:$0xff]  }
0x28a1   :  { %6686 = vmatprep.subr.bf16.mxu0 %v17583_v50  ;;  %20606 = vst [vmem:[#allocation75_spill] sm:$0xff] %v17607_v48  ;;  %v13795_v50 = vld [vmem:[%s20212_s3 + $0x624] ss:$8 sps:$4 sm:$0x1f]  }
0x28a2   :  { %v17623_v31 = vand.u32 %v13795_v50, %v20533_v23  ;;  %v14262_v50 = vld [vmem:[%s20212_s3 + $0xc4] ss:$8 sps:$4 sm:$0xff]  }
0x28a4   :  { %6687 = vmatpush1.bf16.msra.mxu0 %v17589_v17  ;;  %v17616_v17 = vld [vmem:[%s20212_s3 + $0x610] ss:$8 sps:$4 sm:$0xff]   ;;  %20608 = vst [vmem:[#allocation77_spill] sm:$0xff] %v17623_v31 }
0x28a5   :  { %6688 = vmatprep.subr.bf16.mxu0 %v17595_v20  ;;  %20607 = vst [vmem:[#allocation76_spill] sm:$0xff] %v17616_v17  ;;  %v13793_v20 = vld [vmem:[%s20212_s3 + $0x620] ss:$8 sps:$4 sm:$0x1f]  }
0x28a6   :  { %v17627_v41 = vand.u32 %v13793_v20, %v20533_v23  ;;  %v14261_v23 = vld [vmem:[%s20212_s3 + $0xb0] ss:$8 sps:$4 sm:$0xff]  }
0x28a7   :  { %v14265_v20 = vld [vmem:[%s20212_s3 + $0xd0] ss:$8 sps:$4 sm:$0xff]  }
0x28a8   :  { %6689 = vmatpush1.bf16.msra.mxu0 %v17601_v27  ;;  %20609 = vst [vmem:[#allocation78_spill] sm:$0xff] %v17627_v41  ;;  %v14260_v27 = vld [vmem:[%s20212_s3 + $0xb4] ss:$8 sps:$4 sm:$0xff]  }
0x28a9   :  { %6690 = vmatprep.subr.bf16.mxu0 %v17607_v48  ;;  %v17636_v48 = vpack.c.bf16 %v16672_v6, %v16672_v6  ;;  %v14263_v6 = vld [vmem:[%s20212_s3 + $0xc0] ss:$8 sps:$4 sm:$0xff]  }
0x28ac   :  { %6691 = vmatpush1.bf16.msra.mxu0 %v17616_v17 }
0x28ad   :  { %6692 = vmatprep.subr.bf16.mxu0 %v17623_v31 }
0x28b0   :  { %6693 = vmatpush1.bf16.msra.mxu0 %v17627_v41 }
0x28b1   :  { %6824 = vmatprep.subr.bf16.mxu0 %v14260_v27  ;;  %v14266_v27 = vld [vmem:[%s20212_s3 + $0xe4] ss:$8 sps:$4 sm:$0xff]  }
0x28b3   :  { %6705 = vmatmul.mubr.bf16.vlgmr.msra.gmra.mrb[176].mxu0 %v16674_v25  ;;  %v14264_v25 = vld [vmem:[%s20212_s3 + $0xd4] ss:$8 sps:$4 sm:$0xff]  }
0x28b4   :  { %6825 = vmatpush1.bf16.msra.mxu0 %v14261_v23  ;;  %12166 = vmatprep.mubr.msk.bf16.mxu0 %vm4605_vm6, %v17636_v48  ;;  %v14267_v23 = vld [vmem:[%s20212_s3 + $0xe0] ss:$8 sps:$4 sm:$0xff]  }
0x28b5   :  { %6826 = vmatprep.subr.bf16.mxu0 %v14262_v50  ;;  %v14268_v50 = vld [vmem:[%s20212_s3 + $0xf4] ss:$8 sps:$4 sm:$0xff]  }
0x28b8   :  { %6827 = vmatpush1.bf16.msra.mxu0 %v14263_v6  ;;  %v14269_v6 = vld [vmem:[%s20212_s3 + $0xf0] ss:$8 sps:$4 sm:$0xff]  }
0x28b9   :  { %6828 = vmatprep.subr.bf16.mxu0 %v14264_v25  ;;  %v14270_v25 = vld [vmem:[%s20212_s3 + $0x104] ss:$8 sps:$4 sm:$0xff]  }
0x28bc   :  { %6829 = vmatpush1.bf16.msra.mxu0 %v14265_v20  ;;  %v14271_v20 = vld [vmem:[%s20212_s3 + $0x100] ss:$8 sps:$4 sm:$0xff]  }
0x28bd   :  { %6830 = vmatprep.subr.bf16.mxu0 %v14266_v27  ;;  %v14272_v27 = vld [vmem:[%s20212_s3 + $0x114] ss:$8 sps:$4 sm:$0xff]  }
0x28c0   :  { %6831 = vmatpush1.bf16.msra.mxu0 %v14267_v23  ;;  %v14273_v23 = vld [vmem:[%s20212_s3 + $0x110] ss:$8 sps:$4 sm:$0xff]  }
0x28c1   :  { %6832 = vmatprep.subr.bf16.mxu0 %v14268_v50  ;;  %v14274_v50 = vld [vmem:[%s20212_s3 + $0x124] ss:$8 sps:$4 sm:$0xff]  }
0x28c4   :  { %6833 = vmatpush1.bf16.msra.mxu0 %v14269_v6  ;;  %v14275_v6 = vld [vmem:[%s20212_s3 + $0x120] ss:$8 sps:$4 sm:$0xff]  }
0x28c5   :  { %6834 = vmatprep.subr.bf16.mxu0 %v14270_v25  ;;  %v14276_v25 = vld [vmem:[%s20212_s3 + $0x134] ss:$8 sps:$4 sm:$0xff]  }
0x28c8   :  { %6835 = vmatpush1.bf16.msra.mxu0 %v14271_v20  ;;  %v14277_v20 = vld [vmem:[%s20212_s3 + $0x130] ss:$8 sps:$4 sm:$0xff]  }
0x28c9   :  { %6836 = vmatprep.subr.bf16.mxu0 %v14272_v27  ;;  %v14278_v27 = vld [vmem:[%s20212_s3 + $0x144] ss:$8 sps:$4 sm:$0xff]  }
0x28cc   :  { %6837 = vmatpush1.bf16.msra.mxu0 %v14273_v23  ;;  %v14279_v23 = vld [vmem:[%s20212_s3 + $0x140] ss:$8 sps:$4 sm:$0xff]  }
0x28cd   :  { %6838 = vmatprep.subr.bf16.mxu0 %v14274_v50  ;;  %v17702_v50 = vpack.c.bf16 %v16670_v0, %v16670_v0 }
0x28d0   :  { %6839 = vmatpush1.bf16.msra.mxu0 %v14275_v6 }
0x28d1   :  { %6840 = vmatprep.subr.bf16.mxu0 %v14276_v25 }
0x28d4   :  { %6841 = vmatpush1.bf16.msra.mxu0 %v14277_v20 }
0x28d5   :  { %6842 = vmatprep.subr.bf16.mxu0 %v14278_v27 }
0x28d8   :  { %6843 = vmatpush1.bf16.msra.mxu0 %v14279_v23 }
0x28d9   :  { %6844 = vmatprep.subr.bf16.mxu0 %v16651_v10 }
0x28dc   :  { %6845 = vmatpush1.bf16.msra.mxu0 %v16657_v12 }
0x28df   :  { %6857 = vmatmul.mubr.bf16.vlgmr.msra.gmra.mrb[180].mxu0 %v17702_v50 }
0x28e0   :  { %7042 = vmatprep.mubr.bf16.mxu0 %v20394_v61 }
0x295a   :  { %v6526_v6 = vpop.f32.mrb[172].mxu0 }
0x295b   :  { %v17707_v25 = vadd.f32 %v6526_v6, %v17481_v21  ;;  %v6528_v20 = vpop.f32.mrb[173].mxu0  ;;  %v17717_v21 = vld [vmem:[%s20213_s7 + $0x20] sm:$0xf]  ;;  %v14286_v6 = vld [vmem:[%s20212_s3 + $0x34] ss:$8 sps:$4 sm:$0xff]  }
0x295c   :  { %v17710_v27 = vadd.f32 %v6528_v20, %v17484_v51  ;;  %v6530_v23 = vpop.f32.mrb[174].mxu0  ;;  %v14280_v51 = vld [vmem:[%s20212_s3 + $0x4] ss:$8 sps:$4 sm:$0xff]   ;;  %v14287_v20 = vld [vmem:[%s20212_s3 + $0x30] ss:$8 sps:$4 sm:$0xff]  }
0x295d   :  { %v6531_v10 = vpop.f32.mrb[175].mxu0  ;;  %v14288_v23 = vld [vmem:[%s20212_s3 + $0x44] ss:$8 sps:$4 sm:$0xff]  }
0x295e   :  { %v14289_v10 = vld [vmem:[%s20212_s3 + $0x40] ss:$8 sps:$4 sm:$0xff]  }
0x2986   :  { %v6706_v41 = vpop.f32.mrb[176].mxu0 }
0x2987   :  { %v6715_v12 = vpack.c.bf16 %v6706_v41, %v6706_v41  ;;  %v6708_v31 = vpop.f32.mrb[177].mxu0  ;;  %v14283_v41 = vld [vmem:[%s20212_s3 + $0x10] ss:$8 sps:$4 sm:$0xff]  }
0x2988   :  { %v6716_v17 = vpack.c.bf16 %v6708_v31, %v6708_v31  ;;  %v6710_v0 = vpop.f32.mrb[178].mxu0  ;;  %v14284_v31 = vld [vmem:[%s20212_s3 + $0x24] ss:$8 sps:$4 sm:$0xff]  }
0x2989   :  { %v6721_v11 = vsel %vm210_vm2, %v6715_v12, 0  ;;  %v6711_v22 = vpop.f32.mrb[179].mxu0  ;;  %v14290_v12 = vld [vmem:[%s20212_s3 + $0x54] ss:$8 sps:$4 sm:$0xff]   ;;  %v14291_v0 = vld [vmem:[%s20212_s3 + $0x50] ss:$8 sps:$4 sm:$0xff]  }
0x298a   :  { %12163 = vmatprep.subr.msk.bf16.mxu1 %vm210_vm2, %v6716_v17  ;;  %v14281_v22 = vld [vmem:[%s20212_s3] ss:$8 sps:$4 sm:$0xff]  }
0x298b   :  { %6727 = vmatpush1.bf16.msra.mxu1 %v6721_v11  ;;  %v14282_v11 = vld [vmem:[%s20212_s3 + $0x14] ss:$8 sps:$4 sm:$0xff]   ;;  %v14285_v17 = vld [vmem:[%s20212_s3 + $0x20] ss:$8 sps:$4 sm:$0xff]  }
0x298c   :  { %6781 = vmatprep.subr.bf16.mxu1 %v14280_v51  ;;  %v14292_v51 = vld [vmem:[%s20212_s3 + $0x64] ss:$8 sps:$4 sm:$0xff]  }
0x298e   :  { %12164 = vmatmul.mubr.msk.bf16.vlgmr.msra.gmra.mrb[176].mxu1 %vm206_vm3, %v17717_v21 }
0x298f   :  { %6782 = vmatpush1.bf16.msra.mxu1 %v14281_v22  ;;  %12165 = vmatprep.mubr.msk.bf16.mxu1 %vm4605_vm6, %v17636_v48  ;;  %v14293_v22 = vld [vmem:[%s20212_s3 + $0x60] ss:$8 sps:$4 sm:$0xff]  }
0x2990   :  { %6783 = vmatprep.subr.bf16.mxu1 %v14282_v11  ;;  %v14294_v11 = vld [vmem:[%s20212_s3 + $0x74] ss:$8 sps:$4 sm:$0xff]  }
0x2993   :  { %6784 = vmatpush1.bf16.msra.mxu1 %v14283_v41  ;;  %v14295_v41 = vld [vmem:[%s20212_s3 + $0x70] ss:$8 sps:$4 sm:$0xff]  }
0x2994   :  { %6785 = vmatprep.subr.bf16.mxu1 %v14284_v31  ;;  %v14296_v31 = vld [vmem:[%s20212_s3 + $0x84] ss:$8 sps:$4 sm:$0xff]  }
0x2997   :  { %6786 = vmatpush1.bf16.msra.mxu1 %v14285_v17  ;;  %v14297_v17 = vld [vmem:[%s20212_s3 + $0x80] ss:$8 sps:$4 sm:$0xff]  }
0x2998   :  { %6787 = vmatprep.subr.bf16.mxu1 %v14286_v6  ;;  %v14298_v6 = vld [vmem:[%s20212_s3 + $0x94] ss:$8 sps:$4 sm:$0xff]  }
0x299b   :  { %6788 = vmatpush1.bf16.msra.mxu1 %v14287_v20 }
0x299c   :  { %6789 = vmatprep.subr.bf16.mxu1 %v14288_v23  ;;  %v14299_v23 = vld [vmem:[%s20212_s3 + $0x90] ss:$8 sps:$4 sm:$0xff]  }
0x299f   :  { %6790 = vmatpush1.bf16.msra.mxu1 %v14289_v10 }
0x29a0   :  { %6791 = vmatprep.subr.bf16.mxu1 %v14290_v12 }
0x29a3   :  { %6792 = vmatpush1.bf16.msra.mxu1 %v14291_v0 }
0x29a4   :  { %6793 = vmatprep.subr.bf16.mxu1 %v14292_v51 }
0x29a7   :  { %6794 = vmatpush1.bf16.msra.mxu1 %v14293_v22 }
0x29a8   :  { %6795 = vmatprep.subr.bf16.mxu1 %v14294_v11 }
0x29ab   :  { %6796 = vmatpush1.bf16.msra.mxu1 %v14295_v41  ;;  %v14300_v41 = vld [vmem:[%s20213_s7 + $0x4] sm:$0xf] }
0x29ac   :  { %6797 = vmatprep.subr.bf16.mxu1 %v14296_v31 }
0x29af   :  { %6798 = vmatpush1.bf16.msra.mxu1 %v14297_v17  ;;  %v17795_v17 = vpop.permute.xlu0 %6771 }
0x29b0   :  { %6799 = vmatprep.subr.bf16.mxu1 %v14298_v6 }
0x29b2   :  { %v6858_v20 = vpop.f32.mrb[180].mxu0 }
0x29b3   :  { %6800 = vmatpush1.bf16.msra.mxu1 %v14299_v23  ;;  %v6860_v10 = vpop.f32.mrb[181].mxu0  ;;  %v6865_v51 = vpack.c.bf16 %v6858_v20, %v6858_v20 }
0x29b4   :  { %v6862_v12 = vpop.f32.mrb[182].mxu0  ;;  %6801 = vmatprep.subr.bf16.mxu1 %v16648_v28  ;;  %v6866_v22 = vpack.c.bf16 %v6860_v10, %v6860_v10 }
0x29b5   :  { %v6863_v0 = vpop.f32.mrb[183].mxu0  ;;  %v6868_v11 = vsel %vm210_vm2, %v6865_v51, 0 }
0x29b7   :  { %6802 = vmatpush1.bf16.msra.mxu1 %v16654_v29 }
0x29b8   :  { %12167 = vmatprep.subr.msk.bf16.mxu1 %vm210_vm2, %v6866_v22 }
0x29ba   :  { %6814 = vmatmul.mubr.bf16.vlgmr.msra.gmra.mrb[180].mxu1 %v17702_v50 }
0x29bb   :  { %6874 = vmatpush1.bf16.msra.mxu1 %v6868_v11  ;;  %6905 = vmatprep.mubr.bf16.mxu1 %v20394_v61 }
0x29c2   :  { %12168 = vmatmul.mubr.msk.bf16.vlgmr.msra.gmra.mrb[184].mxu1 %vm206_vm3, %v14300_v41 }
0x29c3   :  { %6952 = vmatprep.mubr.bf16.mxu1 %v20394_v61 }
0x2a61   :  { %v6760_v28 = vpop.f32.mrb[176].mxu1 }
0x2a62   :  { %v6767_v29 = vadd.f32 %v6760_v28, %v17707_v25  ;;  %v6762_v31 = vpop.f32.mrb[177].mxu1 }
0x2a63   :  { %v6768_v6 = vadd.f32 %v6762_v31, %v17710_v27  ;;  %v6764_v20 = vpop.f32.mrb[178].mxu1 }
0x2a64   :  { %v6774_v23 = vadd.f32 %v17795_v17, %v6767_v29  ;;  %v6765_v10 = vpop.f32.mrb[179].mxu1 }
0x2a65   :  { %v6775_v12 = vadd.f32 %v17795_v17, %v6768_v6  ;;  %v14301_v10 = vld [vmem:[%s20212_s3 + $0x164] ss:$8 sps:$4 sm:$0xff]  }
0x2a66   :  { %v17800_v0 = vmax.f32 %v6774_v23, 0.0 }
0x2a67   :  { %v17802_v51 = vmax.f32 %v6775_v12, 0.0  ;;  %v14302_v12 = vld [vmem:[%s20213_s7] sm:$0xf] }
0x2a68   :  { %v7612_v25 = vmul.f32 %v17800_v0, %v17800_v0 }
0x2a69   :  { %20610 = vst [vmem:[#allocation79_spill] sm:$0xff] %v17802_v51  ;;  %v7609_v22 = vadd.f32 %v17802_v51, %v17800_v0  ;;  %v7613_v11 = vmul.f32 %v17802_v51, %v17802_v51 }
0x2a6b   :  { %7610 = vadd.xlane.f32.xlu1 %v7609_v22  ;;  %v7614_v27 = vadd.f32 %v7613_v11, %v7612_v25  ;;  %v14303_v25 = vld [vmem:[%s20212_s3 + $0x160] ss:$8 sps:$4 sm:$0xff]  }
0x2a6f   :  { %7615 = vadd.xlane.f32.xlu1 %v7614_v27  ;;  %v14304_v27 = vld [vmem:[%s20212_s3 + $0x174] ss:$8 sps:$4 sm:$0xff]  }
0x2a8d   :  { %v6815_v41 = vpop.f32.mrb[180].mxu1 }
0x2a8e   :  { %v6822_v28 = vpack.c.bf16 %v6815_v41, %v6815_v41  ;;  %v6817_v29 = vpop.f32.mrb[181].mxu1 }
0x2a8f   :  { %v6823_v31 = vpack.c.bf16 %v6817_v29, %v6817_v29  ;;  %v6819_v6 = vpop.f32.mrb[182].mxu1  ;;  %v14305_v29 = vld [vmem:[%s20212_s3 + $0x170] ss:$8 sps:$4 sm:$0xff]  }
0x2a90   :  { %v6915_v20 = vsel %vm210_vm2, %v6822_v28, 0  ;;  %v6820_v23 = vpop.f32.mrb[183].mxu1  ;;  %v14307_v6 = vld [vmem:[%s20212_s3 + $0x180] ss:$8 sps:$4 sm:$0xff]  }
0x2a91   :  { %12169 = vmatprep.subr.msk.bf16.mxu1 %vm210_vm2, %v6823_v31  ;;  %v14306_v31 = vld [vmem:[%s20212_s3 + $0x184] ss:$8 sps:$4 sm:$0xff]   ;;  %v14309_v23 = vld [vmem:[%s20212_s3 + $0x190] ss:$8 sps:$4 sm:$0xff]  }
0x2a92   :  { %6921 = vmatpush1.bf16.msra.mxu1 %v6915_v20  ;;  %v14308_v20 = vld [vmem:[%s20212_s3 + $0x194] ss:$8 sps:$4 sm:$0xff]  }
0x2a93   :  { %6961 = vmatprep.subr.bf16.mxu1 %v14301_v10  ;;  %v14310_v10 = vld [vmem:[%s20212_s3 + $0x1a4] ss:$8 sps:$4 sm:$0xff]  }
0x2a95   :  { %12170 = vmatmul.mubr.msk.bf16.vlgmr.msra.gmra.mrb[188].mxu1 %vm206_vm3, %v14302_v12  ;;  %v6907_v22 = vpop.f32.mrb[184].mxu1  ;;  %v14311_v12 = vld [vmem:[%s20212_s3 + $0x1a0] ss:$8 sps:$4 sm:$0xff]  }
0x2a96   :  { %6962 = vmatpush1.bf16.msra.mxu1 %v14303_v25  ;;  %12171 = vmatprep.mubr.msk.bf16.mxu1 %vm4605_vm6, %v17636_v48  ;;  %v6909_v11 = vpop.f32.mrb[185].mxu1  ;;  %v14312_v25 = vld [vmem:[%s20212_s3 + $0x1b4] ss:$8 sps:$4 sm:$0xff]  }
0x2a97   :  { %6963 = vmatprep.subr.bf16.mxu1 %v14304_v27  ;;  %v6911_v41 = vpop.f32.mrb[186].mxu1  ;;  %v14313_v27 = vld [vmem:[%s20212_s3 + $0x1b0] ss:$8 sps:$4 sm:$0xff]  }
0x2a98   :  { %v6912_v28 = vpop.f32.mrb[187].mxu1  ;;  %v14314_v41 = vld [vmem:[%s20212_s3 + $0x1c4] ss:$8 sps:$4 sm:$0xff]  }
0x2a99   :  { %v14315_v28 = vld [vmem:[%s20212_s3 + $0x1c0] ss:$8 sps:$4 sm:$0xff]  }
0x2a9a   :  { %6964 = vmatpush1.bf16.msra.mxu1 %v14305_v29  ;;  %v14316_v29 = vld [vmem:[%s20212_s3 + $0x1d4] ss:$8 sps:$4 sm:$0xff]  }
0x2a9b   :  { %6965 = vmatprep.subr.bf16.mxu1 %v14306_v31  ;;  %v14317_v31 = vld [vmem:[%s20212_s3 + $0x1d0] ss:$8 sps:$4 sm:$0xff]  }
0x2a9e   :  { %6966 = vmatpush1.bf16.msra.mxu1 %v14307_v6  ;;  %v14318_v6 = vld [vmem:[%s20212_s3 + $0x1e4] ss:$8 sps:$4 sm:$0xff]  }
0x2a9f   :  { %6967 = vmatprep.subr.bf16.mxu1 %v14308_v20  ;;  %v14319_v20 = vld [vmem:[%s20212_s3 + $0x1e0] ss:$8 sps:$4 sm:$0xff]  }
0x2aa2   :  { %6968 = vmatpush1.bf16.msra.mxu1 %v14309_v23  ;;  %v14320_v23 = vld [vmem:[%s20212_s3 + $0x1f4] ss:$8 sps:$4 sm:$0xff]  }
0x2aa3   :  { %6969 = vmatprep.subr.bf16.mxu1 %v14310_v10  ;;  %v14321_v10 = vld [vmem:[%s20212_s3 + $0x1f0] ss:$8 sps:$4 sm:$0xff]  }
0x2aa6   :  { %6970 = vmatpush1.bf16.msra.mxu1 %v14311_v12 }
0x2aa7   :  { %6971 = vmatprep.subr.bf16.mxu1 %v14312_v25 }
0x2aaa   :  { %6972 = vmatpush1.bf16.msra.mxu1 %v14313_v27 }
0x2aab   :  { %6973 = vmatprep.subr.bf16.mxu1 %v14314_v41 }
0x2aae   :  { %6974 = vmatpush1.bf16.msra.mxu1 %v14315_v28 }
0x2aaf   :  { %6975 = vmatprep.subr.bf16.mxu1 %v14316_v29 }
0x2ab2   :  { %6976 = vmatpush1.bf16.msra.mxu1 %v14317_v31 }
0x2ab3   :  { %6977 = vmatprep.subr.bf16.mxu1 %v14318_v6 }
0x2ab6   :  { %6978 = vmatpush1.bf16.msra.mxu1 %v14319_v20 }
0x2ab7   :  { %6979 = vmatprep.subr.bf16.mxu1 %v14320_v23 }
0x2aba   :  { %6980 = vmatpush1.bf16.msra.mxu1 %v14321_v10 }
0x2abb   :  { %6981 = vmatprep.subr.bf16.mxu1 %v16768_v62 }
0x2abe   :  { %6982 = vmatpush1.bf16.msra.mxu1 %v16771_v39  ;;  %v14322_v39 = vld [vmem:[%s20212_s3 + $0x214] ss:$8 sps:$4 sm:$0xff]  }
0x2ac1   :  { %6994 = vmatmul.mubr.bf16.vlgmr.msra.gmra.mrb[192].mxu1 %v17702_v50 }
0x2ac2   :  { %7134 = vmatprep.mubr.bf16.mxu1 %v20394_v61 }
0x2b68   :  { %v6954_v12 = vpop.f32.mrb[188].mxu1 }
0x2b69   :  { %v6955_v25 = vadd.f32 %v6954_v12, %v6907_v22  ;;  %v6956_v27 = vpop.f32.mrb[189].mxu1  ;;  %v14323_v22 = vld [vmem:[%s20213_s7 + $0x8] sm:$0xf] }
0x2b6a   :  { %v6957_v41 = vadd.f32 %v6956_v27, %v6909_v11  ;;  %v6958_v28 = vpop.f32.mrb[190].mxu1  ;;  %v14325_v11 = vld [vmem:[%s20212_s3 + $0x224] ss:$8 sps:$4 sm:$0xff]   ;;  %v14326_v12 = vld [vmem:[%s20212_s3 + $0x220] ss:$8 sps:$4 sm:$0xff]  }
0x2b6b   :  { %v6959_v29 = vpop.f32.mrb[191].mxu1  ;;  %v14327_v27 = vld [vmem:[%s20212_s3 + $0x234] ss:$8 sps:$4 sm:$0xff]   ;;  %v14328_v28 = vld [vmem:[%s20212_s3 + $0x230] ss:$8 sps:$4 sm:$0xff]  }
0x2b6c   :  { %v14329_v29 = vld [vmem:[%s20212_s3 + $0x244] ss:$8 sps:$4 sm:$0xff]  }
0x2b94   :  { %v6995_v31 = vpop.f32.mrb[192].mxu1 }
0x2b95   :  { %v7002_v6 = vpack.c.bf16 %v6995_v31, %v6995_v31  ;;  %v6997_v20 = vpop.f32.mrb[193].mxu1  ;;  %v14330_v31 = vld [vmem:[%s20212_s3 + $0x240] ss:$8 sps:$4 sm:$0xff]  }
0x2b96   :  { %v7003_v23 = vpack.c.bf16 %v6997_v20, %v6997_v20  ;;  %v6999_v51 = vpop.f32.mrb[194].mxu1  ;;  %v14332_v20 = vld [vmem:[%s20212_s3 + $0x250] ss:$8 sps:$4 sm:$0xff]  }
0x2b97   :  { %v7005_v10 = vsel %vm210_vm2, %v7002_v6, 0  ;;  %v7000_v62 = vpop.f32.mrb[195].mxu1  ;;  %v14324_v51 = vld [vmem:[%s20212_s3 + $0x210] ss:$8 sps:$4 sm:$0xff]   ;;  %v14331_v6 = vld [vmem:[%s20212_s3 + $0x254] ss:$8 sps:$4 sm:$0xff]  }
0x2b98   :  { %12172 = vmatprep.subr.msk.bf16.mxu0 %vm210_vm2, %v7003_v23  ;;  %v14333_v23 = vld [vmem:[%s20212_s3 + $0x264] ss:$8 sps:$4 sm:$0xff]   ;;  %v14335_v62 = vld [vmem:[%s20212_s3 + $0x274] ss:$8 sps:$4 sm:$0xff]  }
0x2b99   :  { %7011 = vmatpush1.bf16.msra.mxu0 %v7005_v10  ;;  %v14334_v10 = vld [vmem:[%s20212_s3 + $0x260] ss:$8 sps:$4 sm:$0xff]  }
0x2b9a   :  { %7053 = vmatprep.subr.bf16.mxu0 %v14322_v39  ;;  %v14336_v39 = vld [vmem:[%s20212_s3 + $0x270] ss:$8 sps:$4 sm:$0xff]  }
0x2b9c   :  { %12173 = vmatmul.mubr.msk.bf16.vlgmr.msra.gmra.mrb[184].mxu0 %vm206_vm3, %v14323_v22  ;;  %v14337_v22 = vld [vmem:[%s20212_s3 + $0x284] ss:$8 sps:$4 sm:$0xff]  }
0x2b9d   :  { %7054 = vmatpush1.bf16.msra.mxu0 %v14324_v51  ;;  %12174 = vmatprep.mubr.msk.bf16.mxu0 %vm4605_vm6, %v17636_v48  ;;  %v14338_v51 = vld [vmem:[%s20212_s3 + $0x280] ss:$8 sps:$4 sm:$0xff]  }
0x2b9e   :  { %7055 = vmatprep.subr.bf16.mxu0 %v14325_v11  ;;  %v14339_v11 = vld [vmem:[%s20212_s3 + $0x294] ss:$8 sps:$4 sm:$0xff]  }
0x2ba1   :  { %7056 = vmatpush1.bf16.msra.mxu0 %v14326_v12  ;;  %v14340_v12 = vld [vmem:[%s20212_s3 + $0x290] ss:$8 sps:$4 sm:$0xff]  }
0x2ba2   :  { %7057 = vmatprep.subr.bf16.mxu0 %v14327_v27  ;;  %v14341_v27 = vld [vmem:[%s20212_s3 + $0x2a4] ss:$8 sps:$4 sm:$0xff]  }
0x2ba5   :  { %7058 = vmatpush1.bf16.msra.mxu0 %v14328_v28 }
0x2ba6   :  { %7059 = vmatprep.subr.bf16.mxu0 %v14329_v29 }
0x2ba9   :  { %7060 = vmatpush1.bf16.msra.mxu0 %v14330_v31 }
0x2baa   :  { %7061 = vmatprep.subr.bf16.mxu0 %v14331_v6 }
0x2bad   :  { %7062 = vmatpush1.bf16.msra.mxu0 %v14332_v20 }
0x2bae   :  { %7063 = vmatprep.subr.bf16.mxu0 %v14333_v23 }
0x2bb1   :  { %7064 = vmatpush1.bf16.msra.mxu0 %v14334_v10 }
0x2bb2   :  { %7065 = vmatprep.subr.bf16.mxu0 %v14335_v62 }
0x2bb5   :  { %7066 = vmatpush1.bf16.msra.mxu0 %v14336_v39 }
0x2bb6   :  { %7067 = vmatprep.subr.bf16.mxu0 %v14337_v22 }
0x2bb9   :  { %7068 = vmatpush1.bf16.msra.mxu0 %v14338_v51 }
0x2bba   :  { %7069 = vmatprep.subr.bf16.mxu0 %v14339_v11 }
0x2bbd   :  { %7070 = vmatpush1.bf16.msra.mxu0 %v14340_v12  ;;  %v20623_v12 = vld [vmem:[#allocation15_spill] sm:$0xff] }
0x2bbe   :  { %7071 = vmatprep.subr.bf16.mxu0 %v14341_v27  ;;  %v20624_v27 = vld [vmem:[#allocation16_spill] sm:$0xff] }
0x2bc1   :  { %7072 = vmatpush1.bf16.msra.mxu0 %v16852_v33 }
0x2bc2   :  { %7073 = vmatprep.subr.bf16.mxu0 %v16858_v32 }
0x2bc5   :  { %7074 = vmatpush1.bf16.msra.mxu0 %v16862_v35 }
0x2bc8   :  { %7086 = vmatmul.mubr.bf16.vlgmr.msra.gmra.mrb[188].mxu0 %v17702_v50 }
0x2bc9   :  { %7226 = vmatprep.mubr.bf16.mxu0 %v20394_v61 }
0x2c6f   :  { %v7044_v28 = vpop.f32.mrb[184].mxu0 }
0x2c70   :  { %v7051_v29 = vadd.f32 %v7044_v28, %v6955_v25  ;;  %v7046_v31 = vpop.f32.mrb[185].mxu0  ;;  %v20625_v28 = vld [vmem:[#allocation17_spill] sm:$0xff] }
0x2c71   :  { %v7052_v6 = vadd.f32 %v7046_v31, %v6957_v41  ;;  %v7048_v20 = vpop.f32.mrb[186].mxu0  ;;  %v20627_v31 = vld [vmem:[#allocation19_spill] sm:$0xff] }
0x2c72   :  { %v7049_v23 = vpop.f32.mrb[187].mxu0  ;;  %v20629_v20 = vld [vmem:[#allocation21_spill] sm:$0xff] }
0x2c73   :  { %v20630_v23 = vld [vmem:[#allocation22_spill] sm:$0xff] }
0x2c9b   :  { %v7087_v10 = vpop.f32.mrb[188].mxu0 }
0x2c9c   :  { %v7094_v62 = vpack.c.bf16 %v7087_v10, %v7087_v10  ;;  %v7089_v39 = vpop.f32.mrb[189].mxu0  ;;  %v20631_v10 = vld [vmem:[#allocation23_spill] sm:$0xff] }
0x2c9d   :  { %v7095_v22 = vpack.c.bf16 %v7089_v39, %v7089_v39  ;;  %v7091_v51 = vpop.f32.mrb[190].mxu0  ;;  %v20633_v39 = vld [vmem:[#allocation25_spill] sm:$0xff] }
0x2c9e   :  { %v7097_v33 = vsel %vm210_vm2, %v7094_v62, 0  ;;  %v7092_v32 = vpop.f32.mrb[191].mxu0  ;;  %v20632_v62 = vld [vmem:[#allocation24_spill] sm:$0xff]  ;;  %v20635_v51 = vld [vmem:[#allocation27_spill] sm:$0xff] }
0x2c9f   :  { %12175 = vmatprep.subr.msk.bf16.mxu1 %vm210_vm2, %v7095_v22  ;;  %v20634_v22 = vld [vmem:[#allocation26_spill] sm:$0xff]  ;;  %v20637_v32 = vld [vmem:[#allocation29_spill] sm:$0xff] }
0x2ca0   :  { %7103 = vmatpush1.bf16.msra.mxu1 %v7097_v33  ;;  %v20636_v33 = vld [vmem:[#allocation28_spill] sm:$0xff] }
0x2ca1   :  { %7145 = vmatprep.subr.bf16.mxu1 %v16877_v60 }
0x2ca3   :  { %12176 = vmatmul.mubr.msk.bf16.vlgmr.msra.gmra.mrb[196].mxu1 %vm206_vm3, %v16884_v63 }
0x2ca4   :  { %7146 = vmatpush1.bf16.msra.mxu1 %v16889_v13  ;;  %12177 = vmatprep.mubr.msk.bf16.mxu1 %vm4605_vm6, %v17636_v48 }
0x2ca5   :  { %7147 = vmatprep.subr.bf16.mxu1 %v16895_v30 }
0x2ca8   :  { %7148 = vmatpush1.bf16.msra.mxu1 %v16905_v16 }
0x2ca9   :  { %7149 = vmatprep.subr.bf16.mxu1 %v16911_v38 }
0x2cac   :  { %7150 = vmatpush1.bf16.msra.mxu1 %v16917_v18 }
0x2cad   :  { %7151 = vmatprep.subr.bf16.mxu1 %v16923_v3 }
0x2cb0   :  { %7152 = vmatpush1.bf16.msra.mxu1 %v16929_v7 }
0x2cb1   :  { %7153 = vmatprep.subr.bf16.mxu1 %v16935_v55 }
0x2cb4   :  { %7154 = vmatpush1.bf16.msra.mxu1 %v16941_v19 }
0x2cb5   :  { %7155 = vmatprep.subr.bf16.mxu1 %v16947_v14 }
0x2cb8   :  { %7156 = vmatpush1.bf16.msra.mxu1 %v16953_v42  ;;  %v20611_v42 = vld [vmem:[#allocation3_spill] sm:$0xff] }
0x2cb9   :  { %7157 = vmatprep.subr.bf16.mxu1 %v16959_v44  ;;  %v20612_v44 = vld [vmem:[#allocation4_spill] sm:$0xff] }
0x2cbc   :  { %7158 = vmatpush1.bf16.msra.mxu1 %v16965_v45  ;;  %v20613_v45 = vld [vmem:[#allocation5_spill] sm:$0xff] }
0x2cbd   :  { %7159 = vmatprep.subr.bf16.mxu1 %v16971_v4  ;;  %v20614_v4 = vld [vmem:[#allocation6_spill] sm:$0xff] }
0x2cc0   :  { %7160 = vmatpush1.bf16.msra.mxu1 %v16977_v53  ;;  %v20615_v53 = vld [vmem:[#allocation7_spill] sm:$0xff] }
0x2cc1   :  { %7161 = vmatprep.subr.bf16.mxu1 %v16983_v26  ;;  %v20616_v26 = vld [vmem:[#allocation8_spill] sm:$0xff] }
0x2cc4   :  { %7162 = vmatpush1.bf16.msra.mxu1 %v16989_v56  ;;  %v20617_v56 = vld [vmem:[#allocation9_spill] sm:$0xff] }
0x2cc5   :  { %7163 = vmatprep.subr.bf16.mxu1 %v16995_v9  ;;  %v20618_v9 = vld [vmem:[#allocation10_spill] sm:$0xff] }
0x2cc8   :  { %7164 = vmatpush1.bf16.msra.mxu1 %v17004_v1  ;;  %v20619_v1 = vld [vmem:[#allocation11_spill] sm:$0xff] }
0x2cc9   :  { %7165 = vmatprep.subr.bf16.mxu1 %v17011_v47  ;;  %v20620_v47 = vld [vmem:[#allocation12_spill] sm:$0xff] }
0x2ccc   :  { %7166 = vmatpush1.bf16.msra.mxu1 %v17015_v2  ;;  %v20621_v2 = vld [vmem:[#allocation13_spill] sm:$0xff] }
0x2ccf   :  { %7178 = vmatmul.mubr.bf16.vlgmr.msra.gmra.mrb[200].mxu1 %v17702_v50 }
0x2cd0   :  { %7318 = vmatprep.mubr.bf16.mxu1 %v20394_v61 }
0x2d76   :  { %v7136_v35 = vpop.f32.mrb[196].mxu1 }
0x2d77   :  { %v7143_v60 = vadd.f32 %v7136_v35, %v7051_v29  ;;  %v7138_v63 = vpop.f32.mrb[197].mxu1  ;;  %v20626_v29 = vld [vmem:[#allocation18_spill] sm:$0xff] }
0x2d78   :  { %v7144_v13 = vadd.f32 %v7138_v63, %v7052_v6  ;;  %v7140_v30 = vpop.f32.mrb[198].mxu1  ;;  %v20628_v6 = vld [vmem:[#allocation20_spill] sm:$0xff]  ;;  %v20638_v35 = vld [vmem:[#allocation30_spill] sm:$0xff] }
0x2d79   :  { %v7141_v16 = vpop.f32.mrb[199].mxu1  ;;  %v20640_v63 = vld [vmem:[#allocation32_spill] sm:$0xff]  ;;  %v20642_v30 = vld [vmem:[#allocation34_spill] sm:$0xff] }
0x2d7a   :  { %v20643_v16 = vld [vmem:[#allocation35_spill] sm:$0xff] }
0x2da2   :  { %v7179_v38 = vpop.f32.mrb[200].mxu1 }
0x2da3   :  { %v7186_v18 = vpack.c.bf16 %v7179_v38, %v7179_v38  ;;  %v7181_v3 = vpop.f32.mrb[201].mxu1  ;;  %v20644_v38 = vld [vmem:[#allocation36_spill] sm:$0xff] }
0x2da4   :  { %v7187_v7 = vpack.c.bf16 %v7181_v3, %v7181_v3  ;;  %v7183_v55 = vpop.f32.mrb[202].mxu1 }
0x2da5   :  { %v7189_v19 = vsel %vm210_vm2, %v7186_v18, 0  ;;  %v7184_v14 = vpop.f32.mrb[203].mxu1  ;;  %v20645_v18 = vld [vmem:[#allocation37_spill] sm:$0xff] }
0x2da6   :  { %12178 = vmatprep.subr.msk.bf16.mxu0 %vm210_vm2, %v7187_v7 }
0x2da7   :  { %7195 = vmatpush1.bf16.msra.mxu0 %v7189_v19 }
0x2da8   :  { %7237 = vmatprep.subr.bf16.mxu0 %v17030_v59  ;;  %v20622_v59 = vld [vmem:[#allocation14_spill] sm:$0xff] }
0x2daa   :  { %12179 = vmatmul.mubr.msk.bf16.vlgmr.msra.gmra.mrb[192].mxu0 %vm206_vm3, %v17037_v37 }
0x2dab   :  { %7238 = vmatpush1.bf16.msra.mxu0 %v17042_v24  ;;  %12180 = vmatprep.mubr.msk.bf16.mxu0 %vm4605_vm6, %v17636_v48 }
0x2dac   :  { %7239 = vmatprep.subr.bf16.mxu0 %v17048_v52 }
0x2daf   :  { %7240 = vmatpush1.bf16.msra.mxu0 %v17058_v15 }
0x2db0   :  { %7241 = vmatprep.subr.bf16.mxu0 %v17064_v43 }
0x2db3   :  { %7242 = vmatpush1.bf16.msra.mxu0 %v17070_v34 }
0x2db4   :  { %7243 = vmatprep.subr.bf16.mxu0 %v17076_v8 }
0x2db7   :  { %7244 = vmatpush1.bf16.msra.mxu0 %v17082_v57 }
0x2db8   :  { %7245 = vmatprep.subr.bf16.mxu0 %v17088_v46 }
0x2dbb   :  { %7246 = vmatpush1.bf16.msra.mxu0 %v17094_v58 }
0x2dbc   :  { %7247 = vmatprep.subr.bf16.mxu0 %v20611_v42 }
0x2dbf   :  { %7248 = vmatpush1.bf16.msra.mxu0 %v20612_v44 }
0x2dc0   :  { %7249 = vmatprep.subr.bf16.mxu0 %v20613_v45 }
0x2dc3   :  { %7250 = vmatpush1.bf16.msra.mxu0 %v20614_v4 }
0x2dc4   :  { %7251 = vmatprep.subr.bf16.mxu0 %v20615_v53 }
0x2dc7   :  { %7252 = vmatpush1.bf16.msra.mxu0 %v20616_v26 }
0x2dc8   :  { %7253 = vmatprep.subr.bf16.mxu0 %v20617_v56 }
0x2dcb   :  { %7254 = vmatpush1.bf16.msra.mxu0 %v20618_v9 }
0x2dcc   :  { %7255 = vmatprep.subr.bf16.mxu0 %v20619_v1  ;;  %v20646_v1 = vld [vmem:[#allocation38_spill] sm:$0xff] }
0x2dcf   :  { %7256 = vmatpush1.bf16.msra.mxu0 %v20620_v47  ;;  %v20647_v47 = vld [vmem:[#allocation39_spill] sm:$0xff] }
0x2dd0   :  { %7257 = vmatprep.subr.bf16.mxu0 %v20621_v2  ;;  %v20648_v2 = vld [vmem:[#allocation40_spill] sm:$0xff] }
0x2dd3   :  { %7258 = vmatpush1.bf16.msra.mxu0 %v20622_v59  ;;  %v20649_v59 = vld [vmem:[#allocation41_spill] sm:$0xff] }
0x2dd6   :  { %7270 = vmatmul.mubr.bf16.vlgmr.msra.gmra.mrb[196].mxu0 %v17702_v50 }
0x2dd7   :  { %7410 = vmatprep.mubr.bf16.mxu0 %v20394_v61 }
0x2e7d   :  { %v7228_v37 = vpop.f32.mrb[192].mxu0 }
0x2e7e   :  { %v7235_v24 = vadd.f32 %v7228_v37, %v7143_v60  ;;  %v7230_v52 = vpop.f32.mrb[193].mxu0  ;;  %v20639_v60 = vld [vmem:[#allocation31_spill] sm:$0xff]  ;;  %v20650_v37 = vld [vmem:[#allocation42_spill] sm:$0xff] }
0x2e7f   :  { %v7236_v15 = vadd.f32 %v7230_v52, %v7144_v13  ;;  %v7232_v43 = vpop.f32.mrb[194].mxu0  ;;  %v20641_v13 = vld [vmem:[#allocation33_spill] sm:$0xff]  ;;  %v20652_v52 = vld [vmem:[#allocation44_spill] sm:$0xff] }
0x2e80   :  { %v7233_v34 = vpop.f32.mrb[195].mxu0  ;;  %v20654_v43 = vld [vmem:[#allocation46_spill] sm:$0xff] }
0x2e81   :  { %v20655_v34 = vld [vmem:[#allocation47_spill] sm:$0xff] }
0x2ea9   :  { %v7271_v8 = vpop.f32.mrb[196].mxu0 }
0x2eaa   :  { %v7278_v57 = vpack.c.bf16 %v7271_v8, %v7271_v8  ;;  %v7273_v46 = vpop.f32.mrb[197].mxu0  ;;  %v20656_v8 = vld [vmem:[#allocation48_spill] sm:$0xff] }
0x2eab   :  { %v7279_v58 = vpack.c.bf16 %v7273_v46, %v7273_v46  ;;  %v7275_v25 = vpop.f32.mrb[198].mxu0  ;;  %v20658_v46 = vld [vmem:[#allocation50_spill] sm:$0xff] }
0x2eac   :  { %v7281_v41 = vsel %vm210_vm2, %v7278_v57, 0  ;;  %v7276_v11 = vpop.f32.mrb[199].mxu0  ;;  %v20657_v57 = vld [vmem:[#allocation49_spill] sm:$0xff]  ;;  %v20660_v25 = vld [vmem:[#allocation52_spill] sm:$0xff] }
0x2ead   :  { %12181 = vmatprep.subr.msk.bf16.mxu1 %vm210_vm2, %v7279_v58  ;;  %v20659_v58 = vld [vmem:[#allocation51_spill] sm:$0xff]  ;;  %v20662_v11 = vld [vmem:[#allocation54_spill] sm:$0xff] }
0x2eae   :  { %7287 = vmatpush1.bf16.msra.mxu1 %v7281_v41  ;;  %v20661_v41 = vld [vmem:[#allocation53_spill] sm:$0xff] }
0x2eaf   :  { %7329 = vmatprep.subr.bf16.mxu1 %v20623_v12  ;;  %v20663_v12 = vld [vmem:[#allocation55_spill] sm:$0xff] }
0x2eb1   :  { %12182 = vmatmul.mubr.msk.bf16.vlgmr.msra.gmra.mrb[204].mxu1 %vm206_vm3, %v20624_v27  ;;  %v20664_v27 = vld [vmem:[#allocation56_spill] sm:$0xff] }
0x2eb2   :  { %7330 = vmatpush1.bf16.msra.mxu1 %v20625_v28  ;;  %12183 = vmatprep.mubr.msk.bf16.mxu1 %vm4605_vm6, %v17636_v48  ;;  %v20665_v28 = vld [vmem:[#allocation57_spill] sm:$0xff] }
0x2eb3   :  { %7331 = vmatprep.subr.bf16.mxu1 %v20626_v29  ;;  %v20666_v29 = vld [vmem:[#allocation58_spill] sm:$0xff] }
0x2eb6   :  { %7332 = vmatpush1.bf16.msra.mxu1 %v20627_v31  ;;  %v20667_v31 = vld [vmem:[#allocation59_spill] sm:$0xff] }
0x2eb7   :  { %7333 = vmatprep.subr.bf16.mxu1 %v20628_v6  ;;  %v20668_v6 = vld [vmem:[#allocation60_spill] sm:$0xff] }
0x2eba   :  { %7334 = vmatpush1.bf16.msra.mxu1 %v20629_v20 }
0x2ebb   :  { %7335 = vmatprep.subr.bf16.mxu1 %v20630_v23 }
0x2ebe   :  { %7336 = vmatpush1.bf16.msra.mxu1 %v20631_v10 }
0x2ebf   :  { %7337 = vmatprep.subr.bf16.mxu1 %v20632_v62 }
0x2ec2   :  { %7338 = vmatpush1.bf16.msra.mxu1 %v20633_v39 }
0x2ec3   :  { %7339 = vmatprep.subr.bf16.mxu1 %v20634_v22 }
0x2ec6   :  { %7340 = vmatpush1.bf16.msra.mxu1 %v20635_v51 }
0x2ec7   :  { %7341 = vmatprep.subr.bf16.mxu1 %v20636_v33 }
0x2eca   :  { %7342 = vmatpush1.bf16.msra.mxu1 %v20637_v32 }
0x2ecb   :  { %7343 = vmatprep.subr.bf16.mxu1 %v20638_v35 }
0x2ece   :  { %7344 = vmatpush1.bf16.msra.mxu1 %v20639_v60 }
0x2ecf   :  { %7345 = vmatprep.subr.bf16.mxu1 %v20640_v63 }
0x2ed2   :  { %7346 = vmatpush1.bf16.msra.mxu1 %v20641_v13 }
0x2ed3   :  { %7347 = vmatprep.subr.bf16.mxu1 %v20642_v30  ;;  %v20669_v30 = vld [vmem:[#allocation61_spill] sm:$0xff] }
0x2ed6   :  { %7348 = vmatpush1.bf16.msra.mxu1 %v20643_v16  ;;  %v20670_v16 = vld [vmem:[#allocation62_spill] sm:$0xff] }
0x2ed7   :  { %7349 = vmatprep.subr.bf16.mxu1 %v20644_v38  ;;  %v20671_v38 = vld [vmem:[#allocation63_spill] sm:$0xff] }
0x2eda   :  { %7350 = vmatpush1.bf16.msra.mxu1 %v20645_v18  ;;  %v20672_v18 = vld [vmem:[#allocation64_spill] sm:$0xff] }
0x2edd   :  { %7362 = vmatmul.mubr.bf16.vlgmr.msra.gmra.mrb[208].mxu1 %v17702_v50 }
0x2ede   :  { %7502 = vmatprep.mubr.bf16.mxu1 %v20394_v61 }
0x2f84   :  { %v7320_v3 = vpop.f32.mrb[204].mxu1 }
0x2f85   :  { %v7327_v7 = vadd.f32 %v7320_v3, %v7235_v24  ;;  %v7322_v55 = vpop.f32.mrb[205].mxu1  ;;  %v20651_v24 = vld [vmem:[#allocation43_spill] sm:$0xff]  ;;  %v20676_v3 = vld [vmem:[#allocation68_spill] sm:$0xff] }
0x2f86   :  { %v7328_v19 = vadd.f32 %v7322_v55, %v7236_v15  ;;  %v7324_v14 = vpop.f32.mrb[206].mxu1  ;;  %v20653_v15 = vld [vmem:[#allocation45_spill] sm:$0xff] }
0x2f87   :  { %v7325_v42 = vpop.f32.mrb[207].mxu1  ;;  %v20681_v55 = vld [vmem:[#allocation73_spill] sm:$0xff]  ;;  %v20683_v14 = vld [vmem:[#allocation75_spill] sm:$0xff] }
0x2f88   :  { %v20684_v42 = vld [vmem:[#allocation76_spill] sm:$0xff] }
0x2fb0   :  { %v7363_v44 = vpop.f32.mrb[208].mxu1 }
0x2fb1   :  { %v7370_v45 = vpack.c.bf16 %v7363_v44, %v7363_v44  ;;  %v7365_v4 = vpop.f32.mrb[209].mxu1  ;;  %v20685_v44 = vld [vmem:[#allocation77_spill] sm:$0xff] }
0x2fb2   :  { %v7371_v53 = vpack.c.bf16 %v7365_v4, %v7365_v4  ;;  %v7367_v26 = vpop.f32.mrb[210].mxu1 }
0x2fb3   :  { %v7373_v56 = vsel %vm210_vm2, %v7370_v45, 0  ;;  %v7368_v9 = vpop.f32.mrb[211].mxu1  ;;  %v20686_v45 = vld [vmem:[#allocation78_spill] sm:$0xff] }
0x2fb4   :  { %12184 = vmatprep.subr.msk.bf16.mxu0 %vm210_vm2, %v7371_v53 }
0x2fb5   :  { %7379 = vmatpush1.bf16.msra.mxu0 %v7373_v56 }
0x2fb6   :  { %7421 = vmatprep.subr.bf16.mxu0 %v20646_v1 }
0x2fb8   :  { %12185 = vmatmul.mubr.msk.bf16.vlgmr.msra.gmra.mrb[200].mxu0 %vm206_vm3, %v20647_v47 }
0x2fb9   :  { %7422 = vmatpush1.bf16.msra.mxu0 %v20648_v2  ;;  %12186 = vmatprep.mubr.msk.bf16.mxu0 %vm4605_vm6, %v17636_v48 }
0x2fba   :  { %7423 = vmatprep.subr.bf16.mxu0 %v20649_v59 }
0x2fbd   :  { %7424 = vmatpush1.bf16.msra.mxu0 %v20650_v37 }
0x2fbe   :  { %7425 = vmatprep.subr.bf16.mxu0 %v20651_v24 }
0x2fc1   :  { %7426 = vmatpush1.bf16.msra.mxu0 %v20652_v52 }
0x2fc2   :  { %7427 = vmatprep.subr.bf16.mxu0 %v20653_v15 }
0x2fc5   :  { %7428 = vmatpush1.bf16.msra.mxu0 %v20654_v43 }
0x2fc6   :  { %7429 = vmatprep.subr.bf16.mxu0 %v20655_v34 }
0x2fc9   :  { %7430 = vmatpush1.bf16.msra.mxu0 %v20656_v8 }
0x2fca   :  { %7431 = vmatprep.subr.bf16.mxu0 %v20657_v57 }
0x2fcd   :  { %7432 = vmatpush1.bf16.msra.mxu0 %v20658_v46 }
0x2fce   :  { %7433 = vmatprep.subr.bf16.mxu0 %v20659_v58 }
0x2fd1   :  { %7434 = vmatpush1.bf16.msra.mxu0 %v20660_v25 }
0x2fd2   :  { %7435 = vmatprep.subr.bf16.mxu0 %v20661_v41 }
0x2fd5   :  { %7436 = vmatpush1.bf16.msra.mxu0 %v20662_v11 }
0x2fd6   :  { %7437 = vmatprep.subr.bf16.mxu0 %v20663_v12 }
0x2fd9   :  { %7438 = vmatpush1.bf16.msra.mxu0 %v20664_v27 }
0x2fda   :  { %7439 = vmatprep.subr.bf16.mxu0 %v20665_v28 }
0x2fdd   :  { %7440 = vmatpush1.bf16.msra.mxu0 %v20666_v29  ;;  %v13798_v29 = vld [vmem:[%s20214_s4 + $0x4] ss:$8 sps:$4 sm:$0xff]  }
0x2fde   :  { %7441 = vmatprep.subr.bf16.mxu0 %v20667_v31  ;;  %v13799_v31 = vld [vmem:[%s20214_s4 + $0x100] ss:$8 sps:$4 sm:$0xff]  }
0x2fe1   :  { %7442 = vmatpush1.bf16.msra.mxu0 %v20668_v6  ;;  %v13801_v6 = vld [vmem:[%s20214_s4 + $0x104] ss:$8 sps:$4 sm:$0xff]  }
0x2fe4   :  { %7454 = vmatmul.mubr.bf16.vlgmr.msra.gmra.mrb[204].mxu0 %v17702_v50 }
0x2fe5   :  { %7594 = vmatprep.mubr.bf16.mxu0 %v20394_v61 }
0x308b   :  { %v7412_v20 = vpop.f32.mrb[200].mxu0 }
0x308c   :  { %v7419_v23 = vadd.f32 %v7412_v20, %v7327_v7  ;;  %v7414_v10 = vpop.f32.mrb[201].mxu0  ;;  %v20680_v7 = vld [vmem:[#allocation72_spill] sm:$0xff] }
0x308d   :  { %v7420_v62 = vadd.f32 %v7414_v10, %v7328_v19  ;;  %v7416_v39 = vpop.f32.mrb[202].mxu0  ;;  %v20682_v19 = vld [vmem:[#allocation74_spill] sm:$0xff]  ;;  %v13802_v20 = vld [vmem:[%s20214_s4 + $0x10] ss:$8 sps:$4 sm:$0xff]  }
0x308e   :  { %v7417_v22 = vpop.f32.mrb[203].mxu0  ;;  %v13805_v10 = vld [vmem:[%s20214_s4 + $0x110] ss:$8 sps:$4 sm:$0xff]   ;;  %v13810_v39 = vld [vmem:[%s20214_s4 + $0x24] ss:$8 sps:$4 sm:$0xff]  }
0x308f   :  { %v13808_v22 = vld [vmem:[%s20214_s4 + $0x20] ss:$8 sps:$4 sm:$0xff]  }
0x30b7   :  { %v7455_v51 = vpop.f32.mrb[204].mxu0 }
0x30b8   :  { %v7462_v33 = vpack.c.bf16 %v7455_v51, %v7455_v51  ;;  %v7457_v32 = vpop.f32.mrb[205].mxu0  ;;  %v13813_v51 = vld [vmem:[%s20214_s4 + $0x124] ss:$8 sps:$4 sm:$0xff]  }
0x30b9   :  { %v7463_v35 = vpack.c.bf16 %v7457_v32, %v7457_v32  ;;  %v7459_v60 = vpop.f32.mrb[206].mxu0  ;;  %v13816_v32 = vld [vmem:[%s20214_s4 + $0x34] ss:$8 sps:$4 sm:$0xff]  }
0x30ba   :  { %v7465_v63 = vsel %vm210_vm2, %v7462_v33, 0  ;;  %v7460_v13 = vpop.f32.mrb[207].mxu0  ;;  %v13811_v33 = vld [vmem:[%s20214_s4 + $0x120] ss:$8 sps:$4 sm:$0xff]   ;;  %v13814_v60 = vld [vmem:[%s20214_s4 + $0x30] ss:$8 sps:$4 sm:$0xff]  }
0x30bb   :  { %12187 = vmatprep.subr.msk.bf16.mxu1 %vm210_vm2, %v7463_v35  ;;  %v13819_v35 = vld [vmem:[%s20214_s4 + $0x134] ss:$8 sps:$4 sm:$0xff]   ;;  %v13822_v13 = vld [vmem:[%s20214_s4 + $0x44] ss:$8 sps:$4 sm:$0xff]  }
0x30bc   :  { %7471 = vmatpush1.bf16.msra.mxu1 %v7465_v63  ;;  %v13817_v63 = vld [vmem:[%s20214_s4 + $0x130] ss:$8 sps:$4 sm:$0xff]  }
0x30bd   :  { %7513 = vmatprep.subr.bf16.mxu1 %v17489_v54  ;;  %v20673_v54 = vld [vmem:[#allocation65_spill] sm:$0xff] }
0x30bf   :  { %12188 = vmatmul.mubr.msk.bf16.vlgmr.msra.gmra.mrb[212].mxu1 %vm206_vm3, %v17496_v36  ;;  %v20674_v36 = vld [vmem:[#allocation66_spill] sm:$0xff] }
0x30c0   :  { %7514 = vmatpush1.bf16.msra.mxu1 %v17501_v49  ;;  %12189 = vmatprep.mubr.msk.bf16.mxu1 %vm4605_vm6, %v17636_v48  ;;  %v20675_v49 = vld [vmem:[#allocation67_spill] sm:$0xff]  ;;  %v20677_v48 = vld [vmem:[#allocation69_spill] sm:$0xff] }
0x30c1   :  { %7515 = vmatprep.subr.bf16.mxu1 %v17507_v40  ;;  %v20678_v40 = vld [vmem:[#allocation70_spill] sm:$0xff] }
0x30c4   :  { %7516 = vmatpush1.bf16.msra.mxu1 %v17517_v5  ;;  %v20679_v5 = vld [vmem:[#allocation71_spill] sm:$0xff] }
0x30c5   :  { %7517 = vmatprep.subr.bf16.mxu1 %v20669_v30  ;;  %v13825_v30 = vld [vmem:[%s20214_s4 + $0x144] ss:$8 sps:$4 sm:$0xff]  }
0x30c8   :  { %7518 = vmatpush1.bf16.msra.mxu1 %v20670_v16  ;;  %v13820_v16 = vld [vmem:[%s20214_s4 + $0x40] ss:$8 sps:$4 sm:$0xff]  }
0x30c9   :  { %7519 = vmatprep.subr.bf16.mxu1 %v20671_v38  ;;  %v13823_v38 = vld [vmem:[%s20214_s4 + $0x140] ss:$8 sps:$4 sm:$0xff]  }
0x30cc   :  { %7520 = vmatpush1.bf16.msra.mxu1 %v20672_v18  ;;  %v13828_v18 = vld [vmem:[%s20214_s4 + $0x54] ss:$8 sps:$4 sm:$0xff]  }
0x30cd   :  { %7521 = vmatprep.subr.bf16.mxu1 %v20673_v54  ;;  %v13831_v54 = vld [vmem:[%s20214_s4 + $0x154] ss:$8 sps:$4 sm:$0xff]  }
0x30d0   :  { %7522 = vmatpush1.bf16.msra.mxu1 %v20674_v36  ;;  %v13826_v36 = vld [vmem:[%s20214_s4 + $0x50] ss:$8 sps:$4 sm:$0xff]  }
0x30d1   :  { %7523 = vmatprep.subr.bf16.mxu1 %v20675_v49  ;;  %v13829_v49 = vld [vmem:[%s20214_s4 + $0x150] ss:$8 sps:$4 sm:$0xff]  }
0x30d4   :  { %7524 = vmatpush1.bf16.msra.mxu1 %v20676_v3  ;;  %v13834_v3 = vld [vmem:[%s20214_s4 + $0x64] ss:$8 sps:$4 sm:$0xff]  }
0x30d5   :  { %7525 = vmatprep.subr.bf16.mxu1 %v20677_v48  ;;  %v13837_v48 = vld [vmem:[%s20214_s4 + $0x164] ss:$8 sps:$4 sm:$0xff]  }
0x30d8   :  { %7526 = vmatpush1.bf16.msra.mxu1 %v20678_v40  ;;  %v13832_v40 = vld [vmem:[%s20214_s4 + $0x60] ss:$8 sps:$4 sm:$0xff]  }
0x30d9   :  { %7527 = vmatprep.subr.bf16.mxu1 %v20679_v5  ;;  %v13835_v5 = vld [vmem:[%s20214_s4 + $0x160] ss:$8 sps:$4 sm:$0xff]  }
0x30dc   :  { %7528 = vmatpush1.bf16.msra.mxu1 %v20680_v7  ;;  %v13840_v7 = vld [vmem:[%s20214_s4 + $0x74] ss:$8 sps:$4 sm:$0xff]  }
0x30dd   :  { %7529 = vmatprep.subr.bf16.mxu1 %v20681_v55  ;;  %v13843_v55 = vld [vmem:[%s20214_s4 + $0x174] ss:$8 sps:$4 sm:$0xff]  }
0x30e0   :  { %7530 = vmatpush1.bf16.msra.mxu1 %v20682_v19  ;;  %v13838_v19 = vld [vmem:[%s20214_s4 + $0x70] ss:$8 sps:$4 sm:$0xff]  }
0x30e1   :  { %7531 = vmatprep.subr.bf16.mxu1 %v20683_v14  ;;  %v13841_v14 = vld [vmem:[%s20214_s4 + $0x170] ss:$8 sps:$4 sm:$0xff]  }
0x30e4   :  { %7532 = vmatpush1.bf16.msra.mxu1 %v20684_v42  ;;  %v13846_v42 = vld [vmem:[%s20214_s4 + $0x84] ss:$8 sps:$4 sm:$0xff]  }
0x30e5   :  { %7533 = vmatprep.subr.bf16.mxu1 %v20685_v44  ;;  %v13849_v44 = vld [vmem:[%s20214_s4 + $0x184] ss:$8 sps:$4 sm:$0xff]  }
0x30e8   :  { %7534 = vmatpush1.bf16.msra.mxu1 %v20686_v45  ;;  %v13844_v45 = vld [vmem:[%s20214_s4 + $0x80] ss:$8 sps:$4 sm:$0xff]  }
0x30e9   :  { %8094 = vmatprep.subr.bf16.mxu1 %v13801_v6 }
0x30eb   :  { %7546 = vmatmul.mubr.bf16.vlgmr.msra.gmra.mrb[216].mxu1 %v17702_v50 }
0x30ec   :  { %8095 = vmatpush1.bf16.msra.mxu1 %v13799_v31 }
0x3192   :  { %v7504_v4 = vpop.f32.mrb[212].mxu1 }
0x3193   :  { %v7511_v53 = vadd.f32 %v7504_v4, %v7419_v23  ;;  %v7506_v26 = vpop.f32.mrb[213].mxu1  ;;  %v13804_v23 = vld [vmem:[%s20214_s4 + $0x14] ss:$8 sps:$4 sm:$0xff]   ;;  %v13847_v4 = vld [vmem:[%s20214_s4 + $0x180] ss:$8 sps:$4 sm:$0xff]  }
0x3194   :  { %v7512_v56 = vadd.f32 %v7506_v26, %v7420_v62  ;;  %v7508_v9 = vpop.f32.mrb[214].mxu1  ;;  %v13807_v62 = vld [vmem:[%s20214_s4 + $0x114] ss:$8 sps:$4 sm:$0xff]  }
0x3195   :  { %v7509_v1 = vpop.f32.mrb[215].mxu1  ;;  %8096 = vmatprep.subr.bf16.mxu1 %v13807_v62  ;;  %v13855_v26 = vld [vmem:[%s20214_s4 + $0x194] ss:$8 sps:$4 sm:$0xff]   ;;  %v13853_v9 = vld [vmem:[%s20214_s4 + $0x190] ss:$8 sps:$4 sm:$0xff]  }
0x3196   :  { %8097 = vmatpush1.bf16.msra.mxu1 %v13805_v10  ;;  %v13858_v1 = vld [vmem:[%s20214_s4 + $0xa4] ss:$8 sps:$4 sm:$0xff]  }
0x3197   :  { %8098 = vmatprep.subr.bf16.mxu1 %v13813_v51 }
0x319a   :  { %8099 = vmatpush1.bf16.msra.mxu1 %v13811_v33  ;;  %v12193_v33 = vld [vmem:[%s20210_s11 + $0x10] sm:$0xff] }
0x319b   :  { %8100 = vmatprep.subr.bf16.mxu1 %v13819_v35  ;;  %v13885_v35 = vld [vmem:[%s20214_s4 + $0x1e4] ss:$8 sps:$4 sm:$0xff]  }
0x319e   :  { %8101 = vmatpush1.bf16.msra.mxu1 %v13817_v63  ;;  %v13880_v63 = vld [vmem:[%s20214_s4 + $0xe0] ss:$8 sps:$4 sm:$0xff]  }
0x319f   :  { %8102 = vmatprep.subr.bf16.mxu1 %v13825_v30 }
0x31a2   :  { %8103 = vmatpush1.bf16.msra.mxu1 %v13823_v38  ;;  %v13891_v38 = vld [vmem:[%s20214_s4 + $0x1f4] ss:$8 sps:$4 sm:$0xff]  }
0x31a3   :  { %8104 = vmatprep.subr.bf16.mxu1 %v13831_v54  ;;  %v13889_v54 = vld [vmem:[%s20214_s4 + $0x1f0] ss:$8 sps:$4 sm:$0xff]  }
0x31a6   :  { %8105 = vmatpush1.bf16.msra.mxu1 %v13829_v49 }
0x31a7   :  { %8106 = vmatprep.subr.bf16.mxu1 %v13837_v48  ;;  %v20687_v48 = vld [vmem:[#allocation79_spill] sm:$0xff] }
0x31aa   :  { %8107 = vmatpush1.bf16.msra.mxu1 %v13835_v5 }
0x31ab   :  { %8108 = vmatprep.subr.bf16.mxu1 %v13843_v55 }
0x31ae   :  { %8109 = vmatpush1.bf16.msra.mxu1 %v13841_v14 }
0x31af   :  { %8110 = vmatprep.subr.bf16.mxu1 %v13849_v44 }
0x31b2   :  { %8111 = vmatpush1.bf16.msra.mxu1 %v13847_v4 }
0x31b3   :  { %8112 = vmatprep.subr.bf16.mxu1 %v13855_v26 }
0x31b6   :  { %8113 = vmatpush1.bf16.msra.mxu1 %v13853_v9 }
0x31be   :  { %v7547_v47 = vpop.f32.mrb[216].mxu1 }
0x31bf   :  { %v7554_v2 = vpack.c.bf16 %v7547_v47, %v7547_v47  ;;  %v7549_v59 = vpop.f32.mrb[217].mxu1  ;;  %v13861_v47 = vld [vmem:[%s20214_s4 + $0x1a4] ss:$8 sps:$4 sm:$0xff]  }
0x31c0   :  { %v7555_v37 = vpack.c.bf16 %v7549_v59, %v7549_v59  ;;  %v7551_v24 = vpop.f32.mrb[218].mxu1  ;;  %v13859_v59 = vld [vmem:[%s20214_s4 + $0x1a0] ss:$8 sps:$4 sm:$0xff]   ;;  %8114 = vmatprep.subr.bf16.mxu1 %v13861_v47 }
0x31c1   :  { %v7557_v52 = vsel %vm210_vm2, %v7554_v2, 0  ;;  %v7552_v15 = vpop.f32.mrb[219].mxu1  ;;  %v13856_v2 = vld [vmem:[%s20214_s4 + $0xa0] ss:$8 sps:$4 sm:$0xff]   ;;  %v13867_v24 = vld [vmem:[%s20214_s4 + $0x1b4] ss:$8 sps:$4 sm:$0xff]   ;;  %8115 = vmatpush1.bf16.msra.mxu1 %v13859_v59 }
0x31c2   :  { %12190 = vmatprep.subr.msk.bf16.mxu0 %vm210_vm2, %v7555_v37  ;;  %v13864_v37 = vld [vmem:[%s20214_s4 + $0xb4] ss:$8 sps:$4 sm:$0xff]   ;;  %v13865_v15 = vld [vmem:[%s20214_s4 + $0x1b0] ss:$8 sps:$4 sm:$0xff]   ;;  %8116 = vmatprep.subr.bf16.mxu1 %v13867_v24 }
0x31c3   :  { %7563 = vmatpush1.bf16.msra.mxu0 %v7557_v52  ;;  %v13862_v52 = vld [vmem:[%s20214_s4 + $0xb0] ss:$8 sps:$4 sm:$0xff]  }
0x31c4   :  { %7857 = vmatprep.subr.bf16.mxu0 %v13798_v29 }
0x31c5   :  { %8117 = vmatpush1.bf16.msra.mxu1 %v13865_v15  ;;  %v13894_v15 = vld [vmem:[%s20214_s4 + $0x204] ss:$8 sps:$4 sm:$0xff]  }
0x31c6   :  { %12191 = vmatmul.mubr.msk.bf16.vlgmr.msra.gmra.mrb[208].mxu0 %vm206_vm3, %v17717_v21 }
0x3299   :  { %v7596_v50 = vpop.f32.mrb[208].mxu0 }
0x329a   :  { %v7603_v43 = vadd.f32 %v7596_v50, %v7511_v53  ;;  %v7598_v34 = vpop.f32.mrb[209].mxu0  ;;  %v13852_v53 = vld [vmem:[%s20214_s4 + $0x94] ss:$8 sps:$4 sm:$0xff]   ;;  %v13870_v50 = vld [vmem:[%s20214_s4 + $0xc4] ss:$8 sps:$4 sm:$0xff]  }
0x329b   :  { %v7604_v8 = vadd.f32 %v7598_v34, %v7512_v56  ;;  %v7600_v57 = vpop.f32.mrb[210].mxu0  ;;  %v13850_v56 = vld [vmem:[%s20214_s4 + $0x90] ss:$8 sps:$4 sm:$0xff]   ;;  %v13868_v34 = vld [vmem:[%s20214_s4 + $0xc0] ss:$8 sps:$4 sm:$0xff]  }
0x329c   :  { %v7605_v46 = vadd.f32 %v7603_v43, %v17795_v17  ;;  %v7601_v58 = vpop.f32.mrb[211].mxu0  ;;  %v13873_v43 = vld [vmem:[%s20214_s4 + $0x1c4] ss:$8 sps:$4 sm:$0xff]   ;;  %v13876_v57 = vld [vmem:[%s20214_s4 + $0xd4] ss:$8 sps:$4 sm:$0xff]  }
0x329d   :  { %v7606_v25 = vadd.f32 %v7604_v8, %v17795_v17  ;;  %v13796_v17 = vld [vmem:[%s20214_s4] ss:$8 sps:$4 sm:$0xff]   ;;  %8118 = vmatprep.subr.bf16.mxu1 %v13873_v43  ;;  %v13874_v58 = vld [vmem:[%s20214_s4 + $0xd0] ss:$8 sps:$4 sm:$0xff]  }
0x329e   :  { %v18107_v41 = vmax.f32 %v7605_v46, 0.0  ;;  %7858 = vmatpush1.bf16.msra.mxu0 %v13796_v17  ;;  %v13871_v8 = vld [vmem:[%s20214_s4 + $0x1c0] ss:$8 sps:$4 sm:$0xff]   ;;  %v13879_v46 = vld [vmem:[%s20214_s4 + $0x1d4] ss:$8 sps:$4 sm:$0xff]  }
0x329f   :  { %v18109_v11 = vmax.f32 %v7606_v25, 0.0  ;;  %7859 = vmatprep.subr.bf16.mxu0 %v13804_v23  ;;  %v13877_v25 = vld [vmem:[%s20214_s4 + $0x1d0] ss:$8 sps:$4 sm:$0xff]   ;;  %8119 = vmatpush1.bf16.msra.mxu1 %v13871_v8  ;;  %v13892_v43 = vld [vmem:[%s20214_s4 + $0x200] ss:$8 sps:$4 sm:$0xff]  }
0x32a0   :  { %v7621_v12 = vmul.f32 %v18107_v41, %v18107_v41  ;;  %8120 = vmatprep.subr.bf16.mxu1 %v13879_v46  ;;  %v13897_v8 = vld [vmem:[%s20214_s4 + $0x214] ss:$8 sps:$4 sm:$0xff]   ;;  %v13900_v46 = vld [vmem:[%s20214_s4 + $0x224] ss:$8 sps:$4 sm:$0xff]  }
0x32a1   :  { %v7617_v21 = vadd.f32 %v18109_v11, %v18107_v41  ;;  %v7622_v27 = vmul.f32 %v18109_v11, %v18109_v11 }
0x32a2   :  { %7860 = vmatpush1.bf16.msra.mxu0 %v13802_v20 }
0x32a3   :  { %7618 = vadd.xlane.f32.xlu0 %v7617_v21  ;;  %v7623_v28 = vadd.f32 %v7622_v27, %v7621_v12  ;;  %7861 = vmatprep.subr.bf16.mxu0 %v13810_v39  ;;  %v7611_v12 = vpop.xlane.xlu1 %7610  ;;  %v12192_v39 = vld [vmem:[%s20209_s10 + $0x10] sm:$0xff] }
0x32a4   :  { %8121 = vmatpush1.bf16.msra.mxu1 %v13877_v25  ;;  %v13903_v25 = vld [vmem:[%s20214_s4 + $0x234] ss:$8 sps:$4 sm:$0xff]  }
0x32a5   :  { %7624 = vadd.xlane.f32.xlu1 %v7623_v28  ;;  %8122 = vmatprep.subr.bf16.mxu1 %v13885_v35  ;;  %v13930_v35 = vld [vmem:[%s20214_s4 + $0x2c4] ss:$8 sps:$4 sm:$0xff]  }
0x32a6   :  { %7862 = vmatpush1.bf16.msra.mxu0 %v13808_v22 }
0x32a7   :  { %7863 = vmatprep.subr.bf16.mxu0 %v13816_v32  ;;  %v7616_v21 = vpop.xlane.xlu1 %7615  ;;  %v13882_v32 = vld [vmem:[%s20214_s4 + $0xe4] ss:$8 sps:$4 sm:$0xff]  }
0x32aa   :  { %7864 = vmatpush1.bf16.msra.mxu0 %v13814_v60 }
0x32ab   :  { %7865 = vmatprep.subr.bf16.mxu0 %v13822_v13  ;;  %v13883_v13 = vld [vmem:[%s20214_s4 + $0x1e0] ss:$8 sps:$4 sm:$0xff]  }
0x32ac   :  { %8123 = vmatpush1.bf16.msra.mxu1 %v13883_v13  ;;  %v13931_v13 = vld [vmem:[%s20214_s4 + $0x2d0] ss:$8 sps:$4 sm:$0xff]  }
0x32ad   :  { %8124 = vmatprep.subr.bf16.mxu1 %v13891_v38  ;;  %v13939_v38 = vld [vmem:[%s20214_s4 + $0x2f4] ss:$8 sps:$4 sm:$0xff]  }
0x32ae   :  { %7866 = vmatpush1.bf16.msra.mxu0 %v13820_v16  ;;  %v13888_v16 = vld [vmem:[%s20214_s4 + $0xf4] ss:$8 sps:$4 sm:$0xff]  }
0x32af   :  { %7867 = vmatprep.subr.bf16.mxu0 %v13828_v18  ;;  %v13886_v18 = vld [vmem:[%s20214_s4 + $0xf0] ss:$8 sps:$4 sm:$0xff]  }
0x32b0   :  { %8125 = vmatpush1.bf16.msra.mxu1 %v13889_v54 }
0x32b2   :  { %7868 = vmatpush1.bf16.msra.mxu0 %v13826_v36  ;;  %v12194_v36 = vld [vmem:[%s20207_s9 + $0x18] sm:$0xff] }
0x32b3   :  { %7869 = vmatprep.subr.bf16.mxu0 %v13834_v3 }
0x32b6   :  { %7870 = vmatpush1.bf16.msra.mxu0 %v13832_v40 }
0x32b7   :  { %7871 = vmatprep.subr.bf16.mxu0 %v13840_v7 }
0x32ba   :  { %7872 = vmatpush1.bf16.msra.mxu0 %v13838_v19 }
0x32bb   :  { %7873 = vmatprep.subr.bf16.mxu0 %v13846_v42 }
0x32be   :  { %7874 = vmatpush1.bf16.msra.mxu0 %v13844_v45 }
0x32bf   :  { %7875 = vmatprep.subr.bf16.mxu0 %v13852_v53 }
0x32c2   :  { %7876 = vmatpush1.bf16.msra.mxu0 %v13850_v56 }
0x32c3   :  { %7877 = vmatprep.subr.bf16.mxu0 %v13858_v1 }
0x32c6   :  { %7878 = vmatpush1.bf16.msra.mxu0 %v13856_v2 }
0x32c7   :  { %7879 = vmatprep.subr.bf16.mxu0 %v13864_v37 }
0x32ca   :  { %7880 = vmatpush1.bf16.msra.mxu0 %v13862_v52  ;;  %v12291_v52 = vld [vmem:[%s20215_s8 + $0x4] sm:$0xf] }
0x32cb   :  { %7881 = vmatprep.subr.bf16.mxu0 %v13870_v50 }
0x32ce   :  { %7882 = vmatpush1.bf16.msra.mxu0 %v13868_v34  ;;  %v7898_v34 = vld [vmem:[%s20215_s8] sm:$0xf] }
0x32cf   :  { %7883 = vmatprep.subr.bf16.mxu0 %v13876_v57  ;;  %v13895_v57 = vld [vmem:[%s20214_s4 + $0x210] ss:$8 sps:$4 sm:$0xff]  }
0x32d2   :  { %7884 = vmatpush1.bf16.msra.mxu0 %v13874_v58  ;;  %v13898_v58 = vld [vmem:[%s20214_s4 + $0x220] ss:$8 sps:$4 sm:$0xff]  }
0x32d3   :  { %7885 = vmatprep.subr.bf16.mxu0 %v13882_v32  ;;  %v13925_v32 = vld [vmem:[%s20214_s4 + $0x2b0] ss:$8 sps:$4 sm:$0xff]  }
0x32d6   :  { %7886 = vmatpush1.bf16.msra.mxu0 %v13880_v63  ;;  %v13933_v63 = vld [vmem:[%s20214_s4 + $0x2d4] ss:$8 sps:$4 sm:$0xff]  }
0x32d7   :  { %7887 = vmatprep.subr.bf16.mxu0 %v13888_v16  ;;  %v13934_v16 = vld [vmem:[%s20214_s4 + $0x2e0] ss:$8 sps:$4 sm:$0xff]  }
0x32da   :  { %7888 = vmatpush1.bf16.msra.mxu0 %v13886_v18  ;;  %v13937_v18 = vld [vmem:[%s20214_s4 + $0x2f0] ss:$8 sps:$4 sm:$0xff]  }
0x3330   :  { %v7619_v27 = vpop.xlane.xlu0 %7618 }
0x3331   :  { %v7620_v28 = vadd.f32 %v7619_v27, %v7611_v12  ;;  %v13901_v12 = vld [vmem:[%s20214_s4 + $0x230] ss:$8 sps:$4 sm:$0xff]   ;;  %v13904_v27 = vld [vmem:[%s20214_s4 + $0x240] ss:$8 sps:$4 sm:$0xff]  }
0x3332   :  { %v7625_v17 = vpop.xlane.xlu1 %7624 }
0x3333   :  { %v7627_v29 = vmul.f32 0.001953125, %v7620_v28  ;;  %v7626_v31 = vadd.f32 %v7625_v17, %v7616_v21  ;;  %v13906_v21 = vld [vmem:[%s20214_s4 + $0x244] ss:$8 sps:$4 sm:$0xff]   ;;  %v13909_v28 = vld [vmem:[%s20214_s4 + $0x254] ss:$8 sps:$4 sm:$0xff]  }
0x3334   :  { %v13907_v17 = vld [vmem:[%s20214_s4 + $0x250] ss:$8 sps:$4 sm:$0xff]  }
0x3335   :  { %v7629_v6 = vmul.f32 %v7627_v29, %v7627_v29  ;;  %v7628_v20 = vmul.f32 0.001953125, %v7626_v31  ;;  %v13910_v31 = vld [vmem:[%s20214_s4 + $0x260] ss:$8 sps:$4 sm:$0xff]  }
0x3337   :  { %v7630_v23 = vsub.f32 %v7628_v20, %v7629_v6  ;;  %v13915_v6 = vld [vmem:[%s20214_s4 + $0x274] ss:$8 sps:$4 sm:$0xff]   ;;  %v13913_v20 = vld [vmem:[%s20214_s4 + $0x270] ss:$8 sps:$4 sm:$0xff]  }
0x3339   :  { %v7631_v10 = vmax.f32 %v7630_v23, 0.0  ;;  %v13918_v23 = vld [vmem:[%s20214_s4 + $0x284] ss:$8 sps:$4 sm:$0xff]  }
0x333b   :  { %v7634_v62 = vadd.f32 1e-05, %v7631_v10  ;;  %v13916_v10 = vld [vmem:[%s20214_s4 + $0x280] ss:$8 sps:$4 sm:$0xff]  }
0x333d   :  { %14232 = vrsqrt.f32 %v7634_v62  ;;  %v13921_v62 = vld [vmem:[%s20214_s4 + $0x294] ss:$8 sps:$4 sm:$0xff]  }
0x3347   :  { %v14233_v22 = vpop.eup %14232 }
0x3348   :  { %v7636_v51 = vmul.f32 %v14233_v22, %v12192_v39  ;;  %v13919_v39 = vld [vmem:[%s20214_s4 + $0x290] ss:$8 sps:$4 sm:$0xff]   ;;  %v13924_v22 = vld [vmem:[%s20214_s4 + $0x2a4] ss:$8 sps:$4 sm:$0xff]  }
0x334a   :  { %7643 = vperm.xlu1 %13246, %v7636_v51   ;;  %v7639_v60 = vmul.f32 %v7636_v51, %v7627_v29  ;;  %v13912_v29 = vld [vmem:[%s20214_s4 + $0x264] ss:$8 sps:$4 sm:$0xff]   ;;  %v13922_v51 = vld [vmem:[%s20214_s4 + $0x2a0] ss:$8 sps:$4 sm:$0xff]  }
0x334c   :  { %v7640_v30 = vsub.f32 %v12193_v33, %v7639_v60  ;;  %v13927_v33 = vld [vmem:[%s20214_s4 + $0x2b4] ss:$8 sps:$4 sm:$0xff]   ;;  %v13928_v60 = vld [vmem:[%s20214_s4 + $0x2c0] ss:$8 sps:$4 sm:$0xff]  }
0x334e   :  { %7650 = vperm.xlu1 %13246, %v7640_v30   ;;  %v13936_v30 = vld [vmem:[%s20214_s4 + $0x2e4] ss:$8 sps:$4 sm:$0xff]  }
0x3352   :  { %10271 = vperm.xlu1 %13246, %v12194_v36  }
0x33c9   :  { %v7644_v49 = vpop.permute.xlu1 %7643 }
0x33ca   :  { %v7646_v3 = vmul.f32 %v7644_v49, %v17800_v0  ;;  %v7647_v40 = vmul.f32 %v7644_v49, %v20687_v48  ;;  %v7657_v5 = vmul.f32 %v7644_v49, %v18107_v41  ;;  %v7658_v7 = vmul.f32 %v7644_v49, %v18109_v11 }
0x33cd   :  { %v7651_v55 = vpop.permute.xlu1 %7650 }
0x33ce   :  { %v7653_v19 = vadd.f32 %v7651_v55, %v7646_v3  ;;  %v7654_v14 = vadd.f32 %v7651_v55, %v7647_v40  ;;  %v18322_v42 = vadd.f32 %v7657_v5, %v7651_v55  ;;  %v18324_v44 = vadd.f32 %v7658_v7, %v7651_v55 }
0x33d0   :  { %v18326_v45 = vpack.c.bf16 %v7653_v19, %v7653_v19  ;;  %v18328_v4 = vpack.c.bf16 %v7654_v14, %v7654_v14 }
0x33d2   :  { %7889 = vmatprep.mubr.bf16.mxu0 %v18328_v4  ;;  %8126 = vmatprep.mubr.bf16.mxu1 %v18328_v4 }
0x33d3   :  { %7890 = vmatmul.mubr.bf16.vlgmr.msra.gmra.mrb[212].mxu0 %v18326_v45  ;;  %8127 = vmatmul.mubr.bf16.vlgmr.msra.gmra.mrb[220].mxu1 %v18326_v45 }
0x33d4   :  { %8180 = vmatprep.mubr.bf16.mxu0 %v20394_v61  ;;  %8518 = vmatprep.mubr.bf16.mxu1 %v20394_v61 }
0x34a6   :  { %v7891_v0 = vpop.f32.mrb[212].mxu0  ;;  %v8128_v41 = vpop.f32.mrb[220].mxu1 }
0x34a7   :  { %v8137_v11 = vpack.c.bf16 %v8128_v41, %v8128_v41  ;;  %v7893_v53 = vpop.f32.mrb[213].mxu0  ;;  %v8130_v26 = vpop.f32.mrb[221].mxu1  ;;  %v7899_v37 = vpack.c.bf16 %v7891_v0, %v7891_v0 }
0x34a8   :  { %v8138_v56 = vpack.c.bf16 %v8130_v26, %v8130_v26  ;;  %v7895_v9 = vpop.f32.mrb[214].mxu0  ;;  %v8132_v1 = vpop.f32.mrb[222].mxu1  ;;  %v7900_v24 = vpack.c.bf16 %v7893_v53, %v7893_v53  ;;  %v13942_v26 = vld [vmem:[%s20214_s4 + $0x304] ss:$8 sps:$4 sm:$0xff]  }
0x34a9   :  { %v8143_v47 = vsel %vm210_vm2, %v8137_v11, 0  ;;  %v7896_v2 = vpop.f32.mrb[215].mxu0  ;;  %v8133_v59 = vpop.f32.mrb[223].mxu1  ;;  %v8193_v50 = vsel %vm210_vm2, %v7899_v37, 0  ;;  %v12360_v1 = vld [vmem:[%s20215_s8 + $0x8] sm:$0xf] }
0x34aa   :  { %12292 = vmatprep.subr.msk.bf16.mxu0 %vm210_vm2, %v8138_v56  ;;  %v13945_v2 = vld [vmem:[%s20214_s4 + $0x314] ss:$8 sps:$4 sm:$0xff]   ;;  %v13943_v59 = vld [vmem:[%s20214_s4 + $0x310] ss:$8 sps:$4 sm:$0xff]   ;;  %v13948_v37 = vld [vmem:[%s20214_s4 + $0x324] ss:$8 sps:$4 sm:$0xff]  }
0x34ab   :  { %8149 = vmatpush1.bf16.msra.mxu0 %v8143_v47  ;;  %v13940_v47 = vld [vmem:[%s20214_s4 + $0x300] ss:$8 sps:$4 sm:$0xff]  }
0x34ac   :  { %12294 = vmatprep.subr.msk.bf16.mxu0 %vm210_vm2, %v7900_v24  ;;  %v13946_v24 = vld [vmem:[%s20214_s4 + $0x320] ss:$8 sps:$4 sm:$0xff]  }
0x34ae   :  { %12293 = vmatmul.mubr.msk.bf16.vlgmr.msra.gmra.mrb[216].mxu0 %vm206_vm3, %v12291_v52  ;;  %v13951_v52 = vld [vmem:[%s20214_s4 + $0x334] ss:$8 sps:$4 sm:$0xff]  }
0x34af   :  { %8199 = vmatpush1.bf16.msra.mxu0 %v8193_v50  ;;  %8230 = vmatprep.mubr.bf16.mxu0 %v20394_v61  ;;  %v13954_v50 = vld [vmem:[%s20214_s4 + $0x344] ss:$8 sps:$4 sm:$0xff]  }
0x34b0   :  { %8432 = vmatprep.subr.bf16.mxu0 %v13894_v15  ;;  %v13949_v15 = vld [vmem:[%s20214_s4 + $0x330] ss:$8 sps:$4 sm:$0xff]  }
0x34b6   :  { %12295 = vmatmul.mubr.msk.bf16.vlgmr.msra.gmra.mrb[220].mxu0 %vm206_vm3, %v7898_v34  ;;  %v13957_v34 = vld [vmem:[%s20214_s4 + $0x354] ss:$8 sps:$4 sm:$0xff]  }
0x34b7   :  { %8433 = vmatpush1.bf16.msra.mxu0 %v13892_v43  ;;  %8464 = vmatprep.mubr.bf16.mxu0 %v18328_v4  ;;  %v13952_v43 = vld [vmem:[%s20214_s4 + $0x340] ss:$8 sps:$4 sm:$0xff]  }
0x34b8   :  { %8434 = vmatprep.subr.bf16.mxu0 %v13897_v8  ;;  %v13955_v8 = vld [vmem:[%s20214_s4 + $0x350] ss:$8 sps:$4 sm:$0xff]  }
0x34bb   :  { %8435 = vmatpush1.bf16.msra.mxu0 %v13895_v57  ;;  %v13960_v57 = vld [vmem:[%s20214_s4 + $0x364] ss:$8 sps:$4 sm:$0xff]  }
0x34bc   :  { %8436 = vmatprep.subr.bf16.mxu0 %v13900_v46  ;;  %v13958_v46 = vld [vmem:[%s20214_s4 + $0x360] ss:$8 sps:$4 sm:$0xff]  }
0x34bf   :  { %8437 = vmatpush1.bf16.msra.mxu0 %v13898_v58  ;;  %v13963_v58 = vld [vmem:[%s20214_s4 + $0x374] ss:$8 sps:$4 sm:$0xff]  }
0x34c0   :  { %8438 = vmatprep.subr.bf16.mxu0 %v13903_v25  ;;  %v13961_v25 = vld [vmem:[%s20214_s4 + $0x370] ss:$8 sps:$4 sm:$0xff]  }
0x34c3   :  { %8439 = vmatpush1.bf16.msra.mxu0 %v13901_v12  ;;  %v13966_v12 = vld [vmem:[%s20214_s4 + $0x384] ss:$8 sps:$4 sm:$0xff]  }
0x34c4   :  { %8440 = vmatprep.subr.bf16.mxu0 %v13906_v21  ;;  %v13964_v21 = vld [vmem:[%s20214_s4 + $0x380] ss:$8 sps:$4 sm:$0xff]  }
0x34c7   :  { %8441 = vmatpush1.bf16.msra.mxu0 %v13904_v27  ;;  %v13969_v27 = vld [vmem:[%s20214_s4 + $0x394] ss:$8 sps:$4 sm:$0xff]  }
0x34c8   :  { %8442 = vmatprep.subr.bf16.mxu0 %v13909_v28  ;;  %v13967_v28 = vld [vmem:[%s20214_s4 + $0x390] ss:$8 sps:$4 sm:$0xff]  }
0x34cb   :  { %8443 = vmatpush1.bf16.msra.mxu0 %v13907_v17  ;;  %v13972_v17 = vld [vmem:[%s20214_s4 + $0x3a4] ss:$8 sps:$4 sm:$0xff]  }
0x34cc   :  { %8444 = vmatprep.subr.bf16.mxu0 %v13912_v29  ;;  %v13970_v29 = vld [vmem:[%s20214_s4 + $0x3a0] ss:$8 sps:$4 sm:$0xff]  }
0x34cf   :  { %8445 = vmatpush1.bf16.msra.mxu0 %v13910_v31  ;;  %v13975_v31 = vld [vmem:[%s20214_s4 + $0x3b4] ss:$8 sps:$4 sm:$0xff]  }
0x34d0   :  { %8446 = vmatprep.subr.bf16.mxu0 %v13915_v6  ;;  %v13973_v6 = vld [vmem:[%s20214_s4 + $0x3b0] ss:$8 sps:$4 sm:$0xff]  }
0x34d3   :  { %8447 = vmatpush1.bf16.msra.mxu0 %v13913_v20  ;;  %v13978_v20 = vld [vmem:[%s20214_s4 + $0x3c4] ss:$8 sps:$4 sm:$0xff]  }
0x34d4   :  { %8448 = vmatprep.subr.bf16.mxu0 %v13918_v23  ;;  %v13976_v23 = vld [vmem:[%s20214_s4 + $0x3c0] ss:$8 sps:$4 sm:$0xff]  }
0x34d7   :  { %8449 = vmatpush1.bf16.msra.mxu0 %v13916_v10  ;;  %v13981_v10 = vld [vmem:[%s20214_s4 + $0x3d4] ss:$8 sps:$4 sm:$0xff]  }
0x34d8   :  { %8450 = vmatprep.subr.bf16.mxu0 %v13921_v62  ;;  %v13979_v62 = vld [vmem:[%s20214_s4 + $0x3d0] ss:$8 sps:$4 sm:$0xff]  }
0x34db   :  { %8451 = vmatpush1.bf16.msra.mxu0 %v13919_v39  ;;  %v13984_v39 = vld [vmem:[%s20214_s4 + $0x3e4] ss:$8 sps:$4 sm:$0xff]  }
0x34dc   :  { %8452 = vmatprep.subr.bf16.mxu0 %v13924_v22  ;;  %v13982_v22 = vld [vmem:[%s20214_s4 + $0x3e0] ss:$8 sps:$4 sm:$0xff]  }
0x34df   :  { %8453 = vmatpush1.bf16.msra.mxu0 %v13922_v51  ;;  %v13987_v51 = vld [vmem:[%s20214_s4 + $0x3f4] ss:$8 sps:$4 sm:$0xff]  }
0x34e0   :  { %8454 = vmatprep.subr.bf16.mxu0 %v13927_v33  ;;  %v13985_v33 = vld [vmem:[%s20214_s4 + $0x3f0] ss:$8 sps:$4 sm:$0xff]  }
0x34e3   :  { %8455 = vmatpush1.bf16.msra.mxu0 %v13925_v32 }
0x34e4   :  { %8456 = vmatprep.subr.bf16.mxu0 %v13930_v35 }
0x34e7   :  { %8457 = vmatpush1.bf16.msra.mxu0 %v13928_v60 }
0x34e8   :  { %8458 = vmatprep.subr.bf16.mxu0 %v13933_v63 }
0x34eb   :  { %8459 = vmatpush1.bf16.msra.mxu0 %v13931_v13 }
0x34ec   :  { %8460 = vmatprep.subr.bf16.mxu0 %v13936_v30 }
0x34ef   :  { %8461 = vmatpush1.bf16.msra.mxu0 %v13934_v16 }
0x34f0   :  { %8462 = vmatprep.subr.bf16.mxu0 %v13939_v38 }
0x34f3   :  { %8463 = vmatpush1.bf16.msra.mxu0 %v13937_v18 }
0x34f6   :  { %8465 = vmatmul.mubr.bf16.vlgmr.msra.gmra.mrb[224].mxu0 %v18326_v45 }
0x34f7   :  { %8808 = vmatprep.mubr.bf16.mxu0 %v20394_v61 }
0x3581   :  { %v8182_v54 = vpop.f32.mrb[216].mxu0 }
0x3582   :  { %v8184_v36 = vpop.f32.mrb[217].mxu0 }
0x3583   :  { %v8186_v49 = vpop.f32.mrb[218].mxu0 }
0x3584   :  { %v8187_v3 = vpop.f32.mrb[219].mxu0  ;;  %v13990_v49 = vld [vmem:[%s20214_s4 + $0x404] ss:$8 sps:$4 sm:$0xff]  }
0x3589   :  { %v8232_v48 = vpop.f32.mrb[220].mxu0 }
0x358a   :  { %v18448_v40 = vadd.f32 %v8232_v48, %v8182_v54  ;;  %v8234_v5 = vpop.f32.mrb[221].mxu0 }
0x358b   :  { %v18450_v7 = vadd.f32 %v8234_v5, %v8184_v36  ;;  %v8236_v55 = vpop.f32.mrb[222].mxu0  ;;  %v13988_v5 = vld [vmem:[%s20214_s4 + $0x400] ss:$8 sps:$4 sm:$0xff]  }
0x358c   :  { %v8237_v19 = vpop.f32.mrb[223].mxu0  ;;  %v13991_v55 = vld [vmem:[%s20214_s4 + $0x410] ss:$8 sps:$4 sm:$0xff]  }
0x358d   :  { %v13996_v19 = vld [vmem:[%s20214_s4 + $0x424] ss:$8 sps:$4 sm:$0xff]  }
0x35c9   :  { %v8466_v14 = vpop.f32.mrb[224].mxu0 }
0x35ca   :  { %v8475_v0 = vpack.c.bf16 %v8466_v14, %v8466_v14  ;;  %v8468_v41 = vpop.f32.mrb[225].mxu0  ;;  %v13994_v14 = vld [vmem:[%s20214_s4 + $0x420] ss:$8 sps:$4 sm:$0xff]  }
0x35cb   :  { %v8476_v11 = vpack.c.bf16 %v8468_v41, %v8468_v41  ;;  %v8470_v53 = vpop.f32.mrb[226].mxu0  ;;  %v13997_v41 = vld [vmem:[%s20214_s4 + $0x430] ss:$8 sps:$4 sm:$0xff]  }
0x35cc   :  { %v8481_v56 = vsel %vm210_vm2, %v8475_v0, 0  ;;  %v8471_v9 = vpop.f32.mrb[227].mxu0  ;;  %v13999_v0 = vld [vmem:[%s20214_s4 + $0x434] ss:$8 sps:$4 sm:$0xff]   ;;  %v14000_v53 = vld [vmem:[%s20214_s4 + $0x440] ss:$8 sps:$4 sm:$0xff]  }
0x35cd   :  { %12361 = vmatprep.subr.msk.bf16.mxu1 %vm210_vm2, %v8476_v11  ;;  %v14002_v11 = vld [vmem:[%s20214_s4 + $0x444] ss:$8 sps:$4 sm:$0xff]  }
0x35ce   :  { %8487 = vmatpush1.bf16.msra.mxu1 %v8481_v56  ;;  %v14003_v56 = vld [vmem:[%s20214_s4 + $0x450] ss:$8 sps:$4 sm:$0xff]   ;;  %v14008_v9 = vld [vmem:[%s20214_s4 + $0x464] ss:$8 sps:$4 sm:$0xff]  }
0x35cf   :  { %8722 = vmatprep.subr.bf16.mxu1 %v13942_v26  ;;  %v14005_v26 = vld [vmem:[%s20214_s4 + $0x454] ss:$8 sps:$4 sm:$0xff]  }
0x35d1   :  { %12362 = vmatmul.mubr.msk.bf16.vlgmr.msra.gmra.mrb[224].mxu1 %vm206_vm3, %v12360_v1  ;;  %v14006_v1 = vld [vmem:[%s20214_s4 + $0x460] ss:$8 sps:$4 sm:$0xff]  }
0x35d2   :  { %8723 = vmatpush1.bf16.msra.mxu1 %v13940_v47  ;;  %8754 = vmatprep.mubr.bf16.mxu1 %v18328_v4  ;;  %v14011_v47 = vld [vmem:[%s20214_s4 + $0x474] ss:$8 sps:$4 sm:$0xff]  }
0x35d3   :  { %8724 = vmatprep.subr.bf16.mxu1 %v13945_v2  ;;  %v14009_v2 = vld [vmem:[%s20214_s4 + $0x470] ss:$8 sps:$4 sm:$0xff]  }
0x35d6   :  { %8725 = vmatpush1.bf16.msra.mxu1 %v13943_v59  ;;  %v14014_v59 = vld [vmem:[%s20214_s4 + $0x484] ss:$8 sps:$4 sm:$0xff]  }
0x35d7   :  { %8726 = vmatprep.subr.bf16.mxu1 %v13948_v37  ;;  %v14012_v37 = vld [vmem:[%s20214_s4 + $0x480] ss:$8 sps:$4 sm:$0xff]  }
0x35da   :  { %8727 = vmatpush1.bf16.msra.mxu1 %v13946_v24  ;;  %v14017_v24 = vld [vmem:[%s20214_s4 + $0x494] ss:$8 sps:$4 sm:$0xff]  }
0x35db   :  { %8728 = vmatprep.subr.bf16.mxu1 %v13951_v52  ;;  %v14015_v52 = vld [vmem:[%s20214_s4 + $0x490] ss:$8 sps:$4 sm:$0xff]  }
0x35de   :  { %8729 = vmatpush1.bf16.msra.mxu1 %v13949_v15  ;;  %v14020_v15 = vld [vmem:[%s20214_s4 + $0x4a4] ss:$8 sps:$4 sm:$0xff]  }
0x35df   :  { %8730 = vmatprep.subr.bf16.mxu1 %v13954_v50  ;;  %v14018_v50 = vld [vmem:[%s20214_s4 + $0x4a0] ss:$8 sps:$4 sm:$0xff]  }
0x35e2   :  { %8731 = vmatpush1.bf16.msra.mxu1 %v13952_v43  ;;  %v14023_v43 = vld [vmem:[%s20214_s4 + $0x4b4] ss:$8 sps:$4 sm:$0xff]  }
0x35e3   :  { %8732 = vmatprep.subr.bf16.mxu1 %v13957_v34  ;;  %v14021_v34 = vld [vmem:[%s20214_s4 + $0x4b0] ss:$8 sps:$4 sm:$0xff]  }
0x35e6   :  { %8733 = vmatpush1.bf16.msra.mxu1 %v13955_v8  ;;  %v14026_v8 = vld [vmem:[%s20214_s4 + $0x4c4] ss:$8 sps:$4 sm:$0xff]  }
0x35e7   :  { %8734 = vmatprep.subr.bf16.mxu1 %v13960_v57  ;;  %v14024_v57 = vld [vmem:[%s20214_s4 + $0x4c0] ss:$8 sps:$4 sm:$0xff]  }
0x35ea   :  { %8735 = vmatpush1.bf16.msra.mxu1 %v13958_v46  ;;  %v14029_v46 = vld [vmem:[%s20214_s4 + $0x4d4] ss:$8 sps:$4 sm:$0xff]  }
0x35eb   :  { %8736 = vmatprep.subr.bf16.mxu1 %v13963_v58  ;;  %v14027_v58 = vld [vmem:[%s20214_s4 + $0x4d0] ss:$8 sps:$4 sm:$0xff]  }
0x35ee   :  { %8737 = vmatpush1.bf16.msra.mxu1 %v13961_v25  ;;  %v14032_v25 = vld [vmem:[%s20214_s4 + $0x4e4] ss:$8 sps:$4 sm:$0xff]  }
0x35ef   :  { %8738 = vmatprep.subr.bf16.mxu1 %v13966_v12  ;;  %v14030_v12 = vld [vmem:[%s20214_s4 + $0x4e0] ss:$8 sps:$4 sm:$0xff]  }
0x35f2   :  { %8739 = vmatpush1.bf16.msra.mxu1 %v13964_v21  ;;  %v14035_v21 = vld [vmem:[%s20214_s4 + $0x4f4] ss:$8 sps:$4 sm:$0xff]  }
0x35f3   :  { %8740 = vmatprep.subr.bf16.mxu1 %v13969_v27  ;;  %v14033_v27 = vld [vmem:[%s20214_s4 + $0x4f0] ss:$8 sps:$4 sm:$0xff]  }
0x35f6   :  { %8741 = vmatpush1.bf16.msra.mxu1 %v13967_v28 }
0x35f7   :  { %8742 = vmatprep.subr.bf16.mxu1 %v13972_v17 }
0x35fa   :  { %8743 = vmatpush1.bf16.msra.mxu1 %v13970_v29 }
0x35fb   :  { %8744 = vmatprep.subr.bf16.mxu1 %v13975_v31 }
0x35fe   :  { %8745 = vmatpush1.bf16.msra.mxu1 %v13973_v6 }
0x35ff   :  { %8746 = vmatprep.subr.bf16.mxu1 %v13978_v20 }
0x3602   :  { %8747 = vmatpush1.bf16.msra.mxu1 %v13976_v23 }
0x3603   :  { %8748 = vmatprep.subr.bf16.mxu1 %v13981_v10 }
0x3606   :  { %8749 = vmatpush1.bf16.msra.mxu1 %v13979_v62 }
0x3607   :  { %8750 = vmatprep.subr.bf16.mxu1 %v13984_v39 }
0x360a   :  { %8751 = vmatpush1.bf16.msra.mxu1 %v13982_v22 }
0x360b   :  { %8752 = vmatprep.subr.bf16.mxu1 %v13987_v51  ;;  %v14038_v51 = vld [vmem:[%s20214_s4 + $0x504] ss:$8 sps:$4 sm:$0xff]  }
0x360e   :  { %8753 = vmatpush1.bf16.msra.mxu1 %v13985_v33 }
0x3611   :  { %8755 = vmatmul.mubr.bf16.vlgmr.msra.gmra.mrb[228].mxu1 %v18326_v45 }
0x3612   :  { %9098 = vmatprep.mubr.bf16.mxu1 %v20394_v61 }
0x36a4   :  { %v8520_v32 = vpop.f32.mrb[224].mxu1 }
0x36a5   :  { %v18558_v35 = vadd.f32 %v8520_v32, %v18448_v40  ;;  %v8522_v60 = vpop.f32.mrb[225].mxu1  ;;  %v12427_v40 = vld [vmem:[%s20215_s8 + $0xc] sm:$0xf] }
0x36a6   :  { %v18561_v63 = vadd.f32 %v8522_v60, %v18450_v7  ;;  %v8524_v13 = vpop.f32.mrb[226].mxu1  ;;  %v13993_v7 = vld [vmem:[%s20214_s4 + $0x414] ss:$8 sps:$4 sm:$0xff]   ;;  %v14036_v60 = vld [vmem:[%s20214_s4 + $0x500] ss:$8 sps:$4 sm:$0xff]  }
0x36a7   :  { %v8525_v30 = vpop.f32.mrb[227].mxu1  ;;  %v14039_v13 = vld [vmem:[%s20214_s4 + $0x510] ss:$8 sps:$4 sm:$0xff]  }
0x36a8   :  { %v14044_v30 = vld [vmem:[%s20214_s4 + $0x524] ss:$8 sps:$4 sm:$0xff]  }
0x36e4   :  { %v8756_v16 = vpop.f32.mrb[228].mxu1 }
0x36e5   :  { %v8765_v38 = vpack.c.bf16 %v8756_v16, %v8756_v16  ;;  %v8758_v18 = vpop.f32.mrb[229].mxu1  ;;  %v14042_v16 = vld [vmem:[%s20214_s4 + $0x520] ss:$8 sps:$4 sm:$0xff]  }
0x36e6   :  { %v8766_v54 = vpack.c.bf16 %v8758_v18, %v8758_v18  ;;  %v8760_v36 = vpop.f32.mrb[230].mxu1  ;;  %v14045_v18 = vld [vmem:[%s20214_s4 + $0x530] ss:$8 sps:$4 sm:$0xff]  }
0x36e7   :  { %v8771_v3 = vsel %vm210_vm2, %v8765_v38, 0  ;;  %v8761_v48 = vpop.f32.mrb[231].mxu1  ;;  %v14047_v38 = vld [vmem:[%s20214_s4 + $0x534] ss:$8 sps:$4 sm:$0xff]   ;;  %v14048_v36 = vld [vmem:[%s20214_s4 + $0x540] ss:$8 sps:$4 sm:$0xff]  }
0x36e8   :  { %12428 = vmatprep.subr.msk.bf16.mxu0 %vm210_vm2, %v8766_v54  ;;  %v14050_v54 = vld [vmem:[%s20214_s4 + $0x544] ss:$8 sps:$4 sm:$0xff]  }
0x36e9   :  { %8777 = vmatpush1.bf16.msra.mxu0 %v8771_v3  ;;  %v14051_v3 = vld [vmem:[%s20214_s4 + $0x550] ss:$8 sps:$4 sm:$0xff]   ;;  %v14056_v48 = vld [vmem:[%s20214_s4 + $0x564] ss:$8 sps:$4 sm:$0xff]  }
0x36ea   :  { %9012 = vmatprep.subr.bf16.mxu0 %v13990_v49  ;;  %v14053_v49 = vld [vmem:[%s20214_s4 + $0x554] ss:$8 sps:$4 sm:$0xff]  }
0x36ec   :  { %12429 = vmatmul.mubr.msk.bf16.vlgmr.msra.gmra.mrb[228].mxu0 %vm206_vm3, %v12427_v40  ;;  %v14054_v40 = vld [vmem:[%s20214_s4 + $0x560] ss:$8 sps:$4 sm:$0xff]  }
0x36ed   :  { %9013 = vmatpush1.bf16.msra.mxu0 %v13988_v5  ;;  %9044 = vmatprep.mubr.bf16.mxu0 %v18328_v4  ;;  %v14059_v5 = vld [vmem:[%s20214_s4 + $0x574] ss:$8 sps:$4 sm:$0xff]  }
0x36ee   :  { %9014 = vmatprep.subr.bf16.mxu0 %v13993_v7  ;;  %v14057_v7 = vld [vmem:[%s20214_s4 + $0x570] ss:$8 sps:$4 sm:$0xff]  }
0x36f1   :  { %9015 = vmatpush1.bf16.msra.mxu0 %v13991_v55  ;;  %v14062_v55 = vld [vmem:[%s20214_s4 + $0x584] ss:$8 sps:$4 sm:$0xff]  }
0x36f2   :  { %9016 = vmatprep.subr.bf16.mxu0 %v13996_v19  ;;  %v14060_v19 = vld [vmem:[%s20214_s4 + $0x580] ss:$8 sps:$4 sm:$0xff]  }
0x36f5   :  { %9017 = vmatpush1.bf16.msra.mxu0 %v13994_v14  ;;  %v14065_v14 = vld [vmem:[%s20214_s4 + $0x594] ss:$8 sps:$4 sm:$0xff]  }
0x36f6   :  { %9018 = vmatprep.subr.bf16.mxu0 %v13999_v0  ;;  %v14063_v0 = vld [vmem:[%s20214_s4 + $0x590] ss:$8 sps:$4 sm:$0xff]  }
0x36f9   :  { %9019 = vmatpush1.bf16.msra.mxu0 %v13997_v41  ;;  %v14068_v41 = vld [vmem:[%s20214_s4 + $0x5a4] ss:$8 sps:$4 sm:$0xff]  }
0x36fa   :  { %9020 = vmatprep.subr.bf16.mxu0 %v14002_v11  ;;  %v14066_v11 = vld [vmem:[%s20214_s4 + $0x5a0] ss:$8 sps:$4 sm:$0xff]  }
0x36fd   :  { %9021 = vmatpush1.bf16.msra.mxu0 %v14000_v53  ;;  %v14071_v53 = vld [vmem:[%s20214_s4 + $0x5b4] ss:$8 sps:$4 sm:$0xff]  }
0x36fe   :  { %9022 = vmatprep.subr.bf16.mxu0 %v14005_v26  ;;  %v14069_v26 = vld [vmem:[%s20214_s4 + $0x5b0] ss:$8 sps:$4 sm:$0xff]  }
0x3701   :  { %9023 = vmatpush1.bf16.msra.mxu0 %v14003_v56  ;;  %v14074_v56 = vld [vmem:[%s20214_s4 + $0x5c4] ss:$8 sps:$4 sm:$0xff]  }
0x3702   :  { %9024 = vmatprep.subr.bf16.mxu0 %v14008_v9  ;;  %v14072_v9 = vld [vmem:[%s20214_s4 + $0x5c0] ss:$8 sps:$4 sm:$0xff]  }
0x3705   :  { %9025 = vmatpush1.bf16.msra.mxu0 %v14006_v1  ;;  %v14077_v1 = vld [vmem:[%s20214_s4 + $0x5d4] ss:$8 sps:$4 sm:$0xff]  }
0x3706   :  { %9026 = vmatprep.subr.bf16.mxu0 %v14011_v47  ;;  %v14075_v47 = vld [vmem:[%s20214_s4 + $0x5d0] ss:$8 sps:$4 sm:$0xff]  }
0x3709   :  { %9027 = vmatpush1.bf16.msra.mxu0 %v14009_v2  ;;  %v14080_v2 = vld [vmem:[%s20214_s4 + $0x5e4] ss:$8 sps:$4 sm:$0xff]  }
0x370a   :  { %9028 = vmatprep.subr.bf16.mxu0 %v14014_v59  ;;  %v14078_v59 = vld [vmem:[%s20214_s4 + $0x5e0] ss:$8 sps:$4 sm:$0xff]  }
0x370d   :  { %9029 = vmatpush1.bf16.msra.mxu0 %v14012_v37  ;;  %v14083_v37 = vld [vmem:[%s20214_s4 + $0x5f4] ss:$8 sps:$4 sm:$0xff]  }
0x370e   :  { %9030 = vmatprep.subr.bf16.mxu0 %v14017_v24  ;;  %v14081_v24 = vld [vmem:[%s20214_s4 + $0x5f0] ss:$8 sps:$4 sm:$0xff]  }
0x3711   :  { %9031 = vmatpush1.bf16.msra.mxu0 %v14015_v52 }
0x3712   :  { %9032 = vmatprep.subr.bf16.mxu0 %v14020_v15 }
0x3715   :  { %9033 = vmatpush1.bf16.msra.mxu0 %v14018_v50 }
0x3716   :  { %9034 = vmatprep.subr.bf16.mxu0 %v14023_v43 }
0x3719   :  { %9035 = vmatpush1.bf16.msra.mxu0 %v14021_v34 }
0x371a   :  { %9036 = vmatprep.subr.bf16.mxu0 %v14026_v8 }
0x371d   :  { %9037 = vmatpush1.bf16.msra.mxu0 %v14024_v57 }
0x371e   :  { %9038 = vmatprep.subr.bf16.mxu0 %v14029_v46 }
0x3721   :  { %9039 = vmatpush1.bf16.msra.mxu0 %v14027_v58 }
0x3722   :  { %9040 = vmatprep.subr.bf16.mxu0 %v14032_v25 }
0x3725   :  { %9041 = vmatpush1.bf16.msra.mxu0 %v14030_v12 }
0x3726   :  { %9042 = vmatprep.subr.bf16.mxu0 %v14035_v21  ;;  %v14086_v21 = vld [vmem:[%s20214_s4 + $0x604] ss:$8 sps:$4 sm:$0xff]  }
0x3729   :  { %9043 = vmatpush1.bf16.msra.mxu0 %v14033_v27 }
0x372c   :  { %9045 = vmatmul.mubr.bf16.vlgmr.msra.gmra.mrb[232].mxu0 %v18326_v45 }
0x372d   :  { %9388 = vmatprep.mubr.bf16.mxu0 %v20394_v61 }
0x37bf   :  { %v8810_v28 = vpop.f32.mrb[228].mxu0 }
0x37c0   :  { %v18669_v17 = vadd.f32 %v8810_v28, %v18558_v35  ;;  %v8812_v29 = vpop.f32.mrb[229].mxu0  ;;  %v12494_v35 = vld [vmem:[%s20215_s8 + $0x10] sm:$0xf] }
0x37c1   :  { %v18672_v31 = vadd.f32 %v8812_v29, %v18561_v63  ;;  %v8814_v6 = vpop.f32.mrb[230].mxu0  ;;  %v14041_v63 = vld [vmem:[%s20214_s4 + $0x514] ss:$8 sps:$4 sm:$0xff]   ;;  %v14084_v29 = vld [vmem:[%s20214_s4 + $0x600] ss:$8 sps:$4 sm:$0xff]  }
0x37c2   :  { %v8815_v20 = vpop.f32.mrb[231].mxu0  ;;  %v14087_v6 = vld [vmem:[%s20214_s4 + $0x610] ss:$8 sps:$4 sm:$0xff]  }
0x37c3   :  { %v14092_v20 = vld [vmem:[%s20214_s4 + $0x624] ss:$8 sps:$4 sm:$0xff]  }
0x37ff   :  { %v9046_v23 = vpop.f32.mrb[232].mxu0 }
0x3800   :  { %v9055_v10 = vpack.c.bf16 %v9046_v23, %v9046_v23  ;;  %v9048_v62 = vpop.f32.mrb[233].mxu0  ;;  %v14090_v23 = vld [vmem:[%s20214_s4 + $0x620] ss:$8 sps:$4 sm:$0xff]  }
0x3801   :  { %v9056_v39 = vpack.c.bf16 %v9048_v62, %v9048_v62  ;;  %v9050_v22 = vpop.f32.mrb[234].mxu0  ;;  %v14093_v62 = vld [vmem:[%s20214_s4 + $0x630] ss:$8 sps:$4 sm:$0xff]  }
0x3802   :  { %v9061_v33 = vsel %vm210_vm2, %v9055_v10, 0  ;;  %v9051_v32 = vpop.f32.mrb[235].mxu0  ;;  %v14095_v10 = vld [vmem:[%s20214_s4 + $0x634] ss:$8 sps:$4 sm:$0xff]   ;;  %v14096_v22 = vld [vmem:[%s20214_s4 + $0x640] ss:$8 sps:$4 sm:$0xff]  }
0x3803   :  { %12495 = vmatprep.subr.msk.bf16.mxu1 %vm210_vm2, %v9056_v39  ;;  %v14098_v39 = vld [vmem:[%s20214_s4 + $0x644] ss:$8 sps:$4 sm:$0xff]  }
0x3804   :  { %9067 = vmatpush1.bf16.msra.mxu1 %v9061_v33  ;;  %v14099_v33 = vld [vmem:[%s20214_s4 + $0x650] ss:$8 sps:$4 sm:$0xff]   ;;  %v14104_v32 = vld [vmem:[%s20214_s4 + $0x664] ss:$8 sps:$4 sm:$0xff]  }
0x3805   :  { %9302 = vmatprep.subr.bf16.mxu1 %v14038_v51  ;;  %v14101_v51 = vld [vmem:[%s20214_s4 + $0x654] ss:$8 sps:$4 sm:$0xff]  }
0x3807   :  { %12496 = vmatmul.mubr.msk.bf16.vlgmr.msra.gmra.mrb[232].mxu1 %vm206_vm3, %v12494_v35  ;;  %v14102_v35 = vld [vmem:[%s20214_s4 + $0x660] ss:$8 sps:$4 sm:$0xff]  }
0x3808   :  { %9303 = vmatpush1.bf16.msra.mxu1 %v14036_v60  ;;  %9334 = vmatprep.mubr.bf16.mxu1 %v18328_v4  ;;  %v14107_v60 = vld [vmem:[%s20214_s4 + $0x674] ss:$8 sps:$4 sm:$0xff]  }
0x3809   :  { %9304 = vmatprep.subr.bf16.mxu1 %v14041_v63  ;;  %v14105_v63 = vld [vmem:[%s20214_s4 + $0x670] ss:$8 sps:$4 sm:$0xff]  }
0x380c   :  { %9305 = vmatpush1.bf16.msra.mxu1 %v14039_v13  ;;  %v14110_v13 = vld [vmem:[%s20214_s4 + $0x684] ss:$8 sps:$4 sm:$0xff]  }
0x380d   :  { %9306 = vmatprep.subr.bf16.mxu1 %v14044_v30  ;;  %v14108_v30 = vld [vmem:[%s20214_s4 + $0x680] ss:$8 sps:$4 sm:$0xff]  }
0x3810   :  { %9307 = vmatpush1.bf16.msra.mxu1 %v14042_v16  ;;  %v14113_v16 = vld [vmem:[%s20214_s4 + $0x694] ss:$8 sps:$4 sm:$0xff]  }
0x3811   :  { %9308 = vmatprep.subr.bf16.mxu1 %v14047_v38  ;;  %v14111_v38 = vld [vmem:[%s20214_s4 + $0x690] ss:$8 sps:$4 sm:$0xff]  }
0x3814   :  { %9309 = vmatpush1.bf16.msra.mxu1 %v14045_v18  ;;  %v14116_v18 = vld [vmem:[%s20214_s4 + $0x6a4] ss:$8 sps:$4 sm:$0xff]  }
0x3815   :  { %9310 = vmatprep.subr.bf16.mxu1 %v14050_v54  ;;  %v14114_v54 = vld [vmem:[%s20214_s4 + $0x6a0] ss:$8 sps:$4 sm:$0xff]  }
0x3818   :  { %9311 = vmatpush1.bf16.msra.mxu1 %v14048_v36  ;;  %v14119_v36 = vld [vmem:[%s20214_s4 + $0x6b4] ss:$8 sps:$4 sm:$0xff]  }
0x3819   :  { %9312 = vmatprep.subr.bf16.mxu1 %v14053_v49  ;;  %v14117_v49 = vld [vmem:[%s20214_s4 + $0x6b0] ss:$8 sps:$4 sm:$0xff]  }
0x381c   :  { %9313 = vmatpush1.bf16.msra.mxu1 %v14051_v3  ;;  %v14122_v3 = vld [vmem:[%s20214_s4 + $0x6c4] ss:$8 sps:$4 sm:$0xff]  }
0x381d   :  { %9314 = vmatprep.subr.bf16.mxu1 %v14056_v48  ;;  %v14120_v48 = vld [vmem:[%s20214_s4 + $0x6c0] ss:$8 sps:$4 sm:$0xff]  }
0x3820   :  { %9315 = vmatpush1.bf16.msra.mxu1 %v14054_v40  ;;  %v14125_v40 = vld [vmem:[%s20214_s4 + $0x6d4] ss:$8 sps:$4 sm:$0xff]  }
0x3821   :  { %9316 = vmatprep.subr.bf16.mxu1 %v14059_v5  ;;  %v14123_v5 = vld [vmem:[%s20214_s4 + $0x6d0] ss:$8 sps:$4 sm:$0xff]  }
0x3824   :  { %9317 = vmatpush1.bf16.msra.mxu1 %v14057_v7  ;;  %v14128_v7 = vld [vmem:[%s20214_s4 + $0x6e4] ss:$8 sps:$4 sm:$0xff]  }
0x3825   :  { %9318 = vmatprep.subr.bf16.mxu1 %v14062_v55  ;;  %v14126_v55 = vld [vmem:[%s20214_s4 + $0x6e0] ss:$8 sps:$4 sm:$0xff]  }
0x3828   :  { %9319 = vmatpush1.bf16.msra.mxu1 %v14060_v19  ;;  %v14131_v19 = vld [vmem:[%s20214_s4 + $0x6f4] ss:$8 sps:$4 sm:$0xff]  }
0x3829   :  { %9320 = vmatprep.subr.bf16.mxu1 %v14065_v14  ;;  %v14129_v14 = vld [vmem:[%s20214_s4 + $0x6f0] ss:$8 sps:$4 sm:$0xff]  }
0x382c   :  { %9321 = vmatpush1.bf16.msra.mxu1 %v14063_v0 }
0x382d   :  { %9322 = vmatprep.subr.bf16.mxu1 %v14068_v41 }
0x3830   :  { %9323 = vmatpush1.bf16.msra.mxu1 %v14066_v11 }
0x3831   :  { %9324 = vmatprep.subr.bf16.mxu1 %v14071_v53 }
0x3834   :  { %9325 = vmatpush1.bf16.msra.mxu1 %v14069_v26 }
0x3835   :  { %9326 = vmatprep.subr.bf16.mxu1 %v14074_v56 }
0x3838   :  { %9327 = vmatpush1.bf16.msra.mxu1 %v14072_v9 }
0x3839   :  { %9328 = vmatprep.subr.bf16.mxu1 %v14077_v1 }
0x383c   :  { %9329 = vmatpush1.bf16.msra.mxu1 %v14075_v47 }
0x383d   :  { %9330 = vmatprep.subr.bf16.mxu1 %v14080_v2 }
0x3840   :  { %9331 = vmatpush1.bf16.msra.mxu1 %v14078_v59 }
0x3841   :  { %9332 = vmatprep.subr.bf16.mxu1 %v14083_v37  ;;  %v14134_v37 = vld [vmem:[%s20214_s4 + $0x704] ss:$8 sps:$4 sm:$0xff]  }
0x3844   :  { %9333 = vmatpush1.bf16.msra.mxu1 %v14081_v24 }
0x3847   :  { %9335 = vmatmul.mubr.bf16.vlgmr.msra.gmra.mrb[236].mxu1 %v18326_v45 }
0x3848   :  { %9678 = vmatprep.mubr.bf16.mxu1 %v20394_v61 }
0x38da   :  { %v9100_v52 = vpop.f32.mrb[232].mxu1 }
0x38db   :  { %v18780_v15 = vadd.f32 %v9100_v52, %v18669_v17  ;;  %v9102_v50 = vpop.f32.mrb[233].mxu1  ;;  %v12561_v17 = vld [vmem:[%s20215_s8 + $0x14] sm:$0xf] }
0x38dc   :  { %v18783_v43 = vadd.f32 %v9102_v50, %v18672_v31  ;;  %v9104_v34 = vpop.f32.mrb[234].mxu1  ;;  %v14089_v31 = vld [vmem:[%s20214_s4 + $0x614] ss:$8 sps:$4 sm:$0xff]   ;;  %v14132_v50 = vld [vmem:[%s20214_s4 + $0x700] ss:$8 sps:$4 sm:$0xff]  }
0x38dd   :  { %v9105_v8 = vpop.f32.mrb[235].mxu1  ;;  %v14135_v34 = vld [vmem:[%s20214_s4 + $0x710] ss:$8 sps:$4 sm:$0xff]  }
0x38de   :  { %v14140_v8 = vld [vmem:[%s20214_s4 + $0x724] ss:$8 sps:$4 sm:$0xff]  }
0x391a   :  { %v9336_v57 = vpop.f32.mrb[236].mxu1 }
0x391b   :  { %v9345_v46 = vpack.c.bf16 %v9336_v57, %v9336_v57  ;;  %v9338_v58 = vpop.f32.mrb[237].mxu1  ;;  %v14138_v57 = vld [vmem:[%s20214_s4 + $0x720] ss:$8 sps:$4 sm:$0xff]  }
0x391c   :  { %v9346_v25 = vpack.c.bf16 %v9338_v58, %v9338_v58  ;;  %v9340_v12 = vpop.f32.mrb[238].mxu1  ;;  %v14141_v58 = vld [vmem:[%s20214_s4 + $0x730] ss:$8 sps:$4 sm:$0xff]  }
0x391d   :  { %v9351_v27 = vsel %vm210_vm2, %v9345_v46, 0  ;;  %v9341_v28 = vpop.f32.mrb[239].mxu1  ;;  %v14143_v46 = vld [vmem:[%s20214_s4 + $0x734] ss:$8 sps:$4 sm:$0xff]   ;;  %v14144_v12 = vld [vmem:[%s20214_s4 + $0x740] ss:$8 sps:$4 sm:$0xff]  }
0x391e   :  { %12562 = vmatprep.subr.msk.bf16.mxu0 %vm210_vm2, %v9346_v25  ;;  %v14146_v25 = vld [vmem:[%s20214_s4 + $0x744] ss:$8 sps:$4 sm:$0xff]  }
0x391f   :  { %9357 = vmatpush1.bf16.msra.mxu0 %v9351_v27  ;;  %v14147_v27 = vld [vmem:[%s20214_s4 + $0x750] ss:$8 sps:$4 sm:$0xff]   ;;  %v14152_v28 = vld [vmem:[%s20214_s4 + $0x764] ss:$8 sps:$4 sm:$0xff]  }
0x3920   :  { %9592 = vmatprep.subr.bf16.mxu0 %v14086_v21  ;;  %v14149_v21 = vld [vmem:[%s20214_s4 + $0x754] ss:$8 sps:$4 sm:$0xff]  }
0x3922   :  { %12563 = vmatmul.mubr.msk.bf16.vlgmr.msra.gmra.mrb[236].mxu0 %vm206_vm3, %v12561_v17  ;;  %v14150_v17 = vld [vmem:[%s20214_s4 + $0x760] ss:$8 sps:$4 sm:$0xff]  }
0x3923   :  { %9593 = vmatpush1.bf16.msra.mxu0 %v14084_v29  ;;  %9624 = vmatprep.mubr.bf16.mxu0 %v18328_v4  ;;  %v14155_v29 = vld [vmem:[%s20214_s4 + $0x774] ss:$8 sps:$4 sm:$0xff]  }
0x3924   :  { %9594 = vmatprep.subr.bf16.mxu0 %v14089_v31  ;;  %v14153_v31 = vld [vmem:[%s20214_s4 + $0x770] ss:$8 sps:$4 sm:$0xff]  }
0x3927   :  { %9595 = vmatpush1.bf16.msra.mxu0 %v14087_v6  ;;  %v14158_v6 = vld [vmem:[%s20214_s4 + $0x784] ss:$8 sps:$4 sm:$0xff]  }
0x3928   :  { %9596 = vmatprep.subr.bf16.mxu0 %v14092_v20  ;;  %v14156_v20 = vld [vmem:[%s20214_s4 + $0x780] ss:$8 sps:$4 sm:$0xff]  }
0x392b   :  { %9597 = vmatpush1.bf16.msra.mxu0 %v14090_v23  ;;  %v14161_v23 = vld [vmem:[%s20214_s4 + $0x794] ss:$8 sps:$4 sm:$0xff]  }
0x392c   :  { %9598 = vmatprep.subr.bf16.mxu0 %v14095_v10  ;;  %v14159_v10 = vld [vmem:[%s20214_s4 + $0x790] ss:$8 sps:$4 sm:$0xff]  }
0x392f   :  { %9599 = vmatpush1.bf16.msra.mxu0 %v14093_v62  ;;  %v14164_v62 = vld [vmem:[%s20214_s4 + $0x7a4] ss:$8 sps:$4 sm:$0xff]  }
0x3930   :  { %9600 = vmatprep.subr.bf16.mxu0 %v14098_v39  ;;  %v14162_v39 = vld [vmem:[%s20214_s4 + $0x7a0] ss:$8 sps:$4 sm:$0xff]  }
0x3933   :  { %9601 = vmatpush1.bf16.msra.mxu0 %v14096_v22  ;;  %v14167_v22 = vld [vmem:[%s20214_s4 + $0x7b4] ss:$8 sps:$4 sm:$0xff]  }
0x3934   :  { %9602 = vmatprep.subr.bf16.mxu0 %v14101_v51  ;;  %v14165_v51 = vld [vmem:[%s20214_s4 + $0x7b0] ss:$8 sps:$4 sm:$0xff]  }
0x3937   :  { %9603 = vmatpush1.bf16.msra.mxu0 %v14099_v33  ;;  %v14170_v33 = vld [vmem:[%s20214_s4 + $0x7c4] ss:$8 sps:$4 sm:$0xff]  }
0x3938   :  { %9604 = vmatprep.subr.bf16.mxu0 %v14104_v32  ;;  %v14168_v32 = vld [vmem:[%s20214_s4 + $0x7c0] ss:$8 sps:$4 sm:$0xff]  }
0x393b   :  { %9605 = vmatpush1.bf16.msra.mxu0 %v14102_v35  ;;  %v18984_v35 = vld [vmem:[%s20214_s4 + $0x7d4] ss:$8 sps:$4 sm:$0xff]  }
0x393c   :  { %9606 = vmatprep.subr.bf16.mxu0 %v14107_v60  ;;  %v18989_v60 = vld [vmem:[%s20214_s4 + $0x7d0] ss:$8 sps:$4 sm:$0xff]  }
0x393f   :  { %9607 = vmatpush1.bf16.msra.mxu0 %v14105_v63  ;;  %v18995_v63 = vld [vmem:[%s20214_s4 + $0x7e4] ss:$8 sps:$4 sm:$0xff]  }
0x3940   :  { %9608 = vmatprep.subr.bf16.mxu0 %v14110_v13  ;;  %v19001_v13 = vld [vmem:[%s20214_s4 + $0x7e0] ss:$8 sps:$4 sm:$0xff]  }
0x3943   :  { %9609 = vmatpush1.bf16.msra.mxu0 %v14108_v30  ;;  %v19007_v30 = vld [vmem:[%s20214_s4 + $0x7f4] ss:$8 sps:$4 sm:$0xff]  }
0x3944   :  { %9610 = vmatprep.subr.bf16.mxu0 %v14113_v16  ;;  %v19013_v16 = vld [vmem:[%s20214_s4 + $0x7f0] ss:$8 sps:$4 sm:$0xff]  }
0x3947   :  { %9611 = vmatpush1.bf16.msra.mxu0 %v14111_v38 }
0x3948   :  { %9612 = vmatprep.subr.bf16.mxu0 %v14116_v18 }
0x394b   :  { %9613 = vmatpush1.bf16.msra.mxu0 %v14114_v54 }
0x394c   :  { %9614 = vmatprep.subr.bf16.mxu0 %v14119_v36 }
0x394f   :  { %9615 = vmatpush1.bf16.msra.mxu0 %v14117_v49 }
0x3950   :  { %9616 = vmatprep.subr.bf16.mxu0 %v14122_v3 }
0x3953   :  { %9617 = vmatpush1.bf16.msra.mxu0 %v14120_v48 }
0x3954   :  { %9618 = vmatprep.subr.bf16.mxu0 %v14125_v40 }
0x3957   :  { %9619 = vmatpush1.bf16.msra.mxu0 %v14123_v5 }
0x3958   :  { %9620 = vmatprep.subr.bf16.mxu0 %v14128_v7 }
0x395b   :  { %9621 = vmatpush1.bf16.msra.mxu0 %v14126_v55 }
0x395c   :  { %9622 = vmatprep.subr.bf16.mxu0 %v14131_v19  ;;  %v19028_v19 = vld [vmem:[%s20214_s4 + $0x804] ss:$8 sps:$4 sm:$0xff]  }
0x395f   :  { %9623 = vmatpush1.bf16.msra.mxu0 %v14129_v14 }
0x3962   :  { %9625 = vmatmul.mubr.bf16.vlgmr.msra.gmra.mrb[240].mxu0 %v18326_v45 }
0x3963   :  { %9968 = vmatprep.mubr.bf16.mxu0 %v20394_v61 }
0x39f5   :  { %v9390_v0 = vpop.f32.mrb[236].mxu0 }
0x39f6   :  { %v18891_v41 = vadd.f32 %v9390_v0, %v18780_v15  ;;  %v9392_v11 = vpop.f32.mrb[237].mxu0  ;;  %v12628_v15 = vld [vmem:[%s20215_s8 + $0x18] sm:$0xf] }
0x39f7   :  { %v18894_v53 = vadd.f32 %v9392_v11, %v18783_v43  ;;  %v9394_v26 = vpop.f32.mrb[238].mxu0  ;;  %v14137_v43 = vld [vmem:[%s20214_s4 + $0x714] ss:$8 sps:$4 sm:$0xff]   ;;  %v19040_v11 = vld [vmem:[%s20214_s4 + $0x800] ss:$8 sps:$4 sm:$0xff]  }
0x39f8   :  { %v9395_v56 = vpop.f32.mrb[239].mxu0  ;;  %v19055_v26 = vld [vmem:[%s20214_s4 + $0x810] ss:$8 sps:$4 sm:$0xff]  }
0x39f9   :  { %v19061_v56 = vld [vmem:[%s20214_s4 + $0x824] ss:$8 sps:$4 sm:$0xff]  }
0x3a35   :  { %v9626_v9 = vpop.f32.mrb[240].mxu0 }
0x3a36   :  { %v9635_v1 = vpack.c.bf16 %v9626_v9, %v9626_v9  ;;  %v9628_v47 = vpop.f32.mrb[241].mxu0  ;;  %v19067_v9 = vld [vmem:[%s20214_s4 + $0x820] ss:$8 sps:$4 sm:$0xff]  }
0x3a37   :  { %v9636_v2 = vpack.c.bf16 %v9628_v47, %v9628_v47  ;;  %v9630_v59 = vpop.f32.mrb[242].mxu0  ;;  %v19085_v47 = vld [vmem:[%s20214_s4 + $0x844] ss:$8 sps:$4 sm:$0xff]  }
0x3a38   :  { %v9641_v24 = vsel %vm210_vm2, %v9635_v1, 0  ;;  %v9631_v52 = vpop.f32.mrb[243].mxu0  ;;  %v19079_v1 = vld [vmem:[%s20214_s4 + $0x830] ss:$8 sps:$4 sm:$0xff]   ;;  %v19097_v59 = vld [vmem:[%s20214_s4 + $0x854] ss:$8 sps:$4 sm:$0xff]  }
0x3a39   :  { %12629 = vmatprep.subr.msk.bf16.mxu1 %vm210_vm2, %v9636_v2  ;;  %v19091_v2 = vld [vmem:[%s20214_s4 + $0x840] ss:$8 sps:$4 sm:$0xff]  }
0x3a3a   :  { %9647 = vmatpush1.bf16.msra.mxu1 %v9641_v24  ;;  %v19109_v24 = vld [vmem:[%s20214_s4 + $0x864] ss:$8 sps:$4 sm:$0xff]   ;;  %v19115_v52 = vld [vmem:[%s20214_s4 + $0x860] ss:$8 sps:$4 sm:$0xff]  }
0x3a3b   :  { %9882 = vmatprep.subr.bf16.mxu1 %v14134_v37  ;;  %v19103_v37 = vld [vmem:[%s20214_s4 + $0x850] ss:$8 sps:$4 sm:$0xff]  }
0x3a3d   :  { %12630 = vmatmul.mubr.msk.bf16.vlgmr.msra.gmra.mrb[240].mxu1 %vm206_vm3, %v12628_v15  ;;  %v19121_v15 = vld [vmem:[%s20214_s4 + $0x874] ss:$8 sps:$4 sm:$0xff]  }
0x3a3e   :  { %9883 = vmatpush1.bf16.msra.mxu1 %v14132_v50  ;;  %9914 = vmatprep.mubr.bf16.mxu1 %v18328_v4  ;;  %v19127_v50 = vld [vmem:[%s20214_s4 + $0x870] ss:$8 sps:$4 sm:$0xff]  }
0x3a3f   :  { %9884 = vmatprep.subr.bf16.mxu1 %v14137_v43  ;;  %v19133_v43 = vld [vmem:[%s20214_s4 + $0x884] ss:$8 sps:$4 sm:$0xff]  }
0x3a42   :  { %9885 = vmatpush1.bf16.msra.mxu1 %v14135_v34  ;;  %v19139_v34 = vld [vmem:[%s20214_s4 + $0x880] ss:$8 sps:$4 sm:$0xff]  }
0x3a43   :  { %9886 = vmatprep.subr.bf16.mxu1 %v14140_v8  ;;  %v19145_v8 = vld [vmem:[%s20214_s4 + $0x894] ss:$8 sps:$4 sm:$0xff]  }
0x3a46   :  { %9887 = vmatpush1.bf16.msra.mxu1 %v14138_v57  ;;  %v19151_v57 = vld [vmem:[%s20214_s4 + $0x890] ss:$8 sps:$4 sm:$0xff]  }
0x3a47   :  { %9888 = vmatprep.subr.bf16.mxu1 %v14143_v46  ;;  %v19157_v46 = vld [vmem:[%s20214_s4 + $0x8a4] ss:$8 sps:$4 sm:$0xff]  }
0x3a4a   :  { %9889 = vmatpush1.bf16.msra.mxu1 %v14141_v58  ;;  %v19163_v58 = vld [vmem:[%s20214_s4 + $0x8a0] ss:$8 sps:$4 sm:$0xff]  }
0x3a4b   :  { %9890 = vmatprep.subr.bf16.mxu1 %v14146_v25  ;;  %v19169_v25 = vld [vmem:[%s20214_s4 + $0x8b4] ss:$8 sps:$4 sm:$0xff]  }
0x3a4e   :  { %9891 = vmatpush1.bf16.msra.mxu1 %v14144_v12  ;;  %v19175_v12 = vld [vmem:[%s20214_s4 + $0x8b0] ss:$8 sps:$4 sm:$0xff]  }
0x3a4f   :  { %9892 = vmatprep.subr.bf16.mxu1 %v14149_v21  ;;  %v19181_v21 = vld [vmem:[%s20214_s4 + $0x8c4] ss:$8 sps:$4 sm:$0xff]  }
0x3a52   :  { %9893 = vmatpush1.bf16.msra.mxu1 %v14147_v27  ;;  %v19187_v27 = vld [vmem:[%s20214_s4 + $0x8c0] ss:$8 sps:$4 sm:$0xff]  }
0x3a53   :  { %9894 = vmatprep.subr.bf16.mxu1 %v14152_v28  ;;  %v19193_v28 = vld [vmem:[%s20214_s4 + $0x8d4] ss:$8 sps:$4 sm:$0xff]  }
0x3a56   :  { %9895 = vmatpush1.bf16.msra.mxu1 %v14150_v17  ;;  %v19199_v17 = vld [vmem:[%s20214_s4 + $0x8d0] ss:$8 sps:$4 sm:$0xff]  }
0x3a57   :  { %9896 = vmatprep.subr.bf16.mxu1 %v14155_v29  ;;  %v19205_v29 = vld [vmem:[%s20214_s4 + $0x8e4] ss:$8 sps:$4 sm:$0xff]  }
0x3a5a   :  { %9897 = vmatpush1.bf16.msra.mxu1 %v14153_v31  ;;  %v19211_v31 = vld [vmem:[%s20214_s4 + $0x8e0] ss:$8 sps:$4 sm:$0xff]  }
0x3a5b   :  { %9898 = vmatprep.subr.bf16.mxu1 %v14158_v6  ;;  %v19217_v6 = vld [vmem:[%s20214_s4 + $0x8f4] ss:$8 sps:$4 sm:$0xff]  }
0x3a5e   :  { %9899 = vmatpush1.bf16.msra.mxu1 %v14156_v20  ;;  %v19223_v20 = vld [vmem:[%s20214_s4 + $0x8f0] ss:$8 sps:$4 sm:$0xff]  }
0x3a5f   :  { %9900 = vmatprep.subr.bf16.mxu1 %v14161_v23  ;;  %v14342_v23 = vld [vmem:[%s20214_s4 + $0x104] ss:$8 sps:$4 sm:$0xff]  }
0x3a62   :  { %9901 = vmatpush1.bf16.msra.mxu1 %v14159_v10  ;;  %v19232_v10 = vpack.c.bf16 %v18324_v44, %v18324_v44  ;;  %v14346_v44 = vld [vmem:[%s20214_s4 + $0x124] ss:$8 sps:$4 sm:$0xff]  }
0x3a63   :  { %9902 = vmatprep.subr.bf16.mxu1 %v14164_v62  ;;  %v14343_v62 = vld [vmem:[%s20214_s4 + $0x100] ss:$8 sps:$4 sm:$0xff]  }
0x3a66   :  { %9903 = vmatpush1.bf16.msra.mxu1 %v14162_v39  ;;  %v14344_v39 = vld [vmem:[%s20214_s4 + $0x114] ss:$8 sps:$4 sm:$0xff]  }
0x3a67   :  { %9904 = vmatprep.subr.bf16.mxu1 %v14167_v22  ;;  %v14345_v22 = vld [vmem:[%s20214_s4 + $0x110] ss:$8 sps:$4 sm:$0xff]  }
0x3a6a   :  { %9905 = vmatpush1.bf16.msra.mxu1 %v14165_v51  ;;  %v14348_v51 = vld [vmem:[%s20214_s4 + $0x134] ss:$8 sps:$4 sm:$0xff]  }
0x3a6b   :  { %9906 = vmatprep.subr.bf16.mxu1 %v14170_v33  ;;  %v14349_v33 = vld [vmem:[%s20214_s4 + $0x130] ss:$8 sps:$4 sm:$0xff]  }
0x3a6e   :  { %9907 = vmatpush1.bf16.msra.mxu1 %v14168_v32  ;;  %v14350_v32 = vld [vmem:[%s20214_s4 + $0x144] ss:$8 sps:$4 sm:$0xff]  }
0x3a6f   :  { %9908 = vmatprep.subr.bf16.mxu1 %v18984_v35 }
0x3a72   :  { %9909 = vmatpush1.bf16.msra.mxu1 %v18989_v60 }
0x3a73   :  { %9910 = vmatprep.subr.bf16.mxu1 %v18995_v63 }
0x3a76   :  { %9911 = vmatpush1.bf16.msra.mxu1 %v19001_v13 }
0x3a77   :  { %9912 = vmatprep.subr.bf16.mxu1 %v19007_v30 }
0x3a7a   :  { %9913 = vmatpush1.bf16.msra.mxu1 %v19013_v16 }
0x3a7d   :  { %9915 = vmatmul.mubr.bf16.vlgmr.msra.gmra.mrb[244].mxu1 %v18326_v45 }
0x3a7e   :  { %10258 = vmatprep.mubr.bf16.mxu1 %v20394_v61 }
0x3b10   :  { %v9680_v38 = vpop.f32.mrb[240].mxu1 }
0x3b11   :  { %v19020_v18 = vadd.f32 %v9680_v38, %v18891_v41  ;;  %v9682_v54 = vpop.f32.mrb[241].mxu1  ;;  %v19035_v41 = vld [vmem:[%s20215_s8 + $0x1c] sm:$0xf]  ;;  %v14351_v38 = vld [vmem:[%s20214_s4 + $0x140] ss:$8 sps:$4 sm:$0xff]  }
0x3b12   :  { %v19023_v36 = vadd.f32 %v9682_v54, %v18894_v53  ;;  %v9684_v49 = vpop.f32.mrb[242].mxu1  ;;  %v19046_v53 = vld [vmem:[%s20214_s4 + $0x814] ss:$8 sps:$4 sm:$0xff]  }
0x3b13   :  { %v9685_v3 = vpop.f32.mrb[243].mxu1  ;;  %v14352_v54 = vld [vmem:[%s20214_s4 + $0x154] ss:$8 sps:$4 sm:$0xff]   ;;  %v14353_v49 = vld [vmem:[%s20214_s4 + $0x150] ss:$8 sps:$4 sm:$0xff]  }
0x3b14   :  { %v14354_v3 = vld [vmem:[%s20214_s4 + $0x164] ss:$8 sps:$4 sm:$0xff]  }
0x3b50   :  { %v9916_v48 = vpop.f32.mrb[244].mxu1 }
0x3b51   :  { %v9925_v40 = vpack.c.bf16 %v9916_v48, %v9916_v48  ;;  %v9918_v5 = vpop.f32.mrb[245].mxu1  ;;  %v14355_v48 = vld [vmem:[%s20214_s4 + $0x160] ss:$8 sps:$4 sm:$0xff]  }
0x3b52   :  { %v9926_v7 = vpack.c.bf16 %v9918_v5, %v9918_v5  ;;  %v9920_v55 = vpop.f32.mrb[246].mxu1  ;;  %v14357_v5 = vld [vmem:[%s20214_s4 + $0x170] ss:$8 sps:$4 sm:$0xff]  }
0x3b53   :  { %v9931_v14 = vsel %vm210_vm2, %v9925_v40, 0  ;;  %v9921_v0 = vpop.f32.mrb[247].mxu1  ;;  %v14356_v40 = vld [vmem:[%s20214_s4 + $0x174] ss:$8 sps:$4 sm:$0xff]   ;;  %v14359_v55 = vld [vmem:[%s20214_s4 + $0x180] ss:$8 sps:$4 sm:$0xff]  }
0x3b54   :  { %12696 = vmatprep.subr.msk.bf16.mxu0 %vm210_vm2, %v9926_v7  ;;  %v14358_v7 = vld [vmem:[%s20214_s4 + $0x184] ss:$8 sps:$4 sm:$0xff]   ;;  %v14361_v0 = vld [vmem:[%s20214_s4 + $0x190] ss:$8 sps:$4 sm:$0xff]  }
0x3b55   :  { %9937 = vmatpush1.bf16.msra.mxu0 %v9931_v14  ;;  %v14360_v14 = vld [vmem:[%s20214_s4 + $0x194] ss:$8 sps:$4 sm:$0xff]  }
0x3b56   :  { %10172 = vmatprep.subr.bf16.mxu0 %v19028_v19 }
0x3b58   :  { %12697 = vmatmul.mubr.msk.bf16.vlgmr.msra.gmra.mrb[244].mxu0 %vm206_vm3, %v19035_v41 }
0x3b59   :  { %10173 = vmatpush1.bf16.msra.mxu0 %v19040_v11  ;;  %10204 = vmatprep.mubr.bf16.mxu0 %v18328_v4  ;;  %v19073_v4 = vld [vmem:[%s20214_s4 + $0x834] ss:$8 sps:$4 sm:$0xff]  }
0x3b5a   :  { %10174 = vmatprep.subr.bf16.mxu0 %v19046_v53 }
0x3b5d   :  { %10175 = vmatpush1.bf16.msra.mxu0 %v19055_v26 }
0x3b5e   :  { %10176 = vmatprep.subr.bf16.mxu0 %v19061_v56 }
0x3b61   :  { %10177 = vmatpush1.bf16.msra.mxu0 %v19067_v9 }
0x3b62   :  { %10178 = vmatprep.subr.bf16.mxu0 %v19073_v4 }
0x3b65   :  { %10179 = vmatpush1.bf16.msra.mxu0 %v19079_v1 }
0x3b66   :  { %10180 = vmatprep.subr.bf16.mxu0 %v19085_v47 }
0x3b69   :  { %10181 = vmatpush1.bf16.msra.mxu0 %v19091_v2 }
0x3b6a   :  { %10182 = vmatprep.subr.bf16.mxu0 %v19097_v59 }
0x3b6d   :  { %10183 = vmatpush1.bf16.msra.mxu0 %v19103_v37 }
0x3b6e   :  { %10184 = vmatprep.subr.bf16.mxu0 %v19109_v24 }
0x3b71   :  { %10185 = vmatpush1.bf16.msra.mxu0 %v19115_v52 }
0x3b72   :  { %10186 = vmatprep.subr.bf16.mxu0 %v19121_v15 }
0x3b75   :  { %10187 = vmatpush1.bf16.msra.mxu0 %v19127_v50 }
0x3b76   :  { %10188 = vmatprep.subr.bf16.mxu0 %v19133_v43 }
0x3b79   :  { %10189 = vmatpush1.bf16.msra.mxu0 %v19139_v34 }
0x3b7a   :  { %10190 = vmatprep.subr.bf16.mxu0 %v19145_v8 }
0x3b7d   :  { %10191 = vmatpush1.bf16.msra.mxu0 %v19151_v57 }
0x3b7e   :  { %10192 = vmatprep.subr.bf16.mxu0 %v19157_v46 }
0x3b81   :  { %10193 = vmatpush1.bf16.msra.mxu0 %v19163_v58 }
0x3b82   :  { %10194 = vmatprep.subr.bf16.mxu0 %v19169_v25 }
0x3b85   :  { %10195 = vmatpush1.bf16.msra.mxu0 %v19175_v12 }
0x3b86   :  { %10196 = vmatprep.subr.bf16.mxu0 %v19181_v21 }
0x3b89   :  { %10197 = vmatpush1.bf16.msra.mxu0 %v19187_v27 }
0x3b8a   :  { %10198 = vmatprep.subr.bf16.mxu0 %v19193_v28 }
0x3b8d   :  { %10199 = vmatpush1.bf16.msra.mxu0 %v19199_v17 }
0x3b8e   :  { %10200 = vmatprep.subr.bf16.mxu0 %v19205_v29 }
0x3b91   :  { %10201 = vmatpush1.bf16.msra.mxu0 %v19211_v31 }
0x3b92   :  { %10202 = vmatprep.subr.bf16.mxu0 %v19217_v6 }
0x3b95   :  { %10203 = vmatpush1.bf16.msra.mxu0 %v19223_v20 }
0x3b96   :  { %10321 = vmatprep.subr.bf16.mxu0 %v14342_v23  ;;  %v14362_v23 = vld [vmem:[%s20214_s4 + $0x1a4] ss:$8 sps:$4 sm:$0xff]  }
0x3b98   :  { %10205 = vmatmul.mubr.bf16.vlgmr.msra.gmra.mrb[248].mxu0 %v18326_v45  ;;  %v14347_v45 = vld [vmem:[%s20214_s4 + $0x120] ss:$8 sps:$4 sm:$0xff]  }
0x3b99   :  { %10322 = vmatpush1.bf16.msra.mxu0 %v14343_v62  ;;  %10353 = vmatprep.mubr.bf16.mxu0 %v19232_v10  ;;  %v14363_v62 = vld [vmem:[%s20214_s4 + $0x1a0] ss:$8 sps:$4 sm:$0xff]  }
0x3b9a   :  { %10323 = vmatprep.subr.bf16.mxu0 %v14344_v39  ;;  %v14364_v39 = vld [vmem:[%s20214_s4 + $0x1b4] ss:$8 sps:$4 sm:$0xff]  }
0x3b9d   :  { %10324 = vmatpush1.bf16.msra.mxu0 %v14345_v22  ;;  %v14365_v22 = vld [vmem:[%s20214_s4 + $0x1b0] ss:$8 sps:$4 sm:$0xff]  }
0x3b9e   :  { %10325 = vmatprep.subr.bf16.mxu0 %v14346_v44  ;;  %v14366_v44 = vld [vmem:[%s20214_s4 + $0x1c4] ss:$8 sps:$4 sm:$0xff]  }
0x3ba1   :  { %10326 = vmatpush1.bf16.msra.mxu0 %v14347_v45  ;;  %v14367_v45 = vld [vmem:[%s20214_s4 + $0x1c0] ss:$8 sps:$4 sm:$0xff]  }
0x3ba2   :  { %10327 = vmatprep.subr.bf16.mxu0 %v14348_v51  ;;  %v14368_v51 = vld [vmem:[%s20214_s4 + $0x1d4] ss:$8 sps:$4 sm:$0xff]  }
0x3ba5   :  { %10328 = vmatpush1.bf16.msra.mxu0 %v14349_v33  ;;  %v14369_v33 = vld [vmem:[%s20214_s4 + $0x1d0] ss:$8 sps:$4 sm:$0xff]  }
0x3ba6   :  { %10329 = vmatprep.subr.bf16.mxu0 %v14350_v32  ;;  %v14370_v32 = vld [vmem:[%s20214_s4 + $0x1e4] ss:$8 sps:$4 sm:$0xff]  }
0x3ba9   :  { %10330 = vmatpush1.bf16.msra.mxu0 %v14351_v38  ;;  %v14371_v38 = vld [vmem:[%s20214_s4 + $0x1e0] ss:$8 sps:$4 sm:$0xff]  }
0x3baa   :  { %10331 = vmatprep.subr.bf16.mxu0 %v14352_v54  ;;  %v14372_v54 = vld [vmem:[%s20214_s4 + $0x1f4] ss:$8 sps:$4 sm:$0xff]  }
0x3bad   :  { %10332 = vmatpush1.bf16.msra.mxu0 %v14353_v49  ;;  %v14373_v49 = vld [vmem:[%s20214_s4 + $0x1f0] ss:$8 sps:$4 sm:$0xff]  }
0x3bae   :  { %10333 = vmatprep.subr.bf16.mxu0 %v14354_v3  ;;  %v19331_v3 = vpack.c.bf16 %v18322_v42, %v18322_v42 }
0x3bb1   :  { %10334 = vmatpush1.bf16.msra.mxu0 %v14355_v48 }
0x3bb2   :  { %10335 = vmatprep.subr.bf16.mxu0 %v14356_v40 }
0x3bb5   :  { %10336 = vmatpush1.bf16.msra.mxu0 %v14357_v5 }
0x3bb6   :  { %10337 = vmatprep.subr.bf16.mxu0 %v14358_v7 }
0x3bb9   :  { %10338 = vmatpush1.bf16.msra.mxu0 %v14359_v55 }
0x3bba   :  { %10339 = vmatprep.subr.bf16.mxu0 %v14360_v14 }
0x3bbd   :  { %10340 = vmatpush1.bf16.msra.mxu0 %v14361_v0 }
0x3bbe   :  { %10341 = vmatprep.subr.bf16.mxu0 %v14362_v23 }
0x3bc1   :  { %10342 = vmatpush1.bf16.msra.mxu0 %v14363_v62 }
0x3bc2   :  { %10343 = vmatprep.subr.bf16.mxu0 %v14364_v39 }
0x3bc5   :  { %10344 = vmatpush1.bf16.msra.mxu0 %v14365_v22 }
0x3bc6   :  { %10345 = vmatprep.subr.bf16.mxu0 %v14366_v44 }
0x3bc9   :  { %10346 = vmatpush1.bf16.msra.mxu0 %v14367_v45  ;;  %v14375_v45 = vld [vmem:[%s20214_s4] ss:$8 sps:$4 sm:$0xff]  }
0x3bca   :  { %10347 = vmatprep.subr.bf16.mxu0 %v14368_v51  ;;  %v14376_v51 = vld [vmem:[%s20214_s4 + $0x14] ss:$8 sps:$4 sm:$0xff]  }
0x3bcd   :  { %10348 = vmatpush1.bf16.msra.mxu0 %v14369_v33  ;;  %v14377_v33 = vld [vmem:[%s20214_s4 + $0x10] ss:$8 sps:$4 sm:$0xff]  }
0x3bce   :  { %10349 = vmatprep.subr.bf16.mxu0 %v14370_v32  ;;  %v14378_v32 = vld [vmem:[%s20214_s4 + $0x24] ss:$8 sps:$4 sm:$0xff]  }
0x3bd1   :  { %10350 = vmatpush1.bf16.msra.mxu0 %v14371_v38  ;;  %v14379_v38 = vld [vmem:[%s20214_s4 + $0x20] ss:$8 sps:$4 sm:$0xff]  }
0x3bd2   :  { %10351 = vmatprep.subr.bf16.mxu0 %v14372_v54  ;;  %v14380_v54 = vld [vmem:[%s20214_s4 + $0x34] ss:$8 sps:$4 sm:$0xff]  }
0x3bd5   :  { %10352 = vmatpush1.bf16.msra.mxu0 %v14373_v49  ;;  %v14381_v49 = vld [vmem:[%s20214_s4 + $0x30] ss:$8 sps:$4 sm:$0xff]  }
0x3bd8   :  { %10354 = vmatmul.mubr.bf16.vlgmr.msra.gmra.mrb[252].mxu0 %v19331_v3 }
0x3bd9   :  { %10539 = vmatprep.mubr.bf16.mxu0 %v20394_v61 }
0x3c2b   :  { %v9970_v48 = vpop.f32.mrb[244].mxu0 }
0x3c2c   :  { %v19336_v40 = vadd.f32 %v9970_v48, %v19020_v18  ;;  %v9972_v5 = vpop.f32.mrb[245].mxu0  ;;  %v19346_v18 = vld [vmem:[%s20215_s8 + $0x20] sm:$0xf]  ;;  %v14382_v48 = vld [vmem:[%s20214_s4 + $0x44] ss:$8 sps:$4 sm:$0xff]  }
0x3c2d   :  { %v19339_v7 = vadd.f32 %v9972_v5, %v19023_v36  ;;  %v9974_v55 = vpop.f32.mrb[246].mxu0  ;;  %v14374_v36 = vld [vmem:[%s20214_s4 + $0x4] ss:$8 sps:$4 sm:$0xff]   ;;  %v14383_v5 = vld [vmem:[%s20214_s4 + $0x40] ss:$8 sps:$4 sm:$0xff]  }
0x3c2e   :  { %v9975_v14 = vpop.f32.mrb[247].mxu0  ;;  %v14384_v55 = vld [vmem:[%s20214_s4 + $0x54] ss:$8 sps:$4 sm:$0xff]  }
0x3c2f   :  { %v14385_v14 = vld [vmem:[%s20214_s4 + $0x50] ss:$8 sps:$4 sm:$0xff]  }
0x3c6b   :  { %v10206_v0 = vpop.f32.mrb[248].mxu0 }
0x3c6c   :  { %v10215_v23 = vpack.c.bf16 %v10206_v0, %v10206_v0  ;;  %v10208_v62 = vpop.f32.mrb[249].mxu0  ;;  %v14386_v0 = vld [vmem:[%s20214_s4 + $0x64] ss:$8 sps:$4 sm:$0xff]  }
0x3c6d   :  { %v10216_v39 = vpack.c.bf16 %v10208_v62, %v10208_v62  ;;  %v10210_v42 = vpop.f32.mrb[250].mxu0  ;;  %v14388_v62 = vld [vmem:[%s20214_s4 + $0x74] ss:$8 sps:$4 sm:$0xff]  }
0x3c6e   :  { %v10221_v22 = vsel %vm210_vm2, %v10215_v23, 0  ;;  %v10211_v44 = vpop.f32.mrb[251].mxu0  ;;  %v14387_v23 = vld [vmem:[%s20214_s4 + $0x60] ss:$8 sps:$4 sm:$0xff]   ;;  %v14390_v42 = vld [vmem:[%s20214_s4 + $0x84] ss:$8 sps:$4 sm:$0xff]  }
0x3c6f   :  { %12763 = vmatprep.subr.msk.bf16.mxu1 %vm210_vm2, %v10216_v39  ;;  %v14389_v39 = vld [vmem:[%s20214_s4 + $0x70] ss:$8 sps:$4 sm:$0xff]   ;;  %v14392_v44 = vld [vmem:[%s20214_s4 + $0x94] ss:$8 sps:$4 sm:$0xff]  }
0x3c70   :  { %10227 = vmatpush1.bf16.msra.mxu1 %v10221_v22  ;;  %v14391_v22 = vld [vmem:[%s20214_s4 + $0x80] ss:$8 sps:$4 sm:$0xff]  }
0x3c71   :  { %10278 = vmatprep.subr.bf16.mxu1 %v14374_v36  ;;  %v14393_v36 = vld [vmem:[%s20214_s4 + $0x90] ss:$8 sps:$4 sm:$0xff]  }
0x3c73   :  { %12764 = vmatmul.mubr.msk.bf16.vlgmr.msra.gmra.mrb[248].mxu1 %vm206_vm3, %v19346_v18 }
0x3c74   :  { %10279 = vmatpush1.bf16.msra.mxu1 %v14375_v45  ;;  %10310 = vmatprep.mubr.bf16.mxu1 %v19232_v10  ;;  %v14394_v45 = vld [vmem:[%s20214_s4 + $0xa4] ss:$8 sps:$4 sm:$0xff]  }
0x3c75   :  { %10280 = vmatprep.subr.bf16.mxu1 %v14376_v51  ;;  %v14395_v51 = vld [vmem:[%s20214_s4 + $0xa0] ss:$8 sps:$4 sm:$0xff]  }
0x3c78   :  { %10281 = vmatpush1.bf16.msra.mxu1 %v14377_v33  ;;  %v14396_v33 = vld [vmem:[%s20214_s4 + $0xb4] ss:$8 sps:$4 sm:$0xff]  }
0x3c79   :  { %10282 = vmatprep.subr.bf16.mxu1 %v14378_v32  ;;  %v14397_v32 = vld [vmem:[%s20214_s4 + $0xb0] ss:$8 sps:$4 sm:$0xff]  }
0x3c7c   :  { %10283 = vmatpush1.bf16.msra.mxu1 %v14379_v38  ;;  %v14398_v38 = vld [vmem:[%s20214_s4 + $0xc4] ss:$8 sps:$4 sm:$0xff]  }
0x3c7d   :  { %10284 = vmatprep.subr.bf16.mxu1 %v14380_v54  ;;  %v14399_v54 = vld [vmem:[%s20214_s4 + $0xc0] ss:$8 sps:$4 sm:$0xff]  }
0x3c80   :  { %10285 = vmatpush1.bf16.msra.mxu1 %v14381_v49  ;;  %v14400_v49 = vld [vmem:[%s20214_s4 + $0xd4] ss:$8 sps:$4 sm:$0xff]  }
0x3c81   :  { %10286 = vmatprep.subr.bf16.mxu1 %v14382_v48  ;;  %v14401_v48 = vld [vmem:[%s20214_s4 + $0xd0] ss:$8 sps:$4 sm:$0xff]  }
0x3c84   :  { %10287 = vmatpush1.bf16.msra.mxu1 %v14383_v5  ;;  %v14402_v5 = vld [vmem:[%s20214_s4 + $0xe4] ss:$8 sps:$4 sm:$0xff]  }
0x3c85   :  { %10288 = vmatprep.subr.bf16.mxu1 %v14384_v55 }
0x3c88   :  { %10289 = vmatpush1.bf16.msra.mxu1 %v14385_v14  ;;  %v14403_v14 = vld [vmem:[%s20214_s4 + $0xe0] ss:$8 sps:$4 sm:$0xff]  }
0x3c89   :  { %10290 = vmatprep.subr.bf16.mxu1 %v14386_v0 }
0x3c8c   :  { %10291 = vmatpush1.bf16.msra.mxu1 %v14387_v23 }
0x3c8d   :  { %10292 = vmatprep.subr.bf16.mxu1 %v14388_v62  ;;  %v14404_v62 = vld [vmem:[%s20214_s4 + $0xf4] ss:$8 sps:$4 sm:$0xff]  }
0x3c90   :  { %10293 = vmatpush1.bf16.msra.mxu1 %v14389_v39 }
0x3c91   :  { %10294 = vmatprep.subr.bf16.mxu1 %v14390_v42 }
0x3c94   :  { %10295 = vmatpush1.bf16.msra.mxu1 %v14391_v22 }
0x3c95   :  { %10296 = vmatprep.subr.bf16.mxu1 %v14392_v44  ;;  %v14405_v44 = vld [vmem:[%s20214_s4 + $0xf0] ss:$8 sps:$4 sm:$0xff]  }
0x3c98   :  { %10297 = vmatpush1.bf16.msra.mxu1 %v14393_v36 }
0x3c99   :  { %10298 = vmatprep.subr.bf16.mxu1 %v14394_v45  ;;  %v14406_v45 = vld [vmem:[%s20215_s8 + $0x4] sm:$0xf] }
0x3c9c   :  { %10299 = vmatpush1.bf16.msra.mxu1 %v14395_v51 }
0x3c9d   :  { %10300 = vmatprep.subr.bf16.mxu1 %v14396_v33 }
0x3ca0   :  { %10301 = vmatpush1.bf16.msra.mxu1 %v14397_v32 }
0x3ca1   :  { %10302 = vmatprep.subr.bf16.mxu1 %v14398_v38  ;;  %v19457_v38 = vpop.permute.xlu1 %10271 }
0x3ca4   :  { %10303 = vmatpush1.bf16.msra.mxu1 %v14399_v54 }
0x3ca5   :  { %10304 = vmatprep.subr.bf16.mxu1 %v14400_v49 }
0x3ca8   :  { %10305 = vmatpush1.bf16.msra.mxu1 %v14401_v48 }
0x3ca9   :  { %10306 = vmatprep.subr.bf16.mxu1 %v14402_v5 }
0x3cab   :  { %v10355_v55 = vpop.f32.mrb[252].mxu0 }
0x3cac   :  { %10307 = vmatpush1.bf16.msra.mxu1 %v14403_v14  ;;  %v10357_v0 = vpop.f32.mrb[253].mxu0  ;;  %v10362_v42 = vpack.c.bf16 %v10355_v55, %v10355_v55 }
0x3cad   :  { %v10359_v23 = vpop.f32.mrb[254].mxu0  ;;  %10308 = vmatprep.subr.bf16.mxu1 %v14404_v62  ;;  %v10363_v22 = vpack.c.bf16 %v10357_v0, %v10357_v0 }
0x3cae   :  { %v10360_v39 = vpop.f32.mrb[255].mxu0  ;;  %v10365_v36 = vsel %vm210_vm2, %v10362_v42, 0 }
0x3cb0   :  { %10309 = vmatpush1.bf16.msra.mxu1 %v14405_v44 }
0x3cb1   :  { %12765 = vmatprep.subr.msk.bf16.mxu1 %vm210_vm2, %v10363_v22 }
0x3cb3   :  { %10311 = vmatmul.mubr.bf16.vlgmr.msra.gmra.mrb[252].mxu1 %v19331_v3 }
0x3cb4   :  { %10371 = vmatpush1.bf16.msra.mxu1 %v10365_v36  ;;  %10402 = vmatprep.mubr.bf16.mxu1 %v20394_v61 }
0x3cbb   :  { %12766 = vmatmul.mubr.msk.bf16.vlgmr.msra.gmra.mrb[0].mxu1 %vm206_vm3, %v14406_v45 }
0x3cbc   :  { %10449 = vmatprep.mubr.bf16.mxu1 %v20394_v61 }
0x3d46   :  { %v10260_v51 = vpop.f32.mrb[248].mxu1 }
0x3d47   :  { %v10267_v33 = vadd.f32 %v10260_v51, %v19336_v40  ;;  %v10262_v32 = vpop.f32.mrb[249].mxu1 }
0x3d48   :  { %v10268_v54 = vadd.f32 %v10262_v32, %v19339_v7  ;;  %v10264_v49 = vpop.f32.mrb[250].mxu1  ;;  %v14408_v32 = vld [vmem:[%s20215_s8] sm:$0xf] }
0x3d49   :  { %v10274_v48 = vadd.f32 %v19457_v38, %v10267_v33  ;;  %v10265_v5 = vpop.f32.mrb[251].mxu1  ;;  %v14407_v33 = vld [vmem:[%s20214_s4 + $0x204] ss:$8 sps:$4 sm:$0xff]   ;;  %v14409_v49 = vld [vmem:[%s20214_s4 + $0x200] ss:$8 sps:$4 sm:$0xff]  }
0x3d4a   :  { %v10275_v55 = vadd.f32 %v19457_v38, %v10268_v54  ;;  %v14410_v5 = vld [vmem:[%s20214_s4 + $0x214] ss:$8 sps:$4 sm:$0xff]  }
0x3d4b   :  { %v19462_v14 = vmax.f32 %v10274_v48, 0.0 }
0x3d4c   :  { %v19464_v0 = vmax.f32 %v10275_v55, 0.0 }
0x3d4d   :  { %v11109_v40 = vmul.f32 %v19462_v14, %v19462_v14 }
0x3d4e   :  { %v11106_v23 = vadd.f32 %v19464_v0, %v19462_v14  ;;  %v11110_v62 = vmul.f32 %v19464_v0, %v19464_v0 }
0x3d50   :  { %11107 = vadd.xlane.f32.xlu0 %v11106_v23  ;;  %v11111_v7 = vadd.f32 %v11110_v62, %v11109_v40  ;;  %v14411_v40 = vld [vmem:[%s20214_s4 + $0x210] ss:$8 sps:$4 sm:$0xff]   ;;  %v14412_v62 = vld [vmem:[%s20214_s4 + $0x224] ss:$8 sps:$4 sm:$0xff]  }
0x3d54   :  { %11112 = vadd.xlane.f32.xlu0 %v11111_v7  ;;  %v14413_v7 = vld [vmem:[%s20214_s4 + $0x220] ss:$8 sps:$4 sm:$0xff]  }
0x3d86   :  { %v10312_v39 = vpop.f32.mrb[252].mxu1 }
0x3d87   :  { %v10319_v42 = vpack.c.bf16 %v10312_v39, %v10312_v39  ;;  %v10314_v22 = vpop.f32.mrb[253].mxu1  ;;  %v14414_v39 = vld [vmem:[%s20214_s4 + $0x234] ss:$8 sps:$4 sm:$0xff]  }
0x3d88   :  { %v10320_v44 = vpack.c.bf16 %v10314_v22, %v10314_v22  ;;  %v10316_v36 = vpop.f32.mrb[254].mxu1  ;;  %v14416_v22 = vld [vmem:[%s20214_s4 + $0x244] ss:$8 sps:$4 sm:$0xff]  }
0x3d89   :  { %v10412_v45 = vsel %vm210_vm2, %v10319_v42, 0  ;;  %v10317_v51 = vpop.f32.mrb[255].mxu1  ;;  %v14415_v42 = vld [vmem:[%s20214_s4 + $0x230] ss:$8 sps:$4 sm:$0xff]   ;;  %v14418_v36 = vld [vmem:[%s20214_s4 + $0x254] ss:$8 sps:$4 sm:$0xff]  }
0x3d8a   :  { %12767 = vmatprep.subr.msk.bf16.mxu1 %vm210_vm2, %v10320_v44  ;;  %v14417_v44 = vld [vmem:[%s20214_s4 + $0x240] ss:$8 sps:$4 sm:$0xff]   ;;  %v14420_v51 = vld [vmem:[%s20214_s4 + $0x264] ss:$8 sps:$4 sm:$0xff]  }
0x3d8b   :  { %10418 = vmatpush1.bf16.msra.mxu1 %v10412_v45  ;;  %v14419_v45 = vld [vmem:[%s20214_s4 + $0x250] ss:$8 sps:$4 sm:$0xff]  }
0x3d8c   :  { %10458 = vmatprep.subr.bf16.mxu1 %v14407_v33  ;;  %v14421_v33 = vld [vmem:[%s20214_s4 + $0x260] ss:$8 sps:$4 sm:$0xff]  }
0x3d8e   :  { %12768 = vmatmul.mubr.msk.bf16.vlgmr.msra.gmra.mrb[4].mxu1 %vm206_vm3, %v14408_v32  ;;  %v19481_v54 = vpop.f32.mrb[0].mxu1  ;;  %v14422_v32 = vld [vmem:[%s20214_s4 + $0x274] ss:$8 sps:$4 sm:$0xff]  }
0x3d8f   :  { %10459 = vmatpush1.bf16.msra.mxu1 %v14409_v49  ;;  %10490 = vmatprep.mubr.bf16.mxu1 %v19232_v10  ;;  %v19487_v48 = vpop.f32.mrb[1].mxu1  ;;  %v14423_v49 = vld [vmem:[%s20214_s4 + $0x270] ss:$8 sps:$4 sm:$0xff]  }
0x3d90   :  { %10460 = vmatprep.subr.bf16.mxu1 %v14410_v5  ;;  %v10408_v55 = vpop.f32.mrb[2].mxu1  ;;  %v14424_v5 = vld [vmem:[%s20214_s4 + $0x284] ss:$8 sps:$4 sm:$0xff]  }
0x3d91   :  { %v10409_v23 = vpop.f32.mrb[3].mxu1  ;;  %v14425_v55 = vld [vmem:[%s20214_s4 + $0x280] ss:$8 sps:$4 sm:$0xff]  }
0x3d92   :  { %v14426_v23 = vld [vmem:[%s20214_s4 + $0x294] ss:$8 sps:$4 sm:$0xff]  }
0x3d93   :  { %10461 = vmatpush1.bf16.msra.mxu1 %v14411_v40  ;;  %v14427_v40 = vld [vmem:[%s20214_s4 + $0x290] ss:$8 sps:$4 sm:$0xff]  }
0x3d94   :  { %10462 = vmatprep.subr.bf16.mxu1 %v14412_v62  ;;  %v14428_v62 = vld [vmem:[%s20214_s4 + $0x2a4] ss:$8 sps:$4 sm:$0xff]  }
0x3d97   :  { %10463 = vmatpush1.bf16.msra.mxu1 %v14413_v7  ;;  %v14429_v7 = vld [vmem:[%s20214_s4 + $0x2a0] ss:$8 sps:$4 sm:$0xff]  }
0x3d98   :  { %10464 = vmatprep.subr.bf16.mxu1 %v14414_v39  ;;  %v14430_v39 = vld [vmem:[%s20214_s4 + $0x2b4] ss:$8 sps:$4 sm:$0xff]  }
0x3d9b   :  { %10465 = vmatpush1.bf16.msra.mxu1 %v14415_v42  ;;  %v14431_v42 = vld [vmem:[%s20214_s4 + $0x2b0] ss:$8 sps:$4 sm:$0xff]  }
0x3d9c   :  { %10466 = vmatprep.subr.bf16.mxu1 %v14416_v22  ;;  %v14432_v22 = vld [vmem:[%s20214_s4 + $0x2c4] ss:$8 sps:$4 sm:$0xff]  }
0x3d9f   :  { %10467 = vmatpush1.bf16.msra.mxu1 %v14417_v44  ;;  %v14433_v44 = vld [vmem:[%s20214_s4 + $0x2c0] ss:$8 sps:$4 sm:$0xff]  }
0x3da0   :  { %10468 = vmatprep.subr.bf16.mxu1 %v14418_v36  ;;  %v14434_v36 = vld [vmem:[%s20214_s4 + $0x2d4] ss:$8 sps:$4 sm:$0xff]  }
0x3da3   :  { %10469 = vmatpush1.bf16.msra.mxu1 %v14419_v45  ;;  %v14435_v45 = vld [vmem:[%s20214_s4 + $0x2d0] ss:$8 sps:$4 sm:$0xff]  }
0x3da4   :  { %10470 = vmatprep.subr.bf16.mxu1 %v14420_v51  ;;  %v14436_v51 = vld [vmem:[%s20214_s4 + $0x2e4] ss:$8 sps:$4 sm:$0xff]  }
0x3da7   :  { %10471 = vmatpush1.bf16.msra.mxu1 %v14421_v33  ;;  %v14437_v33 = vld [vmem:[%s20214_s4 + $0x2e0] ss:$8 sps:$4 sm:$0xff]  }
0x3da8   :  { %10472 = vmatprep.subr.bf16.mxu1 %v14422_v32  ;;  %v14438_v32 = vld [vmem:[%s20214_s4 + $0x2f4] ss:$8 sps:$4 sm:$0xff]  }
0x3dab   :  { %10473 = vmatpush1.bf16.msra.mxu1 %v14423_v49  ;;  %v14439_v49 = vld [vmem:[%s20214_s4 + $0x2f0] ss:$8 sps:$4 sm:$0xff]  }
0x3dac   :  { %10474 = vmatprep.subr.bf16.mxu1 %v14424_v5 }
0x3daf   :  { %10475 = vmatpush1.bf16.msra.mxu1 %v14425_v55 }
0x3db0   :  { %10476 = vmatprep.subr.bf16.mxu1 %v14426_v23 }
0x3db3   :  { %10477 = vmatpush1.bf16.msra.mxu1 %v14427_v40 }
0x3db4   :  { %10478 = vmatprep.subr.bf16.mxu1 %v14428_v62 }
0x3db7   :  { %10479 = vmatpush1.bf16.msra.mxu1 %v14429_v7 }
0x3db8   :  { %10480 = vmatprep.subr.bf16.mxu1 %v14430_v39 }
0x3dbb   :  { %10481 = vmatpush1.bf16.msra.mxu1 %v14431_v42 }
0x3dbc   :  { %10482 = vmatprep.subr.bf16.mxu1 %v14432_v22 }
0x3dbf   :  { %10483 = vmatpush1.bf16.msra.mxu1 %v14433_v44 }
0x3dc0   :  { %10484 = vmatprep.subr.bf16.mxu1 %v14434_v36 }
0x3dc3   :  { %10485 = vmatpush1.bf16.msra.mxu1 %v14435_v45 }
0x3dc4   :  { %10486 = vmatprep.subr.bf16.mxu1 %v14436_v51 }
0x3dc7   :  { %10487 = vmatpush1.bf16.msra.mxu1 %v14437_v33  ;;  %v14442_v33 = vld [vmem:[%s20214_s4 + $0x300] ss:$8 sps:$4 sm:$0xff]  }
0x3dc8   :  { %10488 = vmatprep.subr.bf16.mxu1 %v14438_v32  ;;  %v14443_v32 = vld [vmem:[%s20214_s4 + $0x314] ss:$8 sps:$4 sm:$0xff]  }
0x3dcb   :  { %10489 = vmatpush1.bf16.msra.mxu1 %v14439_v49  ;;  %v14444_v49 = vld [vmem:[%s20214_s4 + $0x310] ss:$8 sps:$4 sm:$0xff]  }
0x3dce   :  { %10491 = vmatmul.mubr.bf16.vlgmr.msra.gmra.mrb[8].mxu1 %v19331_v3 }
0x3dcf   :  { %10631 = vmatprep.mubr.bf16.mxu1 %v20394_v61 }
0x3e61   :  { %v10451_v5 = vpop.f32.mrb[4].mxu1 }
0x3e62   :  { %v19582_v55 = vadd.f32 %v10451_v5, %v19481_v54  ;;  %v10453_v23 = vpop.f32.mrb[5].mxu1  ;;  %v14440_v54 = vld [vmem:[%s20214_s4 + $0x304] ss:$8 sps:$4 sm:$0xff]  }
0x3e63   :  { %v19585_v40 = vadd.f32 %v10453_v23, %v19487_v48  ;;  %v10455_v62 = vpop.f32.mrb[6].mxu1  ;;  %v14441_v48 = vld [vmem:[%s20215_s8 + $0x8] sm:$0xf]  ;;  %v14445_v5 = vld [vmem:[%s20214_s4 + $0x324] ss:$8 sps:$4 sm:$0xff]  }
0x3e64   :  { %v10456_v7 = vpop.f32.mrb[7].mxu1  ;;  %v14446_v23 = vld [vmem:[%s20214_s4 + $0x320] ss:$8 sps:$4 sm:$0xff]   ;;  %v14447_v62 = vld [vmem:[%s20214_s4 + $0x334] ss:$8 sps:$4 sm:$0xff]  }
0x3e65   :  { %v14448_v7 = vld [vmem:[%s20214_s4 + $0x330] ss:$8 sps:$4 sm:$0xff]  }
0x3ea1   :  { %v10492_v39 = vpop.f32.mrb[8].mxu1 }
0x3ea2   :  { %v10499_v42 = vpack.c.bf16 %v10492_v39, %v10492_v39  ;;  %v10494_v22 = vpop.f32.mrb[9].mxu1  ;;  %v14449_v39 = vld [vmem:[%s20214_s4 + $0x344] ss:$8 sps:$4 sm:$0xff]  }
0x3ea3   :  { %v10500_v44 = vpack.c.bf16 %v10494_v22, %v10494_v22  ;;  %v10496_v36 = vpop.f32.mrb[10].mxu1  ;;  %v14451_v22 = vld [vmem:[%s20214_s4 + $0x354] ss:$8 sps:$4 sm:$0xff]  }
0x3ea4   :  { %v10502_v45 = vsel %vm210_vm2, %v10499_v42, 0  ;;  %v10497_v51 = vpop.f32.mrb[11].mxu1  ;;  %v14450_v42 = vld [vmem:[%s20214_s4 + $0x340] ss:$8 sps:$4 sm:$0xff]   ;;  %v14453_v36 = vld [vmem:[%s20214_s4 + $0x364] ss:$8 sps:$4 sm:$0xff]  }
0x3ea5   :  { %12769 = vmatprep.subr.msk.bf16.mxu0 %vm210_vm2, %v10500_v44  ;;  %v14452_v44 = vld [vmem:[%s20214_s4 + $0x350] ss:$8 sps:$4 sm:$0xff]   ;;  %v14455_v51 = vld [vmem:[%s20214_s4 + $0x374] ss:$8 sps:$4 sm:$0xff]  }
0x3ea6   :  { %10508 = vmatpush1.bf16.msra.mxu0 %v10502_v45  ;;  %v14454_v45 = vld [vmem:[%s20214_s4 + $0x360] ss:$8 sps:$4 sm:$0xff]  }
0x3ea7   :  { %10550 = vmatprep.subr.bf16.mxu0 %v14440_v54  ;;  %v14456_v54 = vld [vmem:[%s20214_s4 + $0x370] ss:$8 sps:$4 sm:$0xff]  }
0x3ea9   :  { %12770 = vmatmul.mubr.msk.bf16.vlgmr.msra.gmra.mrb[0].mxu0 %vm206_vm3, %v14441_v48  ;;  %v14457_v48 = vld [vmem:[%s20214_s4 + $0x384] ss:$8 sps:$4 sm:$0xff]  }
0x3eaa   :  { %10551 = vmatpush1.bf16.msra.mxu0 %v14442_v33  ;;  %10582 = vmatprep.mubr.bf16.mxu0 %v19232_v10  ;;  %v14458_v33 = vld [vmem:[%s20214_s4 + $0x380] ss:$8 sps:$4 sm:$0xff]  }
0x3eab   :  { %10552 = vmatprep.subr.bf16.mxu0 %v14443_v32  ;;  %v14459_v32 = vld [vmem:[%s20214_s4 + $0x394] ss:$8 sps:$4 sm:$0xff]  }
0x3eae   :  { %10553 = vmatpush1.bf16.msra.mxu0 %v14444_v49  ;;  %v14460_v49 = vld [vmem:[%s20214_s4 + $0x390] ss:$8 sps:$4 sm:$0xff]  }
0x3eaf   :  { %10554 = vmatprep.subr.bf16.mxu0 %v14445_v5  ;;  %v14461_v5 = vld [vmem:[%s20214_s4 + $0x3a4] ss:$8 sps:$4 sm:$0xff]  }
0x3eb2   :  { %10555 = vmatpush1.bf16.msra.mxu0 %v14446_v23  ;;  %v14462_v23 = vld [vmem:[%s20214_s4 + $0x3a0] ss:$8 sps:$4 sm:$0xff]  }
0x3eb3   :  { %10556 = vmatprep.subr.bf16.mxu0 %v14447_v62  ;;  %v14463_v62 = vld [vmem:[%s20214_s4 + $0x3b4] ss:$8 sps:$4 sm:$0xff]  }
0x3eb6   :  { %10557 = vmatpush1.bf16.msra.mxu0 %v14448_v7  ;;  %v14464_v7 = vld [vmem:[%s20214_s4 + $0x3b0] ss:$8 sps:$4 sm:$0xff]  }
0x3eb7   :  { %10558 = vmatprep.subr.bf16.mxu0 %v14449_v39  ;;  %v14465_v39 = vld [vmem:[%s20214_s4 + $0x3c4] ss:$8 sps:$4 sm:$0xff]  }
0x3eba   :  { %10559 = vmatpush1.bf16.msra.mxu0 %v14450_v42  ;;  %v14466_v42 = vld [vmem:[%s20214_s4 + $0x3c0] ss:$8 sps:$4 sm:$0xff]  }
0x3ebb   :  { %10560 = vmatprep.subr.bf16.mxu0 %v14451_v22  ;;  %v14467_v22 = vld [vmem:[%s20214_s4 + $0x3d4] ss:$8 sps:$4 sm:$0xff]  }
0x3ebe   :  { %10561 = vmatpush1.bf16.msra.mxu0 %v14452_v44  ;;  %v14468_v44 = vld [vmem:[%s20214_s4 + $0x3d0] ss:$8 sps:$4 sm:$0xff]  }
0x3ebf   :  { %10562 = vmatprep.subr.bf16.mxu0 %v14453_v36  ;;  %v14469_v36 = vld [vmem:[%s20214_s4 + $0x3e4] ss:$8 sps:$4 sm:$0xff]  }
0x3ec2   :  { %10563 = vmatpush1.bf16.msra.mxu0 %v14454_v45  ;;  %v14470_v45 = vld [vmem:[%s20214_s4 + $0x3e0] ss:$8 sps:$4 sm:$0xff]  }
0x3ec3   :  { %10564 = vmatprep.subr.bf16.mxu0 %v14455_v51  ;;  %v14471_v51 = vld [vmem:[%s20214_s4 + $0x3f4] ss:$8 sps:$4 sm:$0xff]  }
0x3ec6   :  { %10565 = vmatpush1.bf16.msra.mxu0 %v14456_v54  ;;  %v14472_v54 = vld [vmem:[%s20214_s4 + $0x3f0] ss:$8 sps:$4 sm:$0xff]  }
0x3ec7   :  { %10566 = vmatprep.subr.bf16.mxu0 %v14457_v48 }
0x3eca   :  { %10567 = vmatpush1.bf16.msra.mxu0 %v14458_v33 }
0x3ecb   :  { %10568 = vmatprep.subr.bf16.mxu0 %v14459_v32 }
0x3ece   :  { %10569 = vmatpush1.bf16.msra.mxu0 %v14460_v49 }
0x3ecf   :  { %10570 = vmatprep.subr.bf16.mxu0 %v14461_v5 }
0x3ed2   :  { %10571 = vmatpush1.bf16.msra.mxu0 %v14462_v23 }
0x3ed3   :  { %10572 = vmatprep.subr.bf16.mxu0 %v14463_v62 }
0x3ed6   :  { %10573 = vmatpush1.bf16.msra.mxu0 %v14464_v7 }
0x3ed7   :  { %10574 = vmatprep.subr.bf16.mxu0 %v14465_v39 }
0x3eda   :  { %10575 = vmatpush1.bf16.msra.mxu0 %v14466_v42 }
0x3edb   :  { %10576 = vmatprep.subr.bf16.mxu0 %v14467_v22 }
0x3ede   :  { %10577 = vmatpush1.bf16.msra.mxu0 %v14468_v44 }
0x3edf   :  { %10578 = vmatprep.subr.bf16.mxu0 %v14469_v36 }
0x3ee2   :  { %10579 = vmatpush1.bf16.msra.mxu0 %v14470_v45  ;;  %v14475_v45 = vld [vmem:[%s20214_s4 + $0x400] ss:$8 sps:$4 sm:$0xff]  }
0x3ee3   :  { %10580 = vmatprep.subr.bf16.mxu0 %v14471_v51  ;;  %v14476_v51 = vld [vmem:[%s20214_s4 + $0x414] ss:$8 sps:$4 sm:$0xff]  }
0x3ee6   :  { %10581 = vmatpush1.bf16.msra.mxu0 %v14472_v54  ;;  %v14477_v54 = vld [vmem:[%s20214_s4 + $0x410] ss:$8 sps:$4 sm:$0xff]  }
0x3ee9   :  { %10583 = vmatmul.mubr.bf16.vlgmr.msra.gmra.mrb[4].mxu0 %v19331_v3 }
0x3eea   :  { %10723 = vmatprep.mubr.bf16.mxu0 %v20394_v61 }
0x3f7c   :  { %v10541_v48 = vpop.f32.mrb[0].mxu0 }
0x3f7d   :  { %v19693_v33 = vadd.f32 %v10541_v48, %v19582_v55  ;;  %v10543_v32 = vpop.f32.mrb[1].mxu0  ;;  %v14473_v55 = vld [vmem:[%s20214_s4 + $0x404] ss:$8 sps:$4 sm:$0xff]  }
0x3f7e   :  { %v19696_v49 = vadd.f32 %v10543_v32, %v19585_v40  ;;  %v10545_v5 = vpop.f32.mrb[2].mxu0  ;;  %v14474_v40 = vld [vmem:[%s20215_s8 + $0xc] sm:$0xf]  ;;  %v14479_v32 = vld [vmem:[%s20214_s4 + $0x420] ss:$8 sps:$4 sm:$0xff]  }
0x3f7f   :  { %v10546_v23 = vpop.f32.mrb[3].mxu0  ;;  %v14478_v48 = vld [vmem:[%s20214_s4 + $0x424] ss:$8 sps:$4 sm:$0xff]   ;;  %v14480_v5 = vld [vmem:[%s20214_s4 + $0x434] ss:$8 sps:$4 sm:$0xff]  }
0x3f80   :  { %v14481_v23 = vld [vmem:[%s20214_s4 + $0x430] ss:$8 sps:$4 sm:$0xff]  }
0x3fbc   :  { %v10584_v62 = vpop.f32.mrb[4].mxu0 }
0x3fbd   :  { %v10591_v7 = vpack.c.bf16 %v10584_v62, %v10584_v62  ;;  %v10586_v39 = vpop.f32.mrb[5].mxu0  ;;  %v14482_v62 = vld [vmem:[%s20214_s4 + $0x444] ss:$8 sps:$4 sm:$0xff]  }
0x3fbe   :  { %v10592_v42 = vpack.c.bf16 %v10586_v39, %v10586_v39  ;;  %v10588_v22 = vpop.f32.mrb[6].mxu0  ;;  %v14484_v39 = vld [vmem:[%s20214_s4 + $0x454] ss:$8 sps:$4 sm:$0xff]  }
0x3fbf   :  { %v10594_v44 = vsel %vm210_vm2, %v10591_v7, 0  ;;  %v10589_v36 = vpop.f32.mrb[7].mxu0  ;;  %v14483_v7 = vld [vmem:[%s20214_s4 + $0x440] ss:$8 sps:$4 sm:$0xff]   ;;  %v14486_v22 = vld [vmem:[%s20214_s4 + $0x464] ss:$8 sps:$4 sm:$0xff]  }
0x3fc0   :  { %12771 = vmatprep.subr.msk.bf16.mxu1 %vm210_vm2, %v10592_v42  ;;  %v14485_v42 = vld [vmem:[%s20214_s4 + $0x450] ss:$8 sps:$4 sm:$0xff]   ;;  %v14488_v36 = vld [vmem:[%s20214_s4 + $0x474] ss:$8 sps:$4 sm:$0xff]  }
0x3fc1   :  { %10600 = vmatpush1.bf16.msra.mxu1 %v10594_v44  ;;  %v14487_v44 = vld [vmem:[%s20214_s4 + $0x460] ss:$8 sps:$4 sm:$0xff]  }
0x3fc2   :  { %10642 = vmatprep.subr.bf16.mxu1 %v14473_v55  ;;  %v14489_v55 = vld [vmem:[%s20214_s4 + $0x470] ss:$8 sps:$4 sm:$0xff]  }
0x3fc4   :  { %12772 = vmatmul.mubr.msk.bf16.vlgmr.msra.gmra.mrb[12].mxu1 %vm206_vm3, %v14474_v40  ;;  %v14490_v40 = vld [vmem:[%s20214_s4 + $0x484] ss:$8 sps:$4 sm:$0xff]  }
0x3fc5   :  { %10643 = vmatpush1.bf16.msra.mxu1 %v14475_v45  ;;  %10674 = vmatprep.mubr.bf16.mxu1 %v19232_v10  ;;  %v14491_v45 = vld [vmem:[%s20214_s4 + $0x480] ss:$8 sps:$4 sm:$0xff]  }
0x3fc6   :  { %10644 = vmatprep.subr.bf16.mxu1 %v14476_v51  ;;  %v14492_v51 = vld [vmem:[%s20214_s4 + $0x494] ss:$8 sps:$4 sm:$0xff]  }
0x3fc9   :  { %10645 = vmatpush1.bf16.msra.mxu1 %v14477_v54  ;;  %v14493_v54 = vld [vmem:[%s20214_s4 + $0x490] ss:$8 sps:$4 sm:$0xff]  }
0x3fca   :  { %10646 = vmatprep.subr.bf16.mxu1 %v14478_v48  ;;  %v14494_v48 = vld [vmem:[%s20214_s4 + $0x4a4] ss:$8 sps:$4 sm:$0xff]  }
0x3fcd   :  { %10647 = vmatpush1.bf16.msra.mxu1 %v14479_v32  ;;  %v14495_v32 = vld [vmem:[%s20214_s4 + $0x4a0] ss:$8 sps:$4 sm:$0xff]  }
0x3fce   :  { %10648 = vmatprep.subr.bf16.mxu1 %v14480_v5  ;;  %v14496_v5 = vld [vmem:[%s20214_s4 + $0x4b4] ss:$8 sps:$4 sm:$0xff]  }
0x3fd1   :  { %10649 = vmatpush1.bf16.msra.mxu1 %v14481_v23  ;;  %v14497_v23 = vld [vmem:[%s20214_s4 + $0x4b0] ss:$8 sps:$4 sm:$0xff]  }
0x3fd2   :  { %10650 = vmatprep.subr.bf16.mxu1 %v14482_v62  ;;  %v14498_v62 = vld [vmem:[%s20214_s4 + $0x4c4] ss:$8 sps:$4 sm:$0xff]  }
0x3fd5   :  { %10651 = vmatpush1.bf16.msra.mxu1 %v14483_v7  ;;  %v14499_v7 = vld [vmem:[%s20214_s4 + $0x4c0] ss:$8 sps:$4 sm:$0xff]  }
0x3fd6   :  { %10652 = vmatprep.subr.bf16.mxu1 %v14484_v39  ;;  %v14500_v39 = vld [vmem:[%s20214_s4 + $0x4d4] ss:$8 sps:$4 sm:$0xff]  }
0x3fd9   :  { %10653 = vmatpush1.bf16.msra.mxu1 %v14485_v42  ;;  %v14501_v42 = vld [vmem:[%s20214_s4 + $0x4d0] ss:$8 sps:$4 sm:$0xff]  }
0x3fda   :  { %10654 = vmatprep.subr.bf16.mxu1 %v14486_v22  ;;  %v14502_v22 = vld [vmem:[%s20214_s4 + $0x4e4] ss:$8 sps:$4 sm:$0xff]  }
0x3fdd   :  { %10655 = vmatpush1.bf16.msra.mxu1 %v14487_v44  ;;  %v14503_v44 = vld [vmem:[%s20214_s4 + $0x4e0] ss:$8 sps:$4 sm:$0xff]  }
0x3fde   :  { %10656 = vmatprep.subr.bf16.mxu1 %v14488_v36  ;;  %v14504_v36 = vld [vmem:[%s20214_s4 + $0x4f4] ss:$8 sps:$4 sm:$0xff]  }
0x3fe1   :  { %10657 = vmatpush1.bf16.msra.mxu1 %v14489_v55  ;;  %v14505_v55 = vld [vmem:[%s20214_s4 + $0x4f0] ss:$8 sps:$4 sm:$0xff]  }
0x3fe2   :  { %10658 = vmatprep.subr.bf16.mxu1 %v14490_v40 }
0x3fe5   :  { %10659 = vmatpush1.bf16.msra.mxu1 %v14491_v45 }
0x3fe6   :  { %10660 = vmatprep.subr.bf16.mxu1 %v14492_v51 }
0x3fe9   :  { %10661 = vmatpush1.bf16.msra.mxu1 %v14493_v54 }
0x3fea   :  { %10662 = vmatprep.subr.bf16.mxu1 %v14494_v48 }
0x3fed   :  { %10663 = vmatpush1.bf16.msra.mxu1 %v14495_v32 }
0x3fee   :  { %10664 = vmatprep.subr.bf16.mxu1 %v14496_v5 }
0x3ff1   :  { %10665 = vmatpush1.bf16.msra.mxu1 %v14497_v23 }
0x3ff2   :  { %10666 = vmatprep.subr.bf16.mxu1 %v14498_v62 }
0x3ff5   :  { %10667 = vmatpush1.bf16.msra.mxu1 %v14499_v7 }
0x3ff6   :  { %10668 = vmatprep.subr.bf16.mxu1 %v14500_v39 }
0x3ff9   :  { %10669 = vmatpush1.bf16.msra.mxu1 %v14501_v42 }
0x3ffa   :  { %10670 = vmatprep.subr.bf16.mxu1 %v14502_v22 }
0x3ffd   :  { %10671 = vmatpush1.bf16.msra.mxu1 %v14503_v44  ;;  %v14508_v44 = vld [vmem:[%s20214_s4 + $0x500] ss:$8 sps:$4 sm:$0xff]  }
0x3ffe   :  { %10672 = vmatprep.subr.bf16.mxu1 %v14504_v36  ;;  %v14509_v36 = vld [vmem:[%s20214_s4 + $0x514] ss:$8 sps:$4 sm:$0xff]  }
0x4001   :  { %10673 = vmatpush1.bf16.msra.mxu1 %v14505_v55  ;;  %v14510_v55 = vld [vmem:[%s20214_s4 + $0x510] ss:$8 sps:$4 sm:$0xff]  }
0x4004   :  { %10675 = vmatmul.mubr.bf16.vlgmr.msra.gmra.mrb[16].mxu1 %v19331_v3 }
0x4005   :  { %10815 = vmatprep.mubr.bf16.mxu1 %v20394_v61 }
0x4097   :  { %v10633_v40 = vpop.f32.mrb[12].mxu1 }
0x4098   :  { %v19804_v45 = vadd.f32 %v10633_v40, %v19693_v33  ;;  %v10635_v51 = vpop.f32.mrb[13].mxu1  ;;  %v14506_v33 = vld [vmem:[%s20214_s4 + $0x504] ss:$8 sps:$4 sm:$0xff]  }
0x4099   :  { %v19807_v54 = vadd.f32 %v10635_v51, %v19696_v49  ;;  %v10637_v48 = vpop.f32.mrb[14].mxu1  ;;  %v14507_v49 = vld [vmem:[%s20215_s8 + $0x10] sm:$0xf]  ;;  %v14511_v40 = vld [vmem:[%s20214_s4 + $0x524] ss:$8 sps:$4 sm:$0xff]  }
0x409a   :  { %v10638_v32 = vpop.f32.mrb[15].mxu1  ;;  %v14512_v51 = vld [vmem:[%s20214_s4 + $0x520] ss:$8 sps:$4 sm:$0xff]   ;;  %v14513_v48 = vld [vmem:[%s20214_s4 + $0x534] ss:$8 sps:$4 sm:$0xff]  }
0x409b   :  { %v14514_v32 = vld [vmem:[%s20214_s4 + $0x530] ss:$8 sps:$4 sm:$0xff]  }
0x40d7   :  { %v10676_v5 = vpop.f32.mrb[16].mxu1 }
0x40d8   :  { %v10683_v23 = vpack.c.bf16 %v10676_v5, %v10676_v5  ;;  %v10678_v62 = vpop.f32.mrb[17].mxu1  ;;  %v14515_v5 = vld [vmem:[%s20214_s4 + $0x544] ss:$8 sps:$4 sm:$0xff]  }
0x40d9   :  { %v10684_v7 = vpack.c.bf16 %v10678_v62, %v10678_v62  ;;  %v10680_v39 = vpop.f32.mrb[18].mxu1  ;;  %v14517_v62 = vld [vmem:[%s20214_s4 + $0x554] ss:$8 sps:$4 sm:$0xff]  }
0x40da   :  { %v10686_v42 = vsel %vm210_vm2, %v10683_v23, 0  ;;  %v10681_v22 = vpop.f32.mrb[19].mxu1  ;;  %v14516_v23 = vld [vmem:[%s20214_s4 + $0x540] ss:$8 sps:$4 sm:$0xff]   ;;  %v14519_v39 = vld [vmem:[%s20214_s4 + $0x564] ss:$8 sps:$4 sm:$0xff]  }
0x40db   :  { %12773 = vmatprep.subr.msk.bf16.mxu0 %vm210_vm2, %v10684_v7  ;;  %v14518_v7 = vld [vmem:[%s20214_s4 + $0x550] ss:$8 sps:$4 sm:$0xff]   ;;  %v14521_v22 = vld [vmem:[%s20214_s4 + $0x574] ss:$8 sps:$4 sm:$0xff]  }
0x40dc   :  { %10692 = vmatpush1.bf16.msra.mxu0 %v10686_v42  ;;  %v14520_v42 = vld [vmem:[%s20214_s4 + $0x560] ss:$8 sps:$4 sm:$0xff]  }
0x40dd   :  { %10734 = vmatprep.subr.bf16.mxu0 %v14506_v33  ;;  %v14522_v33 = vld [vmem:[%s20214_s4 + $0x570] ss:$8 sps:$4 sm:$0xff]  }
0x40df   :  { %12774 = vmatmul.mubr.msk.bf16.vlgmr.msra.gmra.mrb[8].mxu0 %vm206_vm3, %v14507_v49  ;;  %v14523_v49 = vld [vmem:[%s20214_s4 + $0x584] ss:$8 sps:$4 sm:$0xff]  }
0x40e0   :  { %10735 = vmatpush1.bf16.msra.mxu0 %v14508_v44  ;;  %10766 = vmatprep.mubr.bf16.mxu0 %v19232_v10  ;;  %v14524_v44 = vld [vmem:[%s20214_s4 + $0x580] ss:$8 sps:$4 sm:$0xff]  }
0x40e1   :  { %10736 = vmatprep.subr.bf16.mxu0 %v14509_v36  ;;  %v14525_v36 = vld [vmem:[%s20214_s4 + $0x594] ss:$8 sps:$4 sm:$0xff]  }
0x40e4   :  { %10737 = vmatpush1.bf16.msra.mxu0 %v14510_v55  ;;  %v14526_v55 = vld [vmem:[%s20214_s4 + $0x590] ss:$8 sps:$4 sm:$0xff]  }
0x40e5   :  { %10738 = vmatprep.subr.bf16.mxu0 %v14511_v40  ;;  %v14527_v40 = vld [vmem:[%s20214_s4 + $0x5a4] ss:$8 sps:$4 sm:$0xff]  }
0x40e8   :  { %10739 = vmatpush1.bf16.msra.mxu0 %v14512_v51  ;;  %v14528_v51 = vld [vmem:[%s20214_s4 + $0x5a0] ss:$8 sps:$4 sm:$0xff]  }
0x40e9   :  { %10740 = vmatprep.subr.bf16.mxu0 %v14513_v48  ;;  %v14529_v48 = vld [vmem:[%s20214_s4 + $0x5b4] ss:$8 sps:$4 sm:$0xff]  }
0x40ec   :  { %10741 = vmatpush1.bf16.msra.mxu0 %v14514_v32  ;;  %v14530_v32 = vld [vmem:[%s20214_s4 + $0x5b0] ss:$8 sps:$4 sm:$0xff]  }
0x40ed   :  { %10742 = vmatprep.subr.bf16.mxu0 %v14515_v5  ;;  %v14531_v5 = vld [vmem:[%s20214_s4 + $0x5c4] ss:$8 sps:$4 sm:$0xff]  }
0x40f0   :  { %10743 = vmatpush1.bf16.msra.mxu0 %v14516_v23  ;;  %v14532_v23 = vld [vmem:[%s20214_s4 + $0x5c0] ss:$8 sps:$4 sm:$0xff]  }
0x40f1   :  { %10744 = vmatprep.subr.bf16.mxu0 %v14517_v62  ;;  %v14533_v62 = vld [vmem:[%s20214_s4 + $0x5d4] ss:$8 sps:$4 sm:$0xff]  }
0x40f4   :  { %10745 = vmatpush1.bf16.msra.mxu0 %v14518_v7  ;;  %v14534_v7 = vld [vmem:[%s20214_s4 + $0x5d0] ss:$8 sps:$4 sm:$0xff]  }
0x40f5   :  { %10746 = vmatprep.subr.bf16.mxu0 %v14519_v39  ;;  %v14535_v39 = vld [vmem:[%s20214_s4 + $0x5e4] ss:$8 sps:$4 sm:$0xff]  }
0x40f8   :  { %10747 = vmatpush1.bf16.msra.mxu0 %v14520_v42  ;;  %v14536_v42 = vld [vmem:[%s20214_s4 + $0x5e0] ss:$8 sps:$4 sm:$0xff]  }
0x40f9   :  { %10748 = vmatprep.subr.bf16.mxu0 %v14521_v22  ;;  %v14537_v22 = vld [vmem:[%s20214_s4 + $0x5f4] ss:$8 sps:$4 sm:$0xff]  }
0x40fc   :  { %10749 = vmatpush1.bf16.msra.mxu0 %v14522_v33  ;;  %v14538_v33 = vld [vmem:[%s20214_s4 + $0x5f0] ss:$8 sps:$4 sm:$0xff]  }
0x40fd   :  { %10750 = vmatprep.subr.bf16.mxu0 %v14523_v49 }
0x4100   :  { %10751 = vmatpush1.bf16.msra.mxu0 %v14524_v44 }
0x4101   :  { %10752 = vmatprep.subr.bf16.mxu0 %v14525_v36 }
0x4104   :  { %10753 = vmatpush1.bf16.msra.mxu0 %v14526_v55 }
0x4105   :  { %10754 = vmatprep.subr.bf16.mxu0 %v14527_v40 }
0x4108   :  { %10755 = vmatpush1.bf16.msra.mxu0 %v14528_v51 }
0x4109   :  { %10756 = vmatprep.subr.bf16.mxu0 %v14529_v48 }
0x410c   :  { %10757 = vmatpush1.bf16.msra.mxu0 %v14530_v32 }
0x410d   :  { %10758 = vmatprep.subr.bf16.mxu0 %v14531_v5 }
0x4110   :  { %10759 = vmatpush1.bf16.msra.mxu0 %v14532_v23 }
0x4111   :  { %10760 = vmatprep.subr.bf16.mxu0 %v14533_v62 }
0x4114   :  { %10761 = vmatpush1.bf16.msra.mxu0 %v14534_v7 }
0x4115   :  { %10762 = vmatprep.subr.bf16.mxu0 %v14535_v39 }
0x4118   :  { %10763 = vmatpush1.bf16.msra.mxu0 %v14536_v42  ;;  %v14541_v42 = vld [vmem:[%s20214_s4 + $0x600] ss:$8 sps:$4 sm:$0xff]  }
0x4119   :  { %10764 = vmatprep.subr.bf16.mxu0 %v14537_v22  ;;  %v14542_v22 = vld [vmem:[%s20214_s4 + $0x614] ss:$8 sps:$4 sm:$0xff]  }
0x411c   :  { %10765 = vmatpush1.bf16.msra.mxu0 %v14538_v33  ;;  %v14543_v33 = vld [vmem:[%s20214_s4 + $0x610] ss:$8 sps:$4 sm:$0xff]  }
0x411f   :  { %10767 = vmatmul.mubr.bf16.vlgmr.msra.gmra.mrb[12].mxu0 %v19331_v3 }
0x4120   :  { %10907 = vmatprep.mubr.bf16.mxu0 %v20394_v61 }
0x41b2   :  { %v10725_v49 = vpop.f32.mrb[8].mxu0 }
0x41b3   :  { %v19915_v44 = vadd.f32 %v10725_v49, %v19804_v45  ;;  %v10727_v36 = vpop.f32.mrb[9].mxu0  ;;  %v14539_v45 = vld [vmem:[%s20214_s4 + $0x604] ss:$8 sps:$4 sm:$0xff]  }
0x41b4   :  { %v19918_v55 = vadd.f32 %v10727_v36, %v19807_v54  ;;  %v10729_v40 = vpop.f32.mrb[10].mxu0  ;;  %v14540_v54 = vld [vmem:[%s20215_s8 + $0x14] sm:$0xf]  ;;  %v14544_v49 = vld [vmem:[%s20214_s4 + $0x624] ss:$8 sps:$4 sm:$0xff]  }
0x41b5   :  { %v10730_v51 = vpop.f32.mrb[11].mxu0  ;;  %v14545_v36 = vld [vmem:[%s20214_s4 + $0x620] ss:$8 sps:$4 sm:$0xff]   ;;  %v14546_v40 = vld [vmem:[%s20214_s4 + $0x634] ss:$8 sps:$4 sm:$0xff]  }
0x41b6   :  { %v14547_v51 = vld [vmem:[%s20214_s4 + $0x630] ss:$8 sps:$4 sm:$0xff]  }
0x41f2   :  { %v10768_v48 = vpop.f32.mrb[12].mxu0 }
0x41f3   :  { %v10775_v32 = vpack.c.bf16 %v10768_v48, %v10768_v48  ;;  %v10770_v5 = vpop.f32.mrb[13].mxu0  ;;  %v14548_v48 = vld [vmem:[%s20214_s4 + $0x644] ss:$8 sps:$4 sm:$0xff]  }
0x41f4   :  { %v10776_v23 = vpack.c.bf16 %v10770_v5, %v10770_v5  ;;  %v10772_v62 = vpop.f32.mrb[14].mxu0  ;;  %v14550_v5 = vld [vmem:[%s20214_s4 + $0x654] ss:$8 sps:$4 sm:$0xff]  }
0x41f5   :  { %v10778_v7 = vsel %vm210_vm2, %v10775_v32, 0  ;;  %v10773_v39 = vpop.f32.mrb[15].mxu0  ;;  %v14549_v32 = vld [vmem:[%s20214_s4 + $0x640] ss:$8 sps:$4 sm:$0xff]   ;;  %v14552_v62 = vld [vmem:[%s20214_s4 + $0x664] ss:$8 sps:$4 sm:$0xff]  }
0x41f6   :  { %12775 = vmatprep.subr.msk.bf16.mxu1 %vm210_vm2, %v10776_v23  ;;  %v14551_v23 = vld [vmem:[%s20214_s4 + $0x650] ss:$8 sps:$4 sm:$0xff]   ;;  %v14554_v39 = vld [vmem:[%s20214_s4 + $0x674] ss:$8 sps:$4 sm:$0xff]  }
0x41f7   :  { %10784 = vmatpush1.bf16.msra.mxu1 %v10778_v7  ;;  %v14553_v7 = vld [vmem:[%s20214_s4 + $0x660] ss:$8 sps:$4 sm:$0xff]  }
0x41f8   :  { %10826 = vmatprep.subr.bf16.mxu1 %v14539_v45  ;;  %v14555_v45 = vld [vmem:[%s20214_s4 + $0x670] ss:$8 sps:$4 sm:$0xff]  }
0x41fa   :  { %12776 = vmatmul.mubr.msk.bf16.vlgmr.msra.gmra.mrb[20].mxu1 %vm206_vm3, %v14540_v54  ;;  %v14556_v54 = vld [vmem:[%s20214_s4 + $0x684] ss:$8 sps:$4 sm:$0xff]  }
0x41fb   :  { %10827 = vmatpush1.bf16.msra.mxu1 %v14541_v42  ;;  %10858 = vmatprep.mubr.bf16.mxu1 %v19232_v10  ;;  %v14557_v42 = vld [vmem:[%s20214_s4 + $0x680] ss:$8 sps:$4 sm:$0xff]  }
0x41fc   :  { %10828 = vmatprep.subr.bf16.mxu1 %v14542_v22  ;;  %v14558_v22 = vld [vmem:[%s20214_s4 + $0x694] ss:$8 sps:$4 sm:$0xff]  }
0x41ff   :  { %10829 = vmatpush1.bf16.msra.mxu1 %v14543_v33  ;;  %v14559_v33 = vld [vmem:[%s20214_s4 + $0x690] ss:$8 sps:$4 sm:$0xff]  }
0x4200   :  { %10830 = vmatprep.subr.bf16.mxu1 %v14544_v49  ;;  %v14560_v49 = vld [vmem:[%s20214_s4 + $0x6a4] ss:$8 sps:$4 sm:$0xff]  }
0x4203   :  { %10831 = vmatpush1.bf16.msra.mxu1 %v14545_v36  ;;  %v14561_v36 = vld [vmem:[%s20214_s4 + $0x6a0] ss:$8 sps:$4 sm:$0xff]  }
0x4204   :  { %10832 = vmatprep.subr.bf16.mxu1 %v14546_v40  ;;  %v14562_v40 = vld [vmem:[%s20214_s4 + $0x6b4] ss:$8 sps:$4 sm:$0xff]  }
0x4207   :  { %10833 = vmatpush1.bf16.msra.mxu1 %v14547_v51  ;;  %v14563_v51 = vld [vmem:[%s20214_s4 + $0x6b0] ss:$8 sps:$4 sm:$0xff]  }
0x4208   :  { %10834 = vmatprep.subr.bf16.mxu1 %v14548_v48  ;;  %v14564_v48 = vld [vmem:[%s20214_s4 + $0x6c4] ss:$8 sps:$4 sm:$0xff]  }
0x420b   :  { %10835 = vmatpush1.bf16.msra.mxu1 %v14549_v32  ;;  %v14565_v32 = vld [vmem:[%s20214_s4 + $0x6c0] ss:$8 sps:$4 sm:$0xff]  }
0x420c   :  { %10836 = vmatprep.subr.bf16.mxu1 %v14550_v5  ;;  %v14566_v5 = vld [vmem:[%s20214_s4 + $0x6d4] ss:$8 sps:$4 sm:$0xff]  }
0x420f   :  { %10837 = vmatpush1.bf16.msra.mxu1 %v14551_v23  ;;  %v14567_v23 = vld [vmem:[%s20214_s4 + $0x6d0] ss:$8 sps:$4 sm:$0xff]  }
0x4210   :  { %10838 = vmatprep.subr.bf16.mxu1 %v14552_v62  ;;  %v14568_v62 = vld [vmem:[%s20214_s4 + $0x6e4] ss:$8 sps:$4 sm:$0xff]  }
0x4213   :  { %10839 = vmatpush1.bf16.msra.mxu1 %v14553_v7  ;;  %v14569_v7 = vld [vmem:[%s20214_s4 + $0x6e0] ss:$8 sps:$4 sm:$0xff]  }
0x4214   :  { %10840 = vmatprep.subr.bf16.mxu1 %v14554_v39  ;;  %v14570_v39 = vld [vmem:[%s20214_s4 + $0x6f4] ss:$8 sps:$4 sm:$0xff]  }
0x4217   :  { %10841 = vmatpush1.bf16.msra.mxu1 %v14555_v45  ;;  %v14571_v45 = vld [vmem:[%s20214_s4 + $0x6f0] ss:$8 sps:$4 sm:$0xff]  }
0x4218   :  { %10842 = vmatprep.subr.bf16.mxu1 %v14556_v54 }
0x421b   :  { %10843 = vmatpush1.bf16.msra.mxu1 %v14557_v42 }
0x421c   :  { %10844 = vmatprep.subr.bf16.mxu1 %v14558_v22 }
0x421f   :  { %10845 = vmatpush1.bf16.msra.mxu1 %v14559_v33 }
0x4220   :  { %10846 = vmatprep.subr.bf16.mxu1 %v14560_v49 }
0x4223   :  { %10847 = vmatpush1.bf16.msra.mxu1 %v14561_v36 }
0x4224   :  { %10848 = vmatprep.subr.bf16.mxu1 %v14562_v40 }
0x4227   :  { %10849 = vmatpush1.bf16.msra.mxu1 %v14563_v51 }
0x4228   :  { %10850 = vmatprep.subr.bf16.mxu1 %v14564_v48 }
0x422b   :  { %10851 = vmatpush1.bf16.msra.mxu1 %v14565_v32 }
0x422c   :  { %10852 = vmatprep.subr.bf16.mxu1 %v14566_v5 }
0x422f   :  { %10853 = vmatpush1.bf16.msra.mxu1 %v14567_v23 }
0x4230   :  { %10854 = vmatprep.subr.bf16.mxu1 %v14568_v62 }
0x4233   :  { %10855 = vmatpush1.bf16.msra.mxu1 %v14569_v7  ;;  %v14574_v7 = vld [vmem:[%s20214_s4 + $0x700] ss:$8 sps:$4 sm:$0xff]  }
0x4234   :  { %10856 = vmatprep.subr.bf16.mxu1 %v14570_v39  ;;  %v14575_v39 = vld [vmem:[%s20214_s4 + $0x714] ss:$8 sps:$4 sm:$0xff]  }
0x4237   :  { %10857 = vmatpush1.bf16.msra.mxu1 %v14571_v45  ;;  %v14576_v45 = vld [vmem:[%s20214_s4 + $0x710] ss:$8 sps:$4 sm:$0xff]  }
0x423a   :  { %10859 = vmatmul.mubr.bf16.vlgmr.msra.gmra.mrb[24].mxu1 %v19331_v3 }
0x423b   :  { %10999 = vmatprep.mubr.bf16.mxu1 %v20394_v61 }
0x42cd   :  { %v10817_v54 = vpop.f32.mrb[20].mxu1 }
0x42ce   :  { %v20026_v42 = vadd.f32 %v10817_v54, %v19915_v44  ;;  %v10819_v22 = vpop.f32.mrb[21].mxu1  ;;  %v14572_v44 = vld [vmem:[%s20214_s4 + $0x704] ss:$8 sps:$4 sm:$0xff]  }
0x42cf   :  { %v20029_v33 = vadd.f32 %v10819_v22, %v19918_v55  ;;  %v10821_v49 = vpop.f32.mrb[22].mxu1  ;;  %v14573_v55 = vld [vmem:[%s20215_s8 + $0x18] sm:$0xf]  ;;  %v14577_v54 = vld [vmem:[%s20214_s4 + $0x724] ss:$8 sps:$4 sm:$0xff]  }
0x42d0   :  { %v10822_v36 = vpop.f32.mrb[23].mxu1  ;;  %v14578_v22 = vld [vmem:[%s20214_s4 + $0x720] ss:$8 sps:$4 sm:$0xff]   ;;  %v14579_v49 = vld [vmem:[%s20214_s4 + $0x734] ss:$8 sps:$4 sm:$0xff]  }
0x42d1   :  { %v14580_v36 = vld [vmem:[%s20214_s4 + $0x730] ss:$8 sps:$4 sm:$0xff]  }
0x430d   :  { %v10860_v40 = vpop.f32.mrb[24].mxu1 }
0x430e   :  { %v10867_v51 = vpack.c.bf16 %v10860_v40, %v10860_v40  ;;  %v10862_v48 = vpop.f32.mrb[25].mxu1  ;;  %v14581_v40 = vld [vmem:[%s20214_s4 + $0x744] ss:$8 sps:$4 sm:$0xff]  }
0x430f   :  { %v10868_v32 = vpack.c.bf16 %v10862_v48, %v10862_v48  ;;  %v10864_v5 = vpop.f32.mrb[26].mxu1  ;;  %v14583_v48 = vld [vmem:[%s20214_s4 + $0x754] ss:$8 sps:$4 sm:$0xff]  }
0x4310   :  { %v10870_v23 = vsel %vm210_vm2, %v10867_v51, 0  ;;  %v10865_v62 = vpop.f32.mrb[27].mxu1  ;;  %v14582_v51 = vld [vmem:[%s20214_s4 + $0x740] ss:$8 sps:$4 sm:$0xff]   ;;  %v14585_v5 = vld [vmem:[%s20214_s4 + $0x764] ss:$8 sps:$4 sm:$0xff]  }
0x4311   :  { %12777 = vmatprep.subr.msk.bf16.mxu0 %vm210_vm2, %v10868_v32  ;;  %v14584_v32 = vld [vmem:[%s20214_s4 + $0x750] ss:$8 sps:$4 sm:$0xff]   ;;  %v14587_v62 = vld [vmem:[%s20214_s4 + $0x774] ss:$8 sps:$4 sm:$0xff]  }
0x4312   :  { %10876 = vmatpush1.bf16.msra.mxu0 %v10870_v23  ;;  %v14586_v23 = vld [vmem:[%s20214_s4 + $0x760] ss:$8 sps:$4 sm:$0xff]  }
0x4313   :  { %10918 = vmatprep.subr.bf16.mxu0 %v14572_v44  ;;  %v14588_v44 = vld [vmem:[%s20214_s4 + $0x770] ss:$8 sps:$4 sm:$0xff]  }
0x4315   :  { %12778 = vmatmul.mubr.msk.bf16.vlgmr.msra.gmra.mrb[16].mxu0 %vm206_vm3, %v14573_v55  ;;  %v14589_v55 = vld [vmem:[%s20214_s4 + $0x784] ss:$8 sps:$4 sm:$0xff]  }
0x4316   :  { %10919 = vmatpush1.bf16.msra.mxu0 %v14574_v7  ;;  %10950 = vmatprep.mubr.bf16.mxu0 %v19232_v10  ;;  %v14590_v7 = vld [vmem:[%s20214_s4 + $0x780] ss:$8 sps:$4 sm:$0xff]  }
0x4317   :  { %10920 = vmatprep.subr.bf16.mxu0 %v14575_v39  ;;  %v14591_v39 = vld [vmem:[%s20214_s4 + $0x794] ss:$8 sps:$4 sm:$0xff]  }
0x431a   :  { %10921 = vmatpush1.bf16.msra.mxu0 %v14576_v45  ;;  %v14592_v45 = vld [vmem:[%s20214_s4 + $0x790] ss:$8 sps:$4 sm:$0xff]  }
0x431b   :  { %10922 = vmatprep.subr.bf16.mxu0 %v14577_v54  ;;  %v14593_v54 = vld [vmem:[%s20214_s4 + $0x7a4] ss:$8 sps:$4 sm:$0xff]  }
0x431e   :  { %10923 = vmatpush1.bf16.msra.mxu0 %v14578_v22  ;;  %v14594_v22 = vld [vmem:[%s20214_s4 + $0x7a0] ss:$8 sps:$4 sm:$0xff]  }
0x431f   :  { %10924 = vmatprep.subr.bf16.mxu0 %v14579_v49  ;;  %v14595_v49 = vld [vmem:[%s20214_s4 + $0x7b4] ss:$8 sps:$4 sm:$0xff]  }
0x4322   :  { %10925 = vmatpush1.bf16.msra.mxu0 %v14580_v36  ;;  %v14596_v36 = vld [vmem:[%s20214_s4 + $0x7b0] ss:$8 sps:$4 sm:$0xff]  }
0x4323   :  { %10926 = vmatprep.subr.bf16.mxu0 %v14581_v40  ;;  %v14597_v40 = vld [vmem:[%s20214_s4 + $0x7c4] ss:$8 sps:$4 sm:$0xff]  }
0x4326   :  { %10927 = vmatpush1.bf16.msra.mxu0 %v14582_v51  ;;  %v14598_v51 = vld [vmem:[%s20214_s4 + $0x7c0] ss:$8 sps:$4 sm:$0xff]  }
0x4327   :  { %10928 = vmatprep.subr.bf16.mxu0 %v14583_v48 }
0x432a   :  { %10929 = vmatpush1.bf16.msra.mxu0 %v14584_v32 }
0x432b   :  { %10930 = vmatprep.subr.bf16.mxu0 %v14585_v5 }
0x432e   :  { %10931 = vmatpush1.bf16.msra.mxu0 %v14586_v23 }
0x432f   :  { %10932 = vmatprep.subr.bf16.mxu0 %v14587_v62 }
0x4332   :  { %10933 = vmatpush1.bf16.msra.mxu0 %v14588_v44 }
0x4333   :  { %10934 = vmatprep.subr.bf16.mxu0 %v14589_v55 }
0x4336   :  { %10935 = vmatpush1.bf16.msra.mxu0 %v14590_v7  ;;  %v12783_v7 = vld [vmem:[%s20209_s10 + $0x18] sm:$0xff] }
0x4337   :  { %10936 = vmatprep.subr.bf16.mxu0 %v14591_v39 }
0x433a   :  { %10937 = vmatpush1.bf16.msra.mxu0 %v14592_v45 }
0x433b   :  { %10938 = vmatprep.subr.bf16.mxu0 %v14593_v54  ;;  %v12784_v54 = vld [vmem:[%s20210_s11 + $0x18] sm:$0xff] }
0x433e   :  { %10939 = vmatpush1.bf16.msra.mxu0 %v14594_v22 }
0x433f   :  { %10940 = vmatprep.subr.bf16.mxu0 %v14595_v49 }
0x4342   :  { %10941 = vmatpush1.bf16.msra.mxu0 %v14596_v36  ;;  %v11161_v36 = vld [vmem:[%s20216_s13] sm:$0xff] }
0x4343   :  { %10942 = vmatprep.subr.bf16.mxu0 %v14597_v40 }
0x4346   :  { %10943 = vmatpush1.bf16.msra.mxu0 %v14598_v51 }
0x4347   :  { %10944 = vmatprep.subr.bf16.mxu0 %v18984_v35 }
0x434a   :  { %10945 = vmatpush1.bf16.msra.mxu0 %v18989_v60 }
0x434b   :  { %10946 = vmatprep.subr.bf16.mxu0 %v18995_v63 }
0x434e   :  { %10947 = vmatpush1.bf16.msra.mxu0 %v19001_v13 }
0x434f   :  { %10948 = vmatprep.subr.bf16.mxu0 %v19007_v30 }
0x4352   :  { %10949 = vmatpush1.bf16.msra.mxu0 %v19013_v16 }
0x4355   :  { %10951 = vmatmul.mubr.bf16.vlgmr.msra.gmra.mrb[20].mxu0 %v19331_v3 }
0x4356   :  { %11091 = vmatprep.mubr.bf16.mxu0 %v20394_v61 }
0x43e8   :  { %v10909_v48 = vpop.f32.mrb[16].mxu0 }
0x43e9   :  { %v10916_v32 = vadd.f32 %v10909_v48, %v20026_v42  ;;  %v10911_v5 = vpop.f32.mrb[17].mxu0 }
0x43ea   :  { %v10917_v35 = vadd.f32 %v10911_v5, %v20029_v33  ;;  %v10913_v23 = vpop.f32.mrb[18].mxu0 }
0x43eb   :  { %v10914_v60 = vpop.f32.mrb[19].mxu0 }
0x4428   :  { %v10952_v62 = vpop.f32.mrb[20].mxu0 }
0x4429   :  { %v10959_v63 = vpack.c.bf16 %v10952_v62, %v10952_v62  ;;  %v10954_v44 = vpop.f32.mrb[21].mxu0 }
0x442a   :  { %v10960_v13 = vpack.c.bf16 %v10954_v44, %v10954_v44  ;;  %v10956_v55 = vpop.f32.mrb[22].mxu0 }
0x442b   :  { %v10962_v30 = vsel %vm210_vm2, %v10959_v63, 0  ;;  %v10957_v16 = vpop.f32.mrb[23].mxu0 }
0x442c   :  { %12779 = vmatprep.subr.msk.bf16.mxu1 %vm210_vm2, %v10960_v13 }
0x442d   :  { %10968 = vmatpush1.bf16.msra.mxu1 %v10962_v30 }
0x442e   :  { %11010 = vmatprep.subr.bf16.mxu1 %v19028_v19 }
0x4430   :  { %12780 = vmatmul.mubr.msk.bf16.vlgmr.msra.gmra.mrb[28].mxu1 %vm206_vm3, %v19035_v41 }
0x4431   :  { %11011 = vmatpush1.bf16.msra.mxu1 %v19040_v11  ;;  %11042 = vmatprep.mubr.bf16.mxu1 %v19232_v10 }
0x4432   :  { %11012 = vmatprep.subr.bf16.mxu1 %v19046_v53 }
0x4435   :  { %11013 = vmatpush1.bf16.msra.mxu1 %v19055_v26 }
0x4436   :  { %11014 = vmatprep.subr.bf16.mxu1 %v19061_v56 }
0x4439   :  { %11015 = vmatpush1.bf16.msra.mxu1 %v19067_v9 }
0x443a   :  { %11016 = vmatprep.subr.bf16.mxu1 %v19073_v4 }
0x443d   :  { %11017 = vmatpush1.bf16.msra.mxu1 %v19079_v1 }
0x443e   :  { %11018 = vmatprep.subr.bf16.mxu1 %v19085_v47 }
0x4441   :  { %11019 = vmatpush1.bf16.msra.mxu1 %v19091_v2 }
0x4442   :  { %11020 = vmatprep.subr.bf16.mxu1 %v19097_v59 }
0x4445   :  { %11021 = vmatpush1.bf16.msra.mxu1 %v19103_v37 }
0x4446   :  { %11022 = vmatprep.subr.bf16.mxu1 %v19109_v24 }
0x4449   :  { %11023 = vmatpush1.bf16.msra.mxu1 %v19115_v52 }
0x444a   :  { %11024 = vmatprep.subr.bf16.mxu1 %v19121_v15 }
0x444d   :  { %11025 = vmatpush1.bf16.msra.mxu1 %v19127_v50 }
0x444e   :  { %11026 = vmatprep.subr.bf16.mxu1 %v19133_v43 }
0x4451   :  { %11027 = vmatpush1.bf16.msra.mxu1 %v19139_v34 }
0x4452   :  { %11028 = vmatprep.subr.bf16.mxu1 %v19145_v8 }
0x4455   :  { %11029 = vmatpush1.bf16.msra.mxu1 %v19151_v57 }
0x4456   :  { %11030 = vmatprep.subr.bf16.mxu1 %v19157_v46 }
0x4459   :  { %11031 = vmatpush1.bf16.msra.mxu1 %v19163_v58 }
0x445a   :  { %11032 = vmatprep.subr.bf16.mxu1 %v19169_v25 }
0x445d   :  { %11033 = vmatpush1.bf16.msra.mxu1 %v19175_v12 }
0x445e   :  { %11034 = vmatprep.subr.bf16.mxu1 %v19181_v21 }
0x4461   :  { %11035 = vmatpush1.bf16.msra.mxu1 %v19187_v27 }
0x4462   :  { %11036 = vmatprep.subr.bf16.mxu1 %v19193_v28  ;;  %v11108_v28 = vpop.xlane.xlu0 %11107 }
0x4465   :  { %11037 = vmatpush1.bf16.msra.mxu1 %v19199_v17 }
0x4466   :  { %11038 = vmatprep.subr.bf16.mxu1 %v19205_v29  ;;  %v11113_v17 = vpop.xlane.xlu0 %11112 }
0x4469   :  { %11039 = vmatpush1.bf16.msra.mxu1 %v19211_v31 }
0x446a   :  { %11040 = vmatprep.subr.bf16.mxu1 %v19217_v6 }
0x446d   :  { %11041 = vmatpush1.bf16.msra.mxu1 %v19223_v20 }
0x4470   :  { %11043 = vmatmul.mubr.bf16.vlgmr.msra.gmra.mrb[32].mxu1 %v19331_v3 }
0x4503   :  { %v11001_v19 = vpop.f32.mrb[28].mxu1 }
0x4504   :  { %v11008_v41 = vadd.f32 %v11001_v19, %v10916_v32  ;;  %v11003_v11 = vpop.f32.mrb[29].mxu1 }
0x4505   :  { %v11009_v53 = vadd.f32 %v11003_v11, %v10917_v35  ;;  %v11005_v26 = vpop.f32.mrb[30].mxu1 }
0x4506   :  { %v11006_v56 = vpop.f32.mrb[31].mxu1 }
0x4543   :  { %v11044_v9 = vpop.f32.mrb[32].mxu1 }
0x4544   :  { %v11051_v4 = vpack.c.bf16 %v11044_v9, %v11044_v9  ;;  %v11046_v1 = vpop.f32.mrb[33].mxu1 }
0x4545   :  { %v11052_v47 = vpack.c.bf16 %v11046_v1, %v11046_v1  ;;  %v11048_v2 = vpop.f32.mrb[34].mxu1 }
0x4546   :  { %v11054_v59 = vsel %vm210_vm2, %v11051_v4, 0  ;;  %v11049_v37 = vpop.f32.mrb[35].mxu1 }
0x4547   :  { %12781 = vmatprep.subr.msk.bf16.mxu0 %vm210_vm2, %v11052_v47 }
0x4548   :  { %11060 = vmatpush1.bf16.msra.mxu0 %v11054_v59 }
0x454b   :  { %12782 = vmatmul.mubr.msk.bf16.vlgmr.msra.gmra.mrb[24].mxu0 %vm206_vm3, %v19346_v18 }
0x454c   :  { %11208 = vmatprep.mubr.bf16.mxu0 %v20394_v61 }
0x461e   :  { %v11093_v24 = vpop.f32.mrb[24].mxu0 }
0x461f   :  { %v11100_v52 = vadd.f32 %v11093_v24, %v11008_v41  ;;  %v11095_v15 = vpop.f32.mrb[25].mxu0 }
0x4620   :  { %v11101_v50 = vadd.f32 %v11095_v15, %v11009_v53  ;;  %v11097_v43 = vpop.f32.mrb[26].mxu0 }
0x4621   :  { %v11102_v34 = vadd.f32 %v11100_v52, %v19457_v38  ;;  %v11098_v8 = vpop.f32.mrb[27].mxu0 }
0x4622   :  { %v11103_v57 = vadd.f32 %v11101_v50, %v19457_v38 }
0x4623   :  { %v11104_v46 = vmax.f32 %v11102_v34, 0.0 }
0x4624   :  { %v11105_v58 = vmax.f32 %v11103_v57, 0.0 }
0x4625   :  { %v11118_v25 = vmul.f32 %v11104_v46, %v11104_v46 }
0x4626   :  { %v11114_v12 = vadd.f32 %v11105_v58, %v11104_v46  ;;  %v11119_v21 = vmul.f32 %v11105_v58, %v11105_v58 }
0x4628   :  { %11115 = vadd.xlane.f32.xlu1 %v11114_v12  ;;  %v11120_v27 = vadd.f32 %v11119_v21, %v11118_v25 }
0x462a   :  { %11121 = vadd.xlane.f32.xlu0 %v11120_v27 }
0x46b5   :  { %v11116_v29 = vpop.xlane.xlu1 %11115 }
0x46b6   :  { %v11117_v31 = vadd.f32 %v11116_v29, %v11108_v28 }
0x46b7   :  { %v11122_v6 = vpop.xlane.xlu0 %11121 }
0x46b8   :  { %v11124_v20 = vmul.f32 0.001953125, %v11117_v31  ;;  %v11123_v10 = vadd.f32 %v11122_v6, %v11113_v17 }
0x46ba   :  { %v11126_v3 = vmul.f32 %v11124_v20, %v11124_v20  ;;  %v11125_v18 = vmul.f32 0.001953125, %v11123_v10 }
0x46bc   :  { %v11127_v42 = vsub.f32 %v11125_v18, %v11126_v3 }
0x46be   :  { %v11128_v33 = vmax.f32 %v11127_v42, 0.0 }
0x46c0   :  { %v11131_v38 = vadd.f32 1e-05, %v11128_v33 }
0x46c2   :  { %14234 = vrsqrt.f32 %v11131_v38 }
0x46cc   :  { %v14235_v39 = vpop.eup %14234 }
0x46cd   :  { %v11133_v45 = vmul.f32 %v14235_v39, %v12783_v7 }
0x46cf   :  { %11140 = vperm.xlu0 %13245, %v11133_v45   ;;  %v11136_v22 = vmul.f32 %v11133_v45, %v11124_v20 }
0x46d1   :  { %v11137_v49 = vsub.f32 %v12784_v54, %v11136_v22 }
0x46d3   :  { %11147 = vperm.xlu0 %13245, %v11137_v49  }
0x46d7   :  { %11164 = vperm.xlu0 %13245, %v11161_v36  }
0x474e   :  { %v11141_v40 = vpop.permute.xlu0 %11140 }
0x474f   :  { %v11143_v51 = vmul.f32 %v11141_v40, %v19462_v14  ;;  %v11144_v48 = vmul.f32 %v11141_v40, %v19464_v0  ;;  %v11154_v32 = vmul.f32 %v11141_v40, %v11104_v46  ;;  %v11155_v5 = vmul.f32 %v11141_v40, %v11105_v58  ;;  %v11160_v14 = vld [vmem:[%s20217_s12] sm:$0xf] }
0x4752   :  { %v11148_v35 = vpop.permute.xlu0 %11147 }
0x4753   :  { %v11150_v23 = vadd.f32 %v11148_v35, %v11143_v51  ;;  %v11151_v60 = vadd.f32 %v11148_v35, %v11144_v48  ;;  %v11156_v62 = vadd.f32 %v11154_v32, %v11148_v35  ;;  %v11157_v63 = vadd.f32 %v11155_v5, %v11148_v35 }
0x4755   :  { %v11153_v44 = vpack.c.bf16 %v11151_v60, %v11151_v60  ;;  %v11152_v13 = vpack.c.bf16 %v11150_v23, %v11150_v23  ;;  %v11159_v55 = vpack.c.bf16 %v11157_v63, %v11157_v63  ;;  %v11158_v16 = vpack.c.bf16 %v11156_v62, %v11156_v62 }
0x4756   :  { %v11165_v19 = vpop.permute.xlu0 %11164 }
0x4757   :  { %12785 = vmatprep.subr.msk.bf16.mxu0 %vm210_vm2, %v11153_v44  ;;  %v11171_v30 = vsel %vm210_vm2, %v11152_v13, 0  ;;  %v11220_v0 = vsel %vm210_vm2, %v11158_v16, 0 }
0x4758   :  { %11177 = vmatpush1.bf16.msra.mxu0 %v11171_v30 }
0x4759   :  { %12787 = vmatprep.subr.msk.bf16.mxu0 %vm210_vm2, %v11159_v55 }
0x475b   :  { %12786 = vmatmul.mubr.msk.bf16.vlgmr.msra.gmra.mrb[28].mxu0 %vm206_vm3, %v11160_v14 }
0x475c   :  { %11226 = vmatpush1.bf16.msra.mxu0 %v11220_v0  ;;  %11257 = vmatprep.mubr.bf16.mxu0 %v20394_v61 }
0x4763   :  { %12788 = vmatmul.mubr.msk.bf16.vlgmr.msra.gmra.mrb[32].mxu0 %vm206_vm3, %v11160_v14 }
0x482e   :  { %v11210_v41 = vpop.f32.mrb[28].mxu0 }
0x482f   :  { %v11211_v11 = vadd.f32 %v11210_v41, %v11165_v19  ;;  %v11212_v53 = vpop.f32.mrb[29].mxu0 }
0x4830   :  { %v11213_v26 = vadd.f32 %v11212_v53, %v11165_v19  ;;  %v11214_v56 = vpop.f32.mrb[30].mxu0 }
0x4831   :  { %11217 = vst [vmem:[%s20218_s14] sm:$0xff] %v11211_v11  ;;  %v11215_v9 = vpop.f32.mrb[31].mxu0 }
0x4832   :  { %11218 = vst [vmem:[%s20218_s14 + $0x8] sm:$0xff] %v11213_v26 }
0x4836   :  { %v11259_v4 = vpop.f32.mrb[32].mxu0 }
0x4837   :  { %v11260_v1 = vadd.f32 %v11259_v4, %v11165_v19  ;;  %v11261_v61 = vpop.f32.mrb[33].mxu0 }
0x4838   :  { %v11262_v47 = vadd.f32 %v11261_v61, %v11165_v19  ;;  %v11263_v2 = vpop.f32.mrb[34].mxu0 }
0x4839   :  { %12789 = vst [vmem:[%s20218_s14 + $0x10] sm:$0xff] %v11260_v1  ;;  %v11264_v59 = vpop.f32.mrb[35].mxu0 }
0x483a   :  { %12790 = vst [vmem:[%s20218_s14 + $0x18] sm:$0xff] %v11262_v47 }

</bundles_post_ra>
